<compile_context>
chip_gen: v6e
topology: v6e:2x2x1
jax: 0.10.0
libtpu: 0.0.40
codegen_flags: <defaults>
</compile_context>

<pallas_src>
import math

import jax
import jax.numpy as jnp
from jax.experimental import pallas as pl
from jax.experimental.pallas import tpu as pltpu


CONV_PAD = 2   # "same" padding for the 3x3, dilation-2 conv
CONV_DIL = 2


# ---------------------------------------------------------------------------
# Fused Pallas kernel: pad -> P x (avgpool + dilated conv + BN + ReLU)
#                      -> concat -> 1x1 conv + BN + ReLU    (per batch element)
# ---------------------------------------------------------------------------

def _make_fused_kernel(kernel_sizes, pads, pmax, H, W, C, Co, Ccat, Cf):
    CP, DIL = CONV_PAD, CONV_DIL
    Hq, Wq = H + 2 * CP, W + 2 * CP        # zero-bordered pooled-map scratch dims
    Hx, Wx = H + 2 * pmax, W + 2 * pmax    # zero-bordered input scratch dims

    def kernel(x_ref, w_ref, bcat_ref, w1_ref, b1_ref, o_ref,
               xpad_ref, pool_ref, col_ref, cat_ref):
        xdt = xpad_ref.dtype

        # ---- stage 0: x tile -> zero-bordered VMEM copy (replaces HBM pad) --
        if pmax > 0:
            xpad_ref[0:pmax, :, :] = jnp.zeros((pmax, Wx, C), xdt)
            xpad_ref[pmax + H:Hx, :, :] = jnp.zeros((pmax, Wx, C), xdt)
            xpad_ref[:, 0:pmax, :] = jnp.zeros((Hx, pmax, C), xdt)
            xpad_ref[:, pmax + W:Wx, :] = jnp.zeros((Hx, pmax, C), xdt)
        xpad_ref[pmax:pmax + H, pmax:pmax + W, :] = x_ref[0]

        # ---- zero only the conv-pad border strips of the pooled-map scratch --
        pool_ref[0:CP, :, :] = jnp.zeros((CP, Wq, C), jnp.float32)
        pool_ref[CP + H:Hq, :, :] = jnp.zeros((CP, Wq, C), jnp.float32)
        pool_ref[:, 0:CP, :] = jnp.zeros((Hq, CP, C), jnp.float32)
        pool_ref[:, CP + W:Wq, :] = jnp.zeros((Hq, CP, C), jnp.float32)

        # iotas for the count_include_pad=False divisor (computed in-kernel)
        row = jax.lax.broadcasted_iota(jnp.int32, (H, W), 0)
        col = jax.lax.broadcasted_iota(jnp.int32, (H, W), 1)

        for pi, (k, p) in enumerate(zip(kernel_sizes, pads)):
            off = pmax - p

            # ---- separable avg-pool: horizontal k-sum, then vertical k-sum --
            hsum = jnp.zeros((H + 2 * p, W, C), jnp.float32)
            for dx in range(k):
                hsum = hsum + xpad_ref[off:off + H + 2 * p,
                                       off + dx:off + dx + W, :].astype(jnp.float32)
            vsum = jnp.zeros((H, W, C), jnp.float32)
            for dy in range(k):
                vsum = vsum + hsum[dy:dy + H, :, :]

            ch = jnp.minimum(row + p, H - 1) - jnp.maximum(row - p, 0) + 1
            cw = jnp.minimum(col + p, W - 1) - jnp.maximum(col - p, 0) + 1
            inv = 1.0 / (ch * cw).astype(jnp.float32)            # (H, W)
            pool_ref[CP:CP + H, CP:CP + W, :] = vsum * inv[:, :, None]

            # ---- im2col of the 9 dilated taps into one (H*W, 9*C) operand ----
            for i in range(3):
                for j in range(3):
                    t = 3 * i + j
                    col_ref[:, :, t * C:(t + 1) * C] = pool_ref[
                        DIL * i:DIL * i + H, DIL * j:DIL * j + W, :]

            # single K = 9*C matmul for this path's dilated 3x3 conv
            a = jnp.dot(col_ref[...].reshape(H * W, 9 * C), w_ref[pi],
                        preferred_element_type=jnp.float32)
            # channel concat expressed as a column block of the cat scratch
            cat_ref[:, pi * Co:(pi + 1) * Co] = a

        # folded BN bias + ReLU for all paths in one lane-dense pass
        cat = jnp.maximum(cat_ref[...] + bcat_ref[...], 0.0)
        # final 1x1 conv as ONE (H*W, Ccat) x (Ccat, Cf) matmul, + BN + ReLU
        y = jnp.dot(cat, w1_ref[...], preferred_element_type=jnp.float32)
        y = jnp.maximum(y + b1_ref[...], 0.0)
        o_ref[0] = y.reshape(H, W, Cf).astype(o_ref.dtype)

    return kernel


def context_pooling_fused(x_nhwc, kernel_sizes, w_im2col, bcat, w1, b1):
    """x_nhwc: (N, H, W, C) -> (N, H, W, Cf), fully fused per batch element."""
    N, H, W, C = x_nhwc.shape
    P, K9C, Co = w_im2col.shape
    Ccat = bcat.shape[-1]
    Cf = w1.shape[-1]
    pads = tuple((k - 1) // 2 for k in kernel_sizes)
    pmax = max(pads)

    flops = 2 * N * H * W * (9 * C * Co * P + Ccat * Cf)
    itemsize = jnp.dtype(x_nhwc.dtype).itemsize
    bytes_accessed = (N * H * W * C * itemsize + N * H * W * Cf * itemsize
                      + 4 * (w_im2col.size + bcat.size + w1.size + b1.size))

    return pl.pallas_call(
        _make_fused_kernel(kernel_sizes, pads, pmax, H, W, C, Co, Ccat, Cf),
        grid=(N,),
        in_specs=[
            pl.BlockSpec((1, H, W, C), lambda n: (n, 0, 0, 0)),
            pl.BlockSpec((P, K9C, Co), lambda n: (0, 0, 0)),
            pl.BlockSpec((1, Ccat), lambda n: (0, 0)),
            pl.BlockSpec((Ccat, Cf), lambda n: (0, 0)),
            pl.BlockSpec((1, Cf), lambda n: (0, 0)),
        ],
        out_specs=pl.BlockSpec((1, H, W, Cf), lambda n: (n, 0, 0, 0)),
        out_shape=jax.ShapeDtypeStruct((N, H, W, Cf), x_nhwc.dtype),
        scratch_shapes=[
            pltpu.VMEM((H + 2 * pmax, W + 2 * pmax, C), x_nhwc.dtype),  # padded x
            pltpu.VMEM((H + 2 * CONV_PAD, W + 2 * CONV_PAD, C), jnp.float32),  # pooled
            pltpu.VMEM((H, W, 9 * C), jnp.float32),                     # im2col
            pltpu.VMEM((H * W, Ccat), jnp.float32),                     # concat
        ],
        compiler_params=pltpu.CompilerParams(
            dimension_semantics=("parallel",),
            vmem_limit_bytes=64 * 1024 * 1024),
        cost_estimate=pl.CostEstimate(flops=flops, transcendentals=0,
                                      bytes_accessed=bytes_accessed),
    )(x_nhwc, w_im2col, bcat, w1, b1)


# ---------------------------------------------------------------------------
# Module wrapper (parameters, BN folding, layout transposes)
# ---------------------------------------------------------------------------

class ContextPoolingPallas:
    """Pallas/JAX port of contextPooling (inference / eval semantics)."""

    def __init__(self, in_channels, kernel_sizes, key, eps=1e-5):
        P = len(kernel_sizes)
        assert in_channels % P == 0
        self.in_channels = in_channels
        self.kernel_sizes = tuple(int(k) for k in kernel_sizes)
        self.P = P
        self.Co = in_channels // P          # per-path conv output channels
        self.eps = eps

        keys = jax.random.split(key, P + 1)

        # Per-path Conv2d(in_channels, Co, 3, pad=2, dilation=2, bias=False),
        # kaiming-normal init, stored HWIO = (3, 3, Cin, Co).
        std3 = math.sqrt(2.0 / (in_channels * 3 * 3))
        self.raw_w = [jax.random.normal(keys[i], (3, 3, in_channels, self.Co),
                                        jnp.float32) * std3 for i in range(P)]
        # BatchNorm2d(Co): weight=1, bias=0 (per _init_weight), running stats
        # mean=0 / var=1  ->  eval-mode BN.
        self.bn_gamma = jnp.ones((self.Co,), jnp.float32)
        self.bn_beta = jnp.zeros((self.Co,), jnp.float32)
        self.bn_mean = jnp.zeros((self.Co,), jnp.float32)
        self.bn_var = jnp.ones((self.Co,), jnp.float32)

        # conv1x1: Conv2d(P*Co, in_channels, 1, bias=False) + BN, stored (Ccat, Cf).
        Cf = in_channels
        std1 = math.sqrt(2.0 / (P * self.Co))
        self.raw_w1 = jax.random.normal(keys[P], (P * self.Co, Cf), jnp.float32) * std1
        self.bn1_gamma = jnp.ones((Cf,), jnp.float32)
        self.bn1_beta = jnp.zeros((Cf,), jnp.float32)
        self.bn1_mean = jnp.zeros((Cf,), jnp.float32)
        self.bn1_var = jnp.ones((Cf,), jnp.float32)

        # Fold eval-mode BN into conv weight scale + bias; reshape the dilated
        # 3x3 weights into im2col layout (9*Cin, Co), tap-major to match the
        # kernel's (H, W, 9*C) column ordering.
        s3 = self.bn_gamma / jnp.sqrt(self.bn_var + eps)                  # (Co,)
        b3 = self.bn_beta - self.bn_mean * s3
        self.w_im2col = jnp.stack(
            [(w * s3).reshape(9 * in_channels, self.Co) for w in self.raw_w])
        self.bcat = jnp.concatenate([b3] * P).reshape(1, P * self.Co)     # (1, Ccat)

        s1 = self.bn1_gamma / jnp.sqrt(self.bn1_var + eps)                # (Cf,)
        b1 = self.bn1_beta - self.bn1_mean * s1
        self.w1_folded = self.raw_w1 * s1                                 # (Ccat, Cf)
        self.b1 = b1.reshape(1, Cf)
        # TODO(synk): training-mode BatchNorm (batch statistics) not implemented;
        # eval-mode running-stats BN is folded into the conv scale/bias above.

    def __call__(self, x_list):
        x = x_list[0]                                    # (N, C, H, W)
        xh = jnp.transpose(x, (0, 2, 3, 1))              # NHWC: channels lane-dense
        y = context_pooling_fused(xh, self.kernel_sizes, self.w_im2col,
                                  self.bcat, self.w1_folded, self.b1)
        return [jnp.transpose(y, (0, 3, 1, 2))]          # back to NCHW


# ---------------------------------------------------------------------------
# Pure-JAX reference (independent of the BN folding) for correctness check
# ---------------------------------------------------------------------------

def _reference_forward(m, x_nchw):
    x = jnp.transpose(x_nchw, (0, 2, 3, 1)).astype(jnp.float32)   # NHWC
    N, H, W, _ = x.shape
    ones = jnp.ones((N, H, W, 1), jnp.float32)
    outs = []
    for idx, k in enumerate(m.kernel_sizes):
        p = (k - 1) // 2
        pad = ((0, 0), (p, p), (p, p), (0, 0))
        s = jax.lax.reduce_window(x, 0.0, jax.lax.add, (1, k, k, 1),
                                  (1, 1, 1, 1), pad)
        c = jax.lax.reduce_window(ones, 0.0, jax.lax.add, (1, k, k, 1),
                                  (1, 1, 1, 1), pad)
        pooled = s / c                                   # count_include_pad=False
        y = jax.lax.conv_general_dilated(
            pooled, m.raw_w[idx], window_strides=(1, 1),
            padding=((CONV_PAD, CONV_PAD), (CONV_PAD, CONV_PAD)),
            rhs_dilation=(CONV_DIL, CONV_DIL),
            dimension_numbers=("NHWC", "HWIO", "NHWC"))
        y = (y - m.bn_mean) / jnp.sqrt(m.bn_var + m.eps) * m.bn_gamma + m.bn_beta
        outs.append(jnp.maximum(y, 0.0))
    cat = jnp.concatenate(outs, axis=-1)
    z = jnp.einsum("nhwc,cf->nhwf", cat, m.raw_w1)
    z = (z - m.bn1_mean) / jnp.sqrt(m.bn1_var + m.eps) * m.bn1_gamma + m.bn1_beta
    z = jnp.maximum(z, 0.0)
    return jnp.transpose(z, (0, 3, 1, 2)).astype(x_nchw.dtype)


# ---------------------------------------------------------------------------
# Main
# ---------------------------------------------------------------------------

if __name__ == "__main__":
    rng = jax.random.PRNGKey(0)
    k_param, k_x = jax.random.split(rng)

    batch, channels, spatial = 2, 32, 16
    kernel_sizes = (3, 5)        # cfg.MODEL.TRANSFORMER.KERNEL_SIZES (odd sizes)

    module = ContextPoolingPallas(channels, kernel_sizes, k_param)
    x = jax.random.normal(k_x, (batch, channels, spatial, spatial), jnp.float32)

    out = module([x])[0]
    out = jax.block_until_ready(out)

    ref = _reference_forward(module, x)
    assert out.shape == (batch, channels, spatial, spatial)
    assert jnp.allclose(out, ref, atol=1e-3, rtol=1e-3), "mismatch vs reference"

    print("KERNEL_OK")
</pallas_src>

<mosaic_0001>
module attributes {stable_mosaic.version = 11 : i64} {
  func.func @kernel(%arg0: i32, %arg1: memref<1x16x16x32xf32, #tpu.memory_space<vmem>>, %arg2: memref<2x288x16xf32, #tpu.memory_space<vmem>>, %arg3: memref<1x32xf32, #tpu.memory_space<vmem>>, %arg4: memref<32x32xf32, #tpu.memory_space<vmem>>, %arg5: memref<1x32xf32, #tpu.memory_space<vmem>>, %arg6: memref<1x16x16x32xf32, #tpu.memory_space<vmem>>, %arg7: memref<20x20x32xf32, #tpu.memory_space<vmem>>, %arg8: memref<20x20x32xf32, #tpu.memory_space<vmem>>, %arg9: memref<16x16x288xf32, #tpu.memory_space<vmem>>, %arg10: memref<256x32xf32, #tpu.memory_space<vmem>>) attributes {dimension_semantics = [#tpu.dimension_semantics<parallel>], iteration_bounds = array<i64: 2>, scalar_prefetch = 0 : i64, scratch_operands = 4 : i64, tpu.core_type = #tpu.core_type<tc>, window_params = [{transform_indices = @transform_0, window_bounds = array<i64: 1, 16, 16, 32>}, {pipeline_mode = #tpu.pipeline_mode<synchronous>, transform_indices = @transform_1, window_bounds = array<i64: 2, 288, 16>}, {pipeline_mode = #tpu.pipeline_mode<synchronous>, transform_indices = @transform_2, window_bounds = array<i64: 1, 32>}, {pipeline_mode = #tpu.pipeline_mode<synchronous>, transform_indices = @transform_3, window_bounds = array<i64: 32, 32>}, {pipeline_mode = #tpu.pipeline_mode<synchronous>, transform_indices = @transform_4, window_bounds = array<i64: 1, 32>}, {transform_indices = @transform_5, window_bounds = array<i64: 1, 16, 16, 32>}]} {
    %cst = arith.constant 0.000000e+00 : f32
    %0 = vector.broadcast %cst : f32 to vector<2x20x32xf32>
    %c0 = arith.constant 0 : index
    %c0_0 = arith.constant 0 : index
    %c0_1 = arith.constant 0 : index
    %1 = vector.load %arg7[%c0, %c0_0, %c0_1] : memref<20x20x32xf32, #tpu.memory_space<vmem>>, vector<2x20x32xf32>
    tpu.vector_store %arg7[%c0, %c0_0, %c0_1], %0 {strides = array<i32>} : memref<20x20x32xf32, #tpu.memory_space<vmem>>, vector<2x20x32xf32>,
    %cst_2 = arith.constant 0.000000e+00 : f32
    %2 = vector.broadcast %cst_2 : f32 to vector<2x20x32xf32>
    %c18 = arith.constant 18 : index
    %c0_3 = arith.constant 0 : index
    %c0_4 = arith.constant 0 : index
    %3 = vector.load %arg7[%c18, %c0_3, %c0_4] : memref<20x20x32xf32, #tpu.memory_space<vmem>>, vector<2x20x32xf32>
    tpu.vector_store %arg7[%c18, %c0_3, %c0_4], %2 {strides = array<i32>} : memref<20x20x32xf32, #tpu.memory_space<vmem>>, vector<2x20x32xf32>,
    %cst_5 = arith.constant 0.000000e+00 : f32
    %4 = vector.broadcast %cst_5 : f32 to vector<20x2x32xf32>
    %c0_6 = arith.constant 0 : index
    %c0_7 = arith.constant 0 : index
    %c0_8 = arith.constant 0 : index
    %5 = vector.load %arg7[%c0_6, %c0_7, %c0_8] : memref<20x20x32xf32, #tpu.memory_space<vmem>>, vector<20x2x32xf32>
    tpu.vector_store %arg7[%c0_6, %c0_7, %c0_8], %4 {strides = array<i32>} : memref<20x20x32xf32, #tpu.memory_space<vmem>>, vector<20x2x32xf32>,
    %cst_9 = arith.constant 0.000000e+00 : f32
    %6 = vector.broadcast %cst_9 : f32 to vector<20x2x32xf32>
    %c0_10 = arith.constant 0 : index
    %c18_11 = arith.constant 18 : index
    %c0_12 = arith.constant 0 : index
    %7 = vector.load %arg7[%c0_10, %c18_11, %c0_12] : memref<20x20x32xf32, #tpu.memory_space<vmem>>, vector<20x2x32xf32>
    tpu.vector_store %arg7[%c0_10, %c18_11, %c0_12], %6 {strides = array<i32>} : memref<20x20x32xf32, #tpu.memory_space<vmem>>, vector<20x2x32xf32>,
    %c0_13 = arith.constant 0 : index
    %c0_14 = arith.constant 0 : index
    %c0_15 = arith.constant 0 : index
    %c0_16 = arith.constant 0 : index
    %8 = vector.load %arg1[%c0_13, %c0_14, %c0_15, %c0_16] : memref<1x16x16x32xf32, #tpu.memory_space<vmem>>, vector<1x16x16x32xf32>
    %9 = vector.shape_cast %8 : vector<1x16x16x32xf32> to vector<16x16x32xf32>
    %c2 = arith.constant 2 : index
    %c2_17 = arith.constant 2 : index
    %c0_18 = arith.constant 0 : index
    %10 = vector.load %arg7[%c2, %c2_17, %c0_18] : memref<20x20x32xf32, #tpu.memory_space<vmem>>, vector<16x16x32xf32>
    tpu.vector_store %arg7[%c2, %c2_17, %c0_18], %9 {strides = array<i32>} : memref<20x20x32xf32, #tpu.memory_space<vmem>>, vector<16x16x32xf32>,
    %cst_19 = arith.constant 0.000000e+00 : f32
    %11 = vector.broadcast %cst_19 : f32 to vector<2x20x32xf32>
    %c0_20 = arith.constant 0 : index
    %c0_21 = arith.constant 0 : index
    %c0_22 = arith.constant 0 : index
    %12 = vector.load %arg8[%c0_20, %c0_21, %c0_22] : memref<20x20x32xf32, #tpu.memory_space<vmem>>, vector<2x20x32xf32>
    tpu.vector_store %arg8[%c0_20, %c0_21, %c0_22], %11 {strides = array<i32>} : memref<20x20x32xf32, #tpu.memory_space<vmem>>, vector<2x20x32xf32>,
    %cst_23 = arith.constant 0.000000e+00 : f32
    %13 = vector.broadcast %cst_23 : f32 to vector<2x20x32xf32>
    %c18_24 = arith.constant 18 : index
    %c0_25 = arith.constant 0 : index
    %c0_26 = arith.constant 0 : index
    %14 = vector.load %arg8[%c18_24, %c0_25, %c0_26] : memref<20x20x32xf32, #tpu.memory_space<vmem>>, vector<2x20x32xf32>
    tpu.vector_store %arg8[%c18_24, %c0_25, %c0_26], %13 {strides = array<i32>} : memref<20x20x32xf32, #tpu.memory_space<vmem>>, vector<2x20x32xf32>,
    %cst_27 = arith.constant 0.000000e+00 : f32
    %15 = vector.broadcast %cst_27 : f32 to vector<20x2x32xf32>
    %c0_28 = arith.constant 0 : index
    %c0_29 = arith.constant 0 : index
    %c0_30 = arith.constant 0 : index
    %16 = vector.load %arg8[%c0_28, %c0_29, %c0_30] : memref<20x20x32xf32, #tpu.memory_space<vmem>>, vector<20x2x32xf32>
    tpu.vector_store %arg8[%c0_28, %c0_29, %c0_30], %15 {strides = array<i32>} : memref<20x20x32xf32, #tpu.memory_space<vmem>>, vector<20x2x32xf32>,
    %cst_31 = arith.constant 0.000000e+00 : f32
    %17 = vector.broadcast %cst_31 : f32 to vector<20x2x32xf32>
    %c0_32 = arith.constant 0 : index
    %c18_33 = arith.constant 18 : index
    %c0_34 = arith.constant 0 : index
    %18 = vector.load %arg8[%c0_32, %c18_33, %c0_34] : memref<20x20x32xf32, #tpu.memory_space<vmem>>, vector<20x2x32xf32>
    tpu.vector_store %arg8[%c0_32, %c18_33, %c0_34], %17 {strides = array<i32>} : memref<20x20x32xf32, #tpu.memory_space<vmem>>, vector<20x2x32xf32>,
    %19 = tpu.iota {dimensions = array<i32: 0>} : vector<16x16xi32>
    %20 = tpu.iota {dimensions = array<i32: 1>} : vector<16x16xi32>
    %cst_35 = arith.constant 0.000000e+00 : f32
    %21 = vector.broadcast %cst_35 : f32 to vector<18x16x32xf32>
    %c1 = arith.constant 1 : index
    %c1_36 = arith.constant 1 : index
    %c0_37 = arith.constant 0 : index
    %22 = vector.load %arg7[%c1, %c1_36, %c0_37] : memref<20x20x32xf32, #tpu.memory_space<vmem>>, vector<18x16x32xf32>
    %23 = arith.addf %21, %22 : vector<18x16x32xf32>
    %c1_38 = arith.constant 1 : index
    %c2_39 = arith.constant 2 : index
    %c0_40 = arith.constant 0 : index
    %24 = vector.load %arg7[%c1_38, %c2_39, %c0_40] : memref<20x20x32xf32, #tpu.memory_space<vmem>>, vector<18x16x32xf32>
    %25 = arith.addf %23, %24 : vector<18x16x32xf32>
    %c1_41 = arith.constant 1 : index
    %c3 = arith.constant 3 : index
    %c0_42 = arith.constant 0 : index
    %26 = vector.load %arg7[%c1_41, %c3, %c0_42] : memref<20x20x32xf32, #tpu.memory_space<vmem>>, vector<18x16x32xf32>
    %27 = arith.addf %25, %26 : vector<18x16x32xf32>
    %cst_43 = arith.constant 0.000000e+00 : f32
    %28 = vector.broadcast %cst_43 : f32 to vector<16x16x32xf32>
    %29 = vector.extract_strided_slice %27 {offsets = [0, 0, 0], sizes = [16, 16, 32], strides = [1, 1, 1]} : vector<18x16x32xf32> to vector<16x16x32xf32>
    %30 = arith.addf %28, %29 : vector<16x16x32xf32>
    %31 = vector.extract_strided_slice %27 {offsets = [1, 0, 0], sizes = [16, 16, 32], strides = [1, 1, 1]} : vector<18x16x32xf32> to vector<16x16x32xf32>
    %32 = arith.addf %30, %31 : vector<16x16x32xf32>
    %33 = vector.extract_strided_slice %27 {offsets = [2, 0, 0], sizes = [16, 16, 32], strides = [1, 1, 1]} : vector<18x16x32xf32> to vector<16x16x32xf32>
    %34 = arith.addf %32, %33 : vector<16x16x32xf32>
    %c1_i32 = arith.constant 1 : i32
    %35 = vector.broadcast %c1_i32 : i32 to vector<16x16xi32>
    %36 = arith.addi %19, %35 : vector<16x16xi32>
    %c15_i32 = arith.constant 15 : i32
    %37 = vector.broadcast %c15_i32 : i32 to vector<16x16xi32>
    %38 = arith.minsi %36, %37 : vector<16x16xi32>
    %c1_i32_44 = arith.constant 1 : i32
    %39 = vector.broadcast %c1_i32_44 : i32 to vector<16x16xi32>
    %40 = arith.subi %19, %39 : vector<16x16xi32>
    %c0_i32 = arith.constant 0 : i32
    %41 = vector.broadcast %c0_i32 : i32 to vector<16x16xi32>
    %42 = arith.maxsi %40, %41 : vector<16x16xi32>
    %43 = arith.subi %38, %42 : vector<16x16xi32>
    %c1_i32_45 = arith.constant 1 : i32
    %44 = vector.broadcast %c1_i32_45 : i32 to vector<16x16xi32>
    %45 = arith.addi %43, %44 : vector<16x16xi32>
    %c1_i32_46 = arith.constant 1 : i32
    %46 = vector.broadcast %c1_i32_46 : i32 to vector<16x16xi32>
    %47 = arith.addi %20, %46 : vector<16x16xi32>
    %c15_i32_47 = arith.constant 15 : i32
    %48 = vector.broadcast %c15_i32_47 : i32 to vector<16x16xi32>
    %49 = arith.minsi %47, %48 : vector<16x16xi32>
    %c1_i32_48 = arith.constant 1 : i32
    %50 = vector.broadcast %c1_i32_48 : i32 to vector<16x16xi32>
    %51 = arith.subi %20, %50 : vector<16x16xi32>
    %c0_i32_49 = arith.constant 0 : i32
    %52 = vector.broadcast %c0_i32_49 : i32 to vector<16x16xi32>
    %53 = arith.maxsi %51, %52 : vector<16x16xi32>
    %54 = arith.subi %49, %53 : vector<16x16xi32>
    %c1_i32_50 = arith.constant 1 : i32
    %55 = vector.broadcast %c1_i32_50 : i32 to vector<16x16xi32>
    %56 = arith.addi %54, %55 : vector<16x16xi32>
    %57 = arith.muli %45, %56 : vector<16x16xi32>
    %58 = arith.sitofp %57 : vector<16x16xi32> to vector<16x16xf32>
    %cst_51 = arith.constant 1.000000e+00 : f32
    %59 = vector.broadcast %cst_51 : f32 to vector<16x16xf32>
    %60 = arith.divf %59, %58 : vector<16x16xf32>
    %61 = vector.shape_cast %60 : vector<16x16xf32> to vector<16x16x1xf32>
    %62 = vector.broadcast %61 : vector<16x16x1xf32> to vector<16x16x32xf32>
    %63 = arith.mulf %34, %62 : vector<16x16x32xf32>
    %c2_52 = arith.constant 2 : index
    %c2_53 = arith.constant 2 : index
    %c0_54 = arith.constant 0 : index
    %64 = vector.load %arg8[%c2_52, %c2_53, %c0_54] : memref<20x20x32xf32, #tpu.memory_space<vmem>>, vector<16x16x32xf32>
    tpu.vector_store %arg8[%c2_52, %c2_53, %c0_54], %63 {strides = array<i32>} : memref<20x20x32xf32, #tpu.memory_space<vmem>>, vector<16x16x32xf32>,
    %c0_55 = arith.constant 0 : index
    %c0_56 = arith.constant 0 : index
    %c0_57 = arith.constant 0 : index
    %65 = vector.load %arg8[%c0_55, %c0_56, %c0_57] : memref<20x20x32xf32, #tpu.memory_space<vmem>>, vector<16x16x32xf32>
    %c0_58 = arith.constant 0 : index
    %c0_59 = arith.constant 0 : index
    %c0_60 = arith.constant 0 : index
    %66 = vector.load %arg9[%c0_58, %c0_59, %c0_60] : memref<16x16x288xf32, #tpu.memory_space<vmem>>, vector<16x16x32xf32>
    tpu.vector_store %arg9[%c0_58, %c0_59, %c0_60], %65 {strides = array<i32>} : memref<16x16x288xf32, #tpu.memory_space<vmem>>, vector<16x16x32xf32>,
    %c0_61 = arith.constant 0 : index
    %c2_62 = arith.constant 2 : index
    %c0_63 = arith.constant 0 : index
    %67 = vector.load %arg8[%c0_61, %c2_62, %c0_63] : memref<20x20x32xf32, #tpu.memory_space<vmem>>, vector<16x16x32xf32>
    %c0_64 = arith.constant 0 : index
    %c0_65 = arith.constant 0 : index
    %c32 = arith.constant 32 : index
    %68 = vector.load %arg9[%c0_64, %c0_65, %c32] : memref<16x16x288xf32, #tpu.memory_space<vmem>>, vector<16x16x32xf32>
    tpu.vector_store %arg9[%c0_64, %c0_65, %c32], %67 {strides = array<i32>} : memref<16x16x288xf32, #tpu.memory_space<vmem>>, vector<16x16x32xf32>,
    %c0_66 = arith.constant 0 : index
    %c4 = arith.constant 4 : index
    %c0_67 = arith.constant 0 : index
    %69 = vector.load %arg8[%c0_66, %c4, %c0_67] : memref<20x20x32xf32, #tpu.memory_space<vmem>>, vector<16x16x32xf32>
    %c0_68 = arith.constant 0 : index
    %c0_69 = arith.constant 0 : index
    %c64 = arith.constant 64 : index
    %70 = vector.load %arg9[%c0_68, %c0_69, %c64] : memref<16x16x288xf32, #tpu.memory_space<vmem>>, vector<16x16x32xf32>
    tpu.vector_store %arg9[%c0_68, %c0_69, %c64], %69 {strides = array<i32>} : memref<16x16x288xf32, #tpu.memory_space<vmem>>, vector<16x16x32xf32>,
    %c2_70 = arith.constant 2 : index
    %c0_71 = arith.constant 0 : index
    %c0_72 = arith.constant 0 : index
    %71 = vector.load %arg8[%c2_70, %c0_71, %c0_72] : memref<20x20x32xf32, #tpu.memory_space<vmem>>, vector<16x16x32xf32>
    %c0_73 = arith.constant 0 : index
    %c0_74 = arith.constant 0 : index
    %c96 = arith.constant 96 : index
    %72 = vector.load %arg9[%c0_73, %c0_74, %c96] : memref<16x16x288xf32, #tpu.memory_space<vmem>>, vector<16x16x32xf32>
    tpu.vector_store %arg9[%c0_73, %c0_74, %c96], %71 {strides = array<i32>} : memref<16x16x288xf32, #tpu.memory_space<vmem>>, vector<16x16x32xf32>,
    %c2_75 = arith.constant 2 : index
    %c2_76 = arith.constant 2 : index
    %c0_77 = arith.constant 0 : index
    %73 = vector.load %arg8[%c2_75, %c2_76, %c0_77] : memref<20x20x32xf32, #tpu.memory_space<vmem>>, vector<16x16x32xf32>
    %c0_78 = arith.constant 0 : index
    %c0_79 = arith.constant 0 : index
    %c128 = arith.constant 128 : index
    %74 = vector.load %arg9[%c0_78, %c0_79, %c128] : memref<16x16x288xf32, #tpu.memory_space<vmem>>, vector<16x16x32xf32>
    tpu.vector_store %arg9[%c0_78, %c0_79, %c128], %73 {strides = array<i32>} : memref<16x16x288xf32, #tpu.memory_space<vmem>>, vector<16x16x32xf32>,
    %c2_80 = arith.constant 2 : index
    %c4_81 = arith.constant 4 : index
    %c0_82 = arith.constant 0 : index
    %75 = vector.load %arg8[%c2_80, %c4_81, %c0_82] : memref<20x20x32xf32, #tpu.memory_space<vmem>>, vector<16x16x32xf32>
    %c0_83 = arith.constant 0 : index
    %c0_84 = arith.constant 0 : index
    %c160 = arith.constant 160 : index
    %76 = vector.load %arg9[%c0_83, %c0_84, %c160] : memref<16x16x288xf32, #tpu.memory_space<vmem>>, vector<16x16x32xf32>
    tpu.vector_store %arg9[%c0_83, %c0_84, %c160], %75 {strides = array<i32>} : memref<16x16x288xf32, #tpu.memory_space<vmem>>, vector<16x16x32xf32>,
    %c4_85 = arith.constant 4 : index
    %c0_86 = arith.constant 0 : index
    %c0_87 = arith.constant 0 : index
    %77 = vector.load %arg8[%c4_85, %c0_86, %c0_87] : memref<20x20x32xf32, #tpu.memory_space<vmem>>, vector<16x16x32xf32>
    %c0_88 = arith.constant 0 : index
    %c0_89 = arith.constant 0 : index
    %c192 = arith.constant 192 : index
    %78 = vector.load %arg9[%c0_88, %c0_89, %c192] : memref<16x16x288xf32, #tpu.memory_space<vmem>>, vector<16x16x32xf32>
    tpu.vector_store %arg9[%c0_88, %c0_89, %c192], %77 {strides = array<i32>} : memref<16x16x288xf32, #tpu.memory_space<vmem>>, vector<16x16x32xf32>,
    %c4_90 = arith.constant 4 : index
    %c2_91 = arith.constant 2 : index
    %c0_92 = arith.constant 0 : index
    %79 = vector.load %arg8[%c4_90, %c2_91, %c0_92] : memref<20x20x32xf32, #tpu.memory_space<vmem>>, vector<16x16x32xf32>
    %c0_93 = arith.constant 0 : index
    %c0_94 = arith.constant 0 : index
    %c224 = arith.constant 224 : index
    %80 = vector.load %arg9[%c0_93, %c0_94, %c224] : memref<16x16x288xf32, #tpu.memory_space<vmem>>, vector<16x16x32xf32>
    tpu.vector_store %arg9[%c0_93, %c0_94, %c224], %79 {strides = array<i32>} : memref<16x16x288xf32, #tpu.memory_space<vmem>>, vector<16x16x32xf32>,
    %c4_95 = arith.constant 4 : index
    %c4_96 = arith.constant 4 : index
    %c0_97 = arith.constant 0 : index
    %81 = vector.load %arg8[%c4_95, %c4_96, %c0_97] : memref<20x20x32xf32, #tpu.memory_space<vmem>>, vector<16x16x32xf32>
    %c0_98 = arith.constant 0 : index
    %c0_99 = arith.constant 0 : index
    %c256 = arith.constant 256 : index
    %82 = vector.load %arg9[%c0_98, %c0_99, %c256] : memref<16x16x288xf32, #tpu.memory_space<vmem>>, vector<16x16x32xf32>
    tpu.vector_store %arg9[%c0_98, %c0_99, %c256], %81 {strides = array<i32>} : memref<16x16x288xf32, #tpu.memory_space<vmem>>, vector<16x16x32xf32>,
    %c0_100 = arith.constant 0 : index
    %c0_101 = arith.constant 0 : index
    %c0_102 = arith.constant 0 : index
    %83 = vector.load %arg9[%c0_100, %c0_101, %c0_102] : memref<16x16x288xf32, #tpu.memory_space<vmem>>, vector<16x16x288xf32>
    %84 = vector.shape_cast %83 : vector<16x16x288xf32> to vector<256x288xf32>
    %c0_103 = arith.constant 0 : index
    %c0_104 = arith.constant 0 : index
    %c0_105 = arith.constant 0 : index
    %85 = vector.load %arg2[%c0_103, %c0_104, %c0_105] : memref<2x288x16xf32, #tpu.memory_space<vmem>>, vector<1x288x16xf32>
    %86 = vector.shape_cast %85 : vector<1x288x16xf32> to vector<288x16xf32>
    %cst_106 = arith.constant dense<0.000000e+00> : vector<256x16xf32>
    %87 = tpu.matmul %84, %86, %cst_106 {dimension_numbers = #tpu.dot_dimension_numbers<[1], [0], [0], [1], [0, 0, 1, 1], [], []>} : vector<256x288xf32>, vector<288x16xf32>, vector<256x16xf32> -> vector<256x16xf32>
    %c0_107 = arith.constant 0 : index
    %c0_108 = arith.constant 0 : index
    %88 = vector.load %arg10[%c0_107, %c0_108] : memref<256x32xf32, #tpu.memory_space<vmem>>, vector<256x16xf32>
    tpu.vector_store %arg10[%c0_107, %c0_108], %87 {strides = array<i32>} : memref<256x32xf32, #tpu.memory_space<vmem>>, vector<256x16xf32>,
    %cst_109 = arith.constant 0.000000e+00 : f32
    %89 = vector.broadcast %cst_109 : f32 to vector<20x16x32xf32>
    %c0_110 = arith.constant 0 : index
    %c0_111 = arith.constant 0 : index
    %c0_112 = arith.constant 0 : index
    %90 = vector.load %arg7[%c0_110, %c0_111, %c0_112] : memref<20x20x32xf32, #tpu.memory_space<vmem>>, vector<20x16x32xf32>
    %91 = arith.addf %89, %90 : vector<20x16x32xf32>
    %c0_113 = arith.constant 0 : index
    %c1_114 = arith.constant 1 : index
    %c0_115 = arith.constant 0 : index
    %92 = vector.load %arg7[%c0_113, %c1_114, %c0_115] : memref<20x20x32xf32, #tpu.memory_space<vmem>>, vector<20x16x32xf32>
    %93 = arith.addf %91, %92 : vector<20x16x32xf32>
    %c0_116 = arith.constant 0 : index
    %c2_117 = arith.constant 2 : index
    %c0_118 = arith.constant 0 : index
    %94 = vector.load %arg7[%c0_116, %c2_117, %c0_118] : memref<20x20x32xf32, #tpu.memory_space<vmem>>, vector<20x16x32xf32>
    %95 = arith.addf %93, %94 : vector<20x16x32xf32>
    %c0_119 = arith.constant 0 : index
    %c3_120 = arith.constant 3 : index
    %c0_121 = arith.constant 0 : index
    %96 = vector.load %arg7[%c0_119, %c3_120, %c0_121] : memref<20x20x32xf32, #tpu.memory_space<vmem>>, vector<20x16x32xf32>
    %97 = arith.addf %95, %96 : vector<20x16x32xf32>
    %c0_122 = arith.constant 0 : index
    %c4_123 = arith.constant 4 : index
    %c0_124 = arith.constant 0 : index
    %98 = vector.load %arg7[%c0_122, %c4_123, %c0_124] : memref<20x20x32xf32, #tpu.memory_space<vmem>>, vector<20x16x32xf32>
    %99 = arith.addf %97, %98 : vector<20x16x32xf32>
    %cst_125 = arith.constant 0.000000e+00 : f32
    %100 = vector.broadcast %cst_125 : f32 to vector<16x16x32xf32>
    %101 = vector.extract_strided_slice %99 {offsets = [0, 0, 0], sizes = [16, 16, 32], strides = [1, 1, 1]} : vector<20x16x32xf32> to vector<16x16x32xf32>
    %102 = arith.addf %100, %101 : vector<16x16x32xf32>
    %103 = vector.extract_strided_slice %99 {offsets = [1, 0, 0], sizes = [16, 16, 32], strides = [1, 1, 1]} : vector<20x16x32xf32> to vector<16x16x32xf32>
    %104 = arith.addf %102, %103 : vector<16x16x32xf32>
    %105 = vector.extract_strided_slice %99 {offsets = [2, 0, 0], sizes = [16, 16, 32], strides = [1, 1, 1]} : vector<20x16x32xf32> to vector<16x16x32xf32>
    %106 = arith.addf %104, %105 : vector<16x16x32xf32>
    %107 = vector.extract_strided_slice %99 {offsets = [3, 0, 0], sizes = [16, 16, 32], strides = [1, 1, 1]} : vector<20x16x32xf32> to vector<16x16x32xf32>
    %108 = arith.addf %106, %107 : vector<16x16x32xf32>
    %109 = vector.extract_strided_slice %99 {offsets = [4, 0, 0], sizes = [16, 16, 32], strides = [1, 1, 1]} : vector<20x16x32xf32> to vector<16x16x32xf32>
    %110 = arith.addf %108, %109 : vector<16x16x32xf32>
    %c2_i32 = arith.constant 2 : i32
    %111 = vector.broadcast %c2_i32 : i32 to vector<16x16xi32>
    %112 = arith.addi %19, %111 : vector<16x16xi32>
    %c15_i32_126 = arith.constant 15 : i32
    %113 = vector.broadcast %c15_i32_126 : i32 to vector<16x16xi32>
    %114 = arith.minsi %112, %113 : vector<16x16xi32>
    %c2_i32_127 = arith.constant 2 : i32
    %115 = vector.broadcast %c2_i32_127 : i32 to vector<16x16xi32>
    %116 = arith.subi %19, %115 : vector<16x16xi32>
    %c0_i32_128 = arith.constant 0 : i32
    %117 = vector.broadcast %c0_i32_128 : i32 to vector<16x16xi32>
    %118 = arith.maxsi %116, %117 : vector<16x16xi32>
    %119 = arith.subi %114, %118 : vector<16x16xi32>
    %c1_i32_129 = arith.constant 1 : i32
    %120 = vector.broadcast %c1_i32_129 : i32 to vector<16x16xi32>
    %121 = arith.addi %119, %120 : vector<16x16xi32>
    %c2_i32_130 = arith.constant 2 : i32
    %122 = vector.broadcast %c2_i32_130 : i32 to vector<16x16xi32>
    %123 = arith.addi %20, %122 : vector<16x16xi32>
    %c15_i32_131 = arith.constant 15 : i32
    %124 = vector.broadcast %c15_i32_131 : i32 to vector<16x16xi32>
    %125 = arith.minsi %123, %124 : vector<16x16xi32>
    %c2_i32_132 = arith.constant 2 : i32
    %126 = vector.broadcast %c2_i32_132 : i32 to vector<16x16xi32>
    %127 = arith.subi %20, %126 : vector<16x16xi32>
    %c0_i32_133 = arith.constant 0 : i32
    %128 = vector.broadcast %c0_i32_133 : i32 to vector<16x16xi32>
    %129 = arith.maxsi %127, %128 : vector<16x16xi32>
    %130 = arith.subi %125, %129 : vector<16x16xi32>
    %c1_i32_134 = arith.constant 1 : i32
    %131 = vector.broadcast %c1_i32_134 : i32 to vector<16x16xi32>
    %132 = arith.addi %130, %131 : vector<16x16xi32>
    %133 = arith.muli %121, %132 : vector<16x16xi32>
    %134 = arith.sitofp %133 : vector<16x16xi32> to vector<16x16xf32>
    %cst_135 = arith.constant 1.000000e+00 : f32
    %135 = vector.broadcast %cst_135 : f32 to vector<16x16xf32>
    %136 = arith.divf %135, %134 : vector<16x16xf32>
    %137 = vector.shape_cast %136 : vector<16x16xf32> to vector<16x16x1xf32>
    %138 = vector.broadcast %137 : vector<16x16x1xf32> to vector<16x16x32xf32>
    %139 = arith.mulf %110, %138 : vector<16x16x32xf32>
    %c2_136 = arith.constant 2 : index
    %c2_137 = arith.constant 2 : index
    %c0_138 = arith.constant 0 : index
    %140 = vector.load %arg8[%c2_136, %c2_137, %c0_138] : memref<20x20x32xf32, #tpu.memory_space<vmem>>, vector<16x16x32xf32>
    tpu.vector_store %arg8[%c2_136, %c2_137, %c0_138], %139 {strides = array<i32>} : memref<20x20x32xf32, #tpu.memory_space<vmem>>, vector<16x16x32xf32>,
    %c0_139 = arith.constant 0 : index
    %c0_140 = arith.constant 0 : index
    %c0_141 = arith.constant 0 : index
    %141 = vector.load %arg8[%c0_139, %c0_140, %c0_141] : memref<20x20x32xf32, #tpu.memory_space<vmem>>, vector<16x16x32xf32>
    %c0_142 = arith.constant 0 : index
    %c0_143 = arith.constant 0 : index
    %c0_144 = arith.constant 0 : index
    %142 = vector.load %arg9[%c0_142, %c0_143, %c0_144] : memref<16x16x288xf32, #tpu.memory_space<vmem>>, vector<16x16x32xf32>
    tpu.vector_store %arg9[%c0_142, %c0_143, %c0_144], %141 {strides = array<i32>} : memref<16x16x288xf32, #tpu.memory_space<vmem>>, vector<16x16x32xf32>,
    %c0_145 = arith.constant 0 : index
    %c2_146 = arith.constant 2 : index
    %c0_147 = arith.constant 0 : index
    %143 = vector.load %arg8[%c0_145, %c2_146, %c0_147] : memref<20x20x32xf32, #tpu.memory_space<vmem>>, vector<16x16x32xf32>
    %c0_148 = arith.constant 0 : index
    %c0_149 = arith.constant 0 : index
    %c32_150 = arith.constant 32 : index
    %144 = vector.load %arg9[%c0_148, %c0_149, %c32_150] : memref<16x16x288xf32, #tpu.memory_space<vmem>>, vector<16x16x32xf32>
    tpu.vector_store %arg9[%c0_148, %c0_149, %c32_150], %143 {strides = array<i32>} : memref<16x16x288xf32, #tpu.memory_space<vmem>>, vector<16x16x32xf32>,
    %c0_151 = arith.constant 0 : index
    %c4_152 = arith.constant 4 : index
    %c0_153 = arith.constant 0 : index
    %145 = vector.load %arg8[%c0_151, %c4_152, %c0_153] : memref<20x20x32xf32, #tpu.memory_space<vmem>>, vector<16x16x32xf32>
    %c0_154 = arith.constant 0 : index
    %c0_155 = arith.constant 0 : index
    %c64_156 = arith.constant 64 : index
    %146 = vector.load %arg9[%c0_154, %c0_155, %c64_156] : memref<16x16x288xf32, #tpu.memory_space<vmem>>, vector<16x16x32xf32>
    tpu.vector_store %arg9[%c0_154, %c0_155, %c64_156], %145 {strides = array<i32>} : memref<16x16x288xf32, #tpu.memory_space<vmem>>, vector<16x16x32xf32>,
    %c2_157 = arith.constant 2 : index
    %c0_158 = arith.constant 0 : index
    %c0_159 = arith.constant 0 : index
    %147 = vector.load %arg8[%c2_157, %c0_158, %c0_159] : memref<20x20x32xf32, #tpu.memory_space<vmem>>, vector<16x16x32xf32>
    %c0_160 = arith.constant 0 : index
    %c0_161 = arith.constant 0 : index
    %c96_162 = arith.constant 96 : index
    %148 = vector.load %arg9[%c0_160, %c0_161, %c96_162] : memref<16x16x288xf32, #tpu.memory_space<vmem>>, vector<16x16x32xf32>
    tpu.vector_store %arg9[%c0_160, %c0_161, %c96_162], %147 {strides = array<i32>} : memref<16x16x288xf32, #tpu.memory_space<vmem>>, vector<16x16x32xf32>,
    %c2_163 = arith.constant 2 : index
    %c2_164 = arith.constant 2 : index
    %c0_165 = arith.constant 0 : index
    %149 = vector.load %arg8[%c2_163, %c2_164, %c0_165] : memref<20x20x32xf32, #tpu.memory_space<vmem>>, vector<16x16x32xf32>
    %c0_166 = arith.constant 0 : index
    %c0_167 = arith.constant 0 : index
    %c128_168 = arith.constant 128 : index
    %150 = vector.load %arg9[%c0_166, %c0_167, %c128_168] : memref<16x16x288xf32, #tpu.memory_space<vmem>>, vector<16x16x32xf32>
    tpu.vector_store %arg9[%c0_166, %c0_167, %c128_168], %149 {strides = array<i32>} : memref<16x16x288xf32, #tpu.memory_space<vmem>>, vector<16x16x32xf32>,
    %c2_169 = arith.constant 2 : index
    %c4_170 = arith.constant 4 : index
    %c0_171 = arith.constant 0 : index
    %151 = vector.load %arg8[%c2_169, %c4_170, %c0_171] : memref<20x20x32xf32, #tpu.memory_space<vmem>>, vector<16x16x32xf32>
    %c0_172 = arith.constant 0 : index
    %c0_173 = arith.constant 0 : index
    %c160_174 = arith.constant 160 : index
    %152 = vector.load %arg9[%c0_172, %c0_173, %c160_174] : memref<16x16x288xf32, #tpu.memory_space<vmem>>, vector<16x16x32xf32>
    tpu.vector_store %arg9[%c0_172, %c0_173, %c160_174], %151 {strides = array<i32>} : memref<16x16x288xf32, #tpu.memory_space<vmem>>, vector<16x16x32xf32>,
    %c4_175 = arith.constant 4 : index
    %c0_176 = arith.constant 0 : index
    %c0_177 = arith.constant 0 : index
    %153 = vector.load %arg8[%c4_175, %c0_176, %c0_177] : memref<20x20x32xf32, #tpu.memory_space<vmem>>, vector<16x16x32xf32>
    %c0_178 = arith.constant 0 : index
    %c0_179 = arith.constant 0 : index
    %c192_180 = arith.constant 192 : index
    %154 = vector.load %arg9[%c0_178, %c0_179, %c192_180] : memref<16x16x288xf32, #tpu.memory_space<vmem>>, vector<16x16x32xf32>
    tpu.vector_store %arg9[%c0_178, %c0_179, %c192_180], %153 {strides = array<i32>} : memref<16x16x288xf32, #tpu.memory_space<vmem>>, vector<16x16x32xf32>,
    %c4_181 = arith.constant 4 : index
    %c2_182 = arith.constant 2 : index
    %c0_183 = arith.constant 0 : index
    %155 = vector.load %arg8[%c4_181, %c2_182, %c0_183] : memref<20x20x32xf32, #tpu.memory_space<vmem>>, vector<16x16x32xf32>
    %c0_184 = arith.constant 0 : index
    %c0_185 = arith.constant 0 : index
    %c224_186 = arith.constant 224 : index
    %156 = vector.load %arg9[%c0_184, %c0_185, %c224_186] : memref<16x16x288xf32, #tpu.memory_space<vmem>>, vector<16x16x32xf32>
    tpu.vector_store %arg9[%c0_184, %c0_185, %c224_186], %155 {strides = array<i32>} : memref<16x16x288xf32, #tpu.memory_space<vmem>>, vector<16x16x32xf32>,
    %c4_187 = arith.constant 4 : index
    %c4_188 = arith.constant 4 : index
    %c0_189 = arith.constant 0 : index
    %157 = vector.load %arg8[%c4_187, %c4_188, %c0_189] : memref<20x20x32xf32, #tpu.memory_space<vmem>>, vector<16x16x32xf32>
    %c0_190 = arith.constant 0 : index
    %c0_191 = arith.constant 0 : index
    %c256_192 = arith.constant 256 : index
    %158 = vector.load %arg9[%c0_190, %c0_191, %c256_192] : memref<16x16x288xf32, #tpu.memory_space<vmem>>, vector<16x16x32xf32>
    tpu.vector_store %arg9[%c0_190, %c0_191, %c256_192], %157 {strides = array<i32>} : memref<16x16x288xf32, #tpu.memory_space<vmem>>, vector<16x16x32xf32>,
    %c0_193 = arith.constant 0 : index
    %c0_194 = arith.constant 0 : index
    %c0_195 = arith.constant 0 : index
    %159 = vector.load %arg9[%c0_193, %c0_194, %c0_195] : memref<16x16x288xf32, #tpu.memory_space<vmem>>, vector<16x16x288xf32>
    %160 = vector.shape_cast %159 : vector<16x16x288xf32> to vector<256x288xf32>
    %c1_196 = arith.constant 1 : index
    %c0_197 = arith.constant 0 : index
    %c0_198 = arith.constant 0 : index
    %161 = vector.load %arg2[%c1_196, %c0_197, %c0_198] : memref<2x288x16xf32, #tpu.memory_space<vmem>>, vector<1x288x16xf32>
    %162 = vector.shape_cast %161 : vector<1x288x16xf32> to vector<288x16xf32>
    %cst_199 = arith.constant dense<0.000000e+00> : vector<256x16xf32>
    %163 = tpu.matmul %160, %162, %cst_199 {dimension_numbers = #tpu.dot_dimension_numbers<[1], [0], [0], [1], [0, 0, 1, 1], [], []>} : vector<256x288xf32>, vector<288x16xf32>, vector<256x16xf32> -> vector<256x16xf32>
    %c0_200 = arith.constant 0 : index
    %c16 = arith.constant 16 : index
    %164 = vector.load %arg10[%c0_200, %c16] : memref<256x32xf32, #tpu.memory_space<vmem>>, vector<256x16xf32>
    tpu.vector_store %arg10[%c0_200, %c16], %163 {strides = array<i32>} : memref<256x32xf32, #tpu.memory_space<vmem>>, vector<256x16xf32>,
    %c0_201 = arith.constant 0 : index
    %c0_202 = arith.constant 0 : index
    %165 = vector.load %arg10[%c0_201, %c0_202] : memref<256x32xf32, #tpu.memory_space<vmem>>, vector<256x32xf32>
    %c0_203 = arith.constant 0 : index
    %c0_204 = arith.constant 0 : index
    %166 = vector.load %arg3[%c0_203, %c0_204] : memref<1x32xf32, #tpu.memory_space<vmem>>, vector<1x32xf32>
    %167 = vector.broadcast %166 : vector<1x32xf32> to vector<256x32xf32>
    %168 = arith.addf %165, %167 : vector<256x32xf32>
    %cst_205 = arith.constant 0.000000e+00 : f32
    %169 = vector.broadcast %cst_205 : f32 to vector<256x32xf32>
    %170 = arith.maximumf %168, %169 : vector<256x32xf32>
    %c0_206 = arith.constant 0 : index
    %c0_207 = arith.constant 0 : index
    %171 = vector.load %arg4[%c0_206, %c0_207] : memref<32x32xf32, #tpu.memory_space<vmem>>, vector<32x32xf32>
    %cst_208 = arith.constant dense<0.000000e+00> : vector<256x32xf32>
    %172 = tpu.matmul %170, %171, %cst_208 {dimension_numbers = #tpu.dot_dimension_numbers<[1], [0], [0], [1], [0, 0, 1, 1], [], []>} : vector<256x32xf32>, vector<32x32xf32>, vector<256x32xf32> -> vector<256x32xf32>
    %c0_209 = arith.constant 0 : index
    %c0_210 = arith.constant 0 : index
    %173 = vector.load %arg5[%c0_209, %c0_210] : memref<1x32xf32, #tpu.memory_space<vmem>>, vector<1x32xf32>
    %174 = vector.broadcast %173 : vector<1x32xf32> to vector<256x32xf32>
    %175 = arith.addf %172, %174 : vector<256x32xf32>
    %cst_211 = arith.constant 0.000000e+00 : f32
    %176 = vector.broadcast %cst_211 : f32 to vector<256x32xf32>
    %177 = arith.maximumf %175, %176 : vector<256x32xf32>
    %178 = vector.shape_cast %177 : vector<256x32xf32> to vector<16x16x32xf32>
    %c0_212 = arith.constant 0 : index
    %c0_213 = arith.constant 0 : index
    %c0_214 = arith.constant 0 : index
    %c0_215 = arith.constant 0 : index
    %179 = vector.load %arg6[%c0_212, %c0_213, %c0_214, %c0_215] : memref<1x16x16x32xf32, #tpu.memory_space<vmem>>, vector<1x16x16x32xf32>
    %180 = vector.shape_cast %179 : vector<1x16x16x32xf32> to vector<16x16x32xf32>
    %181 = vector.shape_cast %178 : vector<16x16x32xf32> to vector<1x16x16x32xf32>
    tpu.vector_store %arg6[%c0_212, %c0_213, %c0_214, %c0_215], %181 {strides = array<i32>} : memref<1x16x16x32xf32, #tpu.memory_space<vmem>>, vector<1x16x16x32xf32>,
    return
  }
  func.func @transform_0(%arg0: i32) -> (i32, i32, i32, i32) {
    %c0_i32 = arith.constant 0 : i32
    %c0_i32_0 = arith.constant 0 : i32
    %c0_i32_1 = arith.constant 0 : i32
    %c0_i32_2 = arith.constant 0 : i32
    return %arg0, %c0_i32, %c0_i32_0, %c0_i32_1 : i32, i32, i32, i32
  }
  func.func @transform_1(%arg0: i32) -> (i32, i32, i32) {
    %c0_i32 = arith.constant 0 : i32
    %c0_i32_0 = arith.constant 0 : i32
    %c0_i32_1 = arith.constant 0 : i32
    %c0_i32_2 = arith.constant 0 : i32
    return %c0_i32, %c0_i32_0, %c0_i32_1 : i32, i32, i32
  }
  func.func @transform_2(%arg0: i32) -> (i32, i32) {
    %c0_i32 = arith.constant 0 : i32
    %c0_i32_0 = arith.constant 0 : i32
    %c0_i32_1 = arith.constant 0 : i32
    return %c0_i32, %c0_i32_0 : i32, i32
  }
  func.func @transform_3(%arg0: i32) -> (i32, i32) {
    %c0_i32 = arith.constant 0 : i32
    %c0_i32_0 = arith.constant 0 : i32
    %c0_i32_1 = arith.constant 0 : i32
    return %c0_i32, %c0_i32_0 : i32, i32
  }
  func.func @transform_4(%arg0: i32) -> (i32, i32) {
    %c0_i32 = arith.constant 0 : i32
    %c0_i32_0 = arith.constant 0 : i32
    %c0_i32_1 = arith.constant 0 : i32
    return %c0_i32, %c0_i32_0 : i32, i32
  }
  func.func @transform_5(%arg0: i32) -> (i32, i32, i32, i32) {
    %c0_i32 = arith.constant 0 : i32
    %c0_i32_0 = arith.constant 0 : i32
    %c0_i32_1 = arith.constant 0 : i32
    %c0_i32_2 = arith.constant 0 : i32
    return %arg0, %c0_i32, %c0_i32_0, %c0_i32_1 : i32, i32, i32, i32
  }
}

</mosaic_0001>

<bundles_post_ra>
// kernel: tpu_custom_call.1
= control target key start
LH: loop header
LB: loop body
LE: loop exit
PB: predicated region body
PF: predicated region fallthrough
CT: control target
= control target key end

     0   :  { %10 = vsyncpa [#allocation7], 0  ;;  %s10508_s0 = inlined_call_operand.vmem [shape: f32[2,16,16,32], index: 0, kind: input, shape index: {}]   ;;  %s10509_s1 = inlined_call_operand.vmem [shape: f32[2,288,16], index: 1, kind: input, shape index: {}]   ;;  %s10510_s2 = inlined_call_operand.vmem [shape: f32[1,32], index: 2, kind: input, shape index: {}]   ;;  %s10511_s3 = inlined_call_operand.vmem [shape: f32[32,32], index: 3, kind: input, shape index: {}]   ;;  %s10512_s4 = inlined_call_operand.vmem [shape: f32[1,32], index: 4, kind: input, shape index: {}]   ;;  %s10513_s5 = inlined_call_operand.hbm [shape: f32[2,16,16,32], index: 5, kind: output, shape index: {}]  }
   0x1   :  { %12 = vsyncpa [#allocation7 + $0x1], 0  ;;  %s7232_s18 = smov 0   ;;  %s7234_s19 = smov 0  }
   0x2   :  { %s7236_s20 = smov 0   ;;  %s7238_s21 = smov 0  }
   0x3 LB: > { %s7253_s22 = sadd.s32 4294967295, %s7192_s21   ;;  %s6638_s23 = sadd.s32 4294967294, %s7192_s21   ;;  %s7192_s21 = sphi %s7238_s21, %s10577_s21   ;;  %s7188_s20 = sphi %s7236_s20, %s10576_s20   ;;  %s7184_s19 = sphi %s7234_s19, %s10575_s19   ;;  %s7180_s18 = sphi %s7232_s18, %s10574_s18  }
   0x4   : > { %s7257_s24 = sadd.s32 1, %s7192_s21   ;;  %s135_s25 = sadd.s32 1, %s7188_s20 }
   0x5   : > { %s132_s26 = ssub.s32 %s7192_s21, %s7257_s24  ;;  %p145_p0 = scmp.ne.s32.totalorder %s7188_s20, %s7184_s19 }
   0x6   : > { %p133_p1 = scmp.eq.s32.totalorder %s132_s26, 0  ;;  %p146_p2 = scmp.eq.s32.totalorder %s7253_s22, 1 }
   0x7   : > { %p151_p3 = scmp.ne.s32.totalorder %s7184_s19, %s7180_s18  ;;  %p152_p4 = scmp.eq.s32.totalorder %s6638_s23, 1 }
   0x8   : > { %s7268_s27 = scalar_select %p133_p1, %s7188_s20, %s135_s25  }
   0x9   : > { %p7270_p5 = por %p146_p2, %p145_p0  ;;  %p7274_p6 = por %p152_p4, %p151_p3 }
   0xa   : > { %p6641_p7 = scmp.ge.s32.totalorder %s7192_s21, 1  ;;  %p190_p8 = scmp.lt.s32.totalorder %s7192_s21, 3 }
   0xc   : > { %p191_p9 = pnand %p6641_p7, %p190_p8 }
   0xe   : > { %194 = sbr.rel (%p191_p9) target bundleno = 1662 (0x67e), region = 40 }
  0x13   : > { %v397_v0 = vlaneseq  ;;  %vm223_vm0 = vcmask 261120   ;;  %vm226_vm1 = vcmask 257024   ;;  %p218_p10 = scmp.lt.s32.totalorder %s7253_s22, 1  ;;  %v10514_v1 = vmov 0.0   ;;  %s7195_s23 = smov 32  }
  0x14   : > { %344 = vst.msk [vmem:[#allocation3] sm:$0xff] %vm223_vm0, %v10514_v1  ;;  %345 = vst.msk [vmem:[#allocation3 + $0x8] sm:$0xff] %vm223_vm0, %v10514_v1  ;;  %2564 = vmatprep.subr.mxu0 %v10514_v1  ;;  %vm238_vm2 = vcmask 254976   ;;  %s7196_s25 = smov 64   ;;  %vm1212_vm11 = vcmask 523520   ;;  %vm1405_vm12 = vcmask 785920  }
  0x15   : > { %224 = vst.msk [vmem:[#allocation2] sm:$0xff] %vm223_vm0, %v10514_v1  ;;  %225 = vst.msk [vmem:[#allocation2 + $0x8] sm:$0xff] %vm223_vm0, %v10514_v1  ;;  %v7330_v2 = vshrl.u32 %v397_v0, 7  ;;  %v7332_v3 = vand.u32 127, %v397_v0  ;;  %s7337_s30 = scalar_select %p218_p10, %s7253_s22, 1  ;;  %vm1598_vm13 = vcmask 1048320  }
  0x16   : > { %228 = vst.msk [vmem:[#allocation2 + $0x18] sm:$0xff] %vm223_vm0, %v10514_v1  ;;  %229 = vst.msk [vmem:[#allocation2 + $0x20] sm:$0xff] %vm223_vm0, %v10514_v1  ;;  %s7197_s26 = smov 96   ;;  %vm3014_vm14 = vcmask 130048   ;;  %s7198_s15 = smov 16   ;;  %vm6030_vm15 = vcmask 261248  }
  0x17   : > { %232 = vst.msk [vmem:[#allocation2 + $0x1b0] sm:$0xff] %vm223_vm0, %v10514_v1  ;;  %233 = vst.msk [vmem:[#allocation2 + $0x1b8] sm:$0xff] %vm223_vm0, %v10514_v1  ;;  %v715_v4 = vadd.s32 1, %v7330_v2  ;;  %v6645_v5 = vadd.s32 4294967295, %v7330_v2  ;;  %v731_v6 = vadd.s32 1, %v7332_v3  ;;  %v6647_v7 = vadd.s32 4294967295, %v7332_v3 }
  0x18   : > { %235 = vst.msk [vmem:[#allocation2 + $0x1c8] sm:$0xff] %vm223_vm0, %v10514_v1  ;;  %236 = vst.msk [vmem:[#allocation2 + $0x1d0] sm:$0xff] %vm223_vm0, %v10514_v1  ;;  %s6790_s6 = sshll.u32 %s7337_s30, 8  ;;  %v3607_v8 = vadd.s32 2, %v7330_v2  ;;  %v6680_v9 = vadd.s32 4294967294, %v7330_v2  ;;  %v3623_v10 = vadd.s32 2, %v7332_v3 }
  0x19   : > { %347 = vst.msk [vmem:[#allocation3 + $0x18] sm:$0xff] %vm223_vm0, %v10514_v1  ;;  %348 = vst.msk [vmem:[#allocation3 + $0x20] sm:$0xff] %vm223_vm0, %v10514_v1  ;;  %s7510_s9 = scalar_lea.vmem %s10508_s0, %s6790_s6  ;;  %vm723_vm3 = vcmp.gt.s32.totalorder %v6645_v5, 0  ;;  %vm732_vm4 = vcmp.lt.s32.totalorder %v731_v6, 15  ;;  %vm735_vm5 = vcmp.gt.s32.totalorder %v6647_v7, 0  ;;  %v6682_v11 = vadd.s32 4294967294, %v7332_v3 }
  0x1a   : > { %351 = vst.msk [vmem:[#allocation3 + $0x1b0] sm:$0xff] %vm223_vm0, %v10514_v1  ;;  %352 = vst.msk [vmem:[#allocation3 + $0x1b8] sm:$0xff] %vm223_vm0, %v10514_v1  ;;  %v279_v12 = vld [vmem:[%s7510_s9] sm:$0xff]  ;;  %v280_v13 = vld [vmem:[%s7510_s9 + $0x8] sm:$0xff]  ;;  %v724_v14 = vsel %vm723_vm3, %v6645_v5, 0  ;;  %v733_v15 = vsel %vm732_vm4, %v731_v6, 15 }
  0x1b   : > { %354 = vst.msk [vmem:[#allocation3 + $0x1c8] sm:$0xff] %vm223_vm0, %v10514_v1  ;;  %355 = vst.msk [vmem:[#allocation3 + $0x1d0] sm:$0xff] %vm223_vm0, %v10514_v1  ;;  %v736_v16 = vsel %vm735_vm5, %v6647_v7, 0  ;;  %vm3615_vm6 = vcmp.gt.s32.totalorder %v6680_v9, 0  ;;  %v281_v17 = vld [vmem:[%s7510_s9 + $0x10] sm:$0xff]  ;;  %v282_v18 = vld [vmem:[%s7510_s9 + $0x18] sm:$0xff]  ;;  %v727_v19 = vsub.s32 %v715_v4, %v724_v14 }
  0x1c   : > { %346 = vst.msk [vmem:[#allocation3 + $0x10] sm:$0xf] %vm226_vm1, %v10514_v1  ;;  %227 = vst.msk [vmem:[#allocation2 + $0x10] sm:$0xf] %vm226_vm1, %v10514_v1  ;;  %v737_v20 = vsub.s32 %v733_v15, %v736_v16  ;;  %v3616_v21 = vsel %vm3615_vm6, %v6680_v9, 0  ;;  %vm3624_vm7 = vcmp.lt.s32.totalorder %v3623_v10, 15 }
  0x1d   : > { %230 = vst.msk [vmem:[#allocation2 + $0x28] sm:$0xf] %vm226_vm1, %v10514_v1  ;;  %234 = vst.msk [vmem:[#allocation2 + $0x1c0] sm:$0xf] %vm226_vm1, %v10514_v1  ;;  %v3619_v22 = vsub.s32 %v3607_v8, %v3616_v21  ;;  %v3625_v23 = vsel %vm3624_vm7, %v3623_v10, 15  ;;  %vm3627_vm8 = vcmp.gt.s32.totalorder %v6682_v11, 0 }
  0x1e   : > { %237 = vst.msk [vmem:[#allocation2 + $0x1d8] sm:$0xf] %vm226_vm1, %v10514_v1  ;;  %349 = vst.msk [vmem:[#allocation3 + $0x28] sm:$0xf] %vm226_vm1, %v10514_v1  ;;  %v283_v24 = vld [vmem:[%s7510_s9 + $0x20] sm:$0xff]  ;;  %v284_v25 = vld [vmem:[%s7510_s9 + $0x28] sm:$0xff] }
  0x1f   : > { %353 = vst.msk [vmem:[#allocation3 + $0x1c0] sm:$0xf] %vm226_vm1, %v10514_v1  ;;  %356 = vst.msk [vmem:[#allocation3 + $0x1d8] sm:$0xf] %vm226_vm1, %v10514_v1  ;;  %v729_v26 = vadd.s32 1, %v727_v19  ;;  %v738_v27 = vadd.s32 1, %v737_v20 }
  0x20   : > { %241 = vst.msk [vmem:[#allocation2 + $0x30] sm:$0x3] %vm238_vm2, %v10514_v1  ;;  %242 = vst.msk [vmem:[#allocation2 + $0x48] sm:$0x3] %vm238_vm2, %v10514_v1  ;;  %v3628_v28 = vsel %vm3627_vm8, %v6682_v11, 0  ;;  %v399_v29 = vadd.s32 8, %v7330_v2 }
  0x21   : > { %243 = vst.msk [vmem:[#allocation2 + $0x60] sm:$0x3] %vm238_vm2, %v10514_v1  ;;  %239 = vst.msk [vmem:[#allocation2] sm:$0x3] %vm238_vm2, %v10514_v1  ;;  %v7526_v30 = vadd.s32 1, %v3619_v22  ;;  %v3629_v31 = vsub.s32 %v3625_v23, %v3628_v28  ;;  %v739_v32 = vmul.u32 %v738_v27, %v729_v26  ;;  %v285_v35 = vld [vmem:[%s7510_s9 + $0x30] sm:$0xff] }
  0x22   : > { %240 = vst.msk [vmem:[#allocation2 + $0x18] sm:$0x3] %vm238_vm2, %v10514_v1  ;;  %244 = vst.msk [vmem:[#allocation2 + $0x78] sm:$0x3] %vm238_vm2, %v10514_v1  ;;  %v3608_v33 = vadd.s32 2, %v399_v29  ;;  %v6681_v34 = vadd.s32 4294967294, %v399_v29 }
  0x23   : > { %245 = vst.msk [vmem:[#allocation2 + $0x90] sm:$0x3] %vm238_vm2, %v10514_v1  ;;  %246 = vst.msk [vmem:[#allocation2 + $0xa8] sm:$0x3] %vm238_vm2, %v10514_v1  ;;  %v7529_v36 = vadd.s32 1, %v3629_v31  ;;  %v286_v37 = vld [vmem:[%s7510_s9 + $0x38] sm:$0xff]  ;;  %v741_v38 = vcvt.s32.f32 %v739_v32 }
  0x24   : > { %247 = vst.msk [vmem:[#allocation2 + $0xc0] sm:$0x3] %vm238_vm2, %v10514_v1  ;;  %248 = vst.msk [vmem:[#allocation2 + $0xd8] sm:$0x3] %vm238_vm2, %v10514_v1  ;;  %vm3611_vm9 = vcmp.lt.s32.totalorder %v3608_v33, 15  ;;  %v716_v42 = vadd.s32 1, %v399_v29 }
  0x25   : > { %249 = vst.msk [vmem:[#allocation2 + $0xf0] sm:$0x3] %vm238_vm2, %v10514_v1  ;;  %250 = vst.msk [vmem:[#allocation2 + $0x108] sm:$0x3] %vm238_vm2, %v10514_v1  ;;  %v3612_v40 = vsel %vm3611_vm9, %v3608_v33, 15  ;;  %7122 = vrcp.f32 %v741_v38  ;;  %v287_v45 = vld [vmem:[%s7510_s9 + $0x40] sm:$0xff] }
  0x26   : > { %251 = vst.msk [vmem:[#allocation2 + $0x120] sm:$0x3] %vm238_vm2, %v10514_v1  ;;  %252 = vst.msk [vmem:[#allocation2 + $0x138] sm:$0x3] %vm238_vm2, %v10514_v1  ;;  %v3620_v41 = vsub.s32 %v3612_v40, %v6681_v34  ;;  %vm719_vm10 = vcmp.lt.s32.totalorder %v716_v42, 15  ;;  %v6646_v46 = vadd.s32 4294967295, %v399_v29 }
  0x27   : > { %253 = vst.msk [vmem:[#allocation2 + $0x150] sm:$0x3] %vm238_vm2, %v10514_v1  ;;  %254 = vst.msk [vmem:[#allocation2 + $0x168] sm:$0x3] %vm238_vm2, %v10514_v1  ;;  %v288_v47 = vld [vmem:[%s7510_s9 + $0x48] sm:$0xff]  ;;  %v720_v48 = vsel %vm719_vm10, %v716_v42, 15 }
  0x28   : > { %255 = vst.msk [vmem:[#allocation2 + $0x180] sm:$0x3] %vm238_vm2, %v10514_v1  ;;  %256 = vst.msk [vmem:[#allocation2 + $0x198] sm:$0x3] %vm238_vm2, %v10514_v1  ;;  %v7536_v43 = vadd.s32 1, %v3620_v41  ;;  %v289_v49 = vld [vmem:[%s7510_s9 + $0x50] sm:$0xff]  ;;  %v728_v55 = vsub.s32 %v720_v48, %v6646_v46 }
  0x29   : > { %257 = vst.msk [vmem:[#allocation2 + $0x1b0] sm:$0x3] %vm238_vm2, %v10514_v1  ;;  %258 = vst.msk [vmem:[#allocation2 + $0x1c8] sm:$0x3] %vm238_vm2, %v10514_v1  ;;  %v290_v50 = vld [vmem:[%s7510_s9 + $0x58] sm:$0xff]  ;;  %v291_v51 = vld [vmem:[%s7510_s9 + $0x60] sm:$0xff] }
  0x2a   : > { %259 = vst.msk [vmem:[#allocation2 + $0x12] sm:$0x3] %vm238_vm2, %v10514_v1  ;;  %260 = vst.msk [vmem:[#allocation2 + $0x2a] sm:$0x3] %vm238_vm2, %v10514_v1  ;;  %v7548_v52 = vsub.s32 1, %v7330_v2  ;;  %v7551_v53 = vsub.s32 0, %v7330_v2 }
  0x2b   : > { %261 = vst.msk [vmem:[#allocation2 + $0x42] sm:$0x3] %vm238_vm2, %v10514_v1  ;;  %262 = vst.msk [vmem:[#allocation2 + $0x5a] sm:$0x3] %vm238_vm2, %v10514_v1  ;;  %v292_v54 = vld [vmem:[%s7510_s9 + $0x68] sm:$0xff]  ;;  %v293_v56 = vld [vmem:[%s7510_s9 + $0x70] sm:$0xff] }
  0x2c   : > { %263 = vst.msk [vmem:[#allocation2 + $0x72] sm:$0x3] %vm238_vm2, %v10514_v1  ;;  %264 = vst.msk [vmem:[#allocation2 + $0x8a] sm:$0x3] %vm238_vm2, %v10514_v1  ;;  %v294_v58 = vld [vmem:[%s7510_s9 + $0x78] sm:$0xff]  ;;  %v730_v61 = vadd.s32 1, %v728_v55 }
  0x2d   : > { %265 = vst.msk [vmem:[#allocation2 + $0xa2] sm:$0x3] %vm238_vm2, %v10514_v1  ;;  %266 = vst.msk [vmem:[#allocation2 + $0xba] sm:$0x3] %vm238_vm2, %v10514_v1  ;;  %v7565_v62 = vsub.s32 2, %v7330_v2  ;;  %v7569_v3 = vsub.s32 3, %v7330_v2 }
  0x2e   : > { %267 = vst.msk [vmem:[#allocation2 + $0xd2] sm:$0x3] %vm238_vm2, %v10514_v1  ;;  %268 = vst.msk [vmem:[#allocation2 + $0xea] sm:$0x3] %vm238_vm2, %v10514_v1  ;;  %v740_v63 = vmul.u32 %v738_v27, %v730_v61  ;;  %v2467_v4 = vld [vmem:[%s10509_s1 + $0x118] sm:$0xff]  ;;  %v295_v5 = vld [vmem:[%s7510_s9 + $0x80] sm:$0xff] }
  0x2f   : > { %269 = vst.msk [vmem:[#allocation2 + $0x102] sm:$0x3] %vm238_vm2, %v10514_v1  ;;  %270 = vst.msk [vmem:[#allocation2 + $0x11a] sm:$0x3] %vm238_vm2, %v10514_v1  ;;  %6900 = vmatprep.subr.mxu1 %v2467_v4  ;;  %v7577_v8 = vsub.s32 4, %v7330_v2  ;;  %v2466_v9 = vld [vmem:[%s10509_s1 + $0x110] sm:$0xff] }
  0x30   : > { %271 = vst.msk [vmem:[#allocation2 + $0x132] sm:$0x3] %vm238_vm2, %v10514_v1  ;;  %272 = vst.msk [vmem:[#allocation2 + $0x14a] sm:$0x3] %vm238_vm2, %v10514_v1  ;;  %v742_v6 = vcvt.s32.f32 %v740_v63  ;;  %v296_v10 = vld [vmem:[%s7510_s9 + $0x88] sm:$0xff]  ;;  %6901 = vmatpush3.msra.mxu1 %v2467_v4  ;;  %v2464_v14 = vld [vmem:[%s10509_s1 + $0x100] sm:$0xff] }
  0x31   : > { %273 = vst.msk [vmem:[#allocation2 + $0x162] sm:$0x3] %vm238_vm2, %v10514_v1  ;;  %274 = vst.msk [vmem:[#allocation2 + $0x17a] sm:$0x3] %vm238_vm2, %v10514_v1  ;;  %6902 = vmatprep.subr.mxu1 %v2466_v9  ;;  %v2465_v11 = vld [vmem:[%s10509_s1 + $0x108] sm:$0xff]  ;;  %v7597_v16 = vsub.s32 6, %v7330_v2 }
  0x32   : > { %275 = vst.msk [vmem:[#allocation2 + $0x192] sm:$0x3] %vm238_vm2, %v10514_v1  ;;  %276 = vst.msk [vmem:[#allocation2 + $0x1aa] sm:$0x3] %vm238_vm2, %v10514_v1  ;;  %v7123_v57 = vpop.eup %7122  ;;  %6903 = vmatpush3.msra.mxu1 %v2466_v9  ;;  %7124 = vrcp.f32 %v742_v6  ;;  %v297_v22 = vld [vmem:[%s7510_s9 + $0x90] sm:$0xff]  ;;  %v298_v23 = vld [vmem:[%s7510_s9 + $0x98] sm:$0xff] }
  0x33   : > { %277 = vst.msk [vmem:[#allocation2 + $0x1c2] sm:$0x3] %vm238_vm2, %v10514_v1  ;;  %278 = vst.msk [vmem:[#allocation2 + $0x1da] sm:$0x3] %vm238_vm2, %v10514_v1  ;;  %v761_v59 = vrot.slane %v7123_v57, %v7548_v52  ;;  %v750_v60 = vrot.slane %v7123_v57, %v7551_v53  ;;  %v772_v0 = vrot.slane %v7123_v57, %v7565_v62  ;;  %6904 = vmatprep.subr.mxu1 %v2465_v11  ;;  %v301_v27 = vld [vmem:[%s7510_s9 + $0xb0] sm:$0xff]  ;;  %v302_v28 = vld [vmem:[%s7510_s9 + $0xb8] sm:$0xff] }
  0x34   : > { %357 = vst.msk [vmem:[#allocation3] sm:$0x3] %vm238_vm2, %v10514_v1  ;;  %358 = vst.msk [vmem:[#allocation3 + $0x18] sm:$0x3] %vm238_vm2, %v10514_v1  ;;  %v783_v7 = vrot.slane %v7123_v57, %v7569_v3  ;;  %6905 = vmatpush3.msra.mxu1 %v2465_v11  ;;  %v303_v31 = vld [vmem:[%s7510_s9 + $0xc0] sm:$0xff]  ;;  %v304_v32 = vld [vmem:[%s7510_s9 + $0xc8] sm:$0xff] }
  0x35   : > { %359 = vst.msk [vmem:[#allocation3 + $0x30] sm:$0x3] %vm238_vm2, %v10514_v1  ;;  %360 = vst.msk [vmem:[#allocation3 + $0x48] sm:$0x3] %vm238_vm2, %v10514_v1  ;;  %763 = vbcast.lane.b32.xlu1 %v761_v59, 256  ;;  %752 = vbcast.lane.b32.xlu0 %v750_v60, 256 }
  0x36   : > { %361 = vst.msk [vmem:[#allocation3 + $0x60] sm:$0x3] %vm238_vm2, %v10514_v1  ;;  %362 = vst.msk [vmem:[#allocation3 + $0x78] sm:$0x3] %vm238_vm2, %v10514_v1  ;;  %6906 = vmatprep.subr.mxu1 %v2464_v14  ;;  %v305_v34 = vld [vmem:[%s7510_s9 + $0xd0] sm:$0xff]  ;;  %v307_v38 = vld [vmem:[%s7510_s9 + $0xe0] sm:$0xff] }
  0x37   : > { %363 = vst.msk [vmem:[#allocation3 + $0x90] sm:$0x3] %vm238_vm2, %v10514_v1  ;;  %364 = vst.msk [vmem:[#allocation3 + $0xa8] sm:$0x3] %vm238_vm2, %v10514_v1  ;;  %6907 = vmatpush3.msra.mxu1 %v2464_v14  ;;  %v308_v40 = vld [vmem:[%s7510_s9 + $0xe8] sm:$0xff]  ;;  %v309_v55 = vld [vmem:[%s7510_s9 + $0xf0] sm:$0xff] }
  0x38   : > { %365 = vst.msk [vmem:[#allocation3 + $0xc0] sm:$0x3] %vm238_vm2, %v10514_v1  ;;  %366 = vst.msk [vmem:[#allocation3 + $0xd8] sm:$0x3] %vm238_vm2, %v10514_v1  ;;  %5452 = vmatprep.subr.mxu1 %v10514_v1  ;;  %v1053_v46 = vld [vmem:[#allocation3 + $0xa] sm:$0xff]  ;;  %v1055_v48 = vld [vmem:[#allocation3 + $0x22] sm:$0xff] }
  0x39   : > { %367 = vst.msk [vmem:[#allocation3 + $0xf0] sm:$0x3] %vm238_vm2, %v10514_v1  ;;  %368 = vst.msk [vmem:[#allocation3 + $0x108] sm:$0x3] %vm238_vm2, %v10514_v1  ;;  %767 = vbcast.lane.b32.xlu1 %v761_v59, 264  ;;  %756 = vbcast.lane.b32.xlu0 %v750_v60, 264 }
  0x3a   : > { %369 = vst.msk [vmem:[#allocation3 + $0x120] sm:$0x3] %vm238_vm2, %v10514_v1  ;;  %370 = vst.msk [vmem:[#allocation3 + $0x138] sm:$0x3] %vm238_vm2, %v10514_v1  ;;  %v475_v61 = vld [vmem:[#allocation2 + $0x1a] sm:$0xff]  ;;  %s215_s30 = sand.u32 1, %s7184_s19  }
  0x3b   : > { %371 = vst.msk [vmem:[#allocation3 + $0x150] sm:$0x3] %vm238_vm2, %v10514_v1  ;;  %372 = vst.msk [vmem:[#allocation3 + $0x168] sm:$0x3] %vm238_vm2, %v10514_v1  ;;  %v990_v4 = vld [vmem:[#allocation3 + $0x18] sm:$0xff]  ;;  %s6642_s8 = sshll.u32 %s215_s30, 8 }
  0x3c   : > { %373 = vst.msk [vmem:[#allocation3 + $0x180] sm:$0x3] %vm238_vm2, %v10514_v1  ;;  %374 = vst.msk [vmem:[#allocation3 + $0x198] sm:$0x3] %vm238_vm2, %v10514_v1  ;;  %s7199_s13 = smov [#allocation6]  }
  0x3d   : > { %375 = vst.msk [vmem:[#allocation3 + $0x1b0] sm:$0x3] %vm238_vm2, %v10514_v1  ;;  %376 = vst.msk [vmem:[#allocation3 + $0x1c8] sm:$0x3] %vm238_vm2, %v10514_v1  ;;  %774 = vbcast.lane.b32.xlu0 %v772_v0, 256  ;;  %778 = vbcast.lane.b32.xlu1 %v772_v0, 264 }
  0x3e   : > { %377 = vst.msk [vmem:[#allocation3 + $0x12] sm:$0x3] %vm238_vm2, %v10514_v1  ;;  %378 = vst.msk [vmem:[#allocation3 + $0x2a] sm:$0x3] %vm238_vm2, %v10514_v1  ;;  %v989_v0 = vld [vmem:[#allocation3 + $0x8] sm:$0xff]  ;;  %s7136_s14 = sshll.u32 %s7199_s13, 4  ;;  %s7137_s14 = int_to_ptr.vmem [resolvable:$false] %s7136_s14 }
  0x3f   : > { %379 = vst.msk [vmem:[#allocation3 + $0x42] sm:$0x3] %vm238_vm2, %v10514_v1  ;;  %380 = vst.msk [vmem:[#allocation3 + $0x5a] sm:$0x3] %vm238_vm2, %v10514_v1  ;;  %v7125_v20 = vpop.eup %7124 }
  0x40   : > { %381 = vst.msk [vmem:[#allocation3 + $0x72] sm:$0x3] %vm238_vm2, %v10514_v1  ;;  %382 = vst.msk [vmem:[#allocation3 + $0x8a] sm:$0x3] %vm238_vm2, %v10514_v1  ;;  %v838_v21 = vrot.slane %v7125_v20, %v7551_v53  ;;  %v860_v26 = vrot.slane %v7125_v20, %v7565_v62  ;;  %v871_v29 = vrot.slane %v7125_v20, %v7569_v3 }
  0x41   : > { %383 = vst.msk [vmem:[#allocation3 + $0xa2] sm:$0x3] %vm238_vm2, %v10514_v1  ;;  %384 = vst.msk [vmem:[#allocation3 + $0xba] sm:$0x3] %vm238_vm2, %v10514_v1  ;;  %785 = vbcast.lane.b32.xlu0 %v783_v7, 256  ;;  %789 = vbcast.lane.b32.xlu1 %v783_v7, 264  ;;  %v882_v33 = vrot.slane %v7125_v20, %v7577_v8  ;;  %v904_v41 = vrot.slane %v7125_v20, %v7597_v16 }
  0x42   : > { %385 = vst.msk [vmem:[#allocation3 + $0xd2] sm:$0x3] %vm238_vm2, %v10514_v1  ;;  %386 = vst.msk [vmem:[#allocation3 + $0xea] sm:$0x3] %vm238_vm2, %v10514_v1  ;;  %v547_v7 = vld [vmem:[#allocation2 + $0x1b] sm:$0xff] }
  0x43   : > { %387 = vst.msk [vmem:[#allocation3 + $0x102] sm:$0x3] %vm238_vm2, %v10514_v1  ;;  %388 = vst.msk [vmem:[#allocation3 + $0x11a] sm:$0x3] %vm238_vm2, %v10514_v1 }
  0x44   : > { %389 = vst.msk [vmem:[#allocation3 + $0x132] sm:$0x3] %vm238_vm2, %v10514_v1  ;;  %390 = vst.msk [vmem:[#allocation3 + $0x14a] sm:$0x3] %vm238_vm2, %v10514_v1 }
  0x45   : > { %391 = vst.msk [vmem:[#allocation3 + $0x162] sm:$0x3] %vm238_vm2, %v10514_v1  ;;  %392 = vst.msk [vmem:[#allocation3 + $0x17a] sm:$0x3] %vm238_vm2, %v10514_v1 }
  0x46   : > { %393 = vst.msk [vmem:[#allocation3 + $0x192] sm:$0x3] %vm238_vm2, %v10514_v1  ;;  %394 = vst.msk [vmem:[#allocation3 + $0x1aa] sm:$0x3] %vm238_vm2, %v10514_v1 }
  0x47   : > { %395 = vst.msk [vmem:[#allocation3 + $0x1c2] sm:$0x3] %vm238_vm2, %v10514_v1  ;;  %396 = vst.msk [vmem:[#allocation3 + $0x1da] sm:$0x3] %vm238_vm2, %v10514_v1 }
  0x48   : > { %312 = vst.msk [vmem:[#allocation2 + $0x32] sm:$0xff] %vm223_vm0, %v279_v12  ;;  %313 = vst.msk [vmem:[#allocation2 + $0x3a] sm:$0xff] %vm223_vm0, %v280_v13  ;;  %v794_v12 = vrot.slane %v7123_v57, %v7577_v8  ;;  %v7590_v13 = vsub.s32 5, %v7330_v2 }
  0x49   : > { %314 = vst.msk [vmem:[#allocation2 + $0x4a] sm:$0xff] %vm223_vm0, %v281_v17  ;;  %315 = vst.msk [vmem:[#allocation2 + $0x52] sm:$0xff] %vm223_vm0, %v282_v18  ;;  %v816_v17 = vrot.slane %v7123_v57, %v7597_v16  ;;  %v7602_v18 = vsub.s32 7, %v7330_v2  ;;  %v849_v2 = vrot.slane %v7125_v20, %v7548_v52 }
  0x4a   : > { %316 = vst.msk [vmem:[#allocation2 + $0x62] sm:$0xff] %vm223_vm0, %v283_v24  ;;  %317 = vst.msk [vmem:[#allocation2 + $0x6a] sm:$0xff] %vm223_vm0, %v284_v25  ;;  %796 = vbcast.lane.b32.xlu0 %v794_v12, 256  ;;  %800 = vbcast.lane.b32.xlu1 %v794_v12, 264  ;;  %v805_v15 = vrot.slane %v7123_v57, %v7590_v13  ;;  %v299_v24 = vld [vmem:[%s7510_s9 + $0xa0] sm:$0xff]  ;;  %v300_v25 = vld [vmem:[%s7510_s9 + $0xa8] sm:$0xff] }
  0x4b   : > { %318 = vst.msk [vmem:[#allocation2 + $0x7a] sm:$0xff] %vm223_vm0, %v285_v35  ;;  %319 = vst.msk [vmem:[#allocation2 + $0x82] sm:$0xff] %vm223_vm0, %v286_v37  ;;  %v827_v19 = vrot.slane %v7123_v57, %v7602_v18  ;;  %v306_v35 = vld [vmem:[%s7510_s9 + $0xd8] sm:$0xff]  ;;  %v893_v37 = vrot.slane %v7125_v20, %v7590_v13  ;;  %v915_v42 = vrot.slane %v7125_v20, %v7602_v18  ;;  %v988_v57 = vld [vmem:[#allocation3] sm:$0xff] }
  0x4c   : > { %10543 = vst [vmem:[#allocation9_spill] sm:$0xff] %v7536_v43  ;;  %320 = vst.msk [vmem:[#allocation2 + $0x92] sm:$0xff] %vm223_vm0, %v287_v45  ;;  %v1052_v45 = vld [vmem:[#allocation3 + $0x2] sm:$0xff] }
  0x4d   : > { %321 = vst.msk [vmem:[#allocation2 + $0x9a] sm:$0xff] %vm223_vm0, %v288_v47  ;;  %10544 = vst [vmem:[#allocation10_spill] sm:$0xff] %v7548_v52  ;;  %v1054_v47 = vld [vmem:[#allocation3 + $0x1a] sm:$0xff] }
  0x4e   : > { %10545 = vst [vmem:[#allocation11_spill] sm:$0xff] %v7551_v53  ;;  %322 = vst.msk [vmem:[#allocation2 + $0xaa] sm:$0xff] %vm223_vm0, %v289_v49  ;;  %807 = vbcast.lane.b32.xlu0 %v805_v15, 256  ;;  %811 = vbcast.lane.b32.xlu1 %v805_v15, 264  ;;  %v1245_v49 = vld [vmem:[#allocation3 + $0x4] sm:$0xff]  ;;  %v438_v52 = vld [vmem:[#allocation2 + $0x1b9] sm:$0xff] }
  0x4f   : > { %323 = vst.msk [vmem:[#allocation2 + $0xb2] sm:$0xff] %vm223_vm0, %v290_v50  ;;  %324 = vst.msk [vmem:[#allocation2 + $0xc2] sm:$0xff] %vm223_vm0, %v291_v51  ;;  %v1246_v50 = vld [vmem:[#allocation3 + $0xc] sm:$0xff]  ;;  %v1247_v51 = vld [vmem:[#allocation3 + $0x1c] sm:$0xff] }
  0x50   : > { %325 = vst.msk [vmem:[#allocation2 + $0xca] sm:$0xff] %vm223_vm0, %v292_v54  ;;  %326 = vst.msk [vmem:[#allocation2 + $0xda] sm:$0xff] %vm223_vm0, %v293_v56  ;;  %v1248_v54 = vld [vmem:[#allocation3 + $0x24] sm:$0xff]  ;;  %v310_v56 = vld [vmem:[%s7510_s9 + $0xf8] sm:$0xff]  ;;  %s10361_s9 = scalar_lea.vmem [#allocation6], %s6642_s8 }
  0x51   : > { %327 = vst.msk [vmem:[#allocation2 + $0xe2] sm:$0xff] %vm223_vm0, %v294_v58  ;;  %10546 = vst [vmem:[#allocation12_spill] sm:$0xff] %v7565_v62  ;;  %v403_v58 = vld [vmem:[#allocation2 + $0x19] sm:$0xff]  ;;  %v405_v59 = vld [vmem:[#allocation2 + $0x31] sm:$0xff] }
  0x52   : > { %10547 = vst [vmem:[#allocation13_spill] sm:$0xff] %v7569_v3  ;;  %10548 = vst [vmem:[#allocation14_spill] sm:$0xff] %v7577_v8  ;;  %818 = vbcast.lane.b32.xlu0 %v816_v17, 256  ;;  %822 = vbcast.lane.b32.xlu1 %v816_v17, 264  ;;  %v477_v60 = vld [vmem:[#allocation2 + $0x32] sm:$0xff]  ;;  %v407_v63 = vld [vmem:[#allocation2 + $0x49] sm:$0xff]  ;;  %v511_v14 = vadd.f32 %v475_v61, %v403_v58 }
  0x53   : > { %328 = vst.msk [vmem:[#allocation2 + $0xf2] sm:$0xff] %vm223_vm0, %v295_v5  ;;  %329 = vst.msk [vmem:[#allocation2 + $0xfa] sm:$0xff] %vm223_vm0, %v296_v10  ;;  %v479_v5 = vld [vmem:[#allocation2 + $0x4a] sm:$0xff]  ;;  %v549_v6 = vld [vmem:[#allocation2 + $0x33] sm:$0xff]  ;;  %v513_v12 = vadd.f32 %v477_v60, %v405_v59 }
  0x54   : > { %10549 = vst [vmem:[#allocation15_spill] sm:$0xff] %v7590_v13  ;;  %10550 = vst [vmem:[#allocation16_spill] sm:$0xff] %v7597_v16  ;;  %v406_v9 = vld [vmem:[#allocation2 + $0x39] sm:$0xff]  ;;  %v408_v10 = vld [vmem:[#allocation2 + $0x51] sm:$0xff] }
  0x55   : > { %10551 = vst [vmem:[#allocation17_spill] sm:$0xff] %v7602_v18  ;;  %330 = vst.msk [vmem:[#allocation2 + $0x10a] sm:$0xff] %vm223_vm0, %v297_v22  ;;  %v409_v11 = vld [vmem:[#allocation2 + $0x61] sm:$0xff]  ;;  %v480_v17 = vld [vmem:[#allocation2 + $0x52] sm:$0xff]  ;;  %v515_v22 = vadd.f32 %v479_v5, %v407_v63 }
  0x56   : > { %829 = vbcast.lane.b32.xlu0 %v827_v19, 256  ;;  %833 = vbcast.lane.b32.xlu1 %v827_v19, 264  ;;  %331 = vst.msk [vmem:[#allocation2 + $0x112] sm:$0xff] %vm223_vm0, %v298_v23  ;;  %332 = vst.msk [vmem:[#allocation2 + $0x122] sm:$0xff] %vm223_vm0, %v299_v24  ;;  %v478_v15 = vld [vmem:[#allocation2 + $0x3a] sm:$0xff]  ;;  %v481_v19 = vld [vmem:[#allocation2 + $0x62] sm:$0xff] }
  0x57   : > { %333 = vst.msk [vmem:[#allocation2 + $0x12a] sm:$0xff] %vm223_vm0, %v300_v25  ;;  %334 = vst.msk [vmem:[#allocation2 + $0x13a] sm:$0xff] %vm223_vm0, %v301_v27  ;;  %v404_v20 = vld [vmem:[#allocation2 + $0x21] sm:$0xff]  ;;  %v410_v24 = vld [vmem:[#allocation2 + $0x69] sm:$0xff]  ;;  %v514_v25 = vadd.f32 %v478_v15, %v406_v9  ;;  %v517_v27 = vadd.f32 %v481_v19, %v409_v11 }
  0x58   : > { %335 = vst.msk [vmem:[#allocation2 + $0x142] sm:$0xff] %vm223_vm0, %v302_v28  ;;  %336 = vst.msk [vmem:[#allocation2 + $0x152] sm:$0xff] %vm223_vm0, %v303_v31  ;;  %v991_v23 = vld [vmem:[#allocation3 + $0x20] sm:$0xff]  ;;  %v585_v28 = vadd.f32 %v549_v6, %v513_v12  ;;  %v482_v31 = vld [vmem:[#allocation2 + $0x6a] sm:$0xff] }
  0x59   : > { %337 = vst.msk [vmem:[#allocation2 + $0x15a] sm:$0xff] %vm223_vm0, %v304_v32  ;;  %338 = vst.msk [vmem:[#allocation2 + $0x16a] sm:$0xff] %vm223_vm0, %v305_v34  ;;  %v550_v32 = vld [vmem:[#allocation2 + $0x3b] sm:$0xff]  ;;  %v413_v60 = vld [vmem:[#allocation2 + $0x91] sm:$0xff] }
  0x5a   : > { %840 = vbcast.lane.b32.xlu0 %v838_v21, 256  ;;  %844 = vbcast.lane.b32.xlu1 %v838_v21, 264  ;;  %339 = vst.msk [vmem:[#allocation2 + $0x172] sm:$0xff] %vm223_vm0, %v306_v35  ;;  %340 = vst.msk [vmem:[#allocation2 + $0x182] sm:$0xff] %vm223_vm0, %v307_v38  ;;  %v476_v21 = vld [vmem:[#allocation2 + $0x22] sm:$0xff]  ;;  %v485_v61 = vld [vmem:[#allocation2 + $0x92] sm:$0xff] }
  0x5b   : > { %341 = vst.msk [vmem:[#allocation2 + $0x18a] sm:$0xff] %vm223_vm0, %v308_v40  ;;  %342 = vst.msk [vmem:[#allocation2 + $0x19a] sm:$0xff] %vm223_vm0, %v309_v55  ;;  %v512_v34 = vadd.f32 %v476_v21, %v404_v20  ;;  %v553_v35 = vld [vmem:[#allocation2 + $0x63] sm:$0xff]  ;;  %v518_v40 = vadd.f32 %v482_v31, %v410_v24  ;;  %v555_v5 = vld [vmem:[#allocation2 + $0x7b] sm:$0xff]  ;;  %v521_v11 = vadd.f32 %v485_v61, %v413_v60 }
  0x5c   : > { %343 = vst.msk [vmem:[#allocation2 + $0x1a2] sm:$0xff] %vm223_vm0, %v310_v56  ;;  %1020 = vst.msk [vmem:[#allocation4] sm:$0xff] %vm223_vm0, %v988_v57  ;;  %v484_v55 = vld [vmem:[#allocation2 + $0x82] sm:$0xff]  ;;  %v486_v9 = vld [vmem:[#allocation2 + $0x9a] sm:$0xff] }
  0x5d   : > { %1021 = vst.msk [vmem:[#allocation4 + $0x18] sm:$0xff] %vm223_vm0, %v989_v0  ;;  %1022 = vst.msk [vmem:[#allocation4 + $0x30] sm:$0xff] %vm223_vm0, %v990_v4  ;;  %v556_v6 = vld [vmem:[#allocation2 + $0x83] sm:$0xff]  ;;  %v557_v21 = vld [vmem:[#allocation2 + $0x93] sm:$0xff] }
  0x5e   : > { %851 = vbcast.lane.b32.xlu0 %v849_v2, 256  ;;  %855 = vbcast.lane.b32.xlu1 %v849_v2, 264  ;;  %v551_v2 = vld [vmem:[#allocation2 + $0x4b] sm:$0xff]  ;;  %1023 = vst.msk [vmem:[#allocation4 + $0x48] sm:$0xff] %vm223_vm0, %v991_v23  ;;  %v593_v31 = vadd.f32 %v557_v21, %v521_v11  ;;  %v561_v11 = vld [vmem:[#allocation2 + $0xc3] sm:$0xff] }
  0x5f   : > { %v587_v38 = vadd.f32 %v551_v2, %v515_v22  ;;  %v415_v22 = vld [vmem:[#allocation2 + $0xa9] sm:$0xff] }
  0x60   : > { %v487_v23 = vld [vmem:[#allocation2 + $0xaa] sm:$0xff] }
  0x61   : > { %v504_v44 = vld [vmem:[#allocation2 + $0x172] sm:$0xff]  ;;  %v433_v39 = vld [vmem:[#allocation2 + $0x181] sm:$0xff] }
  0x62   : > { %862 = vbcast.lane.b32.xlu0 %v860_v26, 256  ;;  %866 = vbcast.lane.b32.xlu1 %v860_v26, 264  ;;  %v516_v26 = vadd.f32 %v480_v17, %v408_v10  ;;  %v575_v43 = vld [vmem:[#allocation2 + $0x16b] sm:$0xff]  ;;  %v576_v13 = vld [vmem:[#allocation2 + $0x173] sm:$0xff] }
  0x66   : > { %873 = vbcast.lane.b32.xlu0 %v871_v29, 256  ;;  %877 = vbcast.lane.b32.xlu1 %v871_v29, 264  ;;  %v583_v29 = vadd.f32 %v547_v7, %v511_v14  ;;  %v414_v7 = vld [vmem:[#allocation2 + $0x99] sm:$0xff] }
  0x6a   : > { %884 = vbcast.lane.b32.xlu0 %v882_v33, 256  ;;  %888 = vbcast.lane.b32.xlu1 %v882_v33, 264  ;;  %v552_v33 = vld [vmem:[#allocation2 + $0x53] sm:$0xff] }
  0x6e   : > { %895 = vbcast.lane.b32.xlu0 %v893_v37, 256  ;;  %899 = vbcast.lane.b32.xlu1 %v893_v37, 264  ;;  %v548_v37 = vld [vmem:[#allocation2 + $0x23] sm:$0xff] }
  0x72   : > { %906 = vbcast.lane.b32.xlu0 %v904_v41, 256  ;;  %910 = vbcast.lane.b32.xlu1 %v904_v41, 264  ;;  %v554_v41 = vld [vmem:[#allocation2 + $0x6b] sm:$0xff] }
  0x73   : > { %v590_v56 = vadd.f32 %v554_v41, %v518_v40  ;;  %v559_v40 = vld [vmem:[#allocation2 + $0xab] sm:$0xff] }
  0x76   : > { %917 = vbcast.lane.b32.xlu0 %v915_v42, 256  ;;  %921 = vbcast.lane.b32.xlu1 %v915_v42, 264  ;;  %v586_v42 = vadd.f32 %v550_v32, %v514_v25 }
  0x7a   : > { %1116 = vrot.lane.b32.xlu0 %v1052_v45, %s7195_s23  ;;  %1118 = vrot.lane.b32.xlu1 %v1053_v46, %s7195_s23  ;;  %v588_v45 = vadd.f32 %v552_v33, %v516_v26  ;;  %v411_v46 = vld [vmem:[#allocation2 + $0x79] sm:$0xff]  ;;  %v522_v26 = vadd.f32 %v486_v9, %v414_v7  ;;  %v523_v33 = vadd.f32 %v487_v23, %v415_v22 }
  0x7c   : > { %v654_v57 = vadd.f32 %v588_v45, %v586_v42  ;;  %v656_v20 = vadd.f32 %v590_v56, %v588_v45 }
  0x7e   : > { %1120 = vrot.lane.b32.xlu0 %v1054_v47, %s7195_s23  ;;  %1122 = vrot.lane.b32.xlu1 %v1055_v48, %s7195_s23  ;;  %v589_v47 = vadd.f32 %v553_v35, %v517_v27  ;;  %v653_v48 = vadd.f32 %v587_v38, %v585_v28  ;;  %v686_v15 = vadd.f32 %v654_v57, %v590_v56  ;;  %v416_v27 = vld [vmem:[#allocation2 + $0xb1] sm:$0xff] }
  0x7f   : > { %v7657_v57 = vadd.f32 %v559_v40, %v523_v33  ;;  %v564_v33 = vld [vmem:[#allocation2 + $0xe3] sm:$0xff] }
  0x80   : > { %v685_v63 = vadd.f32 %v653_v48, %v589_v47  ;;  %v655_v10 = vadd.f32 %v589_v47, %v587_v38 }
  0x82   : > { %1309 = vrot.lane.b32.xlu0 %v1245_v49, %s7196_s25  ;;  %1311 = vrot.lane.b32.xlu1 %v1246_v50, %s7196_s25  ;;  %v651_v49 = vadd.f32 %v585_v28, %v583_v29  ;;  %v584_v50 = vadd.f32 %v548_v37, %v512_v34  ;;  %v488_v28 = vld [vmem:[#allocation2 + $0xb2] sm:$0xff]  ;;  %v558_v29 = vld [vmem:[#allocation2 + $0x9b] sm:$0xff] }
  0x83   : > { %v524_v41 = vadd.f32 %v488_v28, %v416_v27 }
  0x84   : > { %v683_v0 = vadd.f32 %v651_v49, %v587_v38  ;;  %v652_v4 = vadd.f32 %v586_v42, %v584_v50  ;;  %v560_v49 = vld [vmem:[#allocation2 + $0xb3] sm:$0xff]  ;;  %v417_v50 = vld [vmem:[#allocation2 + $0xc1] sm:$0xff] }
  0x86   : > { %1313 = vrot.lane.b32.xlu0 %v1247_v51, %s7196_s25  ;;  %1315 = vrot.lane.b32.xlu1 %v1248_v54, %s7196_s25  ;;  %v483_v51 = vld [vmem:[#allocation2 + $0x7a] sm:$0xff]  ;;  %v684_v25 = vadd.f32 %v652_v4, %v588_v45  ;;  %v594_v45 = vadd.f32 %v558_v29, %v522_v26 }
  0x87   : > { %v412_v54 = vld [vmem:[#allocation2 + $0x81] sm:$0xff]  ;;  %v519_v58 = vadd.f32 %v483_v51, %v411_v46 }
  0x88   : > { %v520_v59 = vadd.f32 %v484_v55, %v412_v54  ;;  %v489_v51 = vld [vmem:[#allocation2 + $0xc2] sm:$0xff]  ;;  %v490_v55 = vld [vmem:[#allocation2 + $0xca] sm:$0xff]  ;;  %v491_v4 = vld [vmem:[#allocation2 + $0xda] sm:$0xff] }
  0x89   : > { %v591_v17 = vadd.f32 %v555_v5, %v519_v58  ;;  %v418_v54 = vld [vmem:[#allocation2 + $0xc9] sm:$0xff]  ;;  %v419_v58 = vld [vmem:[#allocation2 + $0xd9] sm:$0xff]  ;;  %v420_v5 = vld [vmem:[#allocation2 + $0xe1] sm:$0xff] }
  0x8a   : > { %v592_v19 = vadd.f32 %v556_v6, %v520_v59  ;;  %v492_v6 = vld [vmem:[#allocation2 + $0xe2] sm:$0xff] }
  0x8b   : > { %v657_v32 = vadd.f32 %v591_v17, %v589_v47  ;;  %v687_v37 = vadd.f32 %v655_v10, %v591_v17  ;;  %v659_v61 = vadd.f32 %v593_v31, %v591_v17  ;;  %v527_v17 = vadd.f32 %v491_v4, %v419_v58 }
  0x8c   : > { %v688_v38 = vadd.f32 %v656_v20, %v592_v19  ;;  %v658_v48 = vadd.f32 %v592_v19, %v590_v56  ;;  %v525_v56 = vadd.f32 %v489_v51, %v417_v50  ;;  %v563_v20 = vld [vmem:[#allocation2 + $0xdb] sm:$0xff]  ;;  %v565_v50 = vld [vmem:[#allocation2 + $0xf3] sm:$0xff] }
  0x8d   : > { %v689_v47 = vadd.f32 %v657_v32, %v593_v31  ;;  %v691_v27 = vadd.f32 %v659_v61, %v7657_v57  ;;  %v661_v32 = vadd.f32 %v7657_v57, %v593_v31  ;;  %v7682_v31 = vadd.f32 %v563_v20, %v527_v17  ;;  %v566_v51 = vld [vmem:[#allocation2 + $0xfb] sm:$0xff]  ;;  %v567_v20 = vld [vmem:[#allocation2 + $0x10b] sm:$0xff] }
  0x8e   : > { %v690_v10 = vadd.f32 %v658_v48, %v594_v45  ;;  %v597_v29 = vadd.f32 %v561_v11, %v525_v56  ;;  %v424_v56 = vld [vmem:[#allocation2 + $0x111] sm:$0xff] }
  0x8f   : > { %v496_v11 = vld [vmem:[#allocation2 + $0x112] sm:$0xff] }
  0xa7   : > { %v764_v12 = vpop.permute.xlu1 %763  ;;  %v753_v14 = vpop.permute.xlu0 %752 }
  0xa8   : > { %v925_v2 = vmul.f32 %v764_v12, %v685_v63  ;;  %v923_v24 = vmul.f32 %v753_v14, %v683_v0  ;;  %v7659_v63 = vadd.f32 %v560_v49, %v524_v41  ;;  %v660_v0 = vadd.f32 %v594_v45, %v592_v19  ;;  %v562_v14 = vld [vmem:[#allocation2 + $0xcb] sm:$0xff] }
  0xa9   : > { %v526_v12 = vadd.f32 %v490_v55, %v418_v54  ;;  %v528_v19 = vadd.f32 %v492_v6, %v420_v5  ;;  %v493_v41 = vld [vmem:[#allocation2 + $0xf2] sm:$0xff]  ;;  %v423_v54 = vld [vmem:[#allocation2 + $0x109] sm:$0xff] }
  0xaa   : > { %958 = vst.msk [vmem:[#allocation3 + $0x4a] sm:$0xff] %vm223_vm0, %v925_v2  ;;  %956 = vst.msk [vmem:[#allocation3 + $0x32] sm:$0xff] %vm223_vm0, %v923_v24  ;;  %v692_v28 = vadd.f32 %v660_v0, %v7659_v63  ;;  %v662_v40 = vadd.f32 %v7659_v63, %v594_v45  ;;  %v495_v45 = vld [vmem:[#allocation2 + $0x10a] sm:$0xff] }
  0xab   : > { %v768_v34 = vpop.permute.xlu1 %767  ;;  %v757_v35 = vpop.permute.xlu0 %756  ;;  %v7684_v49 = vadd.f32 %v564_v33, %v528_v19  ;;  %v531_v19 = vadd.f32 %v495_v45, %v423_v54  ;;  %v568_v33 = vld [vmem:[#allocation2 + $0x113] sm:$0xff] }
  0xac   : > { %v926_v42 = vmul.f32 %v768_v34, %v686_v15  ;;  %v924_v46 = vmul.f32 %v757_v35, %v684_v25  ;;  %v421_v34 = vld [vmem:[#allocation2 + $0xf1] sm:$0xff] }
  0xad   : > { %v529_v61 = vadd.f32 %v493_v41, %v421_v34  ;;  %v425_v34 = vld [vmem:[#allocation2 + $0x121] sm:$0xff]  ;;  %v7740_v45 = vadd.f32 %v567_v20, %v531_v19 }
  0xae   : > { %959 = vst.msk [vmem:[#allocation3 + $0x52] sm:$0xff] %vm223_vm0, %v926_v42  ;;  %957 = vst.msk [vmem:[#allocation3 + $0x3a] sm:$0xff] %vm223_vm0, %v924_v46  ;;  %v422_v42 = vld [vmem:[#allocation2 + $0xf9] sm:$0xff] }
  0xaf   : > { %v775_v59 = vpop.permute.xlu0 %774  ;;  %v779_v60 = vpop.permute.xlu1 %778  ;;  %v494_v46 = vld [vmem:[#allocation2 + $0xfa] sm:$0xff] }
  0xb0   : > { %v927_v7 = vmul.f32 %v775_v59, %v687_v37  ;;  %v928_v9 = vmul.f32 %v779_v60, %v688_v38  ;;  %v598_v38 = vadd.f32 %v562_v14, %v526_v12  ;;  %v693_v59 = vadd.f32 %v661_v32, %v597_v29 }
  0xb1   : > { %v1056_v15 = vld [vmem:[#allocation3 + $0x32] sm:$0xff]  ;;  %v7668_v22 = vld [vmem:[#allocation3 + $0x48] sm:$0xff]  ;;  %v663_v60 = vadd.f32 %v597_v29, %v7657_v57  ;;  %v530_v0 = vadd.f32 %v494_v46, %v422_v42  ;;  %v532_v42 = vadd.f32 %v496_v11, %v424_v56 }
  0xb2   : > { %v7661_v21 = vld [vmem:[#allocation3 + $0x30] sm:$0xff]  ;;  %960 = vst.msk [vmem:[#allocation3 + $0x62] sm:$0xff] %vm223_vm0, %v927_v7  ;;  %961 = vst.msk [vmem:[#allocation3 + $0x6a] sm:$0xff] %vm223_vm0, %v928_v9  ;;  %1124 = vrot.lane.b32.xlu0 %v1056_v15, %s7195_s23  ;;  %v694_v9 = vadd.f32 %v662_v40, %v598_v38 }
  0xb3   : > { %1024 = vst.msk [vmem:[#allocation4 + $0x60] sm:$0xff] %vm223_vm0, %v7661_v21  ;;  %v1631_v23 = vld [vmem:[#allocation3 + $0x32] sm:$0xff]  ;;  %v1633_v2 = vld [vmem:[#allocation3 + $0x4a] sm:$0xff]  ;;  %v786_v24 = vpop.permute.xlu0 %785  ;;  %v790_v25 = vpop.permute.xlu1 %789  ;;  %1026 = vst.msk [vmem:[#allocation4 + $0x90] sm:$0xff] %vm223_vm0, %v7668_v22  ;;  %v7719_v32 = vadd.f32 %v566_v51, %v530_v0  ;;  %v7754_v20 = vadd.f32 %v568_v33, %v532_v42 }
  0xb4   : > { %v1058_v26 = vld [vmem:[#allocation3 + $0x4a] sm:$0xff]  ;;  %1663 = vst.msk [vmem:[#allocation4 + $0x8] sm:$0xff] %vm223_vm0, %v1631_v23  ;;  %1665 = vst.msk [vmem:[#allocation4 + $0x38] sm:$0xff] %vm223_vm0, %v1633_v2  ;;  %v929_v35 = vmul.f32 %v786_v24, %v689_v47  ;;  %v930_v37 = vmul.f32 %v790_v25, %v690_v10  ;;  %v664_v10 = vadd.f32 %v598_v38, %v7659_v63 }
  0xb5   : > { %v1057_v48 = vld [vmem:[#allocation3 + $0x3a] sm:$0xff]  ;;  %v1059_v58 = vld [vmem:[#allocation3 + $0x52] sm:$0xff]  ;;  %v665_v63 = vadd.f32 %v7682_v31, %v597_v29  ;;  %v666_v29 = vadd.f32 %v7684_v49, %v598_v38  ;;  %v426_v46 = vld [vmem:[#allocation2 + $0x129] sm:$0xff]  ;;  %v668_v19 = vadd.f32 %v7719_v32, %v7684_v49 }
  0xb6   : > { %962 = vst.msk [vmem:[#allocation3 + $0x7a] sm:$0xff] %vm223_vm0, %v929_v35  ;;  %963 = vst.msk [vmem:[#allocation3 + $0x82] sm:$0xff] %vm223_vm0, %v930_v37  ;;  %1126 = vrot.lane.b32.xlu1 %v1057_v48, %s7195_s23  ;;  %1128 = vrot.lane.b32.xlu0 %v1058_v26, %s7195_s23  ;;  %v7687_v4 = vld [vmem:[#allocation3 + $0x38] sm:$0xff]  ;;  %v7689_v5 = vld [vmem:[#allocation3 + $0x50] sm:$0xff]  ;;  %v696_v41 = vadd.f32 %v664_v10, %v7684_v49 }
  0xb7   : > { %1025 = vst.msk [vmem:[#allocation4 + $0x78] sm:$0xff] %vm223_vm0, %v7687_v4  ;;  %1027 = vst.msk [vmem:[#allocation4 + $0xa8] sm:$0xff] %vm223_vm0, %v7689_v5  ;;  %v1632_v57 = vld [vmem:[#allocation3 + $0x3a] sm:$0xff]  ;;  %v1634_v12 = vld [vmem:[#allocation3 + $0x52] sm:$0xff] }
  0xb8   : > { %1664 = vst.msk [vmem:[#allocation4 + $0x20] sm:$0xff] %vm223_vm0, %v1632_v57  ;;  %1666 = vst.msk [vmem:[#allocation4 + $0x50] sm:$0xff] %vm223_vm0, %v1634_v12  ;;  %v497_v35 = vld [vmem:[#allocation2 + $0x122] sm:$0xff]  ;;  %v498_v48 = vld [vmem:[#allocation2 + $0x12a] sm:$0xff] }
  0xb9   : > { %v1635_v14 = vld [vmem:[#allocation3 + $0x62] sm:$0xff]  ;;  %v7696_v15 = vld [vmem:[#allocation3 + $0x6c] sm:$0xff]  ;;  %v533_v10 = vadd.f32 %v497_v35, %v425_v34  ;;  %v534_v11 = vadd.f32 %v498_v48, %v426_v46  ;;  %v499_v57 = vld [vmem:[#allocation2 + $0x13a] sm:$0xff] }
  0xba   : > { %1667 = vst.msk [vmem:[#allocation4 + $0x68] sm:$0xff] %vm223_vm0, %v1635_v14  ;;  %2305 = vst.msk [vmem:[#allocation4 + $0x28] sm:$0xff] %vm223_vm0, %v7696_v15  ;;  %1130 = vrot.lane.b32.xlu1 %v1059_v58, %s7195_s23  ;;  %1132 = vrot.lane.b32.xlu0 %v1635_v14, %s7195_s23  ;;  %v7708_v17 = vld [vmem:[#allocation3 + $0x64] sm:$0xff]  ;;  %v571_v35 = vld [vmem:[#allocation2 + $0x13b] sm:$0xff] }
  0xbb   : > { %v7710_v23 = vld [vmem:[#allocation3 + $0x60] sm:$0xff]  ;;  %v7712_v2 = vld [vmem:[#allocation3 + $0x68] sm:$0xff]  ;;  %2304 = vst.msk [vmem:[#allocation4 + $0x10] sm:$0xff] %vm223_vm0, %v7708_v17 }
  0xbc   : > { %v797_v55 = vpop.permute.xlu0 %796  ;;  %v801_v47 = vpop.permute.xlu1 %800  ;;  %v1061_v26 = vld [vmem:[#allocation3 + $0x6a] sm:$0xff]  ;;  %1028 = vst.msk [vmem:[#allocation4 + $0xc0] sm:$0xff] %vm223_vm0, %v7710_v23  ;;  %1029 = vst.msk [vmem:[#allocation4 + $0xd8] sm:$0xff] %vm223_vm0, %v7712_v2  ;;  %v428_v12 = vld [vmem:[#allocation2 + $0x141] sm:$0xff] }
  0xbd   : > { %v931_v6 = vmul.f32 %v797_v55, %v691_v27  ;;  %v932_v7 = vmul.f32 %v801_v47, %v692_v28  ;;  %v695_v27 = vadd.f32 %v663_v60, %v7682_v31  ;;  %v7715_v28 = vadd.f32 %v565_v50, %v529_v61  ;;  %v1636_v50 = vld [vmem:[#allocation3 + $0x6a] sm:$0xff]  ;;  %v7727_v51 = vld [vmem:[#allocation3 + $0x7c] sm:$0xff] }
  0xbe   : > { %v7729_v38 = vld [vmem:[#allocation3 + $0x84] sm:$0xff]  ;;  %v1062_v54 = vld [vmem:[#allocation3 + $0x7a] sm:$0xff]  ;;  %1668 = vst.msk [vmem:[#allocation4 + $0x80] sm:$0xff] %vm223_vm0, %v1636_v50  ;;  %2306 = vst.msk [vmem:[#allocation4 + $0x40] sm:$0xff] %vm223_vm0, %v7727_v51  ;;  %1134 = vrot.lane.b32.xlu1 %v1061_v26, %s7195_s23 }
  0xbf   : > { %964 = vst.msk [vmem:[#allocation3 + $0x92] sm:$0xff] %vm223_vm0, %v931_v6  ;;  %965 = vst.msk [vmem:[#allocation3 + $0x9a] sm:$0xff] %vm223_vm0, %v932_v7  ;;  %1136 = vrot.lane.b32.xlu0 %v1062_v54, %s7195_s23  ;;  %v667_v55 = vadd.f32 %v7715_v28, %v7682_v31  ;;  %v569_v47 = vld [vmem:[#allocation2 + $0x123] sm:$0xff]  ;;  %v570_v58 = vld [vmem:[#allocation2 + $0x12b] sm:$0xff]  ;;  %v697_v7 = vadd.f32 %v665_v63, %v7715_v28  ;;  %v669_v54 = vadd.f32 %v7740_v45, %v7715_v28 }
  0xc0   : > { %v808_v24 = vpop.permute.xlu0 %807  ;;  %v812_v25 = vpop.permute.xlu1 %811  ;;  %2307 = vst.msk [vmem:[#allocation4 + $0x58] sm:$0xff] %vm223_vm0, %v7729_v38  ;;  %v7744_v60 = vld [vmem:[#allocation3 + $0x78] sm:$0xff]  ;;  %v7746_v61 = vld [vmem:[#allocation3 + $0x80] sm:$0xff]  ;;  %v7774_v50 = vadd.f32 %v569_v47, %v533_v10 }
  0xc1   : > { %v933_v37 = vmul.f32 %v808_v24, %v693_v59  ;;  %v934_v40 = vmul.f32 %v812_v25, %v694_v9  ;;  %v427_v59 = vld [vmem:[#allocation2 + $0x139] sm:$0xff]  ;;  %v1063_v6 = vld [vmem:[#allocation3 + $0x82] sm:$0xff]  ;;  %v698_v9 = vadd.f32 %v666_v29, %v7719_v32  ;;  %1030 = vst.msk [vmem:[#allocation4 + $0xf0] sm:$0xff] %vm223_vm0, %v7744_v60  ;;  %1031 = vst.msk [vmem:[#allocation4 + $0x108] sm:$0xff] %vm223_vm0, %v7746_v61 }
  0xc2   : > { %v500_v63 = vld [vmem:[#allocation2 + $0x142] sm:$0xff]  ;;  %v1637_v24 = vld [vmem:[#allocation3 + $0x7a] sm:$0xff]  ;;  %1138 = vrot.lane.b32.xlu1 %v1063_v6, %s7195_s23  ;;  %v2338_v49 = vld [vmem:[#allocation4 + $0x10] sm:$0xff]  ;;  %v699_v33 = vadd.f32 %v667_v55, %v7740_v45 }
  0xc3   : > { %966 = vst.msk [vmem:[#allocation3 + $0xaa] sm:$0xff] %vm223_vm0, %v933_v37  ;;  %967 = vst.msk [vmem:[#allocation3 + $0xb2] sm:$0xff] %vm223_vm0, %v934_v40  ;;  %v1638_v25 = vld [vmem:[#allocation3 + $0x82] sm:$0xff]  ;;  %v429_v37 = vld [vmem:[#allocation2 + $0x151] sm:$0xff]  ;;  %v535_v40 = vadd.f32 %v499_v57, %v427_v59  ;;  %6908 = vmatprep.mubr.msk.f32.mxu1 %vm223_vm0, %v2338_v49  ;;  %v536_v47 = vadd.f32 %v500_v63, %v428_v12 }
  0xc4   : > { %v819_v0 = vpop.permute.xlu0 %818  ;;  %v823_v56 = vpop.permute.xlu1 %822  ;;  %1669 = vst.msk [vmem:[#allocation4 + $0x98] sm:$0xff] %vm223_vm0, %v1637_v24  ;;  %1670 = vst.msk [vmem:[#allocation4 + $0xb0] sm:$0xff] %vm223_vm0, %v1638_v25  ;;  %v572_v10 = vld [vmem:[#allocation2 + $0x143] sm:$0xff]  ;;  %v502_v24 = vld [vmem:[#allocation2 + $0x15a] sm:$0xff] }
  0xc5   : > { %v935_v31 = vmul.f32 %v819_v0, %v695_v27  ;;  %v936_v14 = vmul.f32 %v823_v56, %v696_v41  ;;  %v2341_v27 = vld [vmem:[#allocation4 + $0x28] sm:$0xff]  ;;  %v501_v41 = vld [vmem:[#allocation2 + $0x152] sm:$0xff]  ;;  %v7778_v0 = vadd.f32 %v570_v58, %v534_v11  ;;  %v670_v56 = vadd.f32 %v7754_v20, %v7719_v32  ;;  %v574_v25 = vld [vmem:[#allocation2 + $0x15b] sm:$0xff] }
  0xc6   : > { %v7758_v26 = vld [vmem:[#allocation3 + $0x94] sm:$0xff]  ;;  %v7760_v29 = vld [vmem:[#allocation3 + $0x9c] sm:$0xff]  ;;  %6909 = vmatmul.mubr.msk.f32.vlgmr.msra.gmra.mxu1 %vm223_vm0, %v2341_v27  ;;  %v7804_v12 = vadd.f32 %v571_v35, %v535_v40  ;;  %v537_v63 = vadd.f32 %v501_v41, %v429_v37  ;;  %v503_v49 = vld [vmem:[#allocation2 + $0x16a] sm:$0xff]  ;;  %v7816_v41 = vadd.f32 %v572_v10, %v536_v47 }
  0xc7   : > { %v1064_v34 = vld [vmem:[#allocation3 + $0x92] sm:$0xff]  ;;  %2308 = vst.msk [vmem:[#allocation4 + $0x70] sm:$0xff] %vm223_vm0, %v7758_v26  ;;  %2309 = vst.msk [vmem:[#allocation4 + $0x88] sm:$0xff] %vm223_vm0, %v7760_v29  ;;  %v1065_v48 = vld [vmem:[#allocation3 + $0x9a] sm:$0xff] }
  0xc8   : > { %968 = vst.msk [vmem:[#allocation3 + $0xc2] sm:$0xff] %vm223_vm0, %v935_v31  ;;  %969 = vst.msk [vmem:[#allocation3 + $0xca] sm:$0xff] %vm223_vm0, %v936_v14  ;;  %1140 = vrot.lane.b32.xlu0 %v1064_v34, %s7195_s23  ;;  %v830_v42 = vpop.permute.xlu0 %829  ;;  %v834_v46 = vpop.permute.xlu1 %833  ;;  %v7782_v6 = vld [vmem:[#allocation3 + $0x90] sm:$0xff]  ;;  %v7784_v55 = vld [vmem:[#allocation3 + $0x98] sm:$0xff]  ;;  %v700_v31 = vadd.f32 %v668_v19, %v7754_v20  ;;  %1142 = vrot.lane.b32.xlu1 %v1065_v48, %s7195_s23  ;;  %v671_v19 = vadd.f32 %v7774_v50, %v7740_v45 }
  0xc9   : > { %v937_v59 = vmul.f32 %v830_v42, %v697_v7  ;;  %v938_v57 = vmul.f32 %v834_v46, %v698_v9  ;;  %v430_v14 = vld [vmem:[#allocation2 + $0x159] sm:$0xff]  ;;  %1032 = vst.msk [vmem:[#allocation4 + $0x120] sm:$0xff] %vm223_vm0, %v7782_v6  ;;  %1033 = vst.msk [vmem:[#allocation4 + $0x138] sm:$0xff] %vm223_vm0, %v7784_v55  ;;  %v431_v34 = vld [vmem:[#allocation2 + $0x169] sm:$0xff]  ;;  %v701_v48 = vadd.f32 %v669_v54, %v7774_v50 }
  0xca   : > { %v7792_v28 = vld [vmem:[#allocation3 + $0xac] sm:$0xff]  ;;  %v7794_v32 = vld [vmem:[#allocation3 + $0xb4] sm:$0xff]  ;;  %v2344_v9 = vld [vmem:[#allocation4 + $0x40] sm:$0xff]  ;;  %v703_v10 = vadd.f32 %v671_v19, %v7804_v12  ;;  %v539_v18 = vadd.f32 %v503_v49, %v431_v34 }
  0xcb   : > { %v1066_v58 = vld [vmem:[#allocation3 + $0xaa] sm:$0xff]  ;;  %v573_v7 = vld [vmem:[#allocation2 + $0x153] sm:$0xff]  ;;  %2310 = vst.msk [vmem:[#allocation4 + $0xa0] sm:$0xff] %vm223_vm0, %v7792_v28  ;;  %2311 = vst.msk [vmem:[#allocation4 + $0xb8] sm:$0xff] %vm223_vm0, %v7794_v32  ;;  %6911 = vmatprep.mubr.msk.f32.mxu1 %vm223_vm0, %v2344_v9  ;;  %v672_v9 = vadd.f32 %v7778_v0, %v7754_v20 }
  0xcc   : > { %970 = vst.msk [vmem:[#allocation3 + $0xda] sm:$0xff] %vm223_vm0, %v937_v59  ;;  %971 = vst.msk [vmem:[#allocation3 + $0xe2] sm:$0xff] %vm223_vm0, %v938_v57  ;;  %1144 = vrot.lane.b32.xlu0 %v1066_v58, %s7195_s23  ;;  %v2347_v11 = vld [vmem:[#allocation4 + $0x58] sm:$0xff]  ;;  %v841_v42 = vpop.permute.xlu0 %840  ;;  %v845_v46 = vpop.permute.xlu1 %844  ;;  %v702_v59 = vadd.f32 %v670_v56, %v7778_v0  ;;  %v538_v57 = vadd.f32 %v502_v24, %v430_v14  ;;  %v7811_v35 = vld [vmem:[#allocation3 + $0xa8] sm:$0xff]  ;;  %v7837_v24 = vadd.f32 %v573_v7, %v537_v63 }
  0xcd   : > { %v1067_v27 = vld [vmem:[#allocation3 + $0xb2] sm:$0xff]  ;;  %6912 = vmatmul.mubr.msk.f32.gmra.mxu1 %vm223_vm0, %v2347_v11  ;;  %v939_v45 = vmul.f32 %v841_v42, %v699_v33  ;;  %v940_v37 = vmul.f32 %v845_v46, %v700_v31  ;;  %v505_v54 = vld [vmem:[#allocation2 + $0x182] sm:$0xff]  ;;  %1034 = vst.msk [vmem:[#allocation4 + $0x150] sm:$0xff] %vm223_vm0, %v7811_v35  ;;  %v506_v11 = vld [vmem:[#allocation2 + $0x18a] sm:$0xff] }
  0xce   : > { %v432_v58 = vld [vmem:[#allocation2 + $0x171] sm:$0xff]  ;;  %v434_v31 = vld [vmem:[#allocation2 + $0x189] sm:$0xff]  ;;  %1146 = vrot.lane.b32.xlu1 %v1067_v27, %s7195_s23  ;;  %v673_v27 = vadd.f32 %v7804_v12, %v7774_v50  ;;  %v541_v49 = vadd.f32 %v505_v54, %v433_v39  ;;  %v507_v39 = vld [vmem:[#allocation2 + $0x19a] sm:$0xff] }
  0xcf   : > { %v7813_v40 = vld [vmem:[#allocation3 + $0xb0] sm:$0xff]  ;;  %v7824_v56 = vld [vmem:[#allocation3 + $0xc4] sm:$0xff]  ;;  %972 = vst.msk [vmem:[#allocation3 + $0xf2] sm:$0xff] %vm223_vm0, %v939_v45  ;;  %973 = vst.msk [vmem:[#allocation3 + $0xfa] sm:$0xff] %vm223_vm0, %v940_v37  ;;  %v674_v45 = vadd.f32 %v7816_v41, %v7778_v0  ;;  %v540_v16 = vadd.f32 %v504_v44, %v432_v58 }
  0xd0   : > { %1035 = vst.msk [vmem:[#allocation4 + $0x168] sm:$0xff] %vm223_vm0, %v7813_v40  ;;  %v7826_v14 = vld [vmem:[#allocation3 + $0xcc] sm:$0xff]  ;;  %v1068_v33 = vld [vmem:[#allocation3 + $0xc2] sm:$0xff]  ;;  %2312 = vst.msk [vmem:[#allocation4 + $0xd0] sm:$0xff] %vm223_vm0, %v7824_v56  ;;  %v852_v46 = vpop.permute.xlu0 %851  ;;  %v856_v1 = vpop.permute.xlu1 %855 }
  0xd1   : > { %2313 = vst.msk [vmem:[#allocation4 + $0xe8] sm:$0xff] %vm223_vm0, %v7826_v14  ;;  %1148 = vrot.lane.b32.xlu0 %v1068_v33, %s7195_s23  ;;  %v2350_v20 = vld [vmem:[#allocation4 + $0x70] sm:$0xff]  ;;  %v2353_v47 = vld [vmem:[#allocation4 + $0x88] sm:$0xff]  ;;  %v7842_v33 = vadd.f32 %v574_v25, %v538_v57  ;;  %v7846_v37 = vld [vmem:[#allocation3 + $0xc0] sm:$0xff]  ;;  %v941_v7 = vmul.f32 %v852_v46, %v701_v48  ;;  %v942_v63 = vmul.f32 %v856_v1, %v702_v59 }
  0xd2   : > { %6914 = vmatprep.mubr.msk.f32.mxu1 %vm223_vm0, %v2350_v20  ;;  %v1069_v42 = vld [vmem:[#allocation3 + $0xca] sm:$0xff]  ;;  %v704_v20 = vadd.f32 %v672_v9, %v7816_v41  ;;  %1036 = vst.msk [vmem:[#allocation4 + $0x180] sm:$0xff] %vm223_vm0, %v7846_v37  ;;  %v2356_v1 = vld [vmem:[#allocation4 + $0xa0] sm:$0xff]  ;;  %v2359_v44 = vld [vmem:[#allocation4 + $0xb8] sm:$0xff]  ;;  %v542_v59 = vadd.f32 %v506_v11, %v434_v31  ;;  %v7871_v46 = vadd.f32 %v575_v43, %v539_v18 }
  0xd3   : > { %v7848_v19 = vld [vmem:[#allocation3 + $0xc8] sm:$0xff]  ;;  %6915 = vmatmul.mubr.msk.f32.gmra.mxu1 %vm223_vm0, %v2353_v47  ;;  %v7856_v0 = vld [vmem:[#allocation3 + $0xdc] sm:$0xff]  ;;  %1150 = vrot.lane.b32.xlu1 %v1069_v42, %s7195_s23  ;;  %974 = vst.msk [vmem:[#allocation3 + $0x10a] sm:$0xff] %vm223_vm0, %v941_v7  ;;  %975 = vst.msk [vmem:[#allocation3 + $0x112] sm:$0xff] %vm223_vm0, %v942_v63  ;;  %v705_v47 = vadd.f32 %v673_v27, %v7837_v24  ;;  %v706_v42 = vadd.f32 %v674_v45, %v7842_v33 }
  0xd4   : > { %v577_v50 = vld [vmem:[#allocation2 + $0x183] sm:$0xff]  ;;  %1037 = vst.msk [vmem:[#allocation4 + $0x198] sm:$0xff] %vm223_vm0, %v7848_v19  ;;  %v1070_v34 = vld [vmem:[#allocation3 + $0xda] sm:$0xff]  ;;  %v578_v48 = vld [vmem:[#allocation2 + $0x18b] sm:$0xff]  ;;  %6917 = vmatprep.mubr.msk.f32.mxu1 %vm223_vm0, %v2356_v1  ;;  %v863_v9 = vpop.permute.xlu0 %862  ;;  %v867_v54 = vpop.permute.xlu1 %866  ;;  %v612_v8 = vadd.f32 %v576_v13, %v540_v16  ;;  %v676_v27 = vadd.f32 %v7842_v33, %v7816_v41  ;;  %v677_v16 = vadd.f32 %v7871_v46, %v7837_v24 }
  0xd5   : > { %v7858_v25 = vld [vmem:[#allocation3 + $0xe4] sm:$0xff]  ;;  %2314 = vst.msk [vmem:[#allocation4 + $0x100] sm:$0xff] %vm223_vm0, %v7856_v0  ;;  %1152 = vrot.lane.b32.xlu0 %v1070_v34, %s7195_s23  ;;  %v435_v57 = vld [vmem:[#allocation2 + $0x199] sm:$0xff]  ;;  %v675_v34 = vadd.f32 %v7837_v24, %v7804_v12  ;;  %v943_v11 = vmul.f32 %v863_v9, %v703_v10  ;;  %v944_v1 = vmul.f32 %v867_v54, %v704_v20 }
  0xd6   : > { %2315 = vst.msk [vmem:[#allocation4 + $0x118] sm:$0xff] %vm223_vm0, %v7858_v25  ;;  %v1071_v58 = vld [vmem:[#allocation3 + $0xe2] sm:$0xff]  ;;  %v7875_v7 = vld [vmem:[#allocation3 + $0xd8] sm:$0xff]  ;;  %v7903_v41 = vadd.f32 %v578_v48, %v542_v59  ;;  %v678_v10 = vadd.f32 %v612_v8, %v7842_v33  ;;  %v543_v9 = vadd.f32 %v507_v39, %v435_v57  ;;  %v1251_v48 = vld [vmem:[#allocation3 + $0x4c] sm:$0xff]  ;;  %v708_v53 = vadd.f32 %v676_v27, %v612_v8 }
  0xd7   : > { %v7877_v63 = vld [vmem:[#allocation3 + $0xe0] sm:$0xff]  ;;  %6918 = vmatmul.mubr.msk.f32.gmra.mxu1 %vm223_vm0, %v2359_v44  ;;  %v7880_v31 = vld [vmem:[#allocation3 + $0x34] sm:$0xff]  ;;  %1038 = vst.msk [vmem:[#allocation4 + $0x1b0] sm:$0xff] %vm223_vm0, %v7875_v7  ;;  %v7890_v44 = vadd.f32 %v577_v50, %v541_v49  ;;  %1154 = vrot.lane.b32.xlu1 %v1071_v58, %s7195_s23  ;;  %976 = vst.msk [vmem:[#allocation3 + $0x122] sm:$0xff] %vm223_vm0, %v943_v11  ;;  %v707_v62 = vadd.f32 %v675_v34, %v7871_v46 }
  0xd8   : > { %10552 = vst [vmem:[#allocation18_spill] sm:$0xff] %v7877_v63  ;;  %10553 = vst [vmem:[#allocation19_spill] sm:$0xff] %v7880_v31  ;;  %v436_v45 = vld [vmem:[#allocation2 + $0x1a1] sm:$0xff]  ;;  %v2362_v18 = vld [vmem:[#allocation4 + $0xd0] sm:$0xff]  ;;  %v874_v49 = vpop.permute.xlu0 %873  ;;  %v878_v58 = vpop.permute.xlu1 %877  ;;  %v710_v34 = vadd.f32 %v678_v10, %v7903_v41 }
  0xd9   : > { %v508_v43 = vld [vmem:[#allocation2 + $0x1a2] sm:$0xff]  ;;  %1039 = vst.msk [vmem:[#allocation4 + $0x1c8] sm:$0xff] %vm223_vm0, %v7877_v63  ;;  %v7888_v3 = vld [vmem:[#allocation3 + $0xf4] sm:$0xff]  ;;  %1317 = vrot.lane.b32.xlu0 %v7880_v31, %s7196_s25  ;;  %977 = vst.msk [vmem:[#allocation3 + $0x12a] sm:$0xff] %vm223_vm0, %v944_v1  ;;  %6920 = vmatprep.mubr.msk.f32.mxu1 %vm223_vm0, %v2362_v18  ;;  %v945_v59 = vmul.f32 %v874_v49, %v705_v47  ;;  %v946_v18 = vmul.f32 %v878_v58, %v706_v42 }
  0xda   : > { %v2365_v12 = vld [vmem:[#allocation4 + $0xe8] sm:$0xff]  ;;  %v7895_v13 = vld [vmem:[#allocation3 + $0xfc] sm:$0xff]  ;;  %2316 = vst.msk [vmem:[#allocation4 + $0x130] sm:$0xff] %vm223_vm0, %v7888_v3  ;;  %v544_v54 = vadd.f32 %v508_v43, %v436_v45  ;;  %v437_v11 = vld [vmem:[#allocation2 + $0x1b1] sm:$0xff]  ;;  %v709_v42 = vadd.f32 %v677_v16, %v7890_v44  ;;  %v679_v49 = vadd.f32 %v7890_v44, %v7871_v46 }
  0xdb   : > { %v579_v20 = vld [vmem:[#allocation2 + $0x19b] sm:$0xff]  ;;  %v580_v50 = vld [vmem:[#allocation2 + $0x1a3] sm:$0xff]  ;;  %2317 = vst.msk [vmem:[#allocation4 + $0x148] sm:$0xff] %vm223_vm0, %v7895_v13  ;;  %v509_v1 = vld [vmem:[#allocation2 + $0x1b2] sm:$0xff]  ;;  %6921 = vmatmul.mubr.msk.f32.gmra.mxu1 %vm223_vm0, %v2365_v12 }
  0xdc   : > { %v7909_v31 = vld [vmem:[#allocation3 + $0xf0] sm:$0xff]  ;;  %v7911_v24 = vld [vmem:[#allocation3 + $0xf8] sm:$0xff]  ;;  %v2368_v57 = vld [vmem:[#allocation4 + $0x100] sm:$0xff]  ;;  %978 = vst.msk [vmem:[#allocation3 + $0x13a] sm:$0xff] %vm223_vm0, %v945_v59  ;;  %v885_v27 = vpop.permute.xlu0 %884  ;;  %v889_v43 = vpop.permute.xlu1 %888  ;;  %v615_v12 = vadd.f32 %v579_v20, %v543_v9  ;;  %v616_v58 = vadd.f32 %v580_v50, %v544_v54 }
  0xdd   : > { %10554 = vst [vmem:[#allocation20_spill] sm:$0xff] %v7909_v31  ;;  %10555 = vst [vmem:[#allocation21_spill] sm:$0xff] %v7911_v24  ;;  %v7914_v33 = vld [vmem:[#allocation3 + $0x3c] sm:$0xff]  ;;  %v7921_v45 = vld [vmem:[#allocation3 + $0x10c] sm:$0xff]  ;;  %1321 = vrot.lane.b32.xlu0 %v1251_v48, %s7196_s25  ;;  %6923 = vmatprep.mubr.msk.f32.mxu1 %vm223_vm0, %v2368_v57  ;;  %v680_v48 = vadd.f32 %v7903_v41, %v612_v8  ;;  %v947_v16 = vmul.f32 %v885_v27, %v707_v62 }
  0xde   : > { %10556 = vst [vmem:[#allocation22_spill] sm:$0xff] %v7914_v33  ;;  %v510_v63 = vld [vmem:[#allocation2 + $0x1ba] sm:$0xff]  ;;  %1040 = vst.msk [vmem:[#allocation4 + $0x1e0] sm:$0xff] %vm223_vm0, %v7909_v31  ;;  %1319 = vrot.lane.b32.xlu1 %v7914_v33, %s7196_s25  ;;  %v7940_v59 = vld [vmem:[#allocation3 + $0x108] sm:$0xff]  ;;  %v948_v10 = vmul.f32 %v889_v43, %v708_v53  ;;  %v545_v57 = vadd.f32 %v509_v1, %v437_v11  ;;  %v711_v50 = vadd.f32 %v679_v49, %v615_v12 }
  0xdf   : > { %1041 = vst.msk [vmem:[#allocation4 + $0x1f8] sm:$0xff] %vm223_vm0, %v7911_v24  ;;  %v2371_v39 = vld [vmem:[#allocation4 + $0x118] sm:$0xff]  ;;  %2318 = vst.msk [vmem:[#allocation4 + $0x160] sm:$0xff] %vm223_vm0, %v7921_v45  ;;  %v546_v24 = vadd.f32 %v510_v63, %v438_v52  ;;  %v712_v9 = vadd.f32 %v680_v48, %v616_v58  ;;  %v682_v54 = vadd.f32 %v616_v58, %v7903_v41  ;;  %v7965_v11 = vld [vmem:[#allocation3 + $0x120] sm:$0xff] }
  0xe0   : > { %v7926_v47 = vld [vmem:[#allocation3 + $0x114] sm:$0xff]  ;;  %979 = vst.msk [vmem:[#allocation3 + $0x142] sm:$0xff] %vm223_vm0, %v946_v18  ;;  %6924 = vmatmul.mubr.msk.f32.gmra.mxu1 %vm223_vm0, %v2371_v39  ;;  %1042 = vst.msk [vmem:[#allocation4 + $0x210] sm:$0xff] %vm223_vm0, %v7940_v59  ;;  %v7949_v8 = vld [vmem:[#allocation3 + $0x124] sm:$0xff]  ;;  %v896_v62 = vpop.permute.xlu0 %895  ;;  %v900_v63 = vpop.permute.xlu1 %899 }
  0xe1   : > { %2319 = vst.msk [vmem:[#allocation4 + $0x178] sm:$0xff] %vm223_vm0, %v7926_v47  ;;  %v7942_v18 = vld [vmem:[#allocation3 + $0x110] sm:$0xff]  ;;  %v582_v31 = vld [vmem:[#allocation2 + $0x1bb] sm:$0xff]  ;;  %1325 = vrot.lane.b32.xlu0 %v7708_v17, %s7196_s25  ;;  %2320 = vst.msk [vmem:[#allocation4 + $0x190] sm:$0xff] %vm223_vm0, %v7949_v8  ;;  %v681_v17 = vadd.f32 %v615_v12, %v7890_v44  ;;  %v949_v39 = vmul.f32 %v896_v62, %v709_v42  ;;  %v950_v27 = vmul.f32 %v900_v63, %v710_v34 }
  0xe2   : > { %v581_v33 = vld [vmem:[#allocation2 + $0x1b3] sm:$0xff]  ;;  %1043 = vst.msk [vmem:[#allocation4 + $0x228] sm:$0xff] %vm223_vm0, %v7942_v18  ;;  %980 = vst.msk [vmem:[#allocation3 + $0x152] sm:$0xff] %vm223_vm0, %v947_v16  ;;  %v2377_v53 = vld [vmem:[#allocation4 + $0x148] sm:$0xff]  ;;  %v618_v16 = vadd.f32 %v582_v31, %v546_v24 }
  0xe3   : > { %v1252_v46 = vld [vmem:[#allocation3 + $0x54] sm:$0xff]  ;;  %v7951_v20 = vld [vmem:[#allocation3 + $0x12c] sm:$0xff]  ;;  %981 = vst.msk [vmem:[#allocation3 + $0x15a] sm:$0xff] %vm223_vm0, %v948_v10  ;;  %v617_v43 = vadd.f32 %v581_v33, %v545_v57  ;;  %1044 = vst.msk [vmem:[#allocation4 + $0x240] sm:$0xff] %vm223_vm0, %v7965_v11 }
  0xe4   : > { %1323 = vrot.lane.b32.xlu1 %v1252_v46, %s7196_s25  ;;  %2321 = vst.msk [vmem:[#allocation4 + $0x1a8] sm:$0xff] %vm223_vm0, %v7951_v20  ;;  %v2374_v52 = vld [vmem:[#allocation4 + $0x130] sm:$0xff]  ;;  %v1013_v1 = vld [vmem:[#allocation3 + $0x128] sm:$0xff]  ;;  %982 = vst.msk [vmem:[#allocation3 + $0x16a] sm:$0xff] %vm223_vm0, %v949_v39  ;;  %v907_v41 = vpop.permute.xlu0 %906  ;;  %v911_v24 = vpop.permute.xlu1 %910  ;;  %v714_v12 = vadd.f32 %v682_v54, %v618_v16 }
  0xe5   : > { %6926 = vmatprep.mubr.msk.f32.mxu1 %vm223_vm0, %v2374_v52  ;;  %1045 = vst.msk [vmem:[#allocation4 + $0x258] sm:$0xff] %vm223_vm0, %v1013_v1  ;;  %1329 = vrot.lane.b32.xlu0 %v7727_v51, %s7196_s25  ;;  %983 = vst.msk [vmem:[#allocation3 + $0x172] sm:$0xff] %vm223_vm0, %v950_v27  ;;  %v951_v51 = vmul.f32 %v907_v41, %v711_v50  ;;  %v952_v42 = vmul.f32 %v911_v24, %v712_v9  ;;  %v1639_v58 = vld [vmem:[#allocation3 + $0x92] sm:$0xff]  ;;  %v1640_v9 = vld [vmem:[#allocation3 + $0x9a] sm:$0xff] }
  0xe6   : > { %6927 = vmatmul.mubr.msk.f32.gmra.mxu1 %vm223_vm0, %v2377_v53  ;;  %v2380_v31 = vld [vmem:[#allocation4 + $0x160] sm:$0xff]  ;;  %v713_v34 = vadd.f32 %v681_v17, %v617_v43  ;;  %1671 = vst.msk [vmem:[#allocation4 + $0xc8] sm:$0xff] %vm223_vm0, %v1639_v58  ;;  %v1641_v17 = vld [vmem:[#allocation3 + $0xaa] sm:$0xff]  ;;  %1672 = vst.msk [vmem:[#allocation4 + $0xe0] sm:$0xff] %vm223_vm0, %v1640_v9 }
  0xe7   : > { %v7971_v49 = vld [vmem:[#allocation3 + $0x13c] sm:$0xff]  ;;  %v7973_v48 = vld [vmem:[#allocation3 + $0x144] sm:$0xff]  ;;  %6929 = vmatprep.mubr.msk.f32.mxu1 %vm223_vm0, %v2380_v31  ;;  %984 = vst.msk [vmem:[#allocation3 + $0x182] sm:$0xff] %vm223_vm0, %v951_v51  ;;  %985 = vst.msk [vmem:[#allocation3 + $0x18a] sm:$0xff] %vm223_vm0, %v952_v42 }
  0xe8   : > { %1327 = vrot.lane.b32.xlu1 %v7696_v15, %s7196_s25  ;;  %2322 = vst.msk [vmem:[#allocation4 + $0x1c0] sm:$0xff] %vm223_vm0, %v7971_v49  ;;  %2323 = vst.msk [vmem:[#allocation4 + $0x1d8] sm:$0xff] %vm223_vm0, %v7973_v48  ;;  %v2383_v44 = vld [vmem:[#allocation4 + $0x178] sm:$0xff]  ;;  %v1015_v33 = vld [vmem:[#allocation3 + $0x140] sm:$0xff]  ;;  %v918_v53 = vpop.permute.xlu0 %917  ;;  %v922_v62 = vpop.permute.xlu1 %921 }
  0xe9   : > { %v1014_v15 = vld [vmem:[#allocation3 + $0x138] sm:$0xff]  ;;  %1047 = vst.msk [vmem:[#allocation4 + $0x288] sm:$0xff] %vm223_vm0, %v1015_v33  ;;  %1333 = vrot.lane.b32.xlu0 %v7758_v26, %s7196_s25  ;;  %v2386_v46 = vld [vmem:[#allocation4 + $0x190] sm:$0xff]  ;;  %v953_v26 = vmul.f32 %v918_v53, %v713_v34  ;;  %v954_v50 = vmul.f32 %v922_v62, %v714_v12  ;;  %1673 = vst.msk [vmem:[#allocation4 + $0xf8] sm:$0xff] %vm223_vm0, %v1641_v17 }
  0xea   : > { %6930 = vmatmul.mubr.msk.f32.gmra.mxu1 %vm223_vm0, %v2383_v44  ;;  %1046 = vst.msk [vmem:[#allocation4 + $0x270] sm:$0xff] %vm223_vm0, %v1014_v15  ;;  %v7989_v10 = vld [vmem:[#allocation3 + $0x154] sm:$0xff]  ;;  %v7991_v57 = vld [vmem:[#allocation3 + $0x15c] sm:$0xff]  ;;  %v1074_v34 = vld [vmem:[#allocation3 + $0x10a] sm:$0xff] }
  0xeb   : > { %2324 = vst.msk [vmem:[#allocation4 + $0x1f0] sm:$0xff] %vm223_vm0, %v7989_v10  ;;  %2325 = vst.msk [vmem:[#allocation4 + $0x208] sm:$0xff] %vm223_vm0, %v7991_v57  ;;  %v2389_v52 = vld [vmem:[#allocation4 + $0x1a8] sm:$0xff]  ;;  %6932 = vmatprep.mubr.msk.f32.mxu1 %vm223_vm0, %v2386_v46  ;;  %v1017_v63 = vld [vmem:[#allocation3 + $0x158] sm:$0xff] }
  0xec   : > { %1331 = vrot.lane.b32.xlu1 %v7729_v38, %s7196_s25  ;;  %v1016_v38 = vld [vmem:[#allocation3 + $0x150] sm:$0xff]  ;;  %1049 = vst.msk [vmem:[#allocation4 + $0x2b8] sm:$0xff] %vm223_vm0, %v1017_v63  ;;  %986 = vst.msk [vmem:[#allocation3 + $0x19a] sm:$0xff] %vm223_vm0, %v953_v26  ;;  %v1117_v16 = vpop.permute.xlu0 %1116  ;;  %v1018_v31 = vld [vmem:[#allocation3 + $0x168] sm:$0xff] }
  0xed   : > { %1048 = vst.msk [vmem:[#allocation4 + $0x2a0] sm:$0xff] %vm223_vm0, %v1016_v38  ;;  %v8008_v54 = vld [vmem:[#allocation3 + $0x16c] sm:$0xff]  ;;  %v8010_v1 = vld [vmem:[#allocation3 + $0x174] sm:$0xff]  ;;  %1337 = vrot.lane.b32.xlu0 %v7792_v28, %s7196_s25  ;;  %987 = vst.msk [vmem:[#allocation3 + $0x1a2] sm:$0xff] %vm223_vm0, %v954_v50 }
  0xee   : > { %6933 = vmatmul.mubr.msk.f32.gmra.mxu1 %vm223_vm0, %v2389_v52  ;;  %2326 = vst.msk [vmem:[#allocation4 + $0x220] sm:$0xff] %vm223_vm0, %v8008_v54  ;;  %2327 = vst.msk [vmem:[#allocation4 + $0x238] sm:$0xff] %vm223_vm0, %v8010_v1  ;;  %v1072_v43 = vld [vmem:[#allocation3 + $0xf2] sm:$0xff]  ;;  %v1643_v41 = vld [vmem:[#allocation3 + $0xc2] sm:$0xff] }
  0xef   : > { %v2392_v39 = vld [vmem:[#allocation4 + $0x1c0] sm:$0xff]  ;;  %v2395_v27 = vld [vmem:[#allocation4 + $0x1d8] sm:$0xff]  ;;  %v1019_v44 = vld [vmem:[#allocation3 + $0x170] sm:$0xff]  ;;  %1213 = vst.msk [vmem:[#allocation4] sm:$0xff] %vm1212_vm11, %v1117_v16 }
  0xf0   : > { %1335 = vrot.lane.b32.xlu1 %v7760_v29, %s7196_s25  ;;  %6935 = vmatprep.mubr.msk.f32.mxu1 %vm223_vm0, %v2392_v39  ;;  %v1119_v29 = vpop.permute.xlu1 %1118  ;;  %1050 = vst.msk [vmem:[#allocation4 + $0x2d0] sm:$0xff] %vm223_vm0, %v1018_v31  ;;  %1051 = vst.msk [vmem:[#allocation4 + $0x2e8] sm:$0xff] %vm223_vm0, %v1019_v44  ;;  %v1642_v28 = vld [vmem:[#allocation3 + $0xb2] sm:$0xff]  ;;  %v2296_v33 = vld [vmem:[#allocation3 + $0x184] sm:$0xff]  ;;  %v1121_v12 = vpop.permute.xlu0 %1120 }
  0xf1   : > { %1214 = vst.msk [vmem:[#allocation4 + $0x18] sm:$0xff] %vm1212_vm11, %v1119_v29  ;;  %1156 = vrot.lane.b32.xlu0 %v1072_v43, %s7195_s23  ;;  %v1073_v51 = vld [vmem:[#allocation3 + $0xfa] sm:$0xff]  ;;  %v2297_v42 = vld [vmem:[#allocation3 + $0x18c] sm:$0xff]  ;;  %1215 = vst.msk [vmem:[#allocation4 + $0x30] sm:$0xff] %vm1212_vm11, %v1121_v12 }
  0xf2   : > { %6936 = vmatmul.mubr.msk.f32.gmra.mxu1 %vm223_vm0, %v2395_v27  ;;  %v2398_v24 = vld [vmem:[#allocation4 + $0x1f0] sm:$0xff]  ;;  %v2401_v15 = vld [vmem:[#allocation4 + $0x208] sm:$0xff]  ;;  %1674 = vst.msk [vmem:[#allocation4 + $0x110] sm:$0xff] %vm223_vm0, %v1642_v28  ;;  %1675 = vst.msk [vmem:[#allocation4 + $0x128] sm:$0xff] %vm223_vm0, %v1643_v41 }
  0xf3   : > { %2328 = vst.msk [vmem:[#allocation4 + $0x250] sm:$0xff] %vm223_vm0, %v2296_v33  ;;  %6938 = vmatprep.mubr.msk.f32.mxu1 %vm223_vm0, %v2398_v24  ;;  %2329 = vst.msk [vmem:[#allocation4 + $0x268] sm:$0xff] %vm223_vm0, %v2297_v42  ;;  %v1644_v46 = vld [vmem:[#allocation3 + $0xca] sm:$0xff]  ;;  %v1645_v52 = vld [vmem:[#allocation3 + $0xda] sm:$0xff] }
  0xf4   : > { %1339 = vrot.lane.b32.xlu1 %v7794_v32, %s7196_s25  ;;  %v1123_v58 = vpop.permute.xlu1 %1122  ;;  %1676 = vst.msk [vmem:[#allocation4 + $0x140] sm:$0xff] %vm223_vm0, %v1644_v46  ;;  %1677 = vst.msk [vmem:[#allocation4 + $0x158] sm:$0xff] %vm223_vm0, %v1645_v52  ;;  %v1646_v32 = vld [vmem:[#allocation3 + $0xe2] sm:$0xff]  ;;  %v1647_v26 = vld [vmem:[#allocation3 + $0xf2] sm:$0xff]  ;;  %v1310_v17 = vpop.permute.xlu0 %1309 }
  0xf5   : > { %1216 = vst.msk [vmem:[#allocation4 + $0x48] sm:$0xff] %vm1212_vm11, %v1123_v58  ;;  %v2404_v53 = vld [vmem:[#allocation4 + $0x220] sm:$0xff]  ;;  %v2407_v62 = vld [vmem:[#allocation4 + $0x238] sm:$0xff]  ;;  %1160 = vrot.lane.b32.xlu0 %v1074_v34, %s7195_s23  ;;  %v1649_v43 = vld [vmem:[#allocation3 + $0x10a] sm:$0xff] }
  0xf6   : > { %6939 = vmatmul.mubr.msk.f32.gmra.mxu1 %vm223_vm0, %v2401_v15  ;;  %v2298_v38 = vld [vmem:[#allocation3 + $0x19c] sm:$0xff]  ;;  %1678 = vst.msk [vmem:[#allocation4 + $0x170] sm:$0xff] %vm223_vm0, %v1646_v32  ;;  %v2299_v63 = vld [vmem:[#allocation3 + $0x1a4] sm:$0xff]  ;;  %v1075_v50 = vld [vmem:[#allocation3 + $0x112] sm:$0xff] }
  0xf7   : > { %2330 = vst.msk [vmem:[#allocation4 + $0x280] sm:$0xff] %vm223_vm0, %v2298_v38  ;;  %v1076_v9 = vld [vmem:[#allocation3 + $0x122] sm:$0xff]  ;;  %6941 = vmatprep.mubr.msk.f32.mxu1 %vm223_vm0, %v2404_v53  ;;  %2331 = vst.msk [vmem:[#allocation4 + $0x298] sm:$0xff] %vm223_vm0, %v2299_v63  ;;  %v1648_v27 = vld [vmem:[#allocation3 + $0xfa] sm:$0xff] }
  0xf8   : > { %1158 = vrot.lane.b32.xlu1 %v1073_v51, %s7195_s23  ;;  %v1312_v39 = vpop.permute.xlu1 %1311  ;;  %1679 = vst.msk [vmem:[#allocation4 + $0x188] sm:$0xff] %vm223_vm0, %v1647_v26  ;;  %1680 = vst.msk [vmem:[#allocation4 + $0x1a0] sm:$0xff] %vm223_vm0, %v1648_v27  ;;  %v1650_v31 = vld [vmem:[#allocation3 + $0x112] sm:$0xff]  ;;  %v1077_v44 = vld [vmem:[#allocation3 + $0x12a] sm:$0xff]  ;;  %v1314_v41 = vpop.permute.xlu0 %1313 }
  0xf9   : > { %1406 = vst.msk [vmem:[#allocation4] sm:$0xff] %vm1405_vm12, %v1310_v17  ;;  %1407 = vst.msk [vmem:[#allocation4 + $0x18] sm:$0xff] %vm1405_vm12, %v1312_v39  ;;  %1164 = vrot.lane.b32.xlu0 %v1076_v9, %s7195_s23  ;;  %v1078_v28 = vld [vmem:[#allocation3 + $0x13a] sm:$0xff]  ;;  %v1651_v15 = vld [vmem:[#allocation3 + $0x122] sm:$0xff] }
  0xfa   : > { %6942 = vmatmul.mubr.msk.f32.gmra.mxu1 %vm223_vm0, %v2407_v62  ;;  %v2410_v16 = vld [vmem:[#allocation4 + $0x250] sm:$0xff]  ;;  %1681 = vst.msk [vmem:[#allocation4 + $0x1b8] sm:$0xff] %vm223_vm0, %v1649_v43  ;;  %v2413_v29 = vld [vmem:[#allocation4 + $0x268] sm:$0xff]  ;;  %1682 = vst.msk [vmem:[#allocation4 + $0x1d0] sm:$0xff] %vm223_vm0, %v1650_v31  ;;  %v10558_v31 = vmul.u32 %v7529_v36, %v7526_v30 }
  0xfb   : > { %6944 = vmatprep.mubr.msk.f32.mxu1 %vm223_vm0, %v2410_v16  ;;  %1408 = vst.msk [vmem:[#allocation4 + $0x30] sm:$0xff] %vm1405_vm12, %v1314_v41  ;;  %v1652_v51 = vld [vmem:[#allocation3 + $0x12a] sm:$0xff]  ;;  %v1079_v34 = vld [vmem:[#allocation3 + $0x142] sm:$0xff]  ;;  %v1080_v12 = vld [vmem:[#allocation3 + $0x152] sm:$0xff] }
  0xfc   : > { %1162 = vrot.lane.b32.xlu1 %v1075_v50, %s7195_s23  ;;  %v1316_v24 = vpop.permute.xlu1 %1315  ;;  %1683 = vst.msk [vmem:[#allocation4 + $0x1e8] sm:$0xff] %vm223_vm0, %v1651_v15  ;;  %1684 = vst.msk [vmem:[#allocation4 + $0x200] sm:$0xff] %vm223_vm0, %v1652_v51  ;;  %v1653_v58 = vld [vmem:[#allocation3 + $0x13a] sm:$0xff]  ;;  %v1654_v46 = vld [vmem:[#allocation3 + $0x142] sm:$0xff] }
  0xfd   : > { %1409 = vst.msk [vmem:[#allocation4 + $0x48] sm:$0xff] %vm1405_vm12, %v1316_v24  ;;  %1168 = vrot.lane.b32.xlu0 %v1078_v28, %s7195_s23  ;;  %v1081_v52 = vld [vmem:[#allocation3 + $0x15a] sm:$0xff]  ;;  %v1655_v32 = vld [vmem:[#allocation3 + $0x152] sm:$0xff]  ;;  %v1082_v62 = vld [vmem:[#allocation3 + $0x16a] sm:$0xff] }
  0xfe   : > { %6945 = vmatmul.mubr.msk.f32.gmra.mxu1 %vm223_vm0, %v2413_v29  ;;  %v2416_v33 = vld [vmem:[#allocation4 + $0x280] sm:$0xff]  ;;  %v2419_v42 = vld [vmem:[#allocation4 + $0x298] sm:$0xff]  ;;  %1685 = vst.msk [vmem:[#allocation4 + $0x218] sm:$0xff] %vm223_vm0, %v1653_v58  ;;  %1686 = vst.msk [vmem:[#allocation4 + $0x230] sm:$0xff] %vm223_vm0, %v1654_v46 }
  0xff   : > { %6947 = vmatprep.mubr.msk.f32.mxu1 %vm223_vm0, %v2416_v33  ;;  %v1656_v53 = vld [vmem:[#allocation3 + $0x15a] sm:$0xff]  ;;  %1687 = vst.msk [vmem:[#allocation4 + $0x248] sm:$0xff] %vm223_vm0, %v1655_v32  ;;  %v1657_v38 = vld [vmem:[#allocation3 + $0x16a] sm:$0xff]  ;;  %v1658_v63 = vld [vmem:[#allocation3 + $0x172] sm:$0xff] }
 0x100   : > { %1166 = vrot.lane.b32.xlu1 %v1077_v44, %s7195_s23  ;;  %1688 = vst.msk [vmem:[#allocation4 + $0x260] sm:$0xff] %vm223_vm0, %v1656_v53  ;;  %1689 = vst.msk [vmem:[#allocation4 + $0x278] sm:$0xff] %vm223_vm0, %v1657_v38  ;;  %v1659_v26 = vld [vmem:[#allocation3 + $0x182] sm:$0xff]  ;;  %v1660_v50 = vld [vmem:[#allocation3 + $0x18a] sm:$0xff]  ;;  %v3633_v44 = vcvt.s32.f32 %v10558_v31 }
 0x101   : > { %1172 = vrot.lane.b32.xlu0 %v1080_v12, %s7195_s23  ;;  %1690 = vst.msk [vmem:[#allocation4 + $0x290] sm:$0xff] %vm223_vm0, %v1658_v63  ;;  %v1661_v9 = vld [vmem:[#allocation3 + $0x19a] sm:$0xff]  ;;  %1691 = vst.msk [vmem:[#allocation4 + $0x2a8] sm:$0xff] %vm223_vm0, %v1659_v26  ;;  %v1662_v17 = vld [vmem:[#allocation3 + $0x1a2] sm:$0xff] }
 0x102   : > { %6948 = vmatmul.mubr.msk.f32.gmra.mxu1 %vm223_vm0, %v2419_v42  ;;  %1692 = vst.msk [vmem:[#allocation4 + $0x2c0] sm:$0xff] %vm223_vm0, %v1660_v50  ;;  %1693 = vst.msk [vmem:[#allocation4 + $0x2d8] sm:$0xff] %vm223_vm0, %v1661_v9  ;;  %v1083_v39 = vld [vmem:[#allocation3 + $0x172] sm:$0xff]  ;;  %v2433_v28 = vld [vmem:[%s10509_s1 + $0x8] sm:$0xff]  ;;  %7126 = vrcp.f32 %v3633_v44 }
 0x103   : > { %1694 = vst.msk [vmem:[#allocation4 + $0x2f0] sm:$0xff] %vm223_vm0, %v1662_v17  ;;  %v2435_v27 = vld [vmem:[%s10509_s1 + $0x18] sm:$0xff]  ;;  %v2434_v29 = vld [vmem:[%s10509_s1 + $0x10] sm:$0xff]  ;;  %v2432_v30 = vld [vmem:[%s10509_s1] sm:$0xff] }
 0x104   : > { %1170 = vrot.lane.b32.xlu1 %v1079_v34, %s7195_s23  ;;  %v2463_v51 = vld [vmem:[%s10509_s1 + $0xf8] sm:$0xff]  ;;  %v2462_v42 = vld [vmem:[%s10509_s1 + $0xf0] sm:$0xff]  ;;  %v2461_v58 = vld [vmem:[%s10509_s1 + $0xe8] sm:$0xff] }
 0x105   : > { %1176 = vrot.lane.b32.xlu0 %v1082_v62, %s7195_s23  ;;  %v10559_v46 = vld [vmem:[#allocation18_spill] sm:$0xff]  ;;  %v2460_v62 = vld [vmem:[%s10509_s1 + $0xe0] sm:$0xff]  ;;  %v2459_v63 = vld [vmem:[%s10509_s1 + $0xd8] sm:$0xff] }
 0x106   : > { %v10561_v38 = vld [vmem:[#allocation21_spill] sm:$0xff]  ;;  %v2458_v17 = vld [vmem:[%s10509_s1 + $0xd0] sm:$0xff] }
 0x107   : > { %v2450_v31 = vld [vmem:[%s10509_s1 + $0x90] sm:$0xff] }
 0x108   : > { %1174 = vrot.lane.b32.xlu1 %v1081_v52, %s7195_s23  ;;  %v10560_v52 = vld [vmem:[#allocation20_spill] sm:$0xff] }
 0x109   : > { %1341 = vrot.lane.b32.xlu0 %v7824_v56, %s7196_s25  ;;  %v2447_v56 = vld [vmem:[%s10509_s1 + $0x78] sm:$0xff] }
 0x10a   : > { %2565 = vmatpush1.msra.mxu0 %v2447_v56 }
 0x10c   : > { %1178 = vrot.lane.b32.xlu1 %v1083_v39, %s7195_s23  ;;  %v10562_v39 = vld [vmem:[#allocation11_spill] sm:$0xff] }
 0x10d   : > { %1345 = vrot.lane.b32.xlu0 %v7856_v0, %s7196_s25  ;;  %v2445_v0 = vld [vmem:[%s10509_s1 + $0x68] sm:$0xff] }
 0x10f   : > { %v8255_v26 = vpop.eup %7126 }
 0x110   : > { %1343 = vrot.lane.b32.xlu1 %v7826_v14, %s7196_s25  ;;  %v10557_v14 = vmov 0.0   ;;  %v3642_v56 = vrot.slane %v8255_v26, %v10562_v39 }
 0x111   : > { %1349 = vrot.lane.b32.xlu0 %v7888_v3, %s7196_s25  ;;  %2566 = vmatprep.subr.mxu0 %v10557_v14  ;;  %v2446_v3 = vld [vmem:[%s10509_s1 + $0x70] sm:$0xff] }
 0x112   : > { %2567 = vmatpush1.msra.mxu0 %v2446_v3 }
 0x113   : > { %2568 = vmatprep.subr.mxu0 %v10557_v14 }
 0x114   : > { %1347 = vrot.lane.b32.xlu1 %v7858_v25, %s7196_s25  ;;  %2569 = vmatpush1.msra.mxu0 %v2445_v0  ;;  %v2444_v25 = vld [vmem:[%s10509_s1 + $0x60] sm:$0xff] }
 0x115   : > { %1353 = vrot.lane.b32.xlu0 %v7921_v45, %s7196_s25  ;;  %2570 = vmatprep.subr.mxu0 %v10557_v14  ;;  %v2442_v45 = vld [vmem:[%s10509_s1 + $0x50] sm:$0xff] }
 0x116   : > { %2571 = vmatpush1.msra.mxu0 %v2444_v25  ;;  %v2457_v25 = vld [vmem:[%s10509_s1 + $0xc8] sm:$0xff] }
 0x117   : > { %2572 = vmatprep.subr.mxu0 %v10557_v14 }
 0x118   : > { %1351 = vrot.lane.b32.xlu1 %v7895_v13, %s7196_s25  ;;  %v2443_v13 = vld [vmem:[%s10509_s1 + $0x58] sm:$0xff] }
 0x119   : > { %1357 = vrot.lane.b32.xlu0 %v7949_v8, %s7196_s25  ;;  %2573 = vmatpush1.msra.mxu0 %v2443_v13  ;;  %v2456_v13 = vld [vmem:[%s10509_s1 + $0xc0] sm:$0xff] }
 0x11a   : > { %2574 = vmatprep.subr.mxu0 %v10557_v14 }
 0x11b   : > { %2575 = vmatpush1.msra.mxu0 %v2442_v45 }
 0x11c   : > { %1355 = vrot.lane.b32.xlu1 %v7926_v47, %s7196_s25  ;;  %v2441_v47 = vld [vmem:[%s10509_s1 + $0x48] sm:$0xff]  ;;  %2576 = vmatprep.subr.mxu0 %v10557_v14 }
 0x11d   : > { %1361 = vrot.lane.b32.xlu0 %v7971_v49, %s7196_s25  ;;  %2577 = vmatpush1.msra.mxu0 %v2441_v47 }
 0x11e   : > { %2578 = vmatprep.subr.mxu0 %v10557_v14 }
 0x120   : > { %1359 = vrot.lane.b32.xlu1 %v7951_v20, %s7196_s25  ;;  %v2440_v20 = vld [vmem:[%s10509_s1 + $0x40] sm:$0xff] }
 0x121   : > { %1365 = vrot.lane.b32.xlu0 %v7989_v10, %s7196_s25  ;;  %2579 = vmatpush1.msra.mxu0 %v2440_v20  ;;  %v10564_v20 = vld [vmem:[#allocation19_spill] sm:$0xff] }
 0x122   : > { %2580 = vmatprep.subr.mxu0 %v10557_v14 }
 0x124   : > { %1363 = vrot.lane.b32.xlu1 %v7973_v48, %s7196_s25  ;;  %v1125_v8 = vpop.permute.xlu0 %1124 }
 0x125   : > { %1369 = vrot.lane.b32.xlu0 %v8008_v54, %s7196_s25  ;;  %1217 = vst.msk [vmem:[#allocation4 + $0x60] sm:$0xff] %vm1212_vm11, %v1125_v8  ;;  %v2455_v8 = vld [vmem:[%s10509_s1 + $0xb8] sm:$0xff] }
 0x128   : > { %1367 = vrot.lane.b32.xlu1 %v7991_v57, %s7196_s25  ;;  %v1127_v49 = vpop.permute.xlu1 %1126  ;;  %v1129_v48 = vpop.permute.xlu0 %1128  ;;  %v2437_v57 = vld [vmem:[%s10509_s1 + $0x28] sm:$0xff] }
 0x129   : > { %1502 = vrot.lane.b32.xlu0 %v7661_v21, %s7197_s26  ;;  %v2439_v21 = vld [vmem:[%s10509_s1 + $0x38] sm:$0xff]  ;;  %1218 = vst.msk [vmem:[#allocation4 + $0x78] sm:$0xff] %vm1212_vm11, %v1127_v49  ;;  %1219 = vst.msk [vmem:[#allocation4 + $0x90] sm:$0xff] %vm1212_vm11, %v1129_v48  ;;  %v2454_v48 = vld [vmem:[%s10509_s1 + $0xb0] sm:$0xff] }
 0x12a   : > { %2581 = vmatpush1.msra.mxu0 %v2439_v21 }
 0x12b   : > { %2582 = vmatprep.subr.mxu0 %v10557_v14 }
 0x12c   : > { %1371 = vrot.lane.b32.xlu1 %v8010_v1, %s7196_s25  ;;  %v1133_v10 = vpop.permute.xlu0 %1132 }
 0x12d   : > { %1506 = vrot.lane.b32.xlu0 %v7668_v22, %s7197_s26  ;;  %v1131_v22 = vpop.permute.xlu1 %1130  ;;  %1221 = vst.msk [vmem:[#allocation4 + $0xc0] sm:$0xff] %vm1212_vm11, %v1133_v10 }
 0x12e   : > { %1220 = vst.msk [vmem:[#allocation4 + $0xa8] sm:$0xff] %vm1212_vm11, %v1131_v22  ;;  %v2453_v22 = vld [vmem:[%s10509_s1 + $0xa8] sm:$0xff] }
 0x130   : > { %1504 = vrot.lane.b32.xlu1 %v7687_v4, %s7197_s26  ;;  %v2438_v4 = vld [vmem:[%s10509_s1 + $0x30] sm:$0xff] }
 0x131   : > { %1510 = vrot.lane.b32.xlu0 %v7710_v23, %s7197_s26  ;;  %2583 = vmatpush1.msra.mxu0 %v2438_v4  ;;  %v1135_v54 = vpop.permute.xlu1 %1134  ;;  %v1137_v1 = vpop.permute.xlu0 %1136  ;;  %v2080_v4 = vld [vmem:[#allocation3 + $0x62] sm:$0xff] }
 0x132   : > { %2584 = vmatprep.subr.mxu0 %v10557_v14  ;;  %1222 = vst.msk [vmem:[#allocation4 + $0xd8] sm:$0xff] %vm1212_vm11, %v1135_v54  ;;  %1223 = vst.msk [vmem:[#allocation4 + $0xf0] sm:$0xff] %vm1212_vm11, %v1137_v1 }
 0x133   : > { %2585 = vmatpush1.msra.mxu0 %v2437_v57 }
 0x134   : > { %1508 = vrot.lane.b32.xlu1 %v7689_v5, %s7197_s26  ;;  %v2436_v5 = vld [vmem:[%s10509_s1 + $0x20] sm:$0xff]  ;;  %2586 = vmatprep.subr.mxu0 %v10557_v14 }
 0x135   : > { %1514 = vrot.lane.b32.xlu0 %v7744_v60, %s7197_s26  ;;  %2587 = vmatpush1.msra.mxu0 %v2436_v5  ;;  %v1139_v43 = vpop.permute.xlu1 %1138  ;;  %v10565_v5 = vld [vmem:[#allocation22_spill] sm:$0xff] }
 0x136   : > { %2588 = vmatprep.subr.mxu0 %v10557_v14  ;;  %1224 = vst.msk [vmem:[#allocation4 + $0x108] sm:$0xff] %vm1212_vm11, %v1139_v43  ;;  %v2081_v43 = vld [vmem:[#allocation3 + $0x6a] sm:$0xff] }
 0x137   : > { %2589 = vmatpush1.msra.mxu0 %v2435_v27  ;;  %v2451_v27 = vld [vmem:[%s10509_s1 + $0x98] sm:$0xff] }
 0x138   : > { %1512 = vrot.lane.b32.xlu1 %v7712_v2, %s7197_s26  ;;  %2590 = vmatprep.subr.mxu0 %v10557_v14 }
 0x139   : > { %1518 = vrot.lane.b32.xlu0 %v7782_v6, %s7197_s26  ;;  %2591 = vmatpush1.msra.mxu0 %v2434_v29 }
 0x13a   : > { %v1141_v16 = vpop.permute.xlu0 %1140  ;;  %v1143_v41 = vpop.permute.xlu1 %1142  ;;  %2592 = vmatprep.subr.mxu0 %v10557_v14 }
 0x13b   : > { %1225 = vst.msk [vmem:[#allocation4 + $0x120] sm:$0xff] %vm1212_vm11, %v1141_v16  ;;  %1226 = vst.msk [vmem:[#allocation4 + $0x138] sm:$0xff] %vm1212_vm11, %v1143_v41  ;;  %2593 = vmatpush1.msra.mxu0 %v2433_v28  ;;  %v10566_v16 = vld [vmem:[#allocation10_spill] sm:$0xff]  ;;  %v10567_v41 = vld [vmem:[#allocation13_spill] sm:$0xff] }
 0x13c   : > { %1516 = vrot.lane.b32.xlu1 %v7746_v61, %s7197_s26  ;;  %2594 = vmatprep.subr.mxu0 %v10557_v14  ;;  %v3653_v29 = vrot.slane %v8255_v26, %v10566_v16 }
 0x13d   : > { %1522 = vrot.lane.b32.xlu0 %v7811_v35, %s7197_s26  ;;  %2595 = vmatpush1.msra.mxu0 %v2432_v30 }
 0x13e   : > { %v1145_v24 = vpop.permute.xlu0 %1144  ;;  %2596 = vmatprep.subr.mxu0 %v10557_v14 }
 0x13f   : > { %1227 = vst.msk [vmem:[#allocation4 + $0x150] sm:$0xff] %vm1212_vm11, %v1145_v24  ;;  %2597 = vmatpush2.msra.mxu0 %v2463_v51  ;;  %v3675_v24 = vrot.slane %v8255_v26, %v10567_v41  ;;  %v1697_v51 = vld [vmem:[#allocation3 + $0x4c] sm:$0xff] }
 0x140   : > { %1520 = vrot.lane.b32.xlu1 %v7784_v55, %s7197_s26  ;;  %v1147_v15 = vpop.permute.xlu1 %1146  ;;  %2598 = vmatprep.subr.mxu0 %v10557_v14 }
 0x141   : > { %1526 = vrot.lane.b32.xlu0 %v7846_v37, %s7197_s26  ;;  %1228 = vst.msk [vmem:[#allocation4 + $0x168] sm:$0xff] %vm1212_vm11, %v1147_v15  ;;  %2599 = vmatpush2.msra.mxu0 %v2462_v42 }
 0x142   : > { %2600 = vmatprep.subr.mxu0 %v10557_v14 }
 0x143   : > { %v1149_v33 = vpop.permute.xlu0 %1148  ;;  %2601 = vmatpush2.msra.mxu0 %v2461_v58 }
 0x144   : > { %1524 = vrot.lane.b32.xlu1 %v7813_v40, %s7197_s26  ;;  %1229 = vst.msk [vmem:[#allocation4 + $0x180] sm:$0xff] %vm1212_vm11, %v1149_v33  ;;  %2602 = vmatprep.subr.mxu0 %v10557_v14  ;;  %v2448_v33 = vld [vmem:[%s10509_s1 + $0x80] sm:$0xff] }
 0x145   : > { %1530 = vrot.lane.b32.xlu0 %v7875_v7, %s7197_s26  ;;  %v1151_v34 = vpop.permute.xlu1 %1150  ;;  %2603 = vmatpush2.msra.mxu0 %v2460_v62 }
 0x146   : > { %1230 = vst.msk [vmem:[#allocation4 + $0x198] sm:$0xff] %vm1212_vm11, %v1151_v34  ;;  %2604 = vmatprep.subr.mxu0 %v10557_v14 }
 0x147   : > { %v1153_v12 = vpop.permute.xlu0 %1152  ;;  %2605 = vmatpush2.msra.mxu0 %v2459_v63 }
 0x148   : > { %1528 = vrot.lane.b32.xlu1 %v7848_v19, %s7197_s26  ;;  %1231 = vst.msk [vmem:[#allocation4 + $0x1b0] sm:$0xff] %vm1212_vm11, %v1153_v12  ;;  %2606 = vmatprep.subr.mxu0 %v10557_v14  ;;  %v2082_v12 = vld [vmem:[#allocation3 + $0x7a] sm:$0xff] }
 0x149   : > { %1534 = vrot.lane.b32.xlu0 %v10560_v52, %s7197_s26  ;;  %v1155_v32 = vpop.permute.xlu1 %1154  ;;  %2607 = vmatpush2.msra.mxu0 %v2458_v17 }
 0x14a   : > { %1232 = vst.msk [vmem:[#allocation4 + $0x1c8] sm:$0xff] %vm1212_vm11, %v1155_v32  ;;  %2608 = vmatprep.subr.mxu0 %v10557_v14 }
 0x14b   : > { %v1318_v53 = vpop.permute.xlu0 %1317  ;;  %2609 = vmatpush2.msra.mxu0 %v2457_v25 }
 0x14c   : > { %1532 = vrot.lane.b32.xlu1 %v10559_v46, %s7197_s26  ;;  %1410 = vst.msk [vmem:[#allocation4 + $0x60] sm:$0xff] %vm1405_vm12, %v1318_v53  ;;  %2610 = vmatprep.subr.mxu0 %v10557_v14  ;;  %v1698_v53 = vld [vmem:[#allocation3 + $0x54] sm:$0xff] }
 0x14d   : > { %1538 = vrot.lane.b32.xlu0 %v7940_v59, %s7197_s26  ;;  %2611 = vmatpush2.msra.mxu0 %v2456_v13 }
 0x14e   : > { %2612 = vmatprep.subr.mxu0 %v10557_v14 }
 0x14f   : > { %v1322_v9 = vpop.permute.xlu0 %1321  ;;  %2613 = vmatpush2.msra.mxu0 %v2455_v8 }
 0x150   : > { %1536 = vrot.lane.b32.xlu1 %v10561_v38, %s7197_s26  ;;  %v1320_v50 = vpop.permute.xlu1 %1319  ;;  %1412 = vst.msk [vmem:[#allocation4 + $0x90] sm:$0xff] %vm1405_vm12, %v1322_v9  ;;  %2614 = vmatprep.subr.mxu0 %v10557_v14 }
 0x151   : > { %1411 = vst.msk [vmem:[#allocation4 + $0x78] sm:$0xff] %vm1405_vm12, %v1320_v50  ;;  %1542 = vrot.lane.b32.xlu0 %v7965_v11, %s7197_s26  ;;  %2615 = vmatpush2.msra.mxu0 %v2454_v48  ;;  %v2083_v50 = vld [vmem:[#allocation3 + $0x82] sm:$0xff] }
 0x152   : > { %2616 = vmatprep.subr.mxu0 %v10557_v14 }
 0x153   : > { %v1326_v0 = vpop.permute.xlu0 %1325  ;;  %2617 = vmatpush2.msra.mxu0 %v2453_v22 }
 0x154   : > { %1540 = vrot.lane.b32.xlu1 %v7942_v18, %s7197_s26  ;;  %1414 = vst.msk [vmem:[#allocation4 + $0xc0] sm:$0xff] %vm1405_vm12, %v1326_v0  ;;  %v10563_v18 = vld [vmem:[#allocation12_spill] sm:$0xff]  ;;  %2618 = vmatprep.subr.mxu0 %v10557_v14 }
 0x155   : > { %3648 = vbcast.lane.b32.xlu0 %v3642_v56, 264  ;;  %v3664_v11 = vrot.slane %v8255_v26, %v10563_v18 }
 0x156   : > { %v1324_v3 = vpop.permute.xlu1 %1323 }
 0x157   : > { %1413 = vst.msk [vmem:[#allocation4 + $0xa8] sm:$0xff] %vm1405_vm12, %v1324_v3  ;;  %v1330_v47 = vpop.permute.xlu0 %1329  ;;  %v1699_v3 = vld [vmem:[#allocation3 + $0x64] sm:$0xff] }
 0x158   : > { %3644 = vbcast.lane.b32.xlu1 %v3642_v56, 256  ;;  %1416 = vst.msk [vmem:[#allocation4 + $0xf0] sm:$0xff] %vm1405_vm12, %v1330_v47 }
 0x159   : > { %3666 = vbcast.lane.b32.xlu0 %v3664_v11, 256 }
 0x15a   : > { %v1328_v45 = vpop.permute.xlu1 %1327 }
 0x15b   : > { %1415 = vst.msk [vmem:[#allocation4 + $0xd8] sm:$0xff] %vm1405_vm12, %v1328_v45  ;;  %v1334_v49 = vpop.permute.xlu0 %1333  ;;  %v1700_v45 = vld [vmem:[#allocation3 + $0x6c] sm:$0xff] }
 0x15c   : > { %1759 = vrot.lane.b32.xlu1 %v10564_v20, %s7195_s23  ;;  %1418 = vst.msk [vmem:[#allocation4 + $0x120] sm:$0xff] %vm1405_vm12, %v1334_v49  ;;  %v2085_v20 = vld [vmem:[#allocation3 + $0x9a] sm:$0xff] }
 0x15d   : > { %2144 = vrot.lane.b32.xlu0 %v2080_v4, %s7197_s26  ;;  %v1701_v4 = vld [vmem:[#allocation3 + $0x7c] sm:$0xff] }
 0x15e   : > { %v1332_v21 = vpop.permute.xlu1 %1331 }
 0x15f   : > { %1417 = vst.msk [vmem:[#allocation4 + $0x108] sm:$0xff] %vm1405_vm12, %v1332_v21  ;;  %v1338_v57 = vpop.permute.xlu0 %1337 }
 0x160   : > { %1952 = vrot.lane.b32.xlu1 %v7710_v23, %s7196_s25  ;;  %1420 = vst.msk [vmem:[#allocation4 + $0x150] sm:$0xff] %vm1405_vm12, %v1338_v57  ;;  %v2452_v23 = vld [vmem:[%s10509_s1 + $0xa0] sm:$0xff] }
 0x161   : > { %3670 = vbcast.lane.b32.xlu0 %v3664_v11, 264  ;;  %2619 = vmatpush2.msra.mxu0 %v2452_v23 }
 0x162   : > { %v1336_v10 = vpop.permute.xlu1 %1335  ;;  %2620 = vmatprep.subr.mxu0 %v10557_v14 }
 0x163   : > { %1419 = vst.msk [vmem:[#allocation4 + $0x138] sm:$0xff] %vm1405_vm12, %v1336_v10  ;;  %v1157_v1 = vpop.permute.xlu0 %1156  ;;  %2621 = vmatpush2.msra.mxu0 %v2451_v27  ;;  %v2087_v27 = vld [vmem:[#allocation3 + $0xb2] sm:$0xff] }
 0x164   : > { %1761 = vrot.lane.b32.xlu1 %v10565_v5, %s7195_s23  ;;  %1233 = vst.msk [vmem:[#allocation4 + $0x1e0] sm:$0xff] %vm1212_vm11, %v1157_v1  ;;  %2622 = vmatprep.subr.mxu0 %v10557_v14  ;;  %v1702_v5 = vld [vmem:[#allocation3 + $0x84] sm:$0xff] }
 0x165   : > { %2146 = vrot.lane.b32.xlu0 %v2081_v43, %s7197_s26  ;;  %2623 = vmatpush2.msra.mxu0 %v2450_v31 }
 0x166   : > { %v1340_v54 = vpop.permute.xlu1 %1339  ;;  %2624 = vmatprep.subr.mxu0 %v10557_v14 }
 0x167   : > { %1421 = vst.msk [vmem:[#allocation4 + $0x168] sm:$0xff] %vm1405_vm12, %v1340_v54  ;;  %v1161_v28 = vpop.permute.xlu0 %1160 }
 0x168   : > { %1954 = vrot.lane.b32.xlu1 %v7712_v2, %s7196_s25  ;;  %1235 = vst.msk [vmem:[#allocation4 + $0x210] sm:$0xff] %vm1212_vm11, %v1161_v28  ;;  %v2449_v2 = vld [vmem:[%s10509_s1 + $0x88] sm:$0xff] }
 0x169   : > { %3659 = vbcast.lane.b32.xlu0 %v3653_v29, 264  ;;  %2625 = vmatpush2.msra.mxu0 %v2449_v2  ;;  %v2088_v2 = vld [vmem:[#allocation3 + $0xc2] sm:$0xff] }
 0x16a   : > { %v1159_v44 = vpop.permute.xlu1 %1158  ;;  %2626 = vmatprep.subr.mxu0 %v10557_v14 }
 0x16b   : > { %1234 = vst.msk [vmem:[#allocation4 + $0x1f8] sm:$0xff] %vm1212_vm11, %v1159_v44  ;;  %v1165_v15 = vpop.permute.xlu0 %1164  ;;  %2627 = vmatpush2.msra.mxu0 %v2448_v33  ;;  %v1703_v44 = vld [vmem:[#allocation3 + $0x94] sm:$0xff] }
 0x16c   : > { %3655 = vbcast.lane.b32.xlu1 %v3653_v29, 256  ;;  %1237 = vst.msk [vmem:[#allocation4 + $0x240] sm:$0xff] %vm1212_vm11, %v1165_v15  ;;  %v3047_v15 = vld [vmem:[#allocation2] sm:$0xff]  ;;  %v3049_v33 = vld [vmem:[#allocation2 + $0x18] sm:$0xff] }
 0x16d   : > { %3677 = vbcast.lane.b32.xlu0 %v3675_v24, 256 }
 0x16e   : > { %v1163_v30 = vpop.permute.xlu1 %1162 }
 0x16f   : > { %1236 = vst.msk [vmem:[#allocation4 + $0x228] sm:$0xff] %vm1212_vm11, %v1163_v30  ;;  %v1169_v34 = vpop.permute.xlu0 %1168  ;;  %v1704_v30 = vld [vmem:[#allocation3 + $0x9c] sm:$0xff] }
 0x170   : > { %1763 = vrot.lane.b32.xlu1 %v1697_v51, %s7195_s23  ;;  %1239 = vst.msk [vmem:[#allocation4 + $0x270] sm:$0xff] %vm1212_vm11, %v1169_v34  ;;  %v3129_v34 = vld [vmem:[#allocation2 + $0x19] sm:$0xff] }
 0x171   : > { %2148 = vrot.lane.b32.xlu0 %v2082_v12, %s7197_s26  ;;  %v3048_v12 = vld [vmem:[#allocation2 + $0x8] sm:$0xff] }
 0x172   : > { %v1167_v42 = vpop.permute.xlu1 %1166 }
 0x173   : > { %1238 = vst.msk [vmem:[#allocation4 + $0x258] sm:$0xff] %vm1212_vm11, %v1167_v42  ;;  %v1173_v32 = vpop.permute.xlu0 %1172  ;;  %v3127_v42 = vld [vmem:[#allocation2 + $0x1] sm:$0xff] }
 0x174   : > { %1956 = vrot.lane.b32.xlu1 %v7744_v60, %s7196_s25  ;;  %1241 = vst.msk [vmem:[#allocation4 + $0x2a0] sm:$0xff] %vm1212_vm11, %v1173_v32  ;;  %v10568_v60 = vld [vmem:[#allocation14_spill] sm:$0xff] }
 0x175   : > { %3681 = vbcast.lane.b32.xlu0 %v3675_v24, 264  ;;  %v3686_v9 = vrot.slane %v8255_v26, %v10568_v60 }
 0x176   : > { %v1171_v58 = vpop.permute.xlu1 %1170 }
 0x177   : > { %1240 = vst.msk [vmem:[#allocation4 + $0x288] sm:$0xff] %vm1212_vm11, %v1171_v58  ;;  %v1177_v63 = vpop.permute.xlu0 %1176  ;;  %v10571_v58 = vld [vmem:[#allocation9_spill] sm:$0xff] }
 0x178   : > { %1765 = vrot.lane.b32.xlu1 %v1698_v53, %s7195_s23  ;;  %1243 = vst.msk [vmem:[#allocation4 + $0x2d0] sm:$0xff] %vm1212_vm11, %v1177_v63  ;;  %v10572_v32 = vmul.u32 %v7529_v36, %v10571_v58  ;;  %v3130_v63 = vld [vmem:[#allocation2 + $0x21] sm:$0xff] }
 0x179   : > { %2150 = vrot.lane.b32.xlu0 %v2083_v50, %s7197_s26  ;;  %v3209_v36 = vld [vmem:[#allocation2 + $0x1a] sm:$0xff] }
 0x17a   : > { %v1175_v62 = vpop.permute.xlu1 %1174  ;;  %v3634_v53 = vcvt.s32.f32 %v10572_v32  ;;  %v3367_v32 = vld [vmem:[#allocation2 + $0x4] sm:$0xff] }
 0x17b   : > { %1242 = vst.msk [vmem:[#allocation4 + $0x2b8] sm:$0xff] %vm1212_vm11, %v1175_v62  ;;  %v1342_v56 = vpop.permute.xlu0 %1341  ;;  %v3128_v62 = vld [vmem:[#allocation2 + $0x9] sm:$0xff] }
 0x17c   : > { %1958 = vrot.lane.b32.xlu1 %v7746_v61, %s7196_s25  ;;  %1422 = vst.msk [vmem:[#allocation4 + $0x180] sm:$0xff] %vm1405_vm12, %v1342_v56  ;;  %v2084_v61 = vld [vmem:[#allocation3 + $0x92] sm:$0xff]  ;;  %7128 = vrcp.f32 %v3634_v53  ;;  %v3369_v53 = vld [vmem:[#allocation2 + $0x1c] sm:$0xff] }
 0x17d   : > { %3688 = vbcast.lane.b32.xlu0 %v3686_v9, 256  ;;  %v3131_v56 = vld [vmem:[#allocation2 + $0x31] sm:$0xff] }
 0x17e   : > { %v1179_v17 = vpop.permute.xlu1 %1178 }
 0x17f   : > { %1244 = vst.msk [vmem:[#allocation4 + $0x2e8] sm:$0xff] %vm1212_vm11, %v1179_v17  ;;  %v1346_v25 = vpop.permute.xlu0 %1345  ;;  %v3051_v17 = vld [vmem:[#allocation2 + $0x30] sm:$0xff] }
 0x180   : > { %1767 = vrot.lane.b32.xlu1 %v1699_v3, %s7195_s23  ;;  %1424 = vst.msk [vmem:[#allocation4 + $0x1b0] sm:$0xff] %vm1405_vm12, %v1346_v25  ;;  %v3167_v3 = vadd.f32 %v3127_v42, %v3047_v15 }
 0x181   : > { %2152 = vrot.lane.b32.xlu0 %v2084_v61, %s7197_s26  ;;  %v3207_v61 = vld [vmem:[#allocation2 + $0x2] sm:$0xff] }
 0x182   : > { %v1344_v0 = vpop.permute.xlu1 %1343 }
 0x183   : > { %1423 = vst.msk [vmem:[#allocation4 + $0x198] sm:$0xff] %vm1405_vm12, %v1344_v0  ;;  %v1350_v13 = vpop.permute.xlu0 %1349  ;;  %v3169_v0 = vadd.f32 %v3129_v34, %v3049_v33  ;;  %v3213_v33 = vld [vmem:[#allocation2 + $0x4a] sm:$0xff]  ;;  %v3291_v34 = vld [vmem:[#allocation2 + $0x33] sm:$0xff] }
 0x184   : > { %1960 = vrot.lane.b32.xlu1 %v7782_v6, %s7196_s25  ;;  %1426 = vst.msk [vmem:[#allocation4 + $0x1e0] sm:$0xff] %vm1405_vm12, %v1350_v13  ;;  %v10569_v6 = vld [vmem:[#allocation15_spill] sm:$0xff]  ;;  %v3168_v13 = vadd.f32 %v3128_v62, %v3048_v12  ;;  %v3056_v62 = vld [vmem:[#allocation2 + $0x68] sm:$0xff] }
 0x185   : > { %3692 = vbcast.lane.b32.xlu0 %v3686_v9, 264  ;;  %v3697_v21 = vrot.slane %v8255_v26, %v10569_v6  ;;  %v2089_v9 = vld [vmem:[#allocation3 + $0xca] sm:$0xff] }
 0x186   : > { %v1348_v11 = vpop.permute.xlu1 %1347 }
 0x187   : > { %1425 = vst.msk [vmem:[#allocation4 + $0x1c8] sm:$0xff] %vm1405_vm12, %v1348_v11  ;;  %v1354_v8 = vpop.permute.xlu0 %1353  ;;  %v3052_v11 = vld [vmem:[#allocation2 + $0x38] sm:$0xff] }
 0x188   : > { %1769 = vrot.lane.b32.xlu1 %v1700_v45, %s7195_s23  ;;  %1428 = vst.msk [vmem:[#allocation4 + $0x210] sm:$0xff] %vm1405_vm12, %v1354_v8 }
 0x189   : > { %2154 = vrot.lane.b32.xlu0 %v2085_v20, %s7197_s26  ;;  %v3132_v20 = vld [vmem:[#allocation2 + $0x39] sm:$0xff] }
 0x18a   : > { %v1352_v47 = vpop.permute.xlu1 %1351 }
 0x18b   : > { %1427 = vst.msk [vmem:[#allocation4 + $0x1f8] sm:$0xff] %vm1405_vm12, %v1352_v47  ;;  %v1358_v48 = vpop.permute.xlu0 %1357  ;;  %v10573_v47 = vld [vmem:[#allocation17_spill] sm:$0xff] }
 0x18c   : > { %1962 = vrot.lane.b32.xlu1 %v7784_v55, %s7196_s25  ;;  %1430 = vst.msk [vmem:[#allocation4 + $0x240] sm:$0xff] %vm1405_vm12, %v1358_v48  ;;  %v2086_v55 = vld [vmem:[#allocation3 + $0xaa] sm:$0xff]  ;;  %v8413_v8 = vrot.slane %v8255_v26, %v10573_v47 }
 0x18d   : > { %3699 = vbcast.lane.b32.xlu0 %v3697_v21, 256  ;;  %v1705_v48 = vld [vmem:[#allocation3 + $0xac] sm:$0xff] }
 0x18e   : > { %v1356_v49 = vpop.permute.xlu1 %1355 }
 0x18f   : > { %1429 = vst.msk [vmem:[#allocation4 + $0x228] sm:$0xff] %vm1405_vm12, %v1356_v49  ;;  %v1362_v10 = vpop.permute.xlu0 %1361  ;;  %v3210_v49 = vld [vmem:[#allocation2 + $0x22] sm:$0xff] }
 0x190   : > { %1771 = vrot.lane.b32.xlu1 %v1701_v4, %s7195_s23  ;;  %1432 = vst.msk [vmem:[#allocation4 + $0x270] sm:$0xff] %vm1405_vm12, %v1362_v10  ;;  %v3053_v4 = vld [vmem:[#allocation2 + $0x48] sm:$0xff] }
 0x191   : > { %2156 = vrot.lane.b32.xlu0 %v2086_v55, %s7197_s26  ;;  %v3133_v10 = vld [vmem:[#allocation2 + $0x49] sm:$0xff]  ;;  %v3171_v55 = vadd.f32 %v3131_v56, %v3051_v17 }
 0x192   : > { %v1360_v22 = vpop.permute.xlu1 %1359  ;;  %v3173_v15 = vadd.f32 %v3133_v10, %v3053_v4 }
 0x193   : > { %1431 = vst.msk [vmem:[#allocation4 + $0x258] sm:$0xff] %vm1405_vm12, %v1360_v22  ;;  %v1366_v23 = vpop.permute.xlu0 %1365 }
 0x194   : > { %1964 = vrot.lane.b32.xlu1 %v7811_v35, %s7196_s25  ;;  %1434 = vst.msk [vmem:[#allocation4 + $0x2a0] sm:$0xff] %vm1405_vm12, %v1366_v23  ;;  %v10570_v35 = vld [vmem:[#allocation16_spill] sm:$0xff]  ;;  %v3247_v23 = vadd.f32 %v3207_v61, %v3167_v3  ;;  %v3370_v61 = vld [vmem:[#allocation2 + $0x24] sm:$0xff] }
 0x195   : > { %3703 = vbcast.lane.b32.xlu0 %v3697_v21, 264  ;;  %v3708_v43 = vrot.slane %v8255_v26, %v10570_v35  ;;  %v3208_v21 = vld [vmem:[#allocation2 + $0xa] sm:$0xff]  ;;  %v3172_v26 = vadd.f32 %v3132_v20, %v3052_v11  ;;  %v3253_v11 = vadd.f32 %v3213_v33, %v3173_v15  ;;  %v6698_v20 = vld [vmem:[%s10509_s1 + $0x198] sm:$0xff] }
 0x196   : > { %v1364_v57 = vpop.permute.xlu1 %1363  ;;  %5453 = vmatpush1.msra.mxu1 %v6698_v20  ;;  %v3217_v15 = vld [vmem:[#allocation2 + $0x7a] sm:$0xff] }
 0x197   : > { %1433 = vst.msk [vmem:[#allocation4 + $0x288] sm:$0xff] %vm1405_vm12, %v1364_v57  ;;  %v1370_v1 = vpop.permute.xlu0 %1369  ;;  %v3211_v57 = vld [vmem:[#allocation2 + $0x32] sm:$0xff]  ;;  %5454 = vmatprep.subr.mxu1 %v10557_v14 }
 0x198   : > { %1773 = vrot.lane.b32.xlu1 %v1702_v5, %s7195_s23  ;;  %1436 = vst.msk [vmem:[#allocation4 + $0x2d0] sm:$0xff] %vm1405_vm12, %v1370_v1  ;;  %v3249_v5 = vadd.f32 %v3209_v36, %v3169_v0  ;;  %v3289_v1 = vld [vmem:[#allocation2 + $0x1b] sm:$0xff]  ;;  %v3251_v42 = vadd.f32 %v3211_v57, %v3171_v55  ;;  %v6697_v55 = vld [vmem:[%s10509_s1 + $0x190] sm:$0xff] }
 0x199   : > { %2158 = vrot.lane.b32.xlu0 %v2087_v27, %s7197_s26  ;;  %v3054_v27 = vld [vmem:[#allocation2 + $0x50] sm:$0xff]  ;;  %v3292_v0 = vld [vmem:[#allocation2 + $0x3b] sm:$0xff]  ;;  %5455 = vmatpush1.msra.mxu1 %v6697_v55 }
 0x19a   : > { %v1368_v54 = vpop.permute.xlu1 %1367  ;;  %v3329_v58 = vadd.f32 %v3289_v1, %v3249_v5  ;;  %v3331_v4 = vadd.f32 %v3291_v34, %v3251_v42  ;;  %v3371_v5 = vld [vmem:[#allocation2 + $0x34] sm:$0xff]  ;;  %v3373_v42 = vld [vmem:[#allocation2 + $0x4c] sm:$0xff]  ;;  %5456 = vmatprep.subr.mxu1 %v10557_v14 }
 0x19b   : > { %1435 = vst.msk [vmem:[#allocation4 + $0x2b8] sm:$0xff] %vm1405_vm12, %v1368_v54  ;;  %v1503_v31 = vpop.permute.xlu0 %1502  ;;  %v3287_v54 = vld [vmem:[#allocation2 + $0x3] sm:$0xff] }
 0x19c   : > { %1966 = vrot.lane.b32.xlu1 %v7813_v40, %s7196_s25  ;;  %1599 = vst.msk [vmem:[#allocation4] sm:$0xff] %vm1598_vm13, %v1503_v31  ;;  %v3327_v12 = vadd.f32 %v3287_v54, %v3247_v23  ;;  %v8427_v10 = vadd.f32 %v3369_v53, %v3329_v58  ;;  %v1706_v23 = vld [vmem:[#allocation3 + $0xb4] sm:$0xff]  ;;  %v3216_v54 = vld [vmem:[#allocation2 + $0x6a] sm:$0xff]  ;;  %v8444_v34 = vadd.f32 %v3371_v5, %v3331_v4  ;;  %v2091_v58 = vld [vmem:[#allocation3 + $0xe2] sm:$0xff] }
 0x19d   : > { %3710 = vbcast.lane.b32.xlu0 %v3708_v43, 256  ;;  %v3376_v4 = vld [vmem:[#allocation2 + $0x6c] sm:$0xff]  ;;  %v3060_v5 = vld [vmem:[#allocation2 + $0x98] sm:$0xff] }
 0x19e   : > { %v1372_v29 = vpop.permute.xlu1 %1371 }
 0x19f   : > { %1437 = vst.msk [vmem:[#allocation4 + $0x2e8] sm:$0xff] %vm1405_vm12, %v1372_v29  ;;  %v1507_v40 = vpop.permute.xlu0 %1506  ;;  %v3248_v29 = vadd.f32 %v3208_v21, %v3168_v13  ;;  %v3057_v13 = vld [vmem:[#allocation2 + $0x78] sm:$0xff] }
 0x1a0   : > { %1775 = vrot.lane.b32.xlu1 %v1703_v44, %s7195_s23  ;;  %1601 = vst.msk [vmem:[#allocation4 + $0x30] sm:$0xff] %vm1598_vm13, %v1507_v40  ;;  %v3212_v44 = vld [vmem:[#allocation2 + $0x3a] sm:$0xff]  ;;  %v3290_v40 = vld [vmem:[#allocation2 + $0x23] sm:$0xff] }
 0x1a1   : > { %2160 = vrot.lane.b32.xlu0 %v2088_v2, %s7197_s26  ;;  %v2090_v2 = vld [vmem:[#allocation3 + $0xda] sm:$0xff]  ;;  %v3252_v17 = vadd.f32 %v3212_v44, %v3172_v26  ;;  %v6696_v44 = vld [vmem:[%s10509_s1 + $0x188] sm:$0xff] }
 0x1a2   : > { %v1505_v28 = vpop.permute.xlu1 %1504  ;;  %v3294_v26 = vld [vmem:[#allocation2 + $0x53] sm:$0xff]  ;;  %5457 = vmatpush1.msra.mxu1 %v6696_v44 }
 0x1a3   : > { %1600 = vst.msk [vmem:[#allocation4 + $0x18] sm:$0xff] %vm1598_vm13, %v1505_v28  ;;  %v1511_v51 = vpop.permute.xlu0 %1510  ;;  %v3288_v28 = vld [vmem:[#allocation2 + $0xb] sm:$0xff]  ;;  %v3332_v1 = vadd.f32 %v3292_v0, %v3252_v17  ;;  %v3374_v17 = vld [vmem:[#allocation2 + $0x54] sm:$0xff]  ;;  %5458 = vmatprep.subr.mxu1 %v10557_v14 }
 0x1a4   : > { %1968 = vrot.lane.b32.xlu1 %v7846_v37, %s7196_s25  ;;  %1603 = vst.msk [vmem:[#allocation4 + $0x60] sm:$0xff] %vm1598_vm13, %v1511_v51  ;;  %v3050_v37 = vld [vmem:[#allocation2 + $0x20] sm:$0xff]  ;;  %v3328_v56 = vadd.f32 %v3288_v28, %v3248_v29  ;;  %v8442_v28 = vpop.eup %7128 }
 0x1a5   : > { %3714 = vbcast.lane.b32.xlu0 %v3708_v43, 264  ;;  %v3170_v45 = vadd.f32 %v3130_v63, %v3050_v37  ;;  %v3134_v43 = vld [vmem:[#allocation2 + $0x51] sm:$0xff]  ;;  %v3136_v63 = vld [vmem:[#allocation2 + $0x69] sm:$0xff]  ;;  %v3372_v29 = vld [vmem:[#allocation2 + $0x3c] sm:$0xff] }
 0x1a6   : > { %v1509_v24 = vpop.permute.xlu1 %1508 }
 0x1a7   : > { %1602 = vst.msk [vmem:[#allocation4 + $0x48] sm:$0xff] %vm1598_vm13, %v1509_v24  ;;  %v1515_v25 = vpop.permute.xlu0 %1514  ;;  %v3250_v31 = vadd.f32 %v3210_v49, %v3170_v45  ;;  %v3055_v24 = vld [vmem:[#allocation2 + $0x60] sm:$0xff] }
 0x1a8   : > { %1777 = vrot.lane.b32.xlu1 %v1704_v30, %s7195_s23  ;;  %1605 = vst.msk [vmem:[#allocation4 + $0x90] sm:$0xff] %vm1598_vm13, %v1515_v25  ;;  %v3135_v30 = vld [vmem:[#allocation2 + $0x61] sm:$0xff]  ;;  %v3368_v25 = vld [vmem:[#allocation2 + $0xc] sm:$0xff]  ;;  %v3137_v45 = vld [vmem:[#allocation2 + $0x79] sm:$0xff] }
 0x1a9   : > { %2162 = vrot.lane.b32.xlu0 %v2089_v9, %s7197_s26  ;;  %v3214_v9 = vld [vmem:[#allocation2 + $0x52] sm:$0xff]  ;;  %v3330_v3 = vadd.f32 %v3290_v40, %v3250_v31  ;;  %v3175_v36 = vadd.f32 %v3135_v30, %v3055_v24  ;;  %v3215_v49 = vld [vmem:[#allocation2 + $0x62] sm:$0xff]  ;;  %v3177_v31 = vadd.f32 %v3137_v45, %v3057_v13 }
 0x1aa   : > { %v1513_v50 = vpop.permute.xlu1 %1512  ;;  %v3059_v24 = vld [vmem:[#allocation2 + $0x90] sm:$0xff]  ;;  %v3138_v13 = vld [vmem:[#allocation2 + $0x81] sm:$0xff] }
 0x1ab   : > { %1604 = vst.msk [vmem:[#allocation4 + $0x78] sm:$0xff] %vm1598_vm13, %v1513_v50  ;;  %v3174_v50 = vadd.f32 %v3134_v43, %v3054_v27  ;;  %v3408_v27 = vadd.f32 %v3368_v25, %v3328_v56  ;;  %v8433_v43 = vadd.f32 %v3370_v61, %v3330_v3  ;;  %v3255_v40 = vadd.f32 %v3215_v49, %v3175_v36  ;;  %v3139_v30 = vld [vmem:[#allocation2 + $0x91] sm:$0xff]  ;;  %v3297_v36 = vld [vmem:[#allocation2 + $0x7b] sm:$0xff]  ;;  %v3375_v45 = vld [vmem:[#allocation2 + $0x64] sm:$0xff] }
 0x1ac   : > { %1970 = vrot.lane.b32.xlu1 %v7848_v19, %s7196_s25  ;;  %v1519_v19 = vpop.permute.xlu0 %1518  ;;  %v3179_v56 = vadd.f32 %v3139_v30, %v3059_v24  ;;  %v3219_v3 = vld [vmem:[#allocation2 + $0x92] sm:$0xff]  ;;  %v3257_v0 = vadd.f32 %v3217_v15, %v3177_v31  ;;  %v1707_v49 = vld [vmem:[#allocation3 + $0xc4] sm:$0xff] }
 0x1ad   : > { %1607 = vst.msk [vmem:[#allocation4 + $0xc0] sm:$0xff] %vm1598_vm13, %v1519_v19  ;;  %3721 = vbcast.lane.b32.xlu0 %v8413_v8, 256  ;;  %v3254_v19 = vadd.f32 %v3214_v9, %v3174_v50  ;;  %v8461_v50 = vrot.slane %v8442_v28, %v10562_v39  ;;  %v3296_v9 = vld [vmem:[#allocation2 + $0x6b] sm:$0xff]  ;;  %v6694_v39 = vld [vmem:[%s10509_s1 + $0x178] sm:$0xff]  ;;  %v3218_v31 = vld [vmem:[#allocation2 + $0x82] sm:$0xff] }
 0x1ae   : > { %v1517_v22 = vpop.permute.xlu1 %1516  ;;  %v2092_v24 = vld [vmem:[#allocation3 + $0xf2] sm:$0xff] }
 0x1af   : > { %1606 = vst.msk [vmem:[#allocation4 + $0xa8] sm:$0xff] %vm1598_vm13, %v1517_v22  ;;  %v3407_v22 = vadd.f32 %v3367_v32, %v3327_v12  ;;  %v3334_v53 = vadd.f32 %v3294_v26, %v3254_v19  ;;  %v3299_v26 = vld [vmem:[#allocation2 + $0x93] sm:$0xff] }
 0x1b0   : > { %1779 = vrot.lane.b32.xlu1 %v1705_v48, %s7195_s23  ;;  %v1523_v37 = vpop.permute.xlu0 %1522  ;;  %v3293_v48 = vld [vmem:[#allocation2 + $0x4b] sm:$0xff] }
 0x1b1   : > { %1609 = vst.msk [vmem:[#allocation4 + $0xf0] sm:$0xff] %vm1598_vm13, %v1523_v37  ;;  %2164 = vrot.lane.b32.xlu0 %v2090_v2, %s7197_s26  ;;  %v3333_v2 = vadd.f32 %v3293_v48, %v3253_v11  ;;  %v8449_v37 = vadd.f32 %v3372_v29, %v3332_v1  ;;  %v3058_v11 = vld [vmem:[#allocation2 + $0x80] sm:$0xff]  ;;  %v6693_v1 = vld [vmem:[%s10509_s1 + $0x170] sm:$0xff] }
 0x1b2   : > { %v1521_v51 = vpop.permute.xlu1 %1520  ;;  %v3178_v19 = vadd.f32 %v3138_v13, %v3058_v11  ;;  %v3377_v29 = vld [vmem:[#allocation2 + $0x7c] sm:$0xff] }
 0x1b3   : > { %1608 = vst.msk [vmem:[#allocation4 + $0xd8] sm:$0xff] %vm1598_vm13, %v1521_v51  ;;  %v3295_v51 = vld [vmem:[#allocation2 + $0x63] sm:$0xff]  ;;  %v8463_v61 = vadd.f32 %v3373_v42, %v3333_v2  ;;  %v3300_v13 = vld [vmem:[#allocation2 + $0x9b] sm:$0xff] }
 0x1b4   : > { %1972 = vrot.lane.b32.xlu1 %v7875_v7, %s7196_s25  ;;  %v3176_v7 = vadd.f32 %v3136_v63, %v3056_v62  ;;  %v1527_v57 = vpop.permute.xlu0 %1526  ;;  %v3480_v62 = vadd.f32 %v8433_v43, %v3408_v27  ;;  %v6695_v63 = vld [vmem:[%s10509_s1 + $0x180] sm:$0xff]  ;;  %v3335_v25 = vadd.f32 %v3295_v51, %v3255_v40  ;;  %v6692_v42 = vld [vmem:[%s10509_s1 + $0x168] sm:$0xff] }
 0x1b5   : > { %1611 = vst.msk [vmem:[#allocation4 + $0x120] sm:$0xff] %vm1598_vm13, %v1527_v57  ;;  %3725 = vbcast.lane.b32.xlu0 %v8413_v8, 264  ;;  %v3479_v8 = vadd.f32 %v8427_v10, %v3407_v22  ;;  %5459 = vmatpush1.msra.mxu1 %v6695_v63  ;;  %v8471_v22 = vadd.f32 %v3374_v17, %v3334_v53  ;;  %v3379_v53 = vld [vmem:[#allocation2 + $0x94] sm:$0xff]  ;;  %v1708_v17 = vld [vmem:[#allocation3 + $0xcc] sm:$0xff] }
 0x1b6   : > { %v1525_v21 = vpop.permute.xlu1 %1524  ;;  %v3256_v32 = vadd.f32 %v3216_v54, %v3176_v7  ;;  %v3512_v7 = vadd.f32 %v3480_v62, %v8449_v37  ;;  %v3483_v55 = vadd.f32 %v8463_v61, %v8444_v34  ;;  %5460 = vmatprep.subr.mxu1 %v10557_v14  ;;  %v3259_v57 = vadd.f32 %v3219_v3, %v3179_v56  ;;  %v3140_v54 = vld [vmem:[#allocation2 + $0x99] sm:$0xff]  ;;  %v3298_v62 = vld [vmem:[#allocation2 + $0x83] sm:$0xff] }
 0x1b7   : > { %1610 = vst.msk [vmem:[#allocation4 + $0x108] sm:$0xff] %vm1598_vm13, %v1525_v21  ;;  %v3511_v20 = vadd.f32 %v3479_v8, %v8444_v34  ;;  %v8483_v27 = vadd.f32 %v3375_v45, %v3335_v25  ;;  %5461 = vmatpush1.msra.mxu1 %v6694_v39  ;;  %v3180_v51 = vadd.f32 %v3140_v54, %v3060_v5  ;;  %v6690_v45 = vld [vmem:[%s10509_s1 + $0x158] sm:$0xff] }
 0x1b8   : > { %1781 = vrot.lane.b32.xlu1 %v1706_v23, %s7195_s23  ;;  %v1531_v12 = vpop.permute.xlu0 %1530  ;;  %v3336_v48 = vadd.f32 %v3296_v9, %v3256_v32  ;;  %v3337_v23 = vadd.f32 %v3297_v36, %v3257_v0  ;;  %5462 = vmatprep.subr.mxu1 %v10557_v14  ;;  %v3544_v15 = vadd.f32 %v3512_v7, %v8471_v22  ;;  %v6691_v9 = vld [vmem:[%s10509_s1 + $0x160] sm:$0xff] }
 0x1b9   : > { %1613 = vst.msk [vmem:[#allocation4 + $0x150] sm:$0xff] %vm1598_vm13, %v1531_v12  ;;  %2166 = vrot.lane.b32.xlu0 %v2091_v58, %s7197_s26  ;;  %v3543_v40 = vadd.f32 %v3511_v20, %v8463_v61  ;;  %5463 = vmatpush1.msra.mxu1 %v6693_v1  ;;  %v3339_v8 = vadd.f32 %v3299_v26, %v3259_v57  ;;  %v3220_v58 = vld [vmem:[#allocation2 + $0x9a] sm:$0xff]  ;;  %v3378_v20 = vld [vmem:[#allocation2 + $0x84] sm:$0xff] }
 0x1ba   : > { %v1529_v33 = vpop.permute.xlu1 %1528  ;;  %v8488_v30 = vadd.f32 %v3376_v4, %v3336_v48  ;;  %v8499_v12 = vadd.f32 %v3377_v29, %v3337_v23  ;;  %v3258_v32 = vadd.f32 %v3218_v31, %v3178_v19  ;;  %5464 = vmatprep.subr.mxu1 %v10557_v14  ;;  %v3260_v0 = vadd.f32 %v3220_v58, %v3180_v51  ;;  %v2093_v48 = vld [vmem:[#allocation3 + $0xfa] sm:$0xff]  ;;  %v3141_v19 = vld [vmem:[#allocation2 + $0xa9] sm:$0xff] }
 0x1bb   : > { %1612 = vst.msk [vmem:[#allocation4 + $0x138] sm:$0xff] %vm1598_vm13, %v1529_v33  ;;  %v3515_v33 = vadd.f32 %v3483_v55, %v8483_v27  ;;  %5465 = vmatpush1.msra.mxu1 %v6692_v42  ;;  %v3575_v56 = vadd.f32 %v3543_v40, %v8483_v27  ;;  %v3484_v25 = vadd.f32 %v8471_v22, %v8449_v37  ;;  %v6689_v55 = vld [vmem:[%s10509_s1 + $0x150] sm:$0xff]  ;;  %v3380_v5 = vld [vmem:[#allocation2 + $0x9c] sm:$0xff] }
 0x1bc   : > { %1974 = vrot.lane.b32.xlu1 %v10559_v46, %s7196_s25  ;;  %v1535_v21 = vpop.permute.xlu0 %1534  ;;  %v3576_v3 = vadd.f32 %v3544_v15, %v8488_v30  ;;  %5466 = vmatprep.subr.mxu1 %v10557_v14  ;;  %v8514_v36 = vadd.f32 %v3379_v53, %v3339_v8  ;;  %v3340_v4 = vadd.f32 %v3300_v13, %v3260_v0  ;;  %v1709_v29 = vld [vmem:[#allocation3 + $0xdc] sm:$0xff]  ;;  %v3221_v51 = vld [vmem:[#allocation2 + $0xaa] sm:$0xff] }
 0x1bd   : > { %1615 = vst.msk [vmem:[#allocation4 + $0x180] sm:$0xff] %vm1598_vm13, %v1535_v21  ;;  %3732 = vbcast.lane.b32.xlu0 %v8461_v50, 256  ;;  %v3547_v11 = vadd.f32 %v3515_v33, %v8499_v12  ;;  %5467 = vmatpush1.msra.mxu1 %v6691_v9  ;;  %v3516_v7 = vadd.f32 %v3484_v25, %v8488_v30  ;;  %v6687_v33 = vld [vmem:[%s10509_s1 + $0x140] sm:$0xff]  ;;  %v6686_v8 = vld [vmem:[%s10509_s1 + $0x138] sm:$0xff]  ;;  %v3301_v9 = vld [vmem:[#allocation2 + $0xab] sm:$0xff] }
 0x1be   : > { %v1533_v46 = vpop.permute.xlu1 %1532  ;;  %5468 = vmatprep.subr.mxu1 %v10557_v14  ;;  %v8542_v31 = vadd.f32 %v3380_v5, %v3340_v4  ;;  %v3482_v40 = vadd.f32 %v8449_v37, %v8433_v43  ;;  %v3485_v53 = vadd.f32 %v8483_v27, %v8463_v61  ;;  %v3381_v4 = vld [vmem:[#allocation2 + $0xac] sm:$0xff] }
 0x1bf   : > { %1614 = vst.msk [vmem:[#allocation4 + $0x168] sm:$0xff] %vm1598_vm13, %v1533_v46  ;;  %v3338_v46 = vadd.f32 %v3298_v62, %v3258_v32  ;;  %5469 = vmatpush1.msra.mxu1 %v6690_v45  ;;  %v3579_v23 = vadd.f32 %v3547_v11, %v8514_v36  ;;  %v3062_v62 = vld [vmem:[#allocation2 + $0xb0] sm:$0xff]  ;;  %v8579_v11 = vld [vmem:[#allocation4 + $0x78] sm:$0xff] }
 0x1c0   : > { %1783 = vrot.lane.b32.xlu1 %v1707_v49, %s7195_s23  ;;  %v1539_v2 = vpop.permute.xlu0 %1538  ;;  %5470 = vmatprep.subr.mxu1 %v10557_v14  ;;  %v3514_v42 = vadd.f32 %v3482_v40, %v8471_v22 }
 0x1c1   : > { %1617 = vst.msk [vmem:[#allocation4 + $0x1b0] sm:$0xff] %vm1598_vm13, %v1539_v2  ;;  %2168 = vrot.lane.b32.xlu0 %v2092_v24, %s7197_s26  ;;  %v8533_v54 = vadd.f32 %v3378_v20, %v3338_v46  ;;  %5471 = vmatpush1.msra.mxu1 %v6689_v55  ;;  %v2095_v55 = vld [vmem:[#allocation3 + $0x112] sm:$0xff] }
 0x1c2   : > { %v1537_v44 = vpop.permute.xlu1 %1536  ;;  %5472 = vmatprep.subr.mxu1 %v10557_v14 }
 0x1c3   : > { %1616 = vst.msk [vmem:[#allocation4 + $0x198] sm:$0xff] %vm1598_vm13, %v1537_v44  ;;  %v3481_v44 = vadd.f32 %v8444_v34, %v8427_v10  ;;  %v3548_v24 = vadd.f32 %v3516_v7, %v8533_v54  ;;  %v2094_v34 = vld [vmem:[#allocation3 + $0x10a] sm:$0xff] }
 0x1c4   : > { %1976 = vrot.lane.b32.xlu1 %v10560_v52, %s7196_s25  ;;  %v1543_v52 = vpop.permute.xlu0 %1542 }
 0x1c5   : > { %1619 = vst.msk [vmem:[#allocation4 + $0x1e0] sm:$0xff] %vm1598_vm13, %v1543_v52  ;;  %3736 = vbcast.lane.b32.xlu0 %v8461_v50, 264  ;;  %v8523_v50 = vrot.slane %v8442_v28, %v10566_v16  ;;  %v3061_v16 = vld [vmem:[#allocation2 + $0xa8] sm:$0xff]  ;;  %v3513_v37 = vadd.f32 %v3481_v44, %v8463_v61  ;;  %v3580_v58 = vadd.f32 %v3548_v24, %v8542_v31  ;;  %v3063_v24 = vld [vmem:[#allocation2 + $0xc0] sm:$0xff] }
 0x1c6   : > { %v1541_v63 = vpop.permute.xlu1 %1540  ;;  %v3181_v15 = vadd.f32 %v3141_v19, %v3061_v16  ;;  %v3546_v61 = vadd.f32 %v3514_v42, %v8488_v30  ;;  %v8610_v44 = vrot.slane %v8442_v28, %v10563_v18  ;;  %v6714_v18 = vld [vmem:[%s10509_s1 + $0x218] sm:$0xff] }
 0x1c7   : > { %1618 = vst.msk [vmem:[#allocation4 + $0x1c8] sm:$0xff] %vm1598_vm13, %v1541_v63  ;;  %v3142_v63 = vld [vmem:[#allocation2 + $0xb1] sm:$0xff]  ;;  %v3545_v0 = vadd.f32 %v3513_v37, %v8483_v27 }
 0x1c8   : > { %1785 = vrot.lane.b32.xlu1 %v1708_v17, %s7195_s23  ;;  %v3649_v49 = vpop.permute.xlu0 %3648  ;;  %v3261_v32 = vadd.f32 %v3221_v51, %v3181_v15  ;;  %v1710_v17 = vld [vmem:[#allocation3 + $0xe4] sm:$0xff]  ;;  %v3182_v25 = vadd.f32 %v3142_v63, %v3062_v62  ;;  %v3578_v19 = vadd.f32 %v3546_v61, %v8533_v54  ;;  %v1711_v37 = vld [vmem:[#allocation3 + $0xf4] sm:$0xff] }
 0x1c9   : > { %v3816_v57 = vmul.f32 %v3649_v49, %v3576_v3  ;;  %2170 = vrot.lane.b32.xlu0 %v2093_v48, %s7197_s26  ;;  %v6684_v49 = vld [vmem:[%s10509_s1 + $0x128] sm:$0xff]  ;;  %v1903_v48 = vld [vmem:[#allocation3 + $0x110] sm:$0xff]  ;;  %v3577_v16 = vadd.f32 %v3545_v0, %v8499_v12  ;;  %v2336_v15 = vld [vmem:[#allocation4] sm:$0xff] }
 0x1ca   : > { %v3645_v39 = vpop.permute.xlu1 %3644  ;;  %v3341_v20 = vadd.f32 %v3301_v9, %v3261_v32  ;;  %v3879_v51 = vld [vmem:[#allocation3] sm:$0xff]  ;;  %v6713_v63 = vld [vmem:[%s10509_s1 + $0x210] sm:$0xff] }
 0x1cb   : > { %v3815_v21 = vmul.f32 %v3645_v39, %v3575_v56  ;;  %3848 = vst.msk [vmem:[#allocation3 + $0x3a] sm:$0xff] %vm223_vm0, %v3816_v57  ;;  %v8571_v56 = vld [vmem:[#allocation4 + $0x60] sm:$0xff]  ;;  %v3517_v39 = vadd.f32 %v3485_v53, %v8499_v12  ;;  %3911 = vst.msk [vmem:[#allocation4] sm:$0xff] %vm223_vm0, %v3879_v51  ;;  %v3382_v53 = vld [vmem:[#allocation2 + $0xb4] sm:$0xff] }
 0x1cc   : > { %1978 = vrot.lane.b32.xlu1 %v10561_v38, %s7196_s25  ;;  %v6688_v38 = vld [vmem:[%s10509_s1 + $0x148] sm:$0xff]  ;;  %v3667_v26 = vpop.permute.xlu0 %3666 }
 0x1cd   : > { %3847 = vst.msk [vmem:[#allocation3 + $0x32] sm:$0xff] %vm223_vm0, %v3815_v21  ;;  %v3819_v2 = vmul.f32 %v3667_v26, %v3579_v23  ;;  %3743 = vbcast.lane.b32.xlu0 %v8523_v50, 256  ;;  %5473 = vmatpush1.msra.mxu1 %v6688_v38  ;;  %v3222_v21 = vld [vmem:[#allocation2 + $0xb2] sm:$0xff]  ;;  %v3486_v38 = vadd.f32 %v8488_v30, %v8471_v22  ;;  %v3223_v9 = vld [vmem:[#allocation2 + $0xc2] sm:$0xff] }
 0x1ce   : > { %v1760_v1 = vpop.permute.xlu1 %1759  ;;  %5474 = vmatprep.subr.mxu1 %v10557_v14  ;;  %v8612_v22 = vadd.f32 %v3381_v4, %v3341_v20  ;;  %v3549_v40 = vadd.f32 %v3517_v39, %v8514_v36  ;;  %v6712_v20 = vld [vmem:[%s10509_s1 + $0x208] sm:$0xff]  ;;  %v8646_v4 = vld [vmem:[#allocation4 + $0xd8] sm:$0xff] }
 0x1cf   : > { %1855 = vst.msk [vmem:[#allocation4 + $0x8] sm:$0xff] %vm1212_vm11, %v1760_v1  ;;  %5475 = vmatpush1.msra.mxu1 %v6687_v33  ;;  %v3262_v1 = vadd.f32 %v3222_v21, %v3182_v25  ;;  %v3143_v33 = vld [vmem:[#allocation2 + $0xc1] sm:$0xff] }
 0x1d0   : > { %1787 = vrot.lane.b32.xlu1 %v1709_v29, %s7195_s23  ;;  %3851 = vst.msk [vmem:[#allocation3 + $0x62] sm:$0xff] %vm223_vm0, %v3819_v2  ;;  %v2145_v43 = vpop.permute.xlu0 %2144  ;;  %5476 = vmatprep.subr.mxu1 %v10557_v14  ;;  %v6683_v29 = vld [vmem:[%s10509_s1 + $0x120] sm:$0xff]  ;;  %v3302_v2 = vld [vmem:[#allocation2 + $0xb3] sm:$0xff]  ;;  %v3581_v32 = vadd.f32 %v3549_v40, %v8612_v22  ;;  %v3183_v62 = vadd.f32 %v3143_v33, %v3063_v24  ;;  %v3224_v24 = vld [vmem:[#allocation2 + $0xca] sm:$0xff] }
 0x1d1   : > { %2172 = vrot.lane.b32.xlu0 %v2094_v34, %s7197_s26  ;;  %5477 = vmatpush1.msra.mxu1 %v6686_v8  ;;  %v3342_v42 = vadd.f32 %v3302_v2, %v3262_v1  ;;  %v3518_v8 = vadd.f32 %v3486_v38, %v8533_v54  ;;  %v3943_v33 = vld [vmem:[#allocation3 + $0x2] sm:$0xff] }
 0x1d2   : > { %v1953_v10 = vpop.permute.xlu1 %1952  ;;  %5478 = vmatprep.subr.mxu1 %v10557_v14  ;;  %v3263_v21 = vadd.f32 %v3223_v9, %v3183_v62  ;;  %v3383_v51 = vld [vmem:[#allocation2 + $0xc4] sm:$0xff] }
 0x1d3   : > { %2048 = vst.msk [vmem:[#allocation4 + $0x8] sm:$0xff] %vm1405_vm12, %v1953_v10  ;;  %v8634_v25 = vadd.f32 %v3382_v53, %v3342_v42  ;;  %v3488_v42 = vadd.f32 %v8533_v54, %v8488_v30  ;;  %v8690_v9 = vld [vmem:[#allocation4 + $0xa8] sm:$0xff] }
 0x1d4   : > { %2240 = vst.msk [vmem:[#allocation4 + $0x8] sm:$0xff] %vm1598_vm13, %v2145_v43  ;;  %1980 = vrot.lane.b32.xlu1 %v7940_v59, %s7196_s25  ;;  %v6685_v59 = vld [vmem:[%s10509_s1 + $0x130] sm:$0xff]  ;;  %v3671_v3 = vpop.permute.xlu0 %3670  ;;  %v3884_v46 = vld [vmem:[#allocation3 + $0x38] sm:$0xff] }
 0x1d5   : > { %v3883_v13 = vld [vmem:[#allocation3 + $0x30] sm:$0xff]  ;;  %v3820_v45 = vmul.f32 %v3671_v3, %v3580_v58  ;;  %3747 = vbcast.lane.b32.xlu0 %v8523_v50, 264  ;;  %3916 = vst.msk [vmem:[#allocation4 + $0x78] sm:$0xff] %vm223_vm0, %v3884_v46  ;;  %5479 = vmatpush1.msra.mxu1 %v6685_v59  ;;  %v8591_v50 = vld [vmem:[#allocation4 + $0xc0] sm:$0xff]  ;;  %v3064_v3 = vld [vmem:[#allocation2 + $0xc8] sm:$0xff] }
 0x1d6   : > { %v1762_v52 = vpop.permute.xlu1 %1761  ;;  %3915 = vst.msk [vmem:[#allocation4 + $0x60] sm:$0xff] %vm223_vm0, %v3883_v13  ;;  %5480 = vmatprep.subr.mxu1 %v10557_v14  ;;  %v8599_v26 = vld [vmem:[#allocation3 + $0x32] sm:$0xff]  ;;  %v2096_v59 = vld [vmem:[#allocation3 + $0x122] sm:$0xff]  ;;  %v3550_v13 = vadd.f32 %v3518_v8, %v8542_v31 }
 0x1d7   : > { %1856 = vst.msk [vmem:[#allocation4 + $0x20] sm:$0xff] %vm1212_vm11, %v1762_v52  ;;  %v3887_v57 = vld [vmem:[#allocation3 + $0x60] sm:$0xff]  ;;  %5481 = vmatpush1.msra.mxu1 %v6684_v49  ;;  %v3487_v49 = vadd.f32 %v8499_v12, %v8483_v27  ;;  %v4583_v1 = vld [vmem:[#allocation3 + $0x34] sm:$0xff] }
 0x1d8   : > { %1789 = vrot.lane.b32.xlu1 %v1710_v17, %s7195_s23  ;;  %3852 = vst.msk [vmem:[#allocation3 + $0x6a] sm:$0xff] %vm223_vm0, %v3820_v45  ;;  %v2147_v23 = vpop.permute.xlu0 %2146  ;;  %3919 = vst.msk [vmem:[#allocation4 + $0xc0] sm:$0xff] %vm223_vm0, %v3887_v57  ;;  %5482 = vmatprep.subr.mxu1 %v10557_v14  ;;  %v1904_v17 = vld [vmem:[#allocation3 + $0x120] sm:$0xff]  ;;  %v8676_v8 = vld [vmem:[#allocation4 + $0x90] sm:$0xff] }
 0x1d9   : > { %2174 = vrot.lane.b32.xlu0 %v2095_v55, %s7197_s26  ;;  %5483 = vmatpush1.msra.mxu1 %v6683_v29  ;;  %v3303_v46 = vld [vmem:[#allocation2 + $0xc3] sm:$0xff]  ;;  %v8637_v45 = vld [vmem:[#allocation3 + $0x3a] sm:$0xff]  ;;  %v3582_v29 = vadd.f32 %v3550_v13, %v8634_v25  ;;  %v3519_v2 = vadd.f32 %v3487_v49, %v8514_v36  ;;  %v3520_v49 = vadd.f32 %v3488_v42, %v8542_v31 }
 0x1da   : > { %v1955_v7 = vpop.permute.xlu1 %1954  ;;  %5484 = vmatprep.subr.mxu1 %v10557_v14  ;;  %v2339_v55 = vld [vmem:[#allocation4 + $0x18] sm:$0xff]  ;;  %v6711_v27 = vld [vmem:[%s10509_s1 + $0x200] sm:$0xff]  ;;  %v3343_v40 = vadd.f32 %v3303_v46, %v3263_v21  ;;  %v6708_v13 = vld [vmem:[%s10509_s1 + $0x1e8] sm:$0xff] }
 0x1db   : > { %2049 = vst.msk [vmem:[#allocation4 + $0x20] sm:$0xff] %vm1405_vm12, %v1955_v7  ;;  %v2337_v5 = vld [vmem:[#allocation4 + $0x8] sm:$0xff]  ;;  %5485 = vmatpush2.msra.mxu1 %v6714_v18  ;;  %v8669_v18 = vld [vmem:[#allocation3 + $0x1b4] sm:$0xff]  ;;  %v3551_v62 = vadd.f32 %v3519_v2, %v8612_v22  ;;  %v3066_v42 = vld [vmem:[#allocation2 + $0xe0] sm:$0xff] }
 0x1dc   : > { %2241 = vst.msk [vmem:[#allocation4 + $0x20] sm:$0xff] %vm1598_vm13, %v2147_v23  ;;  %1982 = vrot.lane.b32.xlu1 %v1903_v48, %s7196_s25  ;;  %2628 = vmatprep.mubr.f32.mxu0 %v2337_v5  ;;  %v3660_v34 = vpop.permute.xlu0 %3659  ;;  %v3144_v48 = vld [vmem:[#allocation2 + $0xc9] sm:$0xff]  ;;  %v8687_v30 = vadd.f32 %v3383_v51, %v3343_v40  ;;  %v8705_v46 = vld [vmem:[#allocation3 + $0x1d4] sm:$0xff] }
 0x1dd   : > { %4551 = vst.msk [vmem:[#allocation4 + $0x8] sm:$0xff] %vm223_vm0, %v8599_v26  ;;  %2629 = vmatmul.mubr.f32.vlgmr.msra.gmra.mxu0 %v2336_v15  ;;  %v3818_v58 = vmul.f32 %v3660_v34, %v3578_v19  ;;  %3754 = vbcast.lane.b32.xlu0 %v8610_v44, 256  ;;  %v1712_v19 = vld [vmem:[#allocation3 + $0xfc] sm:$0xff]  ;;  %v3184_v38 = vadd.f32 %v3144_v48, %v3064_v3  ;;  %2332 = vst.msk [vmem:[#allocation4 + $0x2b0] sm:$0xff] %vm223_vm0, %v8669_v18 }
 0x1de   : > { %v3656_v10 = vpop.permute.xlu1 %3655  ;;  %5486 = vmatprep.subr.mxu1 %v10557_v14  ;;  %v6710_v15 = vld [vmem:[%s10509_s1 + $0x1f8] sm:$0xff]  ;;  %2335 = vst.msk [vmem:[#allocation4 + $0x2f8] sm:$0xff] %vm223_vm0, %v8705_v46 }
 0x1df   : > { %v3817_v43 = vmul.f32 %v3656_v10, %v3577_v16  ;;  %3850 = vst.msk [vmem:[#allocation3 + $0x52] sm:$0xff] %vm223_vm0, %v3818_v58  ;;  %5487 = vmatpush2.msra.mxu1 %v6713_v63  ;;  %v3888_v7 = vld [vmem:[#allocation3 + $0x68] sm:$0xff]  ;;  %v6709_v58 = vld [vmem:[%s10509_s1 + $0x1f0] sm:$0xff]  ;;  %v3145_v3 = vld [vmem:[#allocation2 + $0xd9] sm:$0xff] }
 0x1e0   : > { %1791 = vrot.lane.b32.xlu1 %v1711_v37, %s7195_s23  ;;  %v3678_v0 = vpop.permute.xlu0 %3677  ;;  %5488 = vmatprep.subr.mxu1 %v10557_v14  ;;  %3920 = vst.msk [vmem:[#allocation4 + $0xd8] sm:$0xff] %vm223_vm0, %v3888_v7  ;;  %v5159_v57 = vld [vmem:[#allocation3 + $0x64] sm:$0xff]  ;;  %v5160_v23 = vld [vmem:[#allocation3 + $0x6c] sm:$0xff]  ;;  %v3264_v37 = vadd.f32 %v3224_v24, %v3184_v38  ;;  %v6706_v51 = vld [vmem:[%s10509_s1 + $0x1d8] sm:$0xff] }
 0x1e1   : > { %3849 = vst.msk [vmem:[#allocation3 + $0x4a] sm:$0xff] %vm223_vm0, %v3817_v43  ;;  %v3821_v39 = vmul.f32 %v3678_v0, %v3581_v32  ;;  %2176 = vrot.lane.b32.xlu0 %v2096_v59, %s7197_s26  ;;  %5489 = vmatpush2.msra.mxu1 %v6712_v20  ;;  %5191 = vst.msk [vmem:[#allocation4 + $0x10] sm:$0xff] %vm223_vm0, %v5159_v57  ;;  %v8671_v43 = vld [vmem:[#allocation3 + $0x1bc] sm:$0xff]  ;;  %v3304_v63 = vld [vmem:[#allocation2 + $0xcb] sm:$0xff] }
 0x1e2   : > { %v1764_v52 = vpop.permute.xlu1 %1763  ;;  %5192 = vst.msk [vmem:[#allocation4 + $0x28] sm:$0xff] %vm223_vm0, %v5160_v23  ;;  %5490 = vmatprep.subr.mxu1 %v10557_v14  ;;  %2333 = vst.msk [vmem:[#allocation4 + $0x2c8] sm:$0xff] %vm223_vm0, %v8671_v43  ;;  %v3065_v59 = vld [vmem:[#allocation2 + $0xd8] sm:$0xff]  ;;  %v8694_v0 = vld [vmem:[#allocation3 + $0x1cc] sm:$0xff]  ;;  %v3344_v21 = vadd.f32 %v3304_v63, %v3264_v37  ;;  %v3583_v23 = vadd.f32 %v3551_v62, %v8687_v30  ;;  %v3489_v37 = vadd.f32 %v8514_v36, %v8499_v12 }
 0x1e3   : > { %1857 = vst.msk [vmem:[#allocation4 + $0x38] sm:$0xff] %vm1212_vm11, %v1764_v52  ;;  %v2340_v61 = vld [vmem:[#allocation4 + $0x20] sm:$0xff]  ;;  %5491 = vmatpush2.msra.mxu1 %v6711_v27  ;;  %v2342_v57 = vld [vmem:[#allocation4 + $0x30] sm:$0xff]  ;;  %v3185_v27 = vadd.f32 %v3145_v3, %v3065_v59  ;;  %v8744_v63 = vld [vmem:[#allocation4 + $0x108] sm:$0xff] }
 0x1e4   : > { %1984 = vrot.lane.b32.xlu1 %v1904_v17, %s7196_s25  ;;  %4552 = vst.msk [vmem:[#allocation4 + $0x20] sm:$0xff] %vm223_vm0, %v8637_v45  ;;  %2633 = vmatprep.mubr.f32.mxu0 %v2340_v61  ;;  %3853 = vst.msk [vmem:[#allocation3 + $0x7a] sm:$0xff] %vm223_vm0, %v3821_v39  ;;  %v2149_v16 = vpop.permute.xlu0 %2148  ;;  %v1905_v17 = vld [vmem:[#allocation3 + $0x128] sm:$0xff]  ;;  %v8698_v61 = vld [vmem:[#allocation4 + $0xf0] sm:$0xff] }
 0x1e5   : > { %2634 = vmatmul.mubr.f32.gmra.mxu0 %v2339_v55  ;;  %1793 = vrot.lane.b32.xlu0 %v1712_v19, %s7195_s23  ;;  %2334 = vst.msk [vmem:[#allocation4 + $0x2e0] sm:$0xff] %vm223_vm0, %v8694_v0  ;;  %v8716_v55 = vld [vmem:[#allocation3 + $0x60] sm:$0xff]  ;;  %v6705_v12 = vld [vmem:[%s10509_s1 + $0x1d0] sm:$0xff]  ;;  %v2431_v59 = vld [vmem:[#allocation4 + $0x2f8] sm:$0xff] }
 0x1e6   : > { %v1957_v5 = vpop.permute.xlu1 %1956  ;;  %5492 = vmatprep.subr.mxu1 %v10557_v14  ;;  %v6707_v19 = vld [vmem:[%s10509_s1 + $0x1e0] sm:$0xff]  ;;  %5222 = vst.msk [vmem:[#allocation4 + $0x2f8] sm:$0xff] %vm223_vm0, %v8705_v46 }
 0x1e7   : > { %2050 = vst.msk [vmem:[#allocation4 + $0x38] sm:$0xff] %vm1405_vm12, %v1957_v5  ;;  %5493 = vmatpush2.msra.mxu1 %v6710_v15  ;;  %v3384_v5 = vld [vmem:[#allocation2 + $0xcc] sm:$0xff]  ;;  %v4135_v38 = vld [vmem:[#allocation3 + $0x4] sm:$0xff]  ;;  %v3305_v62 = vld [vmem:[#allocation2 + $0xdb] sm:$0xff] }
 0x1e8   : > { %2242 = vst.msk [vmem:[#allocation4 + $0x38] sm:$0xff] %vm1598_vm13, %v2149_v16  ;;  %4647 = vrot.lane.b32.xlu1 %v4583_v1, %s7195_s23  ;;  %v3682_v34 = vpop.permute.xlu0 %3681  ;;  %v3885_v32 = vld [vmem:[#allocation3 + $0x48] sm:$0xff]  ;;  %v3886_v52 = vld [vmem:[#allocation3 + $0x50] sm:$0xff]  ;;  %5494 = vmatprep.subr.mxu1 %v10557_v14  ;;  %v3225_v16 = vld [vmem:[#allocation2 + $0xda] sm:$0xff]  ;;  %v8728_v15 = vadd.f32 %v3384_v5, %v3344_v21 }
 0x1e9   : > { %v3822_v53 = vmul.f32 %v3682_v34, %v3582_v29  ;;  %4007 = vrot.lane.b32.xlu0 %v3943_v33, %s7195_s23  ;;  %3917 = vst.msk [vmem:[#allocation4 + $0x90] sm:$0xff] %vm223_vm0, %v3885_v32  ;;  %3918 = vst.msk [vmem:[#allocation4 + $0xa8] sm:$0xff] %vm223_vm0, %v3886_v52  ;;  %5495 = vmatpush2.msra.mxu1 %v6709_v58  ;;  %v8710_v48 = vld [vmem:[#allocation3 + $0x4a] sm:$0xff]  ;;  %v4967_v24 = vld [vmem:[#allocation3 + $0x62] sm:$0xff]  ;;  %v3552_v33 = vadd.f32 %v3520_v49, %v8634_v25 }
 0x1ea   : > { %v1766_v10 = vpop.permute.xlu1 %1765  ;;  %5496 = vmatprep.subr.mxu1 %v10557_v14  ;;  %v2422_v29 = vld [vmem:[#allocation4 + $0x2b0] sm:$0xff]  ;;  %v2425_v40 = vld [vmem:[#allocation4 + $0x2c8] sm:$0xff]  ;;  %v3265_v34 = vadd.f32 %v3225_v16, %v3185_v27 }
 0x1eb   : > { %1858 = vst.msk [vmem:[#allocation4 + $0x50] sm:$0xff] %vm1212_vm11, %v1766_v10  ;;  %v3889_v7 = vld [vmem:[#allocation3 + $0x78] sm:$0xff]  ;;  %5497 = vmatpush2.msra.mxu1 %v6708_v13  ;;  %6950 = vmatprep.mubr.msk.f32.mxu1 %vm223_vm0, %v2422_v29  ;;  %v3146_v58 = vld [vmem:[#allocation2 + $0xe1] sm:$0xff]  ;;  %v3584_v49 = vadd.f32 %v3552_v33, %v8728_v15 }
 0x1ec   : > { %3758 = vbcast.lane.b32.xlu1 %v8610_v44, 264  ;;  %3854 = vst.msk [vmem:[#allocation3 + $0x82] sm:$0xff] %vm223_vm0, %v3822_v53  ;;  %v2151_v20 = vpop.permute.xlu0 %2150  ;;  %3921 = vst.msk [vmem:[#allocation4 + $0xf0] sm:$0xff] %vm223_vm0, %v3889_v7  ;;  %5498 = vmatprep.subr.mxu1 %v10557_v14  ;;  %v3880_v32 = vld [vmem:[#allocation3 + $0x8] sm:$0xff]  ;;  %v4327_v53 = vld [vmem:[#allocation3 + $0x30] sm:$0xff]  ;;  %v3186_v13 = vadd.f32 %v3146_v58, %v3066_v42  ;;  %v3345_v7 = vadd.f32 %v3305_v62, %v3265_v34 }
 0x1ed   : > { %1986 = vrot.lane.b32.xlu0 %v1905_v17, %s7196_s25  ;;  %5219 = vst.msk [vmem:[#allocation4 + $0x2b0] sm:$0xff] %vm223_vm0, %v8669_v18  ;;  %5220 = vst.msk [vmem:[#allocation4 + $0x2c8] sm:$0xff] %vm223_vm0, %v8671_v43  ;;  %5499 = vmatpush2.msra.mxu1 %v6707_v19  ;;  %v2097_v43 = vld [vmem:[#allocation3 + $0x12a] sm:$0xff]  ;;  %v3226_v52 = vld [vmem:[#allocation2 + $0xe2] sm:$0xff] }
 0x1ee   : > { %v1959_v44 = vpop.permute.xlu1 %1958  ;;  %5500 = vmatprep.subr.mxu1 %v10557_v14  ;;  %3912 = vst.msk [vmem:[#allocation4 + $0x18] sm:$0xff] %vm223_vm0, %v3880_v32  ;;  %v2428_v17 = vld [vmem:[#allocation4 + $0x2e0] sm:$0xff]  ;;  %6951 = vmatmul.mubr.msk.f32.gmra.mxu1 %vm223_vm0, %v2425_v40  ;;  %v2345_v21 = vld [vmem:[#allocation4 + $0x48] sm:$0xff]  ;;  %v3067_v34 = vld [vmem:[#allocation2 + $0xf0] sm:$0xff] }
 0x1ef   : > { %2051 = vst.msk [vmem:[#allocation4 + $0x50] sm:$0xff] %vm1405_vm12, %v1959_v44  ;;  %v2343_v39 = vld [vmem:[#allocation4 + $0x38] sm:$0xff]  ;;  %5501 = vmatpush2.msra.mxu1 %v6706_v51  ;;  %v6704_v5 = vld [vmem:[%s10509_s1 + $0x1c8] sm:$0xff]  ;;  %6953 = vmatprep.mubr.msk.f32.mxu1 %vm223_vm0, %v2428_v17  ;;  %v6703_v29 = vld [vmem:[%s10509_s1 + $0x1c0] sm:$0xff] }
 0x1f0   : > { %2243 = vst.msk [vmem:[#allocation4 + $0x50] sm:$0xff] %vm1598_vm13, %v2151_v20  ;;  %2638 = vmatprep.mubr.f32.mxu0 %v2343_v39  ;;  %4839 = vrot.lane.b32.xlu1 %v8716_v55, %s7196_s25  ;;  %v3689_v2 = vpop.permute.xlu0 %3688  ;;  %v8759_v20 = vld [vmem:[#allocation3 + $0x52] sm:$0xff]  ;;  %v3306_v51 = vld [vmem:[#allocation2 + $0xe3] sm:$0xff] }
 0x1f1   : > { %4553 = vst.msk [vmem:[#allocation4 + $0x38] sm:$0xff] %vm223_vm0, %v8710_v48  ;;  %2639 = vmatmul.mubr.f32.gmra.mxu0 %v2342_v57  ;;  %v3823_v10 = vmul.f32 %v3689_v2, %v3583_v23  ;;  %5031 = vrot.lane.b32.xlu0 %v4967_v24, %s7197_s26  ;;  %5221 = vst.msk [vmem:[#allocation4 + $0x2e0] sm:$0xff] %vm223_vm0, %v8694_v0  ;;  %v3521_v57 = vadd.f32 %v3489_v37, %v8612_v22  ;;  %v3385_v23 = vld [vmem:[#allocation2 + $0xdc] sm:$0xff]  ;;  %v1713_v19 = vld [vmem:[#allocation3 + $0x10c] sm:$0xff] }
 0x1f2   : > { %v1768_v1 = vpop.permute.xlu1 %1767  ;;  %5502 = vmatprep.subr.mxu1 %v10557_v14  ;;  %6954 = vmatmul.mubr.msk.f32.gmra.mxu1 %vm223_vm0, %v2431_v59  ;;  %v8783_v2 = vld [vmem:[#allocation3 + $0x3c] sm:$0xff]  ;;  %v8786_v24 = vadd.f32 %v3385_v23, %v3345_v7  ;;  %v3147_v37 = vld [vmem:[#allocation2 + $0xf1] sm:$0xff]  ;;  %v3386_v17 = vld [vmem:[#allocation2 + $0xe4] sm:$0xff]  ;;  %v3491_v23 = vadd.f32 %v8612_v22, %v8514_v36 }
 0x1f3   : > { %1859 = vst.msk [vmem:[#allocation4 + $0x68] sm:$0xff] %vm1212_vm11, %v1768_v1  ;;  %v3890_v39 = vld [vmem:[#allocation3 + $0x80] sm:$0xff]  ;;  %5503 = vmatpush2.msra.mxu1 %v6705_v12  ;;  %v3266_v1 = vadd.f32 %v3226_v52, %v3186_v13  ;;  %v3553_v33 = vadd.f32 %v3521_v57, %v8687_v30  ;;  %v3187_v59 = vadd.f32 %v3147_v37, %v3067_v34  ;;  %v3387_v36 = vld [vmem:[#allocation2 + $0xf4] sm:$0xff] }
 0x1f4   : > { %4199 = vrot.lane.b32.xlu1 %v4135_v38, %s7196_s25  ;;  %3855 = vst.msk [vmem:[#allocation3 + $0x92] sm:$0xff] %vm223_vm0, %v3823_v10  ;;  %v2153_v3 = vpop.permute.xlu0 %2152  ;;  %3922 = vst.msk [vmem:[#allocation4 + $0x108] sm:$0xff] %vm223_vm0, %v3890_v39  ;;  %v5161_v0 = vld [vmem:[#allocation3 + $0x7c] sm:$0xff]  ;;  %v5162_v46 = vld [vmem:[#allocation3 + $0x84] sm:$0xff]  ;;  %v3490_v38 = vadd.f32 %v8542_v31, %v8533_v54  ;;  %5504 = vmatprep.subr.mxu1 %v10557_v14  ;;  %v8793_v54 = vrot.slane %v8442_v28, %v10567_v41 }
 0x1f5   : > { %4391 = vrot.lane.b32.xlu0 %v4327_v53, %s7197_s26  ;;  %5193 = vst.msk [vmem:[#allocation4 + $0x40] sm:$0xff] %vm223_vm0, %v5161_v0  ;;  %5194 = vst.msk [vmem:[#allocation4 + $0x58] sm:$0xff] %vm223_vm0, %v5162_v46  ;;  %5505 = vmatpush2.msra.mxu1 %v6704_v5  ;;  %v3944_v10 = vld [vmem:[#allocation3 + $0xa] sm:$0xff]  ;;  %v8797_v58 = vld [vmem:[#allocation4 + $0x120] sm:$0xff]  ;;  %v3585_v12 = vadd.f32 %v3553_v33, %v8786_v24 }
 0x1f6   : > { %v1961_v18 = vpop.permute.xlu1 %1960  ;;  %5506 = vmatprep.subr.mxu1 %v10557_v14  ;;  %v3522_v41 = vadd.f32 %v3490_v38, %v8634_v25  ;;  %v8805_v52 = vld [vmem:[#allocation3 + $0x62] sm:$0xff]  ;;  %v3068_v5 = vld [vmem:[#allocation2 + $0xf8] sm:$0xff]  ;;  %v4968_v38 = vld [vmem:[#allocation3 + $0x6a] sm:$0xff] }
 0x1f7   : > { %2052 = vst.msk [vmem:[#allocation4 + $0x68] sm:$0xff] %vm1405_vm12, %v1961_v18  ;;  %v2346_v44 = vld [vmem:[#allocation4 + $0x50] sm:$0xff]  ;;  %5507 = vmatpush2.msra.mxu1 %v6703_v29  ;;  %v3346_v18 = vadd.f32 %v3306_v51, %v3266_v1  ;;  %v8828_v0 = vld [vmem:[#allocation3 + $0x68] sm:$0xff]  ;;  %v6699_v51 = vld [vmem:[%s10509_s1 + $0x1a0] sm:$0xff] }
 0x1f8   : > { %2244 = vst.msk [vmem:[#allocation4 + $0x68] sm:$0xff] %vm1598_vm13, %v2153_v3  ;;  %2643 = vmatprep.mubr.f32.mxu0 %v2346_v44  ;;  %2178 = vrot.lane.b32.xlu1 %v2097_v43, %s7197_s26  ;;  %v3693_v16 = vpop.permute.xlu0 %3692  ;;  %v6702_v43 = vld [vmem:[%s10509_s1 + $0x1b8] sm:$0xff]  ;;  %v6701_v44 = vld [vmem:[%s10509_s1 + $0x1b0] sm:$0xff]  ;;  %v3554_v7 = vadd.f32 %v3522_v41, %v8728_v15 }
 0x1f9   : > { %4554 = vst.msk [vmem:[#allocation4 + $0x50] sm:$0xff] %vm223_vm0, %v8759_v20  ;;  %2644 = vmatmul.mubr.f32.gmra.mxu0 %v2345_v21  ;;  %v3824_v40 = vmul.f32 %v3693_v16, %v3584_v49  ;;  %1795 = vrot.lane.b32.xlu0 %v1713_v19, %s7195_s23  ;;  %v3227_v3 = vld [vmem:[#allocation2 + $0xf2] sm:$0xff]  ;;  %v8821_v49 = vadd.f32 %v3386_v17, %v3346_v18 }
 0x1fa   : > { %v1770_v27 = vpop.permute.xlu1 %1769  ;;  %5508 = vmatprep.subr.mxu1 %v10557_v14  ;;  %v8819_v21 = vld [vmem:[#allocation3 + $0x138] sm:$0xff]  ;;  %v3267_v46 = vadd.f32 %v3227_v3, %v3187_v59  ;;  %v4136_v1 = vld [vmem:[#allocation3 + $0xc] sm:$0xff] }
 0x1fb   : > { %1860 = vst.msk [vmem:[#allocation4 + $0x80] sm:$0xff] %vm1212_vm11, %v1770_v27  ;;  %v3891_v32 = vld [vmem:[#allocation3 + $0x90] sm:$0xff]  ;;  %5509 = vmatpush2.msra.mxu1 %v6702_v43  ;;  %v3148_v27 = vld [vmem:[#allocation2 + $0xf9] sm:$0xff]  ;;  %v3586_v34 = vadd.f32 %v3554_v7, %v8821_v49 }
 0x1fc   : > { %4649 = vrot.lane.b32.xlu1 %v8783_v2, %s7195_s23  ;;  %3856 = vst.msk [vmem:[#allocation3 + $0x9a] sm:$0xff] %vm223_vm0, %v3824_v40  ;;  %v2155_v53 = vpop.permute.xlu0 %2154  ;;  %3923 = vst.msk [vmem:[#allocation4 + $0x120] sm:$0xff] %vm223_vm0, %v3891_v32  ;;  %5510 = vmatprep.subr.mxu1 %v10557_v14  ;;  %v3307_v16 = vld [vmem:[#allocation2 + $0xf3] sm:$0xff]  ;;  %v3188_v33 = vadd.f32 %v3148_v27, %v3068_v5  ;;  %v3308_v7 = vld [vmem:[#allocation2 + $0xfb] sm:$0xff] }
 0x1fd   : > { %4009 = vrot.lane.b32.xlu0 %v3944_v10, %s7195_s23  ;;  %5511 = vmatpush2.msra.mxu1 %v6701_v44  ;;  %v8843_v10 = vld [vmem:[#allocation3 + $0x6a] sm:$0xff]  ;;  %v3347_v37 = vadd.f32 %v3307_v16, %v3267_v46  ;;  %v3228_v32 = vld [vmem:[#allocation2 + $0xfa] sm:$0xff] }
 0x1fe   : > { %v1963_v42 = vpop.permute.xlu1 %1962  ;;  %5512 = vmatprep.subr.mxu1 %v10557_v14  ;;  %v4328_v17 = vld [vmem:[#allocation3 + $0x38] sm:$0xff]  ;;  %v3268_v59 = vadd.f32 %v3228_v32, %v3188_v33 }
 0x1ff   : > { %2053 = vst.msk [vmem:[#allocation4 + $0x80] sm:$0xff] %vm1405_vm12, %v1963_v42  ;;  %v2349_v62 = vld [vmem:[#allocation4 + $0x68] sm:$0xff]  ;;  %v3523_v42 = vadd.f32 %v3491_v23, %v8687_v30  ;;  %v2098_v44 = vld [vmem:[#allocation3 + $0x13a] sm:$0xff]  ;;  %v8868_v23 = vld [vmem:[#allocation4 + $0x150] sm:$0xff] }
 0x200   : > { %2245 = vst.msk [vmem:[#allocation4 + $0x80] sm:$0xff] %vm1598_vm13, %v2155_v53  ;;  %2648 = vmatprep.mubr.f32.mxu0 %v2349_v62  ;;  %3765 = vbcast.lane.b32.xlu1 %v8793_v54, 256  ;;  %v3700_v39 = vpop.permute.xlu0 %3699  ;;  %v8849_v53 = vld [vmem:[#allocation4 + $0x138] sm:$0xff] }
 0x201   : > { %4555 = vst.msk [vmem:[#allocation4 + $0x68] sm:$0xff] %vm223_vm0, %v8805_v52  ;;  %2649 = vmatmul.mubr.f32.gmra.mxu0 %v8571_v56  ;;  %v6700_v56 = vld [vmem:[%s10509_s1 + $0x1a8] sm:$0xff]  ;;  %v3825_v57 = vmul.f32 %v3700_v39, %v3585_v12  ;;  %1988 = vrot.lane.b32.xlu0 %v8819_v21, %s7196_s25  ;;  %v3555_v39 = vadd.f32 %v3523_v42, %v8786_v24  ;;  %v1714_v27 = vld [vmem:[#allocation3 + $0x114] sm:$0xff] }
 0x202   : > { %v1772_v13 = vpop.permute.xlu1 %1771  ;;  %5513 = vmatpush2.msra.mxu1 %v6700_v56  ;;  %v3069_v56 = vld [vmem:[#allocation2 + $0x108] sm:$0xff] }
 0x203   : > { %1861 = vst.msk [vmem:[#allocation4 + $0x98] sm:$0xff] %vm1212_vm11, %v1772_v13  ;;  %5514 = vmatprep.subr.mxu1 %v10557_v14  ;;  %v3881_v14 = vld [vmem:[#allocation3 + $0x18] sm:$0xff]  ;;  %v8863_v13 = vadd.f32 %v3387_v36, %v3347_v37 }
 0x204   : > { %4841 = vrot.lane.b32.xlu1 %v8828_v0, %s7196_s25  ;;  %3857 = vst.msk [vmem:[#allocation3 + $0xaa] sm:$0xff] %vm223_vm0, %v3825_v57  ;;  %v2157_v29 = vpop.permute.xlu0 %2156  ;;  %3913 = vst.msk [vmem:[#allocation4 + $0x30] sm:$0xff] %vm223_vm0, %v3881_v14  ;;  %v3892_v62 = vld [vmem:[#allocation3 + $0x98] sm:$0xff]  ;;  %5515 = vmatpush2.msra.mxu1 %v6699_v51  ;;  %v3149_v57 = vld [vmem:[#allocation2 + $0x109] sm:$0xff] }
 0x205   : > { %5033 = vrot.lane.b32.xlu0 %v4968_v38, %s7197_s26  ;;  %v5163_v18 = vld [vmem:[#allocation3 + $0x94] sm:$0xff]  ;;  %v5164_v41 = vld [vmem:[#allocation3 + $0x9c] sm:$0xff]  ;;  %3924 = vst.msk [vmem:[#allocation4 + $0x138] sm:$0xff] %vm223_vm0, %v3892_v62  ;;  %v3189_v33 = vadd.f32 %v3149_v57, %v3069_v56 }
 0x206   : > { %v1965_v19 = vpop.permute.xlu1 %1964  ;;  %5195 = vst.msk [vmem:[#allocation4 + $0x70] sm:$0xff] %vm223_vm0, %v5163_v18  ;;  %5196 = vst.msk [vmem:[#allocation4 + $0x88] sm:$0xff] %vm223_vm0, %v5164_v41  ;;  %v8872_v38 = vld [vmem:[#allocation3 + $0x7a] sm:$0xff]  ;;  %v3493_v41 = vadd.f32 %v8687_v30, %v8612_v22 }
 0x207   : > { %2054 = vst.msk [vmem:[#allocation4 + $0x98] sm:$0xff] %vm1405_vm12, %v1965_v19  ;;  %v2352_v40 = vld [vmem:[#allocation4 + $0x80] sm:$0xff]  ;;  %v3348_v19 = vadd.f32 %v3308_v7, %v3268_v59  ;;  %v4777_v57 = vld [vmem:[#allocation3 + $0x78] sm:$0xff] }
 0x208   : > { %2246 = vst.msk [vmem:[#allocation4 + $0x98] sm:$0xff] %vm1598_vm13, %v2157_v29  ;;  %2653 = vmatprep.mubr.f32.mxu0 %v2352_v40  ;;  %4201 = vrot.lane.b32.xlu1 %v4136_v1, %s7196_s25  ;;  %v3704_v12 = vpop.permute.xlu0 %3703  ;;  %v4585_v29 = vld [vmem:[#allocation3 + $0x4c] sm:$0xff]  ;;  %v3587_v40 = vadd.f32 %v3555_v39, %v8863_v13  ;;  %v3388_v36 = vld [vmem:[#allocation2 + $0xfc] sm:$0xff] }
 0x209   : > { %4556 = vst.msk [vmem:[#allocation4 + $0x80] sm:$0xff] %vm223_vm0, %v8843_v10  ;;  %2654 = vmatmul.mubr.f32.gmra.mxu0 %v8579_v11  ;;  %v3492_v11 = vadd.f32 %v8634_v25, %v8542_v31  ;;  %v3826_v3 = vmul.f32 %v3704_v12, %v3586_v34  ;;  %4393 = vrot.lane.b32.xlu0 %v4328_v17, %s7197_s26  ;;  %v3945_v51 = vld [vmem:[#allocation3 + $0x1a] sm:$0xff]  ;;  %v3229_v34 = vld [vmem:[#allocation2 + $0x10a] sm:$0xff] }
 0x20a   : > { %v1774_v43 = vpop.permute.xlu1 %1773  ;;  %v8883_v32 = vadd.f32 %v3388_v36, %v3348_v19  ;;  %v3269_v18 = vadd.f32 %v3229_v34, %v3189_v33  ;;  %v3070_v12 = vld [vmem:[#allocation2 + $0x110] sm:$0xff]  ;;  %v3494_v36 = vadd.f32 %v8728_v15, %v8634_v25  ;;  %v8917_v25 = vld [vmem:[#allocation4 + $0x180] sm:$0xff] }
 0x20b   : > { %1862 = vst.msk [vmem:[#allocation4 + $0xb0] sm:$0xff] %vm1212_vm11, %v1774_v43  ;;  %v3893_v5 = vld [vmem:[#allocation3 + $0xa8] sm:$0xff]  ;;  %v3524_v1 = vadd.f32 %v3492_v11, %v8728_v15  ;;  %v3150_v17 = vld [vmem:[#allocation2 + $0x111] sm:$0xff] }
 0x20c   : > { %2180 = vrot.lane.b32.xlu1 %v2098_v44, %s7197_s26  ;;  %3858 = vst.msk [vmem:[#allocation3 + $0xb2] sm:$0xff] %vm223_vm0, %v3826_v3  ;;  %v2159_v31 = vpop.permute.xlu0 %2158  ;;  %3925 = vst.msk [vmem:[#allocation4 + $0x150] sm:$0xff] %vm223_vm0, %v3893_v5  ;;  %v3309_v43 = vld [vmem:[#allocation2 + $0x10b] sm:$0xff]  ;;  %v8893_v3 = vld [vmem:[#allocation3 + $0x82] sm:$0xff]  ;;  %v3525_v5 = vadd.f32 %v3493_v41, %v8786_v24 }
 0x20d   : > { %1797 = vrot.lane.b32.xlu0 %v1714_v27, %s7195_s23  ;;  %v3556_v14 = vadd.f32 %v3524_v1, %v8821_v49  ;;  %v8891_v11 = vld [vmem:[#allocation4 + $0x168] sm:$0xff]  ;;  %v4137_v1 = vld [vmem:[#allocation3 + $0x1c] sm:$0xff] }
 0x20e   : > { %v1967_v46 = vpop.permute.xlu1 %1966  ;;  %v3389_v27 = vld [vmem:[#allocation2 + $0x10c] sm:$0xff]  ;;  %v3557_v34 = vadd.f32 %v3525_v5, %v8863_v13  ;;  %v1715_v5 = vld [vmem:[#allocation3 + $0x124] sm:$0xff] }
 0x20f   : > { %2055 = vst.msk [vmem:[#allocation4 + $0xb0] sm:$0xff] %vm1405_vm12, %v1967_v46  ;;  %v2355_v16 = vld [vmem:[#allocation4 + $0x98] sm:$0xff]  ;;  %v3588_v22 = vadd.f32 %v3556_v14, %v8883_v32  ;;  %v3349_v46 = vadd.f32 %v3309_v43, %v3269_v18  ;;  %v3071_v14 = vld [vmem:[#allocation2 + $0x120] sm:$0xff]  ;;  %v4329_v43 = vld [vmem:[#allocation3 + $0x48] sm:$0xff] }
 0x210   : > { %2247 = vst.msk [vmem:[#allocation4 + $0xb0] sm:$0xff] %vm1598_vm13, %v2159_v31  ;;  %2658 = vmatprep.mubr.f32.mxu0 %v2355_v16  ;;  %4651 = vrot.lane.b32.xlu1 %v4585_v29, %s7195_s23  ;;  %v3711_v42 = vpop.permute.xlu0 %3710  ;;  %v3190_v31 = vadd.f32 %v3150_v17, %v3070_v12  ;;  %v3230_v16 = vld [vmem:[#allocation2 + $0x112] sm:$0xff]  ;;  %v3526_v17 = vadd.f32 %v3494_v36, %v8821_v49 }
 0x211   : > { %4557 = vst.msk [vmem:[#allocation4 + $0x98] sm:$0xff] %vm223_vm0, %v8872_v38  ;;  %2659 = vmatmul.mubr.f32.gmra.mxu0 %v8676_v8  ;;  %v3827_v62 = vmul.f32 %v3711_v42, %v3587_v40  ;;  %4011 = vrot.lane.b32.xlu0 %v3945_v51, %s7195_s23  ;;  %v1907_v8 = vld [vmem:[#allocation3 + $0x140] sm:$0xff]  ;;  %v8911_v51 = vadd.f32 %v3389_v27, %v3349_v46  ;;  %v3310_v42 = vld [vmem:[#allocation2 + $0x113] sm:$0xff] }
 0x212   : > { %v1776_v37 = vpop.permute.xlu1 %1775  ;;  %v4969_v40 = vld [vmem:[#allocation3 + $0x7a] sm:$0xff]  ;;  %v8944_v36 = vrot.slane %v8442_v28, %v10568_v60 }
 0x213   : > { %1863 = vst.msk [vmem:[#allocation4 + $0xc8] sm:$0xff] %vm1212_vm11, %v1776_v37  ;;  %v3894_v44 = vld [vmem:[#allocation3 + $0xb0] sm:$0xff]  ;;  %v3270_v37 = vadd.f32 %v3230_v16, %v3190_v31  ;;  %v3558_v31 = vadd.f32 %v3526_v17, %v8883_v32 }
 0x214   : > { %3769 = vbcast.lane.b32.xlu1 %v8793_v54, 264  ;;  %3859 = vst.msk [vmem:[#allocation3 + $0xc2] sm:$0xff] %vm223_vm0, %v3827_v62  ;;  %v2161_v39 = vpop.permute.xlu0 %2160  ;;  %3926 = vst.msk [vmem:[#allocation4 + $0x168] sm:$0xff] %vm223_vm0, %v3894_v44  ;;  %v5165_v54 = vld [vmem:[#allocation3 + $0xac] sm:$0xff]  ;;  %v5166_v56 = vld [vmem:[#allocation3 + $0xb4] sm:$0xff] }
 0x215   : > { %1990 = vrot.lane.b32.xlu0 %v1907_v8, %s7196_s25  ;;  %5197 = vst.msk [vmem:[#allocation4 + $0xa0] sm:$0xff] %vm223_vm0, %v5165_v54  ;;  %5198 = vst.msk [vmem:[#allocation4 + $0xb8] sm:$0xff] %vm223_vm0, %v5166_v56  ;;  %v3151_v62 = vld [vmem:[#allocation2 + $0x121] sm:$0xff]  ;;  %v3390_v54 = vld [vmem:[#allocation2 + $0x114] sm:$0xff] }
 0x216   : > { %v1969_v59 = vpop.permute.xlu1 %1968  ;;  %v2099_v44 = vld [vmem:[#allocation3 + $0x142] sm:$0xff]  ;;  %v8933_v16 = vld [vmem:[#allocation3 + $0x54] sm:$0xff]  ;;  %v3232_v17 = vld [vmem:[#allocation2 + $0x12a] sm:$0xff] }
 0x217   : > { %2056 = vst.msk [vmem:[#allocation4 + $0xc8] sm:$0xff] %vm1405_vm12, %v1969_v59  ;;  %v2358_v7 = vld [vmem:[#allocation4 + $0xb0] sm:$0xff]  ;;  %v3231_v56 = vld [vmem:[#allocation2 + $0x122] sm:$0xff] }
 0x218   : > { %2248 = vst.msk [vmem:[#allocation4 + $0xc8] sm:$0xff] %vm1598_vm13, %v2161_v39  ;;  %2663 = vmatprep.mubr.f32.mxu0 %v2358_v7  ;;  %4843 = vrot.lane.b32.xlu1 %v4777_v57, %s7196_s25  ;;  %v3715_v29 = vpop.permute.xlu0 %3714  ;;  %v8921_v59 = vld [vmem:[#allocation3 + $0x92] sm:$0xff]  ;;  %v3589_v39 = vadd.f32 %v3557_v34, %v8911_v51  ;;  %v3350_v7 = vadd.f32 %v3310_v42, %v3270_v37  ;;  %v3311_v34 = vld [vmem:[#allocation2 + $0x123] sm:$0xff]  ;;  %v8949_v42 = vld [vmem:[#allocation3 + $0x9a] sm:$0xff] }
 0x219   : > { %4558 = vst.msk [vmem:[#allocation4 + $0xb0] sm:$0xff] %vm223_vm0, %v8893_v3  ;;  %2664 = vmatmul.mubr.f32.gmra.mxu0 %v8690_v9  ;;  %v3828_v33 = vmul.f32 %v3715_v29, %v3588_v22  ;;  %5035 = vrot.lane.b32.xlu0 %v4969_v40, %s7197_s26  ;;  %v3882_v9 = vld [vmem:[#allocation3 + $0x20] sm:$0xff]  ;;  %v3191_v22 = vadd.f32 %v3151_v62, %v3071_v14  ;;  %v3072_v29 = vld [vmem:[#allocation2 + $0x128] sm:$0xff] }
 0x21a   : > { %v1778_v19 = vpop.permute.xlu1 %1777  ;;  %3914 = vst.msk [vmem:[#allocation4 + $0x48] sm:$0xff] %vm223_vm0, %v3882_v9  ;;  %v3152_v40 = vld [vmem:[#allocation2 + $0x129] sm:$0xff]  ;;  %v8947_v9 = vld [vmem:[#allocation4 + $0x198] sm:$0xff] }
 0x21b   : > { %1864 = vst.msk [vmem:[#allocation4 + $0xe0] sm:$0xff] %vm1212_vm11, %v1778_v19  ;;  %v3895_v41 = vld [vmem:[#allocation3 + $0xc0] sm:$0xff]  ;;  %v8936_v19 = vadd.f32 %v3390_v54, %v3350_v7 }
 0x21c   : > { %4203 = vrot.lane.b32.xlu1 %v4137_v1, %s7196_s25  ;;  %3860 = vst.msk [vmem:[#allocation3 + $0xca] sm:$0xff] %vm223_vm0, %v3828_v33  ;;  %v2163_v8 = vpop.permute.xlu0 %2162  ;;  %3927 = vst.msk [vmem:[#allocation4 + $0x180] sm:$0xff] %vm223_vm0, %v3895_v41  ;;  %v3271_v1 = vadd.f32 %v3231_v56, %v3191_v22  ;;  %v3946_v33 = vld [vmem:[#allocation3 + $0x22] sm:$0xff]  ;;  %v8964_v22 = vld [vmem:[#allocation3 + $0x150] sm:$0xff]  ;;  %v3496_v56 = vadd.f32 %v8821_v49, %v8728_v15 }
 0x21d   : > { %4395 = vrot.lane.b32.xlu0 %v4329_v43, %s7197_s26 }
 0x21e   : > { %v1971_v18 = vpop.permute.xlu1 %1970  ;;  %v3351_v43 = vadd.f32 %v3311_v34, %v3271_v1  ;;  %v3153_v1 = vld [vmem:[#allocation2 + $0x139] sm:$0xff] }
 0x21f   : > { %2057 = vst.msk [vmem:[#allocation4 + $0xe0] sm:$0xff] %vm1405_vm12, %v1971_v18  ;;  %v2361_v12 = vld [vmem:[#allocation4 + $0xc8] sm:$0xff]  ;;  %v3192_v18 = vadd.f32 %v3152_v40, %v3072_v29 }
 0x220   : > { %2249 = vst.msk [vmem:[#allocation4 + $0xe0] sm:$0xff] %vm1598_vm13, %v2163_v8  ;;  %2668 = vmatprep.mubr.f32.mxu0 %v2361_v12  ;;  %2182 = vrot.lane.b32.xlu1 %v2099_v44, %s7197_s26  ;;  %v3722_v46 = vpop.permute.xlu0 %3721  ;;  %v3590_v8 = vadd.f32 %v3558_v31, %v8936_v19  ;;  %v3391_v44 = vld [vmem:[#allocation2 + $0x124] sm:$0xff] }
 0x221   : > { %4559 = vst.msk [vmem:[#allocation4 + $0xc8] sm:$0xff] %vm223_vm0, %v8921_v59  ;;  %2669 = vmatmul.mubr.f32.gmra.mxu0 %v8591_v50  ;;  %v3829_v27 = vmul.f32 %v3722_v46, %v3589_v39  ;;  %1799 = vrot.lane.b32.xlu0 %v1715_v5, %s7195_s23  ;;  %v3495_v50 = vadd.f32 %v8786_v24, %v8687_v30  ;;  %v8968_v46 = vld [vmem:[#allocation3 + $0x80] sm:$0xff]  ;;  %v3312_v31 = vld [vmem:[#allocation2 + $0x12b] sm:$0xff] }
 0x222   : > { %v1780_v57 = vpop.permute.xlu1 %1779  ;;  %v3272_v54 = vadd.f32 %v3232_v17, %v3192_v18  ;;  %v8972_v5 = vadd.f32 %v3391_v44, %v3351_v43  ;;  %v4138_v29 = vld [vmem:[#allocation3 + $0x24] sm:$0xff]  ;;  %v4330_v17 = vld [vmem:[#allocation3 + $0x50] sm:$0xff] }
 0x223   : > { %1865 = vst.msk [vmem:[#allocation4 + $0xf8] sm:$0xff] %vm1212_vm11, %v1780_v57  ;;  %v5167_v14 = vld [vmem:[#allocation3 + $0xc4] sm:$0xff]  ;;  %v5168_v60 = vld [vmem:[#allocation3 + $0xcc] sm:$0xff]  ;;  %v3527_v12 = vadd.f32 %v3495_v50, %v8863_v13 }
 0x224   : > { %4653 = vrot.lane.b32.xlu1 %v8933_v16, %s7195_s23  ;;  %3861 = vst.msk [vmem:[#allocation3 + $0xda] sm:$0xff] %vm223_vm0, %v3829_v27  ;;  %v2165_v30 = vpop.permute.xlu0 %2164  ;;  %5199 = vst.msk [vmem:[#allocation4 + $0xd0] sm:$0xff] %vm223_vm0, %v5167_v14  ;;  %v3896_v41 = vld [vmem:[#allocation3 + $0xc8] sm:$0xff]  ;;  %v3073_v27 = vld [vmem:[#allocation2 + $0x138] sm:$0xff]  ;;  %v3352_v34 = vadd.f32 %v3312_v31, %v3272_v54 }
 0x225   : > { %4013 = vrot.lane.b32.xlu0 %v3946_v33, %s7195_s23  ;;  %3928 = vst.msk [vmem:[#allocation4 + $0x198] sm:$0xff] %vm223_vm0, %v3896_v41  ;;  %5200 = vst.msk [vmem:[#allocation4 + $0xe8] sm:$0xff] %vm223_vm0, %v5168_v60  ;;  %v4970_v40 = vld [vmem:[#allocation3 + $0x82] sm:$0xff]  ;;  %v8980_v14 = vld [vmem:[#allocation3 + $0xaa] sm:$0xff]  ;;  %v3193_v18 = vadd.f32 %v3153_v1, %v3073_v27 }
 0x226   : > { %v1973_v37 = vpop.permute.xlu1 %1972  ;;  %v8985_v41 = vld [vmem:[#allocation4 + $0x1b0] sm:$0xff]  ;;  %v3074_v31 = vld [vmem:[#allocation2 + $0x140] sm:$0xff] }
 0x227   : > { %2058 = vst.msk [vmem:[#allocation4 + $0xf8] sm:$0xff] %vm1405_vm12, %v1973_v37  ;;  %v2364_v62 = vld [vmem:[#allocation4 + $0xe0] sm:$0xff]  ;;  %v3528_v37 = vadd.f32 %v3496_v56, %v8883_v32  ;;  %v2100_v54 = vld [vmem:[#allocation3 + $0x152] sm:$0xff] }
 0x228   : > { %2250 = vst.msk [vmem:[#allocation4 + $0xf8] sm:$0xff] %vm1598_vm13, %v2165_v30  ;;  %2673 = vmatprep.mubr.f32.mxu0 %v2364_v62  ;;  %3776 = vbcast.lane.b32.xlu1 %v8944_v36, 256  ;;  %v3726_v7 = vpop.permute.xlu0 %3725  ;;  %v3392_v62 = vld [vmem:[#allocation2 + $0x12c] sm:$0xff]  ;;  %v3154_v27 = vld [vmem:[#allocation2 + $0x141] sm:$0xff] }
 0x229   : > { %4560 = vst.msk [vmem:[#allocation4 + $0xe0] sm:$0xff] %vm223_vm0, %v8949_v42  ;;  %2674 = vmatmul.mubr.f32.gmra.mxu0 %v8646_v4  ;;  %v3830_v57 = vmul.f32 %v3726_v7, %v3590_v8  ;;  %1992 = vrot.lane.b32.xlu0 %v8964_v22, %s7196_s25  ;;  %v3559_v4 = vadd.f32 %v3527_v12, %v8911_v51  ;;  %v3233_v8 = vld [vmem:[#allocation2 + $0x13a] sm:$0xff] }
 0x22a   : > { %v1782_v39 = vpop.permute.xlu1 %1781  ;;  %v8993_v44 = vadd.f32 %v3392_v62, %v3352_v34  ;;  %v3273_v56 = vadd.f32 %v3233_v8, %v3193_v18  ;;  %v3393_v8 = vld [vmem:[#allocation2 + $0x13c] sm:$0xff] }
 0x22b   : > { %1866 = vst.msk [vmem:[#allocation4 + $0x110] sm:$0xff] %vm1212_vm11, %v1782_v39  ;;  %v3591_v30 = vadd.f32 %v3559_v4, %v8972_v5  ;;  %v3897_v60 = vld [vmem:[#allocation3 + $0xd8] sm:$0xff]  ;;  %v3560_v39 = vadd.f32 %v3528_v37, %v8936_v19 }
 0x22c   : > { %4845 = vrot.lane.b32.xlu1 %v8968_v46, %s7196_s25  ;;  %3862 = vst.msk [vmem:[#allocation3 + $0xe2] sm:$0xff] %vm223_vm0, %v3830_v57  ;;  %v2167_v15 = vpop.permute.xlu0 %2166  ;;  %3929 = vst.msk [vmem:[#allocation4 + $0x1b0] sm:$0xff] %vm223_vm0, %v3897_v60  ;;  %v1716_v57 = vld [vmem:[#allocation3 + $0x12c] sm:$0xff]  ;;  %v3313_v4 = vld [vmem:[#allocation2 + $0x13b] sm:$0xff]  ;;  %v3194_v60 = vadd.f32 %v3154_v27, %v3074_v31 }
 0x22d   : > { %5037 = vrot.lane.b32.xlu0 %v4970_v40, %s7197_s26  ;;  %v3353_v62 = vadd.f32 %v3313_v4, %v3273_v56  ;;  %v3155_v4 = vld [vmem:[#allocation2 + $0x151] sm:$0xff]  ;;  %v9030_v27 = vld [vmem:[#allocation4 + $0x1e0] sm:$0xff] }
 0x22e   : > { %v1975_v50 = vpop.permute.xlu1 %1974 }
 0x22f   : > { %2059 = vst.msk [vmem:[#allocation4 + $0x110] sm:$0xff] %vm1405_vm12, %v1975_v50  ;;  %v2367_v33 = vld [vmem:[#allocation4 + $0xf8] sm:$0xff]  ;;  %v9001_v50 = vld [vmem:[#allocation4 + $0x1c8] sm:$0xff] }
 0x230   : > { %2251 = vst.msk [vmem:[#allocation4 + $0x110] sm:$0xff] %vm1598_vm13, %v2167_v15  ;;  %2678 = vmatprep.mubr.f32.mxu0 %v2367_v33  ;;  %4205 = vrot.lane.b32.xlu1 %v4138_v29, %s7196_s25  ;;  %v3733_v12 = vpop.permute.xlu0 %3732  ;;  %v9003_v29 = vld [vmem:[#allocation3 + $0xb2] sm:$0xff] }
 0x231   : > { %4561 = vst.msk [vmem:[#allocation4 + $0xf8] sm:$0xff] %vm223_vm0, %v8980_v14  ;;  %2679 = vmatmul.mubr.f32.gmra.mxu0 %v8698_v61  ;;  %v3831_v7 = vmul.f32 %v3733_v12, %v3591_v30  ;;  %4397 = vrot.lane.b32.xlu0 %v4330_v17, %s7197_s26  ;;  %v3497_v61 = vadd.f32 %v8863_v13, %v8786_v24  ;;  %v9009_v30 = vld [vmem:[#allocation3 + $0x64] sm:$0xff] }
 0x232   : > { %v1784_v43 = vpop.permute.xlu1 %1783  ;;  %v3592_v24 = vadd.f32 %v3560_v39, %v8993_v44  ;;  %v3498_v39 = vadd.f32 %v8883_v32, %v8821_v49 }
 0x233   : > { %1867 = vst.msk [vmem:[#allocation4 + $0x128] sm:$0xff] %vm1212_vm11, %v1784_v43  ;;  %v5169_v15 = vld [vmem:[#allocation3 + $0xdc] sm:$0xff]  ;;  %v5170_v34 = vld [vmem:[#allocation3 + $0xe4] sm:$0xff]  ;;  %v3529_v18 = vadd.f32 %v3497_v61, %v8911_v51 }
 0x234   : > { %2184 = vrot.lane.b32.xlu1 %v2100_v54, %s7197_s26  ;;  %3863 = vst.msk [vmem:[#allocation3 + $0xf2] sm:$0xff] %vm223_vm0, %v3831_v7  ;;  %v2169_v40 = vpop.permute.xlu0 %2168  ;;  %5201 = vst.msk [vmem:[#allocation4 + $0x100] sm:$0xff] %vm223_vm0, %v5169_v15  ;;  %v3898_v37 = vld [vmem:[#allocation3 + $0xe0] sm:$0xff]  ;;  %v9025_v54 = vadd.f32 %v3393_v8, %v3353_v62 }
 0x235   : > { %1801 = vrot.lane.b32.xlu0 %v1716_v57, %s7195_s23  ;;  %5202 = vst.msk [vmem:[#allocation4 + $0x118] sm:$0xff] %vm223_vm0, %v5170_v34  ;;  %3930 = vst.msk [vmem:[#allocation4 + $0x1c8] sm:$0xff] %vm223_vm0, %v3898_v37  ;;  %v3234_v43 = vld [vmem:[#allocation2 + $0x142] sm:$0xff]  ;;  %v3561_v56 = vadd.f32 %v3529_v18, %v8972_v5  ;;  %v3075_v57 = vld [vmem:[#allocation2 + $0x150] sm:$0xff] }
 0x236   : > { %v1977_v1 = vpop.permute.xlu1 %1976  ;;  %v3274_v61 = vadd.f32 %v3234_v43, %v3194_v60  ;;  %v3195_v37 = vadd.f32 %v3155_v4, %v3075_v57  ;;  %v3394_v62 = vld [vmem:[#allocation2 + $0x144] sm:$0xff]  ;;  %v3235_v18 = vld [vmem:[#allocation2 + $0x152] sm:$0xff] }
 0x237   : > { %2060 = vst.msk [vmem:[#allocation4 + $0x128] sm:$0xff] %vm1405_vm12, %v1977_v1  ;;  %v2370_v33 = vld [vmem:[#allocation4 + $0x110] sm:$0xff] }
 0x238   : > { %2252 = vst.msk [vmem:[#allocation4 + $0x128] sm:$0xff] %vm1598_vm13, %v2169_v40  ;;  %2683 = vmatprep.mubr.f32.mxu0 %v2370_v33  ;;  %4655 = vrot.lane.b32.xlu1 %v9009_v30, %s7195_s23  ;;  %v3737_v17 = vpop.permute.xlu0 %3736  ;;  %v3530_v40 = vadd.f32 %v3498_v39, %v8936_v19  ;;  %v9036_v33 = vld [vmem:[#allocation3 + $0xc2] sm:$0xff]  ;;  %v4971_v43 = vld [vmem:[#allocation3 + $0x92] sm:$0xff] }
 0x239   : > { %4562 = vst.msk [vmem:[#allocation4 + $0x110] sm:$0xff] %vm223_vm0, %v9003_v29  ;;  %2684 = vmatmul.mubr.f32.gmra.mxu0 %v8744_v63  ;;  %v3832_v7 = vmul.f32 %v3737_v17, %v3592_v24  ;;  %4015 = vrot.lane.b32.xlu0 %v8599_v26, %s7195_s23  ;;  %v3314_v63 = vld [vmem:[#allocation2 + $0x143] sm:$0xff]  ;;  %v9033_v26 = vld [vmem:[#allocation3 + $0x158] sm:$0xff]  ;;  %v3593_v24 = vadd.f32 %v3561_v56, %v9025_v54 }
 0x23a   : > { %v1786_v12 = vpop.permute.xlu1 %1785  ;;  %v3354_v34 = vadd.f32 %v3314_v63, %v3274_v61  ;;  %v3499_v56 = vadd.f32 %v8911_v51, %v8863_v13  ;;  %v7130_v61 = vld [vmem:[#allocation3 + $0x34] sm:$0xff] }
 0x23b   : > { %1868 = vst.msk [vmem:[#allocation4 + $0x140] sm:$0xff] %vm1212_vm11, %v1786_v12  ;;  %v3899_v49 = vld [vmem:[#allocation3 + $0xf0] sm:$0xff]  ;;  %v3562_v12 = vadd.f32 %v3530_v40, %v8993_v44  ;;  %v2101_v13 = vld [vmem:[#allocation3 + $0x15a] sm:$0xff] }
 0x23c   : > { %3780 = vbcast.lane.b32.xlu1 %v8944_v36, 264  ;;  %3864 = vst.msk [vmem:[#allocation3 + $0xfa] sm:$0xff] %vm223_vm0, %v3832_v7  ;;  %v2171_v1 = vpop.permute.xlu0 %2170  ;;  %3931 = vst.msk [vmem:[#allocation4 + $0x1e0] sm:$0xff] %vm223_vm0, %v3899_v49  ;;  %v9040_v36 = vld [vmem:[#allocation3 + $0x90] sm:$0xff]  ;;  %v9053_v39 = vadd.f32 %v3394_v62, %v3354_v34  ;;  %v3275_v7 = vadd.f32 %v3235_v18, %v3195_v37  ;;  %v3076_v34 = vld [vmem:[#allocation2 + $0x158] sm:$0xff] }
 0x23d   : > { %1994 = vrot.lane.b32.xlu0 %v9033_v26, %s7196_s25  ;;  %v3156_v37 = vld [vmem:[#allocation2 + $0x159] sm:$0xff] }
 0x23e   : > { %v1979_v31 = vpop.permute.xlu1 %1978  ;;  %v3395_v62 = vld [vmem:[#allocation2 + $0x154] sm:$0xff] }
 0x23f   : > { %2061 = vst.msk [vmem:[#allocation4 + $0x140] sm:$0xff] %vm1405_vm12, %v1979_v31  ;;  %v2373_v15 = vld [vmem:[#allocation4 + $0x128] sm:$0xff] }
 0x240   : > { %2253 = vst.msk [vmem:[#allocation4 + $0x140] sm:$0xff] %vm1598_vm13, %v2171_v1  ;;  %2688 = vmatprep.mubr.f32.mxu0 %v2373_v15  ;;  %4847 = vrot.lane.b32.xlu1 %v9040_v36, %s7196_s25  ;;  %v3744_v8 = vpop.permute.xlu0 %3743  ;;  %v4532_v1 = vld [vmem:[#allocation3 + $0xca] sm:$0xff]  ;;  %v3594_v15 = vadd.f32 %v3562_v12, %v9053_v39  ;;  %v9083_v12 = vrot.slane %v8442_v28, %v10569_v6 }
 0x241   : > { %4563 = vst.msk [vmem:[#allocation4 + $0x128] sm:$0xff] %vm223_vm0, %v9036_v33  ;;  %2689 = vmatmul.mubr.f32.gmra.mxu0 %v8797_v58  ;;  %v3833_v17 = vmul.f32 %v3744_v8, %v3593_v24  ;;  %5039 = vrot.lane.b32.xlu0 %v4971_v43, %s7197_s26  ;;  %v3315_v58 = vld [vmem:[#allocation2 + $0x153] sm:$0xff]  ;;  %v3531_v24 = vadd.f32 %v3499_v56, %v8972_v5  ;;  %v7131_v56 = vld [vmem:[#allocation3 + $0x128] sm:$0xff] }
 0x242   : > { %v1788_v60 = vpop.permute.xlu1 %1787  ;;  %v3355_v40 = vadd.f32 %v3315_v58, %v3275_v7  ;;  %v3196_v8 = vadd.f32 %v3156_v37, %v3076_v34  ;;  %v3236_v7 = vld [vmem:[#allocation2 + $0x15a] sm:$0xff]  ;;  %v3500_v6 = vadd.f32 %v8936_v19, %v8883_v32 }
 0x243   : > { %1869 = vst.msk [vmem:[#allocation4 + $0x158] sm:$0xff] %vm1212_vm11, %v1788_v60  ;;  %v9059_v57 = vld [vmem:[#allocation3 + $0xf4] sm:$0xff]  ;;  %v9061_v4 = vld [vmem:[#allocation3 + $0xfc] sm:$0xff] }
 0x244   : > { %4207 = vrot.lane.b32.xlu1 %v7130_v61, %s7196_s25  ;;  %3865 = vst.msk [vmem:[#allocation3 + $0x10a] sm:$0xff] %vm223_vm0, %v3833_v17  ;;  %v2173_v31 = vpop.permute.xlu0 %2172  ;;  %5203 = vst.msk [vmem:[#allocation4 + $0x130] sm:$0xff] %vm223_vm0, %v9059_v57  ;;  %v9085_v17 = vadd.f32 %v3395_v62, %v3355_v40  ;;  %v3532_v37 = vadd.f32 %v3500_v6, %v8993_v44 }
 0x245   : > { %5204 = vst.msk [vmem:[#allocation4 + $0x148] sm:$0xff] %vm223_vm0, %v9061_v4  ;;  %4399 = vrot.lane.b32.xlu0 %v8716_v55, %s7197_s26  ;;  %v9077_v55 = vld [vmem:[#allocation3 + $0x6c] sm:$0xff] }
 0x246   : > { %v1981_v63 = vpop.permute.xlu1 %1980 }
 0x247   : > { %2062 = vst.msk [vmem:[#allocation4 + $0x158] sm:$0xff] %vm1405_vm12, %v1981_v63  ;;  %v2376_v49 = vld [vmem:[#allocation4 + $0x140] sm:$0xff] }
 0x248   : > { %2254 = vst.msk [vmem:[#allocation4 + $0x158] sm:$0xff] %vm1598_vm13, %v2173_v31  ;;  %2693 = vmatprep.mubr.f32.mxu0 %v2376_v49  ;;  %2186 = vrot.lane.b32.xlu1 %v2101_v13, %s7197_s26  ;;  %v3748_v60 = vpop.permute.xlu0 %3747  ;;  %v3276_v31 = vadd.f32 %v3236_v7, %v3196_v8  ;;  %v4533_v49 = vld [vmem:[#allocation3 + $0xda] sm:$0xff] }
 0x249   : > { %4564 = vst.msk [vmem:[#allocation4 + $0x140] sm:$0xff] %vm223_vm0, %v4532_v1  ;;  %2694 = vmatmul.mubr.f32.gmra.mxu0 %v8849_v53  ;;  %v3834_v43 = vmul.f32 %v3748_v60, %v3594_v15  ;;  %4657 = vrot.lane.b32.xlu0 %v9077_v55, %s7195_s23  ;;  %v3563_v53 = vadd.f32 %v3531_v24, %v9025_v54  ;;  %v1717_v1 = vld [vmem:[#allocation3 + $0x13c] sm:$0xff] }
 0x24a   : > { %v1790_v18 = vpop.permute.xlu1 %1789  ;;  %v3316_v15 = vld [vmem:[#allocation2 + $0x15b] sm:$0xff] }
 0x24b   : > { %1870 = vst.msk [vmem:[#allocation4 + $0x170] sm:$0xff] %vm1212_vm11, %v1790_v18  ;;  %v3595_v13 = vadd.f32 %v3563_v53, %v9085_v17  ;;  %v9100_v24 = vld [vmem:[#allocation3 + $0x98] sm:$0xff]  ;;  %v3356_v34 = vadd.f32 %v3316_v15, %v3276_v31  ;;  %v2102_v31 = vld [vmem:[#allocation3 + $0x16a] sm:$0xff] }
 0x24c   : > { %1544 = vrot.lane.b32.xlu1 %v7131_v56, %s7197_s26  ;;  %3866 = vst.msk [vmem:[#allocation3 + $0x112] sm:$0xff] %vm223_vm0, %v3834_v43  ;;  %v2175_v58 = vpop.permute.xlu0 %2174  ;;  %v3396_v18 = vld [vmem:[#allocation2 + $0x15c] sm:$0xff]  ;;  %v3564_v56 = vadd.f32 %v3532_v37, %v9053_v39  ;;  %v3237_v37 = vld [vmem:[#allocation2 + $0x16a] sm:$0xff] }
 0x24d   : > { %3787 = vbcast.lane.b32.xlu0 %v9083_v12, 256  ;;  %v9115_v7 = vadd.f32 %v3396_v18, %v3356_v34 }
 0x24e   : > { %v1983_v61 = vpop.permute.xlu1 %1982 }
 0x24f   : > { %2063 = vst.msk [vmem:[#allocation4 + $0x170] sm:$0xff] %vm1405_vm12, %v1983_v61  ;;  %v2379_v63 = vld [vmem:[#allocation4 + $0x158] sm:$0xff]  ;;  %v4534_v61 = vld [vmem:[#allocation3 + $0xe2] sm:$0xff]  ;;  %v3596_v6 = vadd.f32 %v3564_v56, %v9115_v7 }
 0x250   : > { %2255 = vst.msk [vmem:[#allocation4 + $0x170] sm:$0xff] %vm1598_vm13, %v2175_v58  ;;  %2698 = vmatprep.mubr.f32.mxu0 %v2379_v63  ;;  %1803 = vrot.lane.b32.xlu1 %v1717_v1, %s7195_s23  ;;  %v3755_v32 = vpop.permute.xlu0 %3754  ;;  %v3157_v1 = vld [vmem:[#allocation2 + $0x169] sm:$0xff] }
 0x251   : > { %4565 = vst.msk [vmem:[#allocation4 + $0x158] sm:$0xff] %vm223_vm0, %v4533_v49  ;;  %2699 = vmatmul.mubr.f32.gmra.mxu0 %v8868_v23  ;;  %v3835_v62 = vmul.f32 %v3755_v32, %v3595_v13  ;;  %4849 = vrot.lane.b32.xlu0 %v9100_v24, %s7196_s25  ;;  %v4972_v49 = vld [vmem:[#allocation3 + $0x9a] sm:$0xff]  ;;  %v4535_v32 = vld [vmem:[#allocation3 + $0xf2] sm:$0xff] }
 0x252   : > { %v1792_v40 = vpop.permute.xlu1 %1791 }
 0x253   : > { %1871 = vst.msk [vmem:[#allocation4 + $0x188] sm:$0xff] %vm1212_vm11, %v1792_v40  ;;  %v9107_v60 = vld [vmem:[#allocation3 + $0x10c] sm:$0xff]  ;;  %v9110_v8 = vld [vmem:[#allocation3 + $0x114] sm:$0xff] }
 0x254   : > { %4017 = vrot.lane.b32.xlu1 %v8637_v45, %s7195_s23  ;;  %3867 = vst.msk [vmem:[#allocation3 + $0x122] sm:$0xff] %vm223_vm0, %v3835_v62  ;;  %5205 = vst.msk [vmem:[#allocation4 + $0x160] sm:$0xff] %vm223_vm0, %v9107_v60  ;;  %v2177_v43 = vpop.permute.xlu0 %2176  ;;  %v9121_v45 = vld [vmem:[#allocation3 + $0x168] sm:$0xff] }
 0x255   : > { %5206 = vst.msk [vmem:[#allocation4 + $0x178] sm:$0xff] %vm223_vm0, %v9110_v8  ;;  %4209 = vrot.lane.b32.xlu0 %v8783_v2, %s7196_s25  ;;  %v3077_v2 = vld [vmem:[#allocation2 + $0x168] sm:$0xff] }
 0x256   : > { %v1985_v23 = vpop.permute.xlu1 %1984  ;;  %v3197_v34 = vadd.f32 %v3157_v1, %v3077_v2  ;;  %v9165_v2 = vld [vmem:[#allocation3 + $0x170] sm:$0xff] }
 0x257   : > { %2064 = vst.msk [vmem:[#allocation4 + $0x188] sm:$0xff] %vm1405_vm12, %v1985_v23  ;;  %v2382_v53 = vld [vmem:[#allocation4 + $0x170] sm:$0xff]  ;;  %v1718_v23 = vld [vmem:[#allocation3 + $0x144] sm:$0xff] }
 0x258   : > { %2256 = vst.msk [vmem:[#allocation4 + $0x188] sm:$0xff] %vm1598_vm13, %v2177_v43  ;;  %2703 = vmatprep.mubr.f32.mxu0 %v2382_v53  ;;  %1996 = vrot.lane.b32.xlu1 %v9121_v45, %s7196_s25  ;;  %v1794_v63 = vpop.permute.xlu0 %1793  ;;  %v3277_v43 = vadd.f32 %v3237_v37, %v3197_v34  ;;  %v3078_v37 = vld [vmem:[#allocation2 + $0x170] sm:$0xff] }
 0x259   : > { %4566 = vst.msk [vmem:[#allocation4 + $0x170] sm:$0xff] %vm223_vm0, %v4534_v61  ;;  %2704 = vmatmul.mubr.f32.gmra.mxu0 %v8891_v11  ;;  %2188 = vrot.lane.b32.xlu0 %v2102_v31, %s7197_s26 }
 0x25a   : > { %v4648_v58 = vpop.permute.xlu1 %4647  ;;  %1872 = vst.msk [vmem:[#allocation4 + $0x1a0] sm:$0xff] %vm1212_vm11, %v1794_v63 }
 0x25b   : > { %4743 = vst.msk [vmem:[#allocation4 + $0x8] sm:$0xff] %vm1212_vm11, %v4648_v58 }
 0x25c   : > { %5041 = vrot.lane.b32.xlu1 %v4972_v49, %s7197_s26  ;;  %v4008_v15 = vpop.permute.xlu0 %4007 }
 0x25d   : > { %4103 = vst.msk [vmem:[#allocation4] sm:$0xff] %vm1212_vm11, %v4008_v15  ;;  %1546 = vrot.lane.b32.xlu0 %v8819_v21, %s7197_s26  ;;  %v9144_v21 = vld [vmem:[#allocation3 + $0x7c] sm:$0xff] }
 0x25e   : > { %v3759_v13 = vpop.permute.xlu1 %3758 }
 0x25f   : > { %v3836_v40 = vmul.f32 %v3759_v13, %v3596_v6  ;;  %v2385_v11 = vld [vmem:[#allocation4 + $0x188] sm:$0xff] }
 0x260   : > { %2708 = vmatprep.mubr.f32.mxu0 %v2385_v11  ;;  %4567 = vst.msk [vmem:[#allocation4 + $0x188] sm:$0xff] %vm223_vm0, %v4535_v32  ;;  %4401 = vrot.lane.b32.xlu1 %v8828_v0, %s7197_s26  ;;  %v1987_v62 = vpop.permute.xlu0 %1986  ;;  %v3501_v0 = vadd.f32 %v8972_v5, %v8911_v51  ;;  %v3397_v51 = vld [vmem:[#allocation2 + $0x16c] sm:$0xff] }
 0x261   : > { %2709 = vmatmul.mubr.f32.gmra.mxu0 %v8917_v25  ;;  %3868 = vst.msk [vmem:[#allocation3 + $0x12a] sm:$0xff] %vm223_vm0, %v3836_v40  ;;  %1805 = vrot.lane.b32.xlu0 %v1718_v23, %s7195_s23  ;;  %v3317_v25 = vld [vmem:[#allocation2 + $0x16b] sm:$0xff] }
 0x262   : > { %v4840_v18 = vpop.permute.xlu1 %4839  ;;  %2065 = vst.msk [vmem:[#allocation4 + $0x1a0] sm:$0xff] %vm1405_vm12, %v1987_v62  ;;  %v3357_v61 = vadd.f32 %v3317_v25, %v3277_v43  ;;  %v3533_v58 = vadd.f32 %v3501_v0, %v9025_v54  ;;  %v4973_v11 = vld [vmem:[#allocation3 + $0xaa] sm:$0xff]  ;;  %v4536_v25 = vld [vmem:[#allocation3 + $0xfa] sm:$0xff] }
 0x263   : > { %4935 = vst.msk [vmem:[#allocation4 + $0x8] sm:$0xff] %vm1405_vm12, %v4840_v18  ;;  %v4141_v32 = vld [vmem:[#allocation3 + $0x4c] sm:$0xff] }
 0x264   : > { %4659 = vrot.lane.b32.xlu1 %v9144_v21, %s7195_s23  ;;  %v5032_v53 = vpop.permute.xlu0 %5031  ;;  %v3565_v1 = vadd.f32 %v3533_v58, %v9085_v17  ;;  %v3158_v62 = vld [vmem:[#allocation2 + $0x171] sm:$0xff] }
 0x265   : > { %5127 = vst.msk [vmem:[#allocation4 + $0x8] sm:$0xff] %vm1598_vm13, %v5032_v53  ;;  %4019 = vrot.lane.b32.xlu0 %v8710_v48, %s7195_s23  ;;  %v9169_v48 = vld [vmem:[#allocation3 + $0xa8] sm:$0xff]  ;;  %v3198_v58 = vadd.f32 %v3158_v62, %v3078_v37  ;;  %v1719_v37 = vld [vmem:[#allocation3 + $0x154] sm:$0xff] }
 0x266   : > { %v4200_v56 = vpop.permute.xlu1 %4199 }
 0x267   : > { %4295 = vst.msk [vmem:[#allocation4] sm:$0xff] %vm1405_vm12, %v4200_v56  ;;  %v2103_v56 = vld [vmem:[#allocation3 + $0x172] sm:$0xff] }
 0x268   : > { %v9156_v63 = vld [vmem:[#allocation3 + $0x124] sm:$0xff]  ;;  %3791 = vbcast.lane.b32.xlu1 %v9083_v12, 264  ;;  %v9159_v31 = vld [vmem:[#allocation3 + $0x12c] sm:$0xff]  ;;  %v4392_v49 = vpop.permute.xlu0 %4391  ;;  %v9173_v12 = vadd.f32 %v3397_v51, %v3357_v61  ;;  %v4333_v61 = vld [vmem:[#allocation3 + $0x78] sm:$0xff] }
 0x269   : > { %5207 = vst.msk [vmem:[#allocation4 + $0x190] sm:$0xff] %vm223_vm0, %v9156_v63  ;;  %5208 = vst.msk [vmem:[#allocation4 + $0x1a8] sm:$0xff] %vm223_vm0, %v9159_v31  ;;  %1998 = vrot.lane.b32.xlu0 %v9165_v2, %s7196_s25  ;;  %v1461_v51 = vld [vmem:[#allocation3 + $0x140] sm:$0xff] }
 0x26a   : > { %v2179_v6 = vpop.permute.xlu1 %2178  ;;  %4487 = vst.msk [vmem:[#allocation4] sm:$0xff] %vm1598_vm13, %v4392_v49  ;;  %v3597_v34 = vadd.f32 %v3565_v1, %v9173_v12 }
 0x26b   : > { %2257 = vst.msk [vmem:[#allocation4 + $0x1a0] sm:$0xff] %vm1598_vm13, %v2179_v6  ;;  %v3238_v6 = vld [vmem:[#allocation2 + $0x172] sm:$0xff] }
 0x26c   : > { %4851 = vrot.lane.b32.xlu1 %v9169_v48, %s7196_s25  ;;  %v1796_v15 = vpop.permute.xlu0 %1795  ;;  %v5224_v40 = vld [vmem:[#allocation4 + $0x8] sm:$0xff] }
 0x26d   : > { %1873 = vst.msk [vmem:[#allocation4 + $0x1b8] sm:$0xff] %vm1212_vm11, %v1796_v15  ;;  %5516 = vmatprep.mubr.f32.mxu1 %v5224_v40  ;;  %5043 = vrot.lane.b32.xlu0 %v4973_v11, %s7197_s26  ;;  %v3278_v15 = vadd.f32 %v3238_v6, %v3198_v58  ;;  %v3502_v40 = vadd.f32 %v8993_v44, %v8936_v19  ;;  %v3318_v11 = vld [vmem:[#allocation2 + $0x173] sm:$0xff]  ;;  %v9220_v58 = vld [vmem:[#allocation3 + $0x180] sm:$0xff] }
 0x26e   : > { %v4650_v13 = vpop.permute.xlu1 %4649  ;;  %v3159_v6 = vld [vmem:[#allocation2 + $0x181] sm:$0xff] }
 0x26f   : > { %4744 = vst.msk [vmem:[#allocation4 + $0x20] sm:$0xff] %vm1212_vm11, %v4650_v13  ;;  %v9191_v13 = vld [vmem:[#allocation3 + $0x84] sm:$0xff]  ;;  %v3358_v62 = vadd.f32 %v3318_v11, %v3278_v15  ;;  %v3534_v19 = vadd.f32 %v3502_v40, %v9053_v39 }
 0x270   : > { %4211 = vrot.lane.b32.xlu1 %v4141_v32, %s7196_s25  ;;  %v4010_v23 = vpop.permute.xlu0 %4009  ;;  %v4537_v11 = vld [vmem:[#allocation3 + $0x10a] sm:$0xff] }
 0x271   : > { %v5223_v0 = vld [vmem:[#allocation4] sm:$0xff]  ;;  %4104 = vst.msk [vmem:[#allocation4 + $0x18] sm:$0xff] %vm1212_vm11, %v4010_v23  ;;  %4403 = vrot.lane.b32.xlu0 %v4333_v61, %s7197_s26 }
 0x272   : > { %v3766_v18 = vpop.permute.xlu1 %3765  ;;  %v2388_v43 = vld [vmem:[#allocation4 + $0x1a0] sm:$0xff]  ;;  %5517 = vmatmul.mubr.f32.vlgmr.msra.gmra.mxu1 %v5223_v0 }
 0x273   : > { %v3837_v53 = vmul.f32 %v3766_v18, %v3597_v34  ;;  %2713 = vmatprep.mubr.f32.mxu0 %v2388_v43  ;;  %4568 = vst.msk [vmem:[#allocation4 + $0x1a0] sm:$0xff] %vm223_vm0, %v4536_v25  ;;  %v3398_v18 = vld [vmem:[#allocation2 + $0x174] sm:$0xff]  ;;  %v3566_v25 = vadd.f32 %v3534_v19, %v9115_v7 }
 0x274   : > { %2190 = vrot.lane.b32.xlu1 %v2103_v56, %s7197_s26  ;;  %2714 = vmatmul.mubr.f32.gmra.mxu0 %v8947_v9  ;;  %v1989_v1 = vpop.permute.xlu0 %1988  ;;  %v9200_v9 = vrot.slane %v8442_v28, %v10570_v35  ;;  %v9209_v35 = vld [vmem:[#allocation3 + $0xb0] sm:$0xff]  ;;  %v9211_v0 = vadd.f32 %v3398_v18, %v3358_v62 }
 0x275   : > { %3869 = vst.msk [vmem:[#allocation3 + $0x13a] sm:$0xff] %vm223_vm0, %v3837_v53  ;;  %4661 = vrot.lane.b32.xlu0 %v9191_v13, %s7195_s23 }
 0x276   : > { %v4842_v49 = vpop.permute.xlu1 %4841  ;;  %2066 = vst.msk [vmem:[#allocation4 + $0x1b8] sm:$0xff] %vm1405_vm12, %v1989_v1 }
 0x277   : > { %4936 = vst.msk [vmem:[#allocation4 + $0x20] sm:$0xff] %vm1405_vm12, %v4842_v49 }
 0x278   : > { %1548 = vrot.lane.b32.xlu1 %v1461_v51, %s7197_s26  ;;  %v5034_v34 = vpop.permute.xlu0 %5033  ;;  %v3598_v51 = vadd.f32 %v3566_v25, %v9211_v0  ;;  %v3319_v25 = vld [vmem:[#allocation2 + $0x183] sm:$0xff] }
 0x279   : > { %5128 = vst.msk [vmem:[#allocation4 + $0x20] sm:$0xff] %vm1598_vm13, %v5034_v34  ;;  %3798 = vbcast.lane.b32.xlu0 %v9200_v9, 256  ;;  %v4974_v34 = vld [vmem:[#allocation3 + $0xb2] sm:$0xff] }
 0x27a   : > { %v4202_v32 = vpop.permute.xlu1 %4201 }
 0x27b   : > { %4296 = vst.msk [vmem:[#allocation4 + $0x18] sm:$0xff] %vm1405_vm12, %v4202_v32 }
 0x27c   : > { %1807 = vrot.lane.b32.xlu1 %v1719_v37, %s7195_s23  ;;  %v4394_v43 = vpop.permute.xlu0 %4393  ;;  %v2104_v37 = vld [vmem:[#allocation3 + $0x182] sm:$0xff] }
 0x27d   : > { %4488 = vst.msk [vmem:[#allocation4 + $0x18] sm:$0xff] %vm1598_vm13, %v4394_v43  ;;  %4853 = vrot.lane.b32.xlu0 %v9209_v35, %s7196_s25  ;;  %v3503_v43 = vadd.f32 %v9025_v54, %v8972_v5 }
 0x27e   : > { %v2181_v23 = vpop.permute.xlu1 %2180 }
 0x27f   : > { %2258 = vst.msk [vmem:[#allocation4 + $0x1b8] sm:$0xff] %vm1598_vm13, %v2181_v23 }
 0x280   : > { %4021 = vrot.lane.b32.xlu1 %v8759_v20, %s7195_s23  ;;  %v1798_v56 = vpop.permute.xlu0 %1797  ;;  %v5227_v61 = vld [vmem:[#allocation4 + $0x20] sm:$0xff] }
 0x281   : > { %1874 = vst.msk [vmem:[#allocation4 + $0x1d0] sm:$0xff] %vm1212_vm11, %v1798_v56  ;;  %5521 = vmatprep.mubr.f32.mxu1 %v5227_v61  ;;  %4213 = vrot.lane.b32.xlu0 %v8933_v16, %s7196_s25  ;;  %v3079_v20 = vld [vmem:[#allocation2 + $0x180] sm:$0xff]  ;;  %v9243_v56 = vld [vmem:[#allocation3 + $0x94] sm:$0xff] }
 0x282   : > { %v4652_v53 = vpop.permute.xlu1 %4651  ;;  %v3199_v62 = vadd.f32 %v3159_v6, %v3079_v20  ;;  %v3239_v16 = vld [vmem:[#allocation2 + $0x182] sm:$0xff]  ;;  %v3535_v20 = vadd.f32 %v3503_v43, %v9085_v17 }
 0x283   : > { %4745 = vst.msk [vmem:[#allocation4 + $0x38] sm:$0xff] %vm1212_vm11, %v4652_v53  ;;  %v1720_v61 = vld [vmem:[#allocation3 + $0x15c] sm:$0xff] }
 0x284   : > { %2000 = vrot.lane.b32.xlu1 %v9220_v58, %s7196_s25  ;;  %v4012_v1 = vpop.permute.xlu0 %4011  ;;  %v5226_v40 = vld [vmem:[#allocation4 + $0x18] sm:$0xff]  ;;  %v3279_v23 = vadd.f32 %v3239_v16, %v3199_v62  ;;  %v6910_v16 = vpop.f32.mrf.mxu1 }
 0x285   : > { %4105 = vst.msk [vmem:[#allocation4 + $0x30] sm:$0xff] %vm1212_vm11, %v4012_v1  ;;  %5522 = vmatmul.mubr.f32.gmra.mxu1 %v5226_v40  ;;  %2192 = vrot.lane.b32.xlu0 %v2104_v37, %s7197_s26  ;;  %v9269_v37 = vld [vmem:[#allocation3 + $0x188] sm:$0xff] }
 0x286   : > { %v3770_v49 = vpop.permute.xlu1 %3769  ;;  %v2391_v15 = vld [vmem:[#allocation4 + $0x1b8] sm:$0xff] }
 0x287   : > { %v3838_v32 = vmul.f32 %v3770_v49, %v3598_v51  ;;  %2718 = vmatprep.mubr.f32.mxu0 %v2391_v15  ;;  %4569 = vst.msk [vmem:[#allocation4 + $0x1b8] sm:$0xff] %vm223_vm0, %v4537_v11  ;;  %v3359_v51 = vadd.f32 %v3319_v25, %v3279_v23  ;;  %v3567_v15 = vadd.f32 %v3535_v20, %v9173_v12  ;;  %v4538_v25 = vld [vmem:[#allocation3 + $0x112] sm:$0xff]  ;;  %v2855_v20 = vpop.f32.mrf.mxu1 }
 0x288   : > { %5045 = vrot.lane.b32.xlu1 %v4974_v34, %s7197_s26  ;;  %2719 = vmatmul.mubr.f32.gmra.mxu0 %v8985_v41  ;;  %v1991_v18 = vpop.permute.xlu0 %1990  ;;  %v9267_v34 = vld [vmem:[#allocation3 + $0xc0] sm:$0xff] }
 0x289   : > { %3870 = vst.msk [vmem:[#allocation3 + $0x142] sm:$0xff] %vm223_vm0, %v3838_v32  ;;  %1550 = vrot.lane.b32.xlu0 %v8964_v22, %s7197_s26 }
 0x28a   : > { %v4844_v19 = vpop.permute.xlu1 %4843  ;;  %2067 = vst.msk [vmem:[#allocation4 + $0x1d0] sm:$0xff] %vm1405_vm12, %v1991_v18 }
 0x28b   : > { %4937 = vst.msk [vmem:[#allocation4 + $0x38] sm:$0xff] %vm1405_vm12, %v4844_v19 }
 0x28c   : > { %4405 = vrot.lane.b32.xlu1 %v8968_v46, %s7197_s26  ;;  %v5036_v53 = vpop.permute.xlu0 %5035  ;;  %v3399_v46 = vld [vmem:[#allocation2 + $0x184] sm:$0xff] }
 0x28d   : > { %5129 = vst.msk [vmem:[#allocation4 + $0x38] sm:$0xff] %vm1598_vm13, %v5036_v53  ;;  %1809 = vrot.lane.b32.xlu0 %v1720_v61, %s7195_s23  ;;  %v9259_v1 = vadd.f32 %v3399_v46, %v3359_v51  ;;  %v4975_v53 = vld [vmem:[#allocation3 + $0xc2] sm:$0xff]  ;;  %v3240_v51 = vld [vmem:[#allocation2 + $0x18a] sm:$0xff] }
 0x28e   : > { %v4204_v41 = vpop.permute.xlu1 %4203 }
 0x28f   : > { %4297 = vst.msk [vmem:[#allocation4 + $0x30] sm:$0xff] %vm1405_vm12, %v4204_v41  ;;  %v3599_v62 = vadd.f32 %v3567_v15, %v9259_v1 }
 0x290   : > { %4663 = vrot.lane.b32.xlu1 %v9243_v56, %s7195_s23  ;;  %v9249_v22 = vld [vmem:[#allocation3 + $0x13c] sm:$0xff]  ;;  %v9251_v5 = vld [vmem:[#allocation3 + $0x144] sm:$0xff]  ;;  %v4396_v49 = vpop.permute.xlu0 %4395 }
 0x291   : > { %5209 = vst.msk [vmem:[#allocation4 + $0x1c0] sm:$0xff] %vm223_vm0, %v9249_v22  ;;  %5210 = vst.msk [vmem:[#allocation4 + $0x1d8] sm:$0xff] %vm223_vm0, %v9251_v5  ;;  %4023 = vrot.lane.b32.xlu0 %v8805_v52, %s7195_s23  ;;  %v3080_v52 = vld [vmem:[#allocation2 + $0x188] sm:$0xff] }
 0x292   : > { %v2183_v6 = vpop.permute.xlu1 %2182  ;;  %4489 = vst.msk [vmem:[#allocation4 + $0x30] sm:$0xff] %vm1598_vm13, %v4396_v49 }
 0x293   : > { %2259 = vst.msk [vmem:[#allocation4 + $0x1d0] sm:$0xff] %vm1598_vm13, %v2183_v6 }
 0x294   : > { %3802 = vbcast.lane.b32.xlu1 %v9200_v9, 264  ;;  %v1800_v11 = vpop.permute.xlu0 %1799  ;;  %v5230_v32 = vld [vmem:[#allocation4 + $0x38] sm:$0xff]  ;;  %v3160_v9 = vld [vmem:[#allocation2 + $0x189] sm:$0xff] }
 0x295   : > { %1875 = vst.msk [vmem:[#allocation4 + $0x1e8] sm:$0xff] %vm1212_vm11, %v1800_v11  ;;  %5526 = vmatprep.mubr.f32.mxu1 %v5230_v32  ;;  %2002 = vrot.lane.b32.xlu0 %v9269_v37, %s7196_s25  ;;  %v3200_v61 = vadd.f32 %v3160_v9, %v3080_v52  ;;  %v2105_v11 = vld [vmem:[#allocation3 + $0x18a] sm:$0xff]  ;;  %v3504_v32 = vadd.f32 %v9053_v39, %v8993_v44  ;;  %v9293_v9 = vld [vmem:[#allocation3 + $0x9c] sm:$0xff] }
 0x296   : > { %v4654_v40 = vpop.permute.xlu1 %4653  ;;  %v9302_v44 = vrot.slane %v8442_v28, %v10573_v47 }
 0x297   : > { %4746 = vst.msk [vmem:[#allocation4 + $0x50] sm:$0xff] %vm1212_vm11, %v4654_v40 }
 0x298   : > { %4855 = vrot.lane.b32.xlu1 %v9267_v34, %s7196_s25  ;;  %v4014_v18 = vpop.permute.xlu0 %4013 }
 0x299   : > { %v5229_v43 = vld [vmem:[#allocation4 + $0x30] sm:$0xff]  ;;  %4106 = vst.msk [vmem:[#allocation4 + $0x48] sm:$0xff] %vm1212_vm11, %v4014_v18  ;;  %5047 = vrot.lane.b32.xlu0 %v4975_v53, %s7197_s26  ;;  %v3536_v18 = vadd.f32 %v3504_v32, %v9115_v7 }
 0x29a   : > { %v3777_v19 = vpop.permute.xlu1 %3776  ;;  %v2394_v23 = vld [vmem:[#allocation4 + $0x1d0] sm:$0xff]  ;;  %5527 = vmatmul.mubr.f32.gmra.mxu1 %v5229_v43 }
 0x29b   : > { %v3839_v41 = vmul.f32 %v3777_v19, %v3599_v62  ;;  %2723 = vmatprep.mubr.f32.mxu0 %v2394_v23  ;;  %4570 = vst.msk [vmem:[#allocation4 + $0x1d0] sm:$0xff] %vm223_vm0, %v4538_v25 }
 0x29c   : > { %4215 = vrot.lane.b32.xlu1 %v9009_v30, %s7196_s25  ;;  %2724 = vmatmul.mubr.f32.gmra.mxu0 %v9001_v50  ;;  %v1993_v15 = vpop.permute.xlu0 %1992  ;;  %v3280_v30 = vadd.f32 %v3240_v51, %v3200_v61  ;;  %v3320_v50 = vld [vmem:[#allocation2 + $0x18b] sm:$0xff] }
 0x29d   : > { %v2630_v46 = vpop.f32.mrf.mxu0  ;;  %3871 = vst.msk [vmem:[#allocation3 + $0x152] sm:$0xff] %vm223_vm0, %v3839_v41  ;;  %4407 = vrot.lane.b32.xlu0 %v9040_v36, %s7197_s26  ;;  %v3400_v36 = vld [vmem:[#allocation2 + $0x18c] sm:$0xff] }
 0x29e   : > { %v2856_v6 = vadd.f32 %v2855_v20, %v2630_v46  ;;  %v4846_v49 = vpop.permute.xlu1 %4845  ;;  %2068 = vst.msk [vmem:[#allocation4 + $0x1e8] sm:$0xff] %vm1405_vm12, %v1993_v15  ;;  %v3360_v19 = vadd.f32 %v3320_v50, %v3280_v30  ;;  %v1721_v61 = vld [vmem:[#allocation3 + $0x16c] sm:$0xff]  ;;  %v3161_v15 = vld [vmem:[#allocation2 + $0x199] sm:$0xff]  ;;  %v4539_v50 = vld [vmem:[#allocation3 + $0x122] sm:$0xff] }
 0x29f   : > { %4938 = vst.msk [vmem:[#allocation4 + $0x50] sm:$0xff] %vm1405_vm12, %v4846_v49  ;;  %v2632_v40 = vpop.f32.mrf.mxu0  ;;  %v9314_v20 = vld [vmem:[#allocation3 + $0xc8] sm:$0xff]  ;;  %v3081_v49 = vld [vmem:[#allocation2 + $0x198] sm:$0xff] }
 0x2a0   : > { %3015 = vst.msk [vmem:[#allocation5] sm:$0xff] %vm3014_vm14, %v2856_v6  ;;  %2194 = vrot.lane.b32.xlu1 %v2105_v11, %s7197_s26  ;;  %v5038_v52 = vpop.permute.xlu0 %5037  ;;  %v9306_v51 = vadd.f32 %v3400_v36, %v3360_v19  ;;  %v6913_v6 = vpop.f32.mrf.mxu1  ;;  %v3201_v19 = vadd.f32 %v3161_v15, %v3081_v49  ;;  %v3241_v36 = vld [vmem:[#allocation2 + $0x19a] sm:$0xff] }
 0x2a1   : > { %5130 = vst.msk [vmem:[#allocation4 + $0x50] sm:$0xff] %vm1598_vm13, %v5038_v52  ;;  %4665 = vrot.lane.b32.xlu0 %v9293_v9, %s7195_s23  ;;  %v9322_v52 = vld [vmem:[#allocation3 + $0x198] sm:$0xff] }
 0x2a2   : > { %v4206_v62 = vpop.permute.xlu1 %4205  ;;  %v3401_v49 = vld [vmem:[#allocation2 + $0x19c] sm:$0xff] }
 0x2a3   : > { %4298 = vst.msk [vmem:[#allocation4 + $0x48] sm:$0xff] %vm1405_vm12, %v4206_v62 }
 0x2a4   : > { %1552 = vrot.lane.b32.xlu1 %v9033_v26, %s7197_s26  ;;  %v4398_v41 = vpop.permute.xlu0 %4397  ;;  %v3568_v26 = vadd.f32 %v3536_v18, %v9211_v0 }
 0x2a5   : > { %v2635_v23 = vpop.f32.mrf.mxu0  ;;  %4490 = vst.msk [vmem:[#allocation4 + $0x48] sm:$0xff] %vm1598_vm13, %v4398_v41  ;;  %3809 = vbcast.lane.b32.xlu0 %v9302_v44, 256 }
 0x2a6   : > { %v2861_v43 = vadd.f32 %v6910_v16, %v2635_v23  ;;  %v2185_v25 = vpop.permute.xlu1 %2184  ;;  %v3600_v46 = vadd.f32 %v3568_v26, %v9306_v51  ;;  %v3505_v26 = vadd.f32 %v9085_v17, %v9025_v54 }
 0x2a7   : > { %2260 = vst.msk [vmem:[#allocation4 + $0x1e8] sm:$0xff] %vm1598_vm13, %v2185_v25  ;;  %v2637_v53 = vpop.f32.mrf.mxu0 }
 0x2a8   : > { %3016 = vst.msk [vmem:[#allocation5 + $0x8] sm:$0xff] %vm3014_vm14, %v2861_v43  ;;  %1811 = vrot.lane.b32.xlu1 %v1721_v61, %s7195_s23  ;;  %v1802_v28 = vpop.permute.xlu0 %1801  ;;  %v5233_v16 = vld [vmem:[#allocation4 + $0x50] sm:$0xff]  ;;  %v2106_v61 = vld [vmem:[#allocation3 + $0x19a] sm:$0xff] }
 0x2a9   : > { %1876 = vst.msk [vmem:[#allocation4 + $0x200] sm:$0xff] %vm1212_vm11, %v1802_v28  ;;  %5531 = vmatprep.mubr.f32.mxu1 %v5233_v16  ;;  %4857 = vrot.lane.b32.xlu0 %v9314_v20, %s7196_s25  ;;  %v9334_v53 = vld [vmem:[#allocation3 + $0xca] sm:$0xff] }
 0x2aa   : > { %v4656_v47 = vpop.permute.xlu1 %4655 }
 0x2ab   : > { %4747 = vst.msk [vmem:[#allocation4 + $0x68] sm:$0xff] %vm1212_vm11, %v4656_v47 }
 0x2ac   : > { %4025 = vrot.lane.b32.xlu1 %v8843_v10, %s7195_s23  ;;  %v4016_v11 = vpop.permute.xlu0 %4015  ;;  %v5232_v32 = vld [vmem:[#allocation4 + $0x48] sm:$0xff]  ;;  %v2865_v10 = vpop.f32.mrf.mxu1 }
 0x2ad   : > { %4107 = vst.msk [vmem:[#allocation4 + $0x60] sm:$0xff] %vm1212_vm11, %v4016_v11  ;;  %5532 = vmatmul.mubr.f32.gmra.mxu1 %v5232_v32  ;;  %4217 = vrot.lane.b32.xlu0 %v9077_v55, %s7196_s25  ;;  %v3281_v55 = vadd.f32 %v3241_v36, %v3201_v19 }
 0x2ae   : > { %v3781_v40 = vpop.permute.xlu1 %3780  ;;  %v2397_v30 = vld [vmem:[#allocation4 + $0x1e8] sm:$0xff]  ;;  %v6916_v19 = vpop.f32.mrf.mxu1 }
 0x2af   : > { %v3840_v62 = vmul.f32 %v3781_v40, %v3600_v46  ;;  %2728 = vmatprep.mubr.f32.mxu0 %v2397_v30  ;;  %4571 = vst.msk [vmem:[#allocation4 + $0x1e8] sm:$0xff] %vm223_vm0, %v4539_v50  ;;  %v3537_v46 = vadd.f32 %v3505_v26, %v9173_v12 }
 0x2b0   : > { %2004 = vrot.lane.b32.xlu1 %v9322_v52, %s7196_s25  ;;  %2729 = vmatmul.mubr.f32.gmra.mxu0 %v9030_v27  ;;  %v1995_v25 = vpop.permute.xlu0 %1994  ;;  %v3321_v27 = vld [vmem:[#allocation2 + $0x19b] sm:$0xff] }
 0x2b1   : > { %v2640_v18 = vpop.f32.mrf.mxu0  ;;  %3872 = vst.msk [vmem:[#allocation3 + $0x15a] sm:$0xff] %vm223_vm0, %v3840_v62  ;;  %2196 = vrot.lane.b32.xlu0 %v2106_v61, %s7197_s26  ;;  %v3361_v16 = vadd.f32 %v3321_v27, %v3281_v55  ;;  %v3569_v62 = vadd.f32 %v3537_v46, %v9259_v1  ;;  %v9375_v46 = vld [vmem:[#allocation3 + $0xd8] sm:$0xff] }
 0x2b2   : > { %v2866_v23 = vadd.f32 %v2865_v10, %v2640_v18  ;;  %v4848_v43 = vpop.permute.xlu1 %4847  ;;  %2069 = vst.msk [vmem:[#allocation4 + $0x200] sm:$0xff] %vm1405_vm12, %v1995_v25 }
 0x2b3   : > { %4939 = vst.msk [vmem:[#allocation4 + $0x68] sm:$0xff] %vm1405_vm12, %v4848_v43  ;;  %v2642_v41 = vpop.f32.mrf.mxu0  ;;  %v9361_v50 = vadd.f32 %v3401_v49, %v3361_v16  ;;  %v2875_v43 = vpop.f32.mrf.mxu1 }
 0x2b4   : > { %3017 = vst.msk [vmem:[#allocation5 + $0x10] sm:$0xff] %vm3014_vm14, %v2866_v23  ;;  %5049 = vrot.lane.b32.xlu1 %v9334_v53, %s7197_s26  ;;  %v5040_v28 = vpop.permute.xlu0 %5039 }
 0x2b5   : > { %5131 = vst.msk [vmem:[#allocation4 + $0x68] sm:$0xff] %vm1598_vm13, %v5040_v28  ;;  %1554 = vrot.lane.b32.xlu0 %v9121_v45, %s7197_s26  ;;  %v9359_v45 = vld [vmem:[#allocation3 + $0xac] sm:$0xff]  ;;  %v3601_v23 = vadd.f32 %v3569_v62, %v9361_v50 }
 0x2b6   : > { %v4208_v47 = vpop.permute.xlu1 %4207 }
 0x2b7   : > { %4299 = vst.msk [vmem:[#allocation4 + $0x60] sm:$0xff] %vm1405_vm12, %v4208_v47  ;;  %v4540_v47 = vld [vmem:[#allocation3 + $0x12a] sm:$0xff] }
 0x2b8   : > { %4409 = vrot.lane.b32.xlu1 %v9100_v24, %s7197_s26  ;;  %v9348_v15 = vld [vmem:[#allocation3 + $0x154] sm:$0xff]  ;;  %v9350_v11 = vld [vmem:[#allocation3 + $0x15c] sm:$0xff]  ;;  %v4400_v32 = vpop.permute.xlu0 %4399 }
 0x2b9   : > { %v2645_v54 = vpop.f32.mrf.mxu0  ;;  %5211 = vst.msk [vmem:[#allocation4 + $0x1f0] sm:$0xff] %vm223_vm0, %v9348_v15  ;;  %5212 = vst.msk [vmem:[#allocation4 + $0x208] sm:$0xff] %vm223_vm0, %v9350_v11 }
 0x2ba   : > { %v2871_v40 = vadd.f32 %v6913_v6, %v2645_v54  ;;  %v2187_v30 = vpop.permute.xlu1 %2186  ;;  %4491 = vst.msk [vmem:[#allocation4 + $0x60] sm:$0xff] %vm1598_vm13, %v4400_v32  ;;  %v1722_v6 = vld [vmem:[#allocation3 + $0x174] sm:$0xff]  ;;  %v3162_v54 = vld [vmem:[#allocation2 + $0x1a1] sm:$0xff] }
 0x2bb   : > { %2261 = vst.msk [vmem:[#allocation4 + $0x200] sm:$0xff] %vm1598_vm13, %v2187_v30  ;;  %v2647_v24 = vpop.f32.mrf.mxu0  ;;  %1813 = vrot.lane.b32.xlu0 %v1722_v6, %s7195_s23  ;;  %v3900_v32 = vld [vmem:[#allocation3 + $0xf8] sm:$0xff] }
 0x2bc   : > { %3018 = vst.msk [vmem:[#allocation5 + $0x18] sm:$0xff] %vm3014_vm14, %v2871_v40  ;;  %4667 = vrot.lane.b32.xlu1 %v9359_v45, %s7195_s23  ;;  %v4658_v18 = vpop.permute.xlu0 %4657  ;;  %v5236_v36 = vld [vmem:[#allocation4 + $0x68] sm:$0xff]  ;;  %v9387_v24 = vld [vmem:[#allocation3 + $0xda] sm:$0xff] }
 0x2bd   : > { %4748 = vst.msk [vmem:[#allocation4 + $0x80] sm:$0xff] %vm1212_vm11, %v4658_v18  ;;  %5536 = vmatprep.mubr.f32.mxu1 %v5236_v36 }
 0x2be   : > { %v1545_v10 = vpop.permute.xlu1 %1544 }
 0x2bf   : > { %1620 = vst.msk [vmem:[#allocation4 + $0x1f8] sm:$0xff] %vm1598_vm13, %v1545_v10  ;;  %4027 = vrot.lane.b32.xlu0 %v8872_v38, %s7195_s23  ;;  %v3082_v38 = vld [vmem:[#allocation2 + $0x1a0] sm:$0xff] }
 0x2c0   : > { %3813 = vbcast.lane.b32.xlu1 %v9302_v44, 264  ;;  %v3788_v55 = vpop.permute.xlu0 %3787  ;;  %v9377_v44 = vld [vmem:[#allocation3 + $0x1a0] sm:$0xff]  ;;  %v3202_v6 = vadd.f32 %v3162_v54, %v3082_v38 }
 0x2c1   : > { %v2650_v25 = vpop.f32.mrf.mxu0  ;;  %v5235_v27 = vld [vmem:[#allocation4 + $0x60] sm:$0xff]  ;;  %v3841_v28 = vmul.f32 %v3788_v55, %v3601_v23 }
 0x2c2   : > { %v2876_v41 = vadd.f32 %v2875_v43, %v2650_v25  ;;  %v1804_v61 = vpop.permute.xlu1 %1803  ;;  %v2400_v26 = vld [vmem:[#allocation4 + $0x200] sm:$0xff]  ;;  %5537 = vmatmul.mubr.f32.gmra.mxu1 %v5235_v27  ;;  %v9404_v27 = vld [vmem:[#allocation3 + $0xb4] sm:$0xff] }
 0x2c3   : > { %1877 = vst.msk [vmem:[#allocation4 + $0x218] sm:$0xff] %vm1212_vm11, %v1804_v61  ;;  %v2652_v16 = vpop.f32.mrf.mxu0  ;;  %2733 = vmatprep.mubr.f32.mxu0 %v2400_v26  ;;  %2006 = vrot.lane.b32.xlu0 %v9377_v44, %s7196_s25  ;;  %v3242_v10 = vld [vmem:[#allocation2 + $0x1a2] sm:$0xff]  ;;  %v6919_v61 = vpop.f32.mrf.mxu1 }
 0x2c4   : > { %3019 = vst.msk [vmem:[#allocation5 + $0x20] sm:$0xff] %vm3014_vm14, %v2876_v41  ;;  %4859 = vrot.lane.b32.xlu1 %v9375_v46, %s7196_s25  ;;  %v4850_v40 = vpop.permute.xlu0 %4849  ;;  %v2107_v25 = vld [vmem:[#allocation3 + $0x1a2] sm:$0xff]  ;;  %v3282_v41 = vadd.f32 %v3242_v10, %v3202_v6  ;;  %v1916_v6 = vld [vmem:[#allocation3 + $0x1b0] sm:$0xff] }
 0x2c5   : > { %4572 = vst.msk [vmem:[#allocation4 + $0x200] sm:$0xff] %vm223_vm0, %v4540_v47  ;;  %3873 = vst.msk [vmem:[#allocation3 + $0x16a] sm:$0xff] %vm223_vm0, %v3841_v28  ;;  %v2885_v16 = vpop.f32.mrf.mxu1 }
 0x2c6   : > { %v4018_v49 = vpop.permute.xlu1 %4017  ;;  %v2399_v30 = vld [vmem:[#allocation4 + $0x1f8] sm:$0xff]  ;;  %4940 = vst.msk [vmem:[#allocation4 + $0x80] sm:$0xff] %vm1405_vm12, %v4850_v40 }
 0x2c7   : > { %4108 = vst.msk [vmem:[#allocation4 + $0x78] sm:$0xff] %vm1212_vm11, %v4018_v49  ;;  %2734 = vmatmul.mubr.f32.gmra.mxu0 %v2399_v30  ;;  %5051 = vrot.lane.b32.xlu0 %v9387_v24, %s7197_s26  ;;  %v1723_v30 = vld [vmem:[#allocation3 + $0x184] sm:$0xff] }
 0x2c8   : > { %3932 = vst.msk [vmem:[#allocation4 + $0x1f8] sm:$0xff] %vm223_vm0, %v3900_v32  ;;  %4219 = vrot.lane.b32.xlu1 %v9144_v21, %s7196_s25  ;;  %v4210_v23 = vpop.permute.xlu0 %4209  ;;  %v3506_v21 = vadd.f32 %v9115_v7, %v9053_v39 }
 0x2c9   : > { %v2655_v62 = vpop.f32.mrf.mxu0  ;;  %4300 = vst.msk [vmem:[#allocation4 + $0x78] sm:$0xff] %vm1405_vm12, %v4210_v23  ;;  %v4541_v23 = vld [vmem:[#allocation3 + $0x13a] sm:$0xff] }
 0x2ca   : > { %v2881_v18 = vadd.f32 %v6916_v19, %v2655_v62  ;;  %v1997_v36 = vpop.permute.xlu1 %1996  ;;  %v3322_v19 = vld [vmem:[#allocation2 + $0x1a3] sm:$0xff]  ;;  %v3538_v28 = vadd.f32 %v3506_v21, %v9211_v0  ;;  %v3163_v21 = vld [vmem:[#allocation2 + $0x1b1] sm:$0xff] }
 0x2cb   : > { %2070 = vst.msk [vmem:[#allocation4 + $0x218] sm:$0xff] %vm1405_vm12, %v1997_v36  ;;  %v2657_v43 = vpop.f32.mrf.mxu0  ;;  %4411 = vrot.lane.b32.xlu0 %v9169_v48, %s7197_s26  ;;  %v3362_v47 = vadd.f32 %v3322_v19, %v3282_v41  ;;  %v3402_v48 = vld [vmem:[#allocation2 + $0x1a4] sm:$0xff]  ;;  %v3083_v41 = vld [vmem:[#allocation2 + $0x1b0] sm:$0xff]  ;;  %v6922_v19 = vpop.f32.mrf.mxu1 }
 0x2cc   : > { %3020 = vst.msk [vmem:[#allocation5 + $0x28] sm:$0xff] %vm3014_vm14, %v2881_v18  ;;  %2198 = vrot.lane.b32.xlu1 %v2107_v25, %s7197_s26  ;;  %v2189_v26 = vpop.permute.xlu0 %2188  ;;  %v9422_v43 = vld [vmem:[#allocation3 + $0xe0] sm:$0xff] }
 0x2cd   : > { %2262 = vst.msk [vmem:[#allocation4 + $0x218] sm:$0xff] %vm1598_vm13, %v2189_v26  ;;  %v9414_v32 = vadd.f32 %v3402_v48, %v3362_v47 }
 0x2ce   : > { %v5042_v55 = vpop.permute.xlu1 %5041 }
 0x2cf   : > { %5132 = vst.msk [vmem:[#allocation4 + $0x80] sm:$0xff] %vm1598_vm13, %v5042_v55  ;;  %4669 = vrot.lane.b32.xlu0 %v9404_v27, %s7195_s23 }
 0x2d0   : > { %1556 = vrot.lane.b32.xlu1 %v9165_v2, %s7197_s26  ;;  %v1547_v49 = vpop.permute.xlu0 %1546  ;;  %v3570_v2 = vadd.f32 %v3538_v28, %v9306_v51 }
 0x2d1   : > { %v2660_v39 = vpop.f32.mrf.mxu0  ;;  %1621 = vst.msk [vmem:[#allocation4 + $0x210] sm:$0xff] %vm1598_vm13, %v1547_v49  ;;  %v3203_v49 = vadd.f32 %v3163_v21, %v3083_v41 }
 0x2d2   : > { %v2886_v38 = vadd.f32 %v2885_v16, %v2660_v39  ;;  %v4402_v54 = vpop.permute.xlu1 %4401  ;;  %v3602_v25 = vadd.f32 %v3570_v2, %v9414_v32  ;;  %v3901_v39 = vld [vmem:[#allocation3 + $0x108] sm:$0xff] }
 0x2d3   : > { %4492 = vst.msk [vmem:[#allocation4 + $0x78] sm:$0xff] %vm1598_vm13, %v4402_v54  ;;  %v2662_v40 = vpop.f32.mrf.mxu0  ;;  %4029 = vrot.lane.b32.xlu0 %v8893_v3, %s7195_s23  ;;  %v9431_v54 = vld [vmem:[#allocation3 + $0xe2] sm:$0xff] }
 0x2d4   : > { %3021 = vst.msk [vmem:[#allocation5 + $0x30] sm:$0xff] %vm3014_vm14, %v2886_v38  ;;  %1815 = vrot.lane.b32.xlu1 %v1723_v30, %s7195_s23  ;;  %v1806_v10 = vpop.permute.xlu0 %1805  ;;  %v2403_v18 = vld [vmem:[#allocation4 + $0x218] sm:$0xff]  ;;  %v2895_v40 = vpop.f32.mrf.mxu1 }
 0x2d5   : > { %1878 = vst.msk [vmem:[#allocation4 + $0x230] sm:$0xff] %vm1212_vm11, %v1806_v10  ;;  %2738 = vmatprep.mubr.f32.mxu0 %v2403_v18  ;;  %v2108_v30 = vld [vmem:[#allocation3 + $0x1b2] sm:$0xff]  ;;  %v3507_v10 = vadd.f32 %v9173_v12, %v9085_v17  ;;  %v9451_v17 = vld [vmem:[#allocation3 + $0xc4] sm:$0xff] }
 0x2d6   : > { %v4660_v62 = vpop.permute.xlu1 %4659  ;;  %v5239_v36 = vld [vmem:[#allocation4 + $0x80] sm:$0xff]  ;;  %4573 = vst.msk [vmem:[#allocation4 + $0x218] sm:$0xff] %vm223_vm0, %v4541_v23  ;;  %v3323_v18 = vld [vmem:[#allocation2 + $0x1b3] sm:$0xff] }
 0x2d7   : > { %4749 = vst.msk [vmem:[#allocation4 + $0x98] sm:$0xff] %vm1212_vm11, %v4660_v62  ;;  %5541 = vmatprep.mubr.f32.mxu1 %v5239_v36  ;;  %2008 = vrot.lane.b32.xlu0 %v1916_v6, %s7196_s25  ;;  %v9446_v36 = vpop.f32.mrf.mxu1 }
 0x2d8   : > { %4861 = vrot.lane.b32.xlu1 %v9422_v43, %s7196_s25  ;;  %v4020_v47 = vpop.permute.xlu0 %4019  ;;  %v2402_v28 = vld [vmem:[#allocation4 + $0x210] sm:$0xff] }
 0x2d9   : > { %v2665_v3 = vpop.f32.mrf.mxu0  ;;  %4109 = vst.msk [vmem:[#allocation4 + $0x90] sm:$0xff] %vm1212_vm11, %v4020_v47  ;;  %2739 = vmatmul.mubr.f32.gmra.mxu0 %v2402_v28  ;;  %v2905_v47 = vpop.f32.mrf.mxu1 }
 0x2da   : > { %v2891_v55 = vadd.f32 %v6919_v61, %v2665_v3  ;;  %v3792_v26 = vpop.permute.xlu1 %3791  ;;  %v5238_v16 = vld [vmem:[#allocation4 + $0x78] sm:$0xff]  ;;  %3933 = vst.msk [vmem:[#allocation4 + $0x210] sm:$0xff] %vm223_vm0, %v3901_v39 }
 0x2db   : > { %v3842_v48 = vmul.f32 %v3792_v26, %v3602_v25  ;;  %v2667_v38 = vpop.f32.mrf.mxu0  ;;  %5542 = vmatmul.mubr.f32.gmra.mxu1 %v5238_v16  ;;  %5053 = vrot.lane.b32.xlu0 %v9431_v54, %s7197_s26  ;;  %v3243_v61 = vld [vmem:[#allocation2 + $0x1b2] sm:$0xff] }
 0x2dc   : > { %3022 = vst.msk [vmem:[#allocation5 + $0x38] sm:$0xff] %vm3014_vm14, %v2891_v55  ;;  %4221 = vrot.lane.b32.xlu1 %v9191_v13, %s7196_s25  ;;  %v1999_v6 = vpop.permute.xlu0 %1998  ;;  %v3283_v62 = vadd.f32 %v3243_v61, %v3203_v49  ;;  %v3539_v55 = vadd.f32 %v3507_v10, %v9259_v1 }
 0x2dd   : > { %3874 = vst.msk [vmem:[#allocation3 + $0x172] sm:$0xff] %vm223_vm0, %v3842_v48  ;;  %v9466_v48 = vpop.f32.mrf.mxu1 }
 0x2de   : > { %v4852_v2 = vpop.permute.xlu1 %4851  ;;  %2071 = vst.msk [vmem:[#allocation4 + $0x230] sm:$0xff] %vm1405_vm12, %v1999_v6  ;;  %v3363_v21 = vadd.f32 %v3323_v18, %v3283_v62  ;;  %v3571_v49 = vadd.f32 %v3539_v55, %v9361_v50  ;;  %v9481_v18 = vld [vmem:[#allocation3 + $0xf0] sm:$0xff] }
 0x2df   : > { %4941 = vst.msk [vmem:[#allocation4 + $0x98] sm:$0xff] %vm1405_vm12, %v4852_v2  ;;  %4413 = vrot.lane.b32.xlu0 %v9209_v35, %s7197_s26  ;;  %v3403_v35 = vld [vmem:[#allocation2 + $0x1b4] sm:$0xff]  ;;  %v9476_v10 = vpop.f32.mrf.mxu1 }
 0x2e0   : > { %2200 = vrot.lane.b32.xlu1 %v2108_v30, %s7197_s26  ;;  %v5044_v3 = vpop.permute.xlu0 %5043  ;;  %v9470_v38 = vadd.f32 %v3403_v35, %v3363_v21  ;;  %v1917_v30 = vld [vmem:[#allocation3 + $0x1b8] sm:$0xff] }
 0x2e1   : > { %v2670_v13 = vpop.f32.mrf.mxu0  ;;  %5133 = vst.msk [vmem:[#allocation4 + $0x98] sm:$0xff] %vm1598_vm13, %v5044_v3  ;;  %v9487_v21 = vpop.f32.mrf.mxu1  ;;  %v9490_v35 = vld [vmem:[#allocation3 + $0xf2] sm:$0xff] }
 0x2e2   : > { %v2896_v23 = vadd.f32 %v2895_v40, %v2670_v13  ;;  %v4212_v25 = vpop.permute.xlu1 %4211 }
 0x2e3   : > { %4301 = vst.msk [vmem:[#allocation4 + $0x90] sm:$0xff] %vm1405_vm12, %v4212_v25  ;;  %v2672_v41 = vpop.f32.mrf.mxu0  ;;  %4671 = vrot.lane.b32.xlu0 %v9451_v17, %s7195_s23 }
 0x2e4   : > { %3023 = vst.msk [vmem:[#allocation5 + $0x40] sm:$0xff] %vm3014_vm14, %v2896_v23  ;;  %1558 = vrot.lane.b32.xlu1 %v9220_v58, %s7197_s26  ;;  %v9458_v26 = vld [vmem:[#allocation3 + $0x16c] sm:$0xff]  ;;  %v9460_v28 = vld [vmem:[#allocation3 + $0x174] sm:$0xff]  ;;  %v4404_v39 = vpop.permute.xlu0 %4403  ;;  %v4542_v41 = vld [vmem:[#allocation3 + $0x142] sm:$0xff] }
 0x2e5   : > { %5213 = vst.msk [vmem:[#allocation4 + $0x220] sm:$0xff] %vm223_vm0, %v9458_v26  ;;  %5214 = vst.msk [vmem:[#allocation4 + $0x238] sm:$0xff] %vm223_vm0, %v9460_v28  ;;  %v1724_v58 = vld [vmem:[#allocation3 + $0x18c] sm:$0xff] }
 0x2e6   : > { %v2191_v16 = vpop.permute.xlu1 %2190  ;;  %4493 = vst.msk [vmem:[#allocation4 + $0x90] sm:$0xff] %vm1598_vm13, %v4404_v39  ;;  %v3084_v39 = vld [vmem:[#allocation2 + $0x1b8] sm:$0xff] }
 0x2e7   : > { %2263 = vst.msk [vmem:[#allocation4 + $0x230] sm:$0xff] %vm1598_vm13, %v2191_v16  ;;  %4031 = vrot.lane.b32.xlu0 %v8921_v59, %s7195_s23  ;;  %v3603_v59 = vadd.f32 %v3571_v49, %v9470_v38 }
 0x2e8   : > { %1817 = vrot.lane.b32.xlu1 %v1724_v58, %s7195_s23  ;;  %v4662_v6 = vpop.permute.xlu0 %4661  ;;  %v5242_v62 = vld [vmem:[#allocation4 + $0x98] sm:$0xff] }
 0x2e9   : > { %v2675_v61 = vpop.f32.mrf.mxu0  ;;  %4750 = vst.msk [vmem:[#allocation4 + $0xb0] sm:$0xff] %vm1212_vm11, %v4662_v6  ;;  %5546 = vmatprep.mubr.f32.mxu1 %v5242_v62  ;;  %v3164_v58 = vld [vmem:[#allocation2 + $0x1b9] sm:$0xff]  ;;  %v3902_v6 = vld [vmem:[#allocation3 + $0x110] sm:$0xff]  ;;  %v9498_v62 = vpop.f32.mrf.mxu1 }
 0x2ea   : > { %v2901_v40 = vadd.f32 %v6922_v19, %v2675_v61  ;;  %v1549_v2 = vpop.permute.xlu1 %1548  ;;  %v2109_v61 = vld [vmem:[#allocation3 + $0x1ba] sm:$0xff] }
 0x2eb   : > { %1622 = vst.msk [vmem:[#allocation4 + $0x228] sm:$0xff] %vm1598_vm13, %v1549_v2  ;;  %v2677_v13 = vpop.f32.mrf.mxu0  ;;  %2010 = vrot.lane.b32.xlu0 %v1917_v30, %s7196_s25 }
 0x2ec   : > { %3024 = vst.msk [vmem:[#allocation5 + $0x48] sm:$0xff] %vm3014_vm14, %v2901_v40  ;;  %4863 = vrot.lane.b32.xlu1 %v9481_v18, %s7196_s25  ;;  %v3799_v23 = vpop.permute.xlu0 %3798  ;;  %v3204_v13 = vadd.f32 %v3164_v58, %v3084_v39 }
 0x2ed   : > { %v5241_v3 = vld [vmem:[#allocation4 + $0x90] sm:$0xff]  ;;  %v3843_v55 = vmul.f32 %v3799_v23, %v3603_v59  ;;  %v9507_v23 = vpop.f32.mrf.mxu1 }
 0x2ee   : > { %v1808_v19 = vpop.permute.xlu1 %1807  ;;  %v2406_v25 = vld [vmem:[#allocation4 + $0x230] sm:$0xff]  ;;  %5547 = vmatmul.mubr.f32.gmra.mxu1 %v5241_v3 }
 0x2ef   : > { %1879 = vst.msk [vmem:[#allocation4 + $0x248] sm:$0xff] %vm1212_vm11, %v1808_v19  ;;  %2743 = vmatprep.mubr.f32.mxu0 %v2406_v25  ;;  %5055 = vrot.lane.b32.xlu0 %v9490_v35, %s7197_s26  ;;  %v9511_v25 = vld [vmem:[#allocation3 + $0xcc] sm:$0xff] }
 0x2f0   : > { %4574 = vst.msk [vmem:[#allocation4 + $0x230] sm:$0xff] %vm223_vm0, %v4542_v41  ;;  %4223 = vrot.lane.b32.xlu1 %v9243_v56, %s7196_s25  ;;  %3875 = vst.msk [vmem:[#allocation3 + $0x182] sm:$0xff] %vm223_vm0, %v3843_v55  ;;  %v4854_v30 = vpop.permute.xlu0 %4853  ;;  %v3508_v41 = vadd.f32 %v9211_v0, %v9115_v7  ;;  %v3324_v55 = vld [vmem:[#allocation2 + $0x1bb] sm:$0xff] }
 0x2f1   : > { %v2680_v16 = vpop.f32.mrf.mxu0  ;;  %4942 = vst.msk [vmem:[#allocation4 + $0xb0] sm:$0xff] %vm1405_vm12, %v4854_v30  ;;  %v1918_v30 = vld [vmem:[#allocation3 + $0x1c8] sm:$0xff] }
 0x2f2   : > { %v2906_v49 = vadd.f32 %v2905_v47, %v2680_v16  ;;  %v4022_v40 = vpop.permute.xlu1 %4021  ;;  %v2405_v2 = vld [vmem:[#allocation4 + $0x228] sm:$0xff]  ;;  %v3244_v47 = vld [vmem:[#allocation2 + $0x1ba] sm:$0xff] }
 0x2f3   : > { %4110 = vst.msk [vmem:[#allocation4 + $0xa8] sm:$0xff] %vm1212_vm11, %v4022_v40  ;;  %v2682_v56 = vpop.f32.mrf.mxu0  ;;  %2744 = vmatmul.mubr.f32.gmra.mxu0 %v2405_v2  ;;  %4415 = vrot.lane.b32.xlu0 %v9267_v34, %s7197_s26  ;;  %v3284_v3 = vadd.f32 %v3244_v47, %v3204_v13  ;;  %v3540_v40 = vadd.f32 %v3508_v41, %v9306_v51  ;;  %v9533_v13 = vld [vmem:[#allocation3 + $0xf8] sm:$0xff] }
 0x2f4   : > { %3025 = vst.msk [vmem:[#allocation5 + $0x50] sm:$0xff] %vm3014_vm14, %v2906_v49  ;;  %2202 = vrot.lane.b32.xlu1 %v2109_v61, %s7197_s26  ;;  %v4214_v19 = vpop.permute.xlu0 %4213  ;;  %v9520_v49 = vpop.f32.mrf.mxu1  ;;  %v1725_v61 = vld [vmem:[#allocation3 + $0x19c] sm:$0xff] }
 0x2f5   : > { %3934 = vst.msk [vmem:[#allocation4 + $0x228] sm:$0xff] %vm223_vm0, %v3902_v6 }
 0x2f6   : > { %v2001_v59 = vpop.permute.xlu1 %2000  ;;  %4302 = vst.msk [vmem:[#allocation4 + $0xa8] sm:$0xff] %vm1405_vm12, %v4214_v19  ;;  %v9529_v56 = vpop.f32.mrf.mxu1 }
 0x2f7   : > { %2072 = vst.msk [vmem:[#allocation4 + $0x248] sm:$0xff] %vm1405_vm12, %v2001_v59  ;;  %4673 = vrot.lane.b32.xlu0 %v9511_v25, %s7195_s23  ;;  %v3572_v59 = vadd.f32 %v3540_v40, %v9414_v32  ;;  %v2110_v40 = vld [vmem:[#allocation3 + $0x1ca] sm:$0xff] }
 0x2f8   : > { %1560 = vrot.lane.b32.xlu1 %v9269_v37, %s7197_s26  ;;  %v2193_v58 = vpop.permute.xlu0 %2192  ;;  %v3364_v37 = vadd.f32 %v3324_v55, %v3284_v3 }
 0x2f9   : > { %v2685_v34 = vpop.f32.mrf.mxu0  ;;  %2264 = vst.msk [vmem:[#allocation4 + $0x248] sm:$0xff] %vm1598_vm13, %v2193_v58 }
 0x2fa   : > { %v2911_v16 = vadd.f32 %v9446_v36, %v2685_v34  ;;  %v5046_v39 = vpop.permute.xlu1 %5045  ;;  %v3404_v36 = vld [vmem:[#allocation2 + $0x1bc] sm:$0xff] }
 0x2fb   : > { %5134 = vst.msk [vmem:[#allocation4 + $0xb0] sm:$0xff] %vm1598_vm13, %v5046_v39  ;;  %v2687_v7 = vpop.f32.mrf.mxu0  ;;  %4033 = vrot.lane.b32.xlu0 %v8949_v42, %s7195_s23  ;;  %v9535_v47 = vadd.f32 %v3404_v36, %v3364_v37  ;;  %v9542_v39 = vpop.f32.mrf.mxu1  ;;  %v3165_v37 = vld [vmem:[#allocation2 + $0x1c9] sm:$0xff] }
 0x2fc   : > { %3026 = vst.msk [vmem:[#allocation5 + $0x58] sm:$0xff] %vm3014_vm14, %v2911_v16  ;;  %1819 = vrot.lane.b32.xlu1 %v1725_v61, %s7195_s23  ;;  %v1551_v6 = vpop.permute.xlu0 %1550  ;;  %v4543_v16 = vld [vmem:[#allocation3 + $0x152] sm:$0xff]  ;;  %v9547_v7 = vld [vmem:[#allocation3 + $0xfa] sm:$0xff]  ;;  %v3085_v61 = vld [vmem:[#allocation2 + $0x1c8] sm:$0xff] }
 0x2fd   : > { %1623 = vst.msk [vmem:[#allocation4 + $0x240] sm:$0xff] %vm1598_vm13, %v1551_v6 }
 0x2fe   : > { %v4406_v2 = vpop.permute.xlu1 %4405 }
 0x2ff   : > { %4494 = vst.msk [vmem:[#allocation4 + $0xa8] sm:$0xff] %vm1598_vm13, %v4406_v2  ;;  %2012 = vrot.lane.b32.xlu0 %v1918_v30, %s7196_s25 }
 0x300   : > { %4865 = vrot.lane.b32.xlu1 %v9533_v13, %s7196_s25  ;;  %v1810_v41 = vpop.permute.xlu0 %1809  ;;  %v2409_v34 = vld [vmem:[#allocation4 + $0x248] sm:$0xff] }
 0x301   : > { %v2690_v42 = vpop.f32.mrf.mxu0  ;;  %1880 = vst.msk [vmem:[#allocation4 + $0x260] sm:$0xff] %vm1212_vm11, %v1810_v41  ;;  %2748 = vmatprep.mubr.f32.mxu0 %v2409_v34  ;;  %v3245_v41 = vld [vmem:[#allocation2 + $0x1ca] sm:$0xff] }
 0x302   : > { %v2916_v19 = vadd.f32 %v9476_v10, %v2690_v42  ;;  %v4664_v3 = vpop.permute.xlu1 %4663  ;;  %v5245_v55 = vld [vmem:[#allocation4 + $0xb0] sm:$0xff]  ;;  %v3604_v10 = vadd.f32 %v3572_v59, %v9535_v47  ;;  %4575 = vst.msk [vmem:[#allocation4 + $0x248] sm:$0xff] %vm223_vm0, %v4543_v16  ;;  %v3903_v42 = vld [vmem:[#allocation3 + $0x120] sm:$0xff]  ;;  %v3205_v59 = vadd.f32 %v3165_v37, %v3085_v61  ;;  %v3509_v37 = vadd.f32 %v9259_v1, %v9173_v12 }
 0x303   : > { %4751 = vst.msk [vmem:[#allocation4 + $0xc8] sm:$0xff] %vm1212_vm11, %v4664_v3  ;;  %v2692_v58 = vpop.f32.mrf.mxu0  ;;  %5551 = vmatprep.mubr.f32.mxu1 %v5245_v55  ;;  %5057 = vrot.lane.b32.xlu0 %v9547_v7, %s7197_s26  ;;  %v9569_v61 = vld [vmem:[#allocation3 + $0xdc] sm:$0xff]  ;;  %v3405_v1 = vld [vmem:[#allocation2 + $0x1cc] sm:$0xff] }
 0x304   : > { %3027 = vst.msk [vmem:[#allocation5 + $0x60] sm:$0xff] %vm3014_vm14, %v2916_v19  ;;  %4225 = vrot.lane.b32.xlu1 %v9293_v9, %s7196_s25  ;;  %v4024_v30 = vpop.permute.xlu0 %4023  ;;  %v2408_v2 = vld [vmem:[#allocation4 + $0x240] sm:$0xff]  ;;  %v9555_v19 = vpop.f32.mrf.mxu1 }
 0x305   : > { %4111 = vst.msk [vmem:[#allocation4 + $0xc0] sm:$0xff] %vm1212_vm11, %v4024_v30  ;;  %2749 = vmatmul.mubr.f32.gmra.mxu0 %v2408_v2  ;;  %v1726_v2 = vld [vmem:[#allocation3 + $0x1a4] sm:$0xff] }
 0x306   : > { %v3803_v36 = vpop.permute.xlu1 %3802  ;;  %v5244_v6 = vld [vmem:[#allocation4 + $0xa8] sm:$0xff]  ;;  %3935 = vst.msk [vmem:[#allocation4 + $0x240] sm:$0xff] %vm223_vm0, %v3903_v42  ;;  %v9564_v58 = vpop.f32.mrf.mxu1  ;;  %v3541_v42 = vadd.f32 %v3509_v37, %v9361_v50 }
 0x307   : > { %v3844_v3 = vmul.f32 %v3803_v36, %v3604_v10  ;;  %5552 = vmatmul.mubr.f32.gmra.mxu1 %v5244_v6  ;;  %4417 = vrot.lane.b32.xlu0 %v9314_v20, %s7197_s26  ;;  %v3285_v20 = vadd.f32 %v3245_v41, %v3205_v59  ;;  %v1919_v59 = vld [vmem:[#allocation3 + $0x1d0] sm:$0xff] }
 0x308   : > { %2204 = vrot.lane.b32.xlu1 %v2110_v40, %s7197_s26  ;;  %v2003_v16 = vpop.permute.xlu0 %2002  ;;  %v9577_v30 = vpop.f32.mrf.mxu1 }
 0x309   : > { %v2695_v9 = vpop.f32.mrf.mxu0  ;;  %3876 = vst.msk [vmem:[#allocation3 + $0x18a] sm:$0xff] %vm223_vm0, %v3844_v3 }
 0x30a   : > { %v2921_v34 = vadd.f32 %v9466_v48, %v2695_v9  ;;  %v4856_v55 = vpop.permute.xlu1 %4855  ;;  %2073 = vst.msk [vmem:[#allocation4 + $0x260] sm:$0xff] %vm1405_vm12, %v2003_v16  ;;  %v3325_v48 = vld [vmem:[#allocation2 + $0x1cb] sm:$0xff]  ;;  %v9594_v50 = vpop.f32.mrf.mxu1  ;;  %v3573_v16 = vadd.f32 %v3541_v42, %v9470_v38  ;;  %v6718_v38 = vld [vmem:[%s10509_s1 + $0x238] sm:$0xff] }
 0x30b   : > { %4943 = vst.msk [vmem:[#allocation4 + $0xc8] sm:$0xff] %vm1405_vm12, %v4856_v55  ;;  %v2697_v10 = vpop.f32.mrf.mxu0  ;;  %4675 = vrot.lane.b32.xlu0 %v9569_v61, %s7195_s23  ;;  %v3365_v6 = vadd.f32 %v3325_v48, %v3285_v20  ;;  %6956 = vmatprep.subr.mxu0 %v6718_v38 }
 0x30c   : > { %3028 = vst.msk [vmem:[#allocation5 + $0x68] sm:$0xff] %vm3014_vm14, %v2921_v34  ;;  %1562 = vrot.lane.b32.xlu1 %v9322_v52, %s7197_s26  ;;  %v5048_v36 = vpop.permute.xlu0 %5047  ;;  %v9605_v10 = vpop.f32.mrf.mxu1  ;;  %6957 = vmatpush3.msra.mxu0 %v6718_v38  ;;  %v6716_v38 = vld [vmem:[%s10509_s1 + $0x228] sm:$0xff] }
 0x30d   : > { %5135 = vst.msk [vmem:[#allocation4 + $0xc8] sm:$0xff] %vm1598_vm13, %v5048_v36  ;;  %v3445_v55 = vadd.f32 %v3405_v1, %v3365_v6  ;;  %v4544_v1 = vld [vmem:[#allocation3 + $0x15a] sm:$0xff] }
 0x30e   : > { %v4216_v40 = vpop.permute.xlu1 %4215  ;;  %v9618_v6 = vpop.f32.mrf.mxu1 }
 0x30f   : > { %4303 = vst.msk [vmem:[#allocation4 + $0xc0] sm:$0xff] %vm1405_vm12, %v4216_v40  ;;  %4035 = vrot.lane.b32.xlu0 %v8980_v14, %s7195_s23  ;;  %v9609_v40 = vld [vmem:[#allocation3 + $0x10a] sm:$0xff]  ;;  %v3605_v36 = vadd.f32 %v3573_v16, %v3445_v55 }
 0x310   : > { %1821 = vrot.lane.b32.xlu1 %v1726_v2, %s7195_s23  ;;  %v9585_v52 = vld [vmem:[#allocation3 + $0x184] sm:$0xff]  ;;  %v9588_v9 = vld [vmem:[#allocation3 + $0x18c] sm:$0xff]  ;;  %v4408_v34 = vpop.permute.xlu0 %4407 }
 0x311   : > { %v2700_v12 = vpop.f32.mrf.mxu0  ;;  %5215 = vst.msk [vmem:[#allocation4 + $0x250] sm:$0xff] %vm223_vm0, %v9585_v52  ;;  %5216 = vst.msk [vmem:[#allocation4 + $0x268] sm:$0xff] %vm223_vm0, %v9588_v9  ;;  %v3166_v16 = vld [vmem:[#allocation2 + $0x1d1] sm:$0xff] }
 0x312   : > { %v2926_v3 = vadd.f32 %v9498_v62, %v2700_v12  ;;  %v2195_v41 = vpop.permute.xlu1 %2194  ;;  %4495 = vst.msk [vmem:[#allocation4 + $0xc0] sm:$0xff] %vm1598_vm13, %v4408_v34  ;;  %v9599_v62 = vld [vmem:[#allocation3 + $0x108] sm:$0xff]  ;;  %v2111_v12 = vld [vmem:[#allocation3 + $0x1d2] sm:$0xff] }
 0x313   : > { %2265 = vst.msk [vmem:[#allocation4 + $0x260] sm:$0xff] %vm1598_vm13, %v2195_v41  ;;  %v2702_v14 = vpop.f32.mrf.mxu0  ;;  %2014 = vrot.lane.b32.xlu0 %v1919_v59, %s7196_s25 }
 0x314   : > { %3029 = vst.msk [vmem:[#allocation5 + $0x70] sm:$0xff] %vm3014_vm14, %v2926_v3  ;;  %4867 = vrot.lane.b32.xlu1 %v9599_v62, %s7196_s25  ;;  %v4666_v37 = vpop.permute.xlu0 %4665  ;;  %v5248_v48 = vld [vmem:[#allocation4 + $0xc8] sm:$0xff] }
 0x315   : > { %4752 = vst.msk [vmem:[#allocation4 + $0xe0] sm:$0xff] %vm1212_vm11, %v4666_v37  ;;  %5556 = vmatprep.mubr.f32.mxu1 %v5248_v48 }
 0x316   : > { %v1553_v20 = vpop.permute.xlu1 %1552 }
 0x317   : > { %1624 = vst.msk [vmem:[#allocation4 + $0x258] sm:$0xff] %vm1598_vm13, %v1553_v20  ;;  %5059 = vrot.lane.b32.xlu0 %v9609_v40, %s7197_s26  ;;  %v9630_v20 = vpop.f32.mrf.mxu1 }
 0x318   : > { %4227 = vrot.lane.b32.xlu1 %v9359_v45, %s7196_s25  ;;  %v3810_v59 = vpop.permute.xlu0 %3809  ;;  %v6717_v45 = vld [vmem:[%s10509_s1 + $0x230] sm:$0xff] }
 0x319   : > { %v2705_v2 = vpop.f32.mrf.mxu0  ;;  %v5247_v34 = vld [vmem:[#allocation4 + $0xc0] sm:$0xff]  ;;  %v3845_v14 = vmul.f32 %v3810_v59, %v3605_v36  ;;  %6958 = vmatprep.subr.mxu0 %v6717_v45  ;;  %v9648_v59 = vpop.f32.mrf.mxu1 }
 0x31a   : > { %v2931_v42 = vadd.f32 %v9487_v21, %v2705_v2  ;;  %v1812_v3 = vpop.permute.xlu1 %1811  ;;  %v2412_v41 = vld [vmem:[#allocation4 + $0x260] sm:$0xff]  ;;  %5557 = vmatmul.mubr.f32.gmra.mxu1 %v5247_v34  ;;  %v3086_v21 = vld [vmem:[#allocation2 + $0x1d0] sm:$0xff]  ;;  %6959 = vmatpush3.msra.mxu0 %v6717_v45  ;;  %v3904_v2 = vld [vmem:[#allocation3 + $0x128] sm:$0xff] }
 0x31b   : > { %1881 = vst.msk [vmem:[#allocation4 + $0x278] sm:$0xff] %vm1212_vm11, %v1812_v3  ;;  %v2707_v55 = vpop.f32.mrf.mxu0  ;;  %2753 = vmatprep.mubr.f32.mxu0 %v2412_v41  ;;  %4419 = vrot.lane.b32.xlu0 %v9375_v46, %s7197_s26  ;;  %v9638_v46 = vld [vmem:[#allocation3 + $0xe4] sm:$0xff]  ;;  %v3246_v3 = vld [vmem:[#allocation2 + $0x1d2] sm:$0xff] }
 0x31c   : > { %3030 = vst.msk [vmem:[#allocation5 + $0x78] sm:$0xff] %vm3014_vm14, %v2931_v42  ;;  %2206 = vrot.lane.b32.xlu1 %v2111_v12, %s7197_s26  ;;  %v4858_v48 = vpop.permute.xlu0 %4857  ;;  %v3206_v42 = vadd.f32 %v3166_v16, %v3086_v21  ;;  %6960 = vmatprep.subr.mxu0 %v6716_v38  ;;  %v6715_v12 = vld [vmem:[%s10509_s1 + $0x220] sm:$0xff]  ;;  %v9656_v55 = vpop.f32.mrf.mxu1  ;;  %v3510_v16 = vadd.f32 %v9306_v51, %v9211_v0 }
 0x31d   : > { %4576 = vst.msk [vmem:[#allocation4 + $0x260] sm:$0xff] %vm223_vm0, %v4544_v1  ;;  %3877 = vst.msk [vmem:[#allocation3 + $0x19a] sm:$0xff] %vm223_vm0, %v3845_v14  ;;  %6961 = vmatpush3.msra.mxu0 %v6716_v38  ;;  %v9654_v14 = vld [vmem:[#allocation3 + $0x110] sm:$0xff] }
 0x31e   : > { %v4026_v37 = vpop.permute.xlu1 %4025  ;;  %v2411_v36 = vld [vmem:[#allocation4 + $0x258] sm:$0xff]  ;;  %4944 = vst.msk [vmem:[#allocation4 + $0xe0] sm:$0xff] %vm1405_vm12, %v4858_v48  ;;  %6962 = vmatprep.subr.mxu0 %v6715_v12  ;;  %v3286_v21 = vadd.f32 %v3246_v3, %v3206_v42  ;;  %v9668_v38 = vpop.f32.mrf.mxu1  ;;  %v3542_v0 = vadd.f32 %v3510_v16, %v9414_v32 }
 0x31f   : > { %4112 = vst.msk [vmem:[#allocation4 + $0xd8] sm:$0xff] %vm1212_vm11, %v4026_v37  ;;  %2754 = vmatmul.mubr.f32.gmra.mxu0 %v2411_v36  ;;  %4677 = vrot.lane.b32.xlu0 %v9638_v46, %s7195_s23  ;;  %v9666_v36 = vld [vmem:[#allocation3 + $0x112] sm:$0xff] }
 0x320   : > { %3936 = vst.msk [vmem:[#allocation4 + $0x258] sm:$0xff] %vm223_vm0, %v3904_v2  ;;  %1564 = vrot.lane.b32.xlu1 %v9377_v44, %s7197_s26  ;;  %v4218_v45 = vpop.permute.xlu0 %4217  ;;  %6963 = vmatpush3.msra.mxu0 %v6715_v12  ;;  %v9677_v12 = vpop.f32.mrf.mxu1  ;;  %v3574_v3 = vadd.f32 %v3542_v0, %v9535_v47 }
 0x321   : > { %v2710_v1 = vpop.f32.mrf.mxu0  ;;  %4304 = vst.msk [vmem:[#allocation4 + $0xd8] sm:$0xff] %vm1405_vm12, %v4218_v45  ;;  %v4545_v45 = vld [vmem:[#allocation3 + $0x16a] sm:$0xff] }
 0x322   : > { %v2936_v41 = vadd.f32 %v9520_v49, %v2710_v1  ;;  %v2005_v34 = vpop.permute.xlu1 %2004  ;;  %v3326_v49 = vld [vmem:[#allocation2 + $0x1d3] sm:$0xff]  ;;  %v9688_v47 = vpop.f32.mrf.mxu1 }
 0x323   : > { %2074 = vst.msk [vmem:[#allocation4 + $0x278] sm:$0xff] %vm1405_vm12, %v2005_v34  ;;  %v2712_v44 = vpop.f32.mrf.mxu0  ;;  %4869 = vrot.lane.b32.xlu0 %v9654_v14, %s7196_s25  ;;  %v3366_v2 = vadd.f32 %v3326_v49, %v3286_v21 }
 0x324   : > { %3031 = vst.msk [vmem:[#allocation5 + $0x80] sm:$0xff] %vm3014_vm14, %v2936_v41  ;;  %4037 = vrot.lane.b32.xlu1 %v9003_v29, %s7195_s23  ;;  %v2197_v48 = vpop.permute.xlu0 %2196  ;;  %v3406_v29 = vld [vmem:[#allocation2 + $0x1d4] sm:$0xff]  ;;  %v9686_v44 = vld [vmem:[#allocation3 + $0x120] sm:$0xff] }
 0x325   : > { %2266 = vst.msk [vmem:[#allocation4 + $0x278] sm:$0xff] %vm1598_vm13, %v2197_v48  ;;  %v3446_v1 = vadd.f32 %v3406_v29, %v3366_v2  ;;  %v3905_v48 = vld [vmem:[#allocation3 + $0x138] sm:$0xff]  ;;  %v9698_v29 = vld [vmem:[#allocation3 + $0x122] sm:$0xff] }
 0x326   : > { %v5050_v37 = vpop.permute.xlu1 %5049 }
 0x327   : > { %5136 = vst.msk [vmem:[#allocation4 + $0xe0] sm:$0xff] %vm1598_vm13, %v5050_v37  ;;  %5061 = vrot.lane.b32.xlu0 %v9666_v36, %s7197_s26  ;;  %v3606_v21 = vadd.f32 %v3574_v3, %v3446_v1 }
 0x328   : > { %4229 = vrot.lane.b32.xlu1 %v9404_v27, %s7196_s25  ;;  %v1555_v42 = vpop.permute.xlu0 %1554 }
 0x329   : > { %1625 = vst.msk [vmem:[#allocation4 + $0x270] sm:$0xff] %vm1598_vm13, %v1555_v42 }
 0x32a   : > { %v4410_v51 = vpop.permute.xlu1 %4409 }
 0x32b   : > { %4496 = vst.msk [vmem:[#allocation4 + $0xd8] sm:$0xff] %vm1598_vm13, %v4410_v51  ;;  %4679 = vrot.lane.b32.xlu0 %v9059_v57, %s7195_s23 }
 0x32c   : > { %4421 = vrot.lane.b32.xlu1 %v9422_v43, %s7197_s26  ;;  %v2415_v41 = vld [vmem:[#allocation4 + $0x278] sm:$0xff] }
 0x32d   : > { %v1814_v32 = vpop.permute.xlu0 %1813  ;;  %2758 = vmatprep.mubr.f32.mxu0 %v2415_v41  ;;  %4577 = vst.msk [vmem:[#allocation4 + $0x278] sm:$0xff] %vm223_vm0, %v4545_v45 }
 0x32e   : > { %v4668_v27 = vpop.permute.xlu1 %4667  ;;  %v5251_v34 = vld [vmem:[#allocation4 + $0xe0] sm:$0xff]  ;;  %1882 = vst.msk [vmem:[#allocation4 + $0x290] sm:$0xff] %vm1212_vm11, %v1814_v32 }
 0x32f   : > { %4753 = vst.msk [vmem:[#allocation4 + $0xf8] sm:$0xff] %vm1212_vm11, %v4668_v27  ;;  %5561 = vmatprep.mubr.f32.mxu1 %v5251_v34  ;;  %4871 = vrot.lane.b32.xlu0 %v9686_v44, %s7196_s25 }
 0x330   : > { %4039 = vrot.lane.b32.xlu1 %v9036_v33, %s7195_s23  ;;  %v2414_v49 = vld [vmem:[#allocation4 + $0x270] sm:$0xff] }
 0x331   : > { %v4028_v16 = vpop.permute.xlu0 %4027  ;;  %2759 = vmatmul.mubr.f32.gmra.mxu0 %v2414_v49  ;;  %3937 = vst.msk [vmem:[#allocation4 + $0x270] sm:$0xff] %vm223_vm0, %v3905_v48 }
 0x332   : > { %v3814_v43 = vpop.permute.xlu1 %3813  ;;  %v5250_v37 = vld [vmem:[#allocation4 + $0xd8] sm:$0xff]  ;;  %4113 = vst.msk [vmem:[#allocation4 + $0xf0] sm:$0xff] %vm1212_vm11, %v4028_v16  ;;  %v9696_v0 = vpop.f32.mrf.mxu1 }
 0x333   : > { %v3846_v2 = vmul.f32 %v3814_v43, %v3606_v21  ;;  %5562 = vmatmul.mubr.f32.gmra.mxu1 %v5250_v37  ;;  %5063 = vrot.lane.b32.xlu0 %v9698_v29, %s7197_s26 }
 0x334   : > { %4231 = vrot.lane.b32.xlu1 %v9451_v17, %s7196_s25  ;;  %v2715_v33 = vpop.f32.mrf.mxu0  ;;  %v5520_v51 = vpop.f32.mrf.mxu1 }
 0x335   : > { %3878 = vst.msk [vmem:[#allocation3 + $0x1a2] sm:$0xff] %vm223_vm0, %v3846_v2  ;;  %v2941_v42 = vadd.f32 %v9507_v23, %v2715_v33  ;;  %v2007_v3 = vpop.permute.xlu0 %2006  ;;  %v9716_v23 = vld [vmem:[#allocation3 + $0x128] sm:$0xff]  ;;  %v4546_v2 = vld [vmem:[#allocation3 + $0x172] sm:$0xff] }
 0x336   : > { %v4860_v1 = vpop.permute.xlu1 %4859  ;;  %2075 = vst.msk [vmem:[#allocation4 + $0x290] sm:$0xff] %vm1405_vm12, %v2007_v3  ;;  %v2717_v27 = vpop.f32.mrf.mxu0  ;;  %v9748_v51 = vld [vmem:[#allocation3 + $0x138] sm:$0xff] }
 0x337   : > { %4945 = vst.msk [vmem:[#allocation4 + $0xf8] sm:$0xff] %vm1405_vm12, %v4860_v1  ;;  %4681 = vrot.lane.b32.xlu0 %v9061_v4, %s7195_s23 }
 0x338   : > { %3032 = vst.msk [vmem:[#allocation5 + $0x88] sm:$0xff] %vm3014_vm14, %v2941_v42  ;;  %4423 = vrot.lane.b32.xlu1 %v9481_v18, %s7197_s26 }
 0x339   : > { %v5052_v32 = vpop.permute.xlu0 %5051 }
 0x33a   : > { %v4220_v17 = vpop.permute.xlu1 %4219  ;;  %5137 = vst.msk [vmem:[#allocation4 + $0xf8] sm:$0xff] %vm1598_vm13, %v5052_v32  ;;  %v3906_v32 = vld [vmem:[#allocation3 + $0x140] sm:$0xff] }
 0x33b   : > { %4305 = vst.msk [vmem:[#allocation4 + $0xf0] sm:$0xff] %vm1405_vm12, %v4220_v17  ;;  %4873 = vrot.lane.b32.xlu0 %v9716_v23, %s7196_s25 }
 0x33c   : > { %4041 = vrot.lane.b32.xlu1 %v9334_v53, %s7195_s23  ;;  %v9722_v41 = vld [vmem:[#allocation3 + $0x19c] sm:$0xff]  ;;  %v9726_v18 = vld [vmem:[#allocation3 + $0x1a4] sm:$0xff] }
 0x33d   : > { %5217 = vst.msk [vmem:[#allocation4 + $0x280] sm:$0xff] %vm223_vm0, %v9722_v41  ;;  %v4412_v45 = vpop.permute.xlu0 %4411  ;;  %5218 = vst.msk [vmem:[#allocation4 + $0x298] sm:$0xff] %vm223_vm0, %v9726_v18  ;;  %v9732_v53 = vld [vmem:[#allocation3 + $0x12a] sm:$0xff] }
 0x33e   : > { %v2199_v34 = vpop.permute.xlu1 %2198  ;;  %4497 = vst.msk [vmem:[#allocation4 + $0xf0] sm:$0xff] %vm1598_vm13, %v4412_v45  ;;  %v9758_v45 = vld [vmem:[#allocation3 + $0x13a] sm:$0xff] }
 0x33f   : > { %2267 = vst.msk [vmem:[#allocation4 + $0x290] sm:$0xff] %vm1598_vm13, %v2199_v34  ;;  %5065 = vrot.lane.b32.xlu0 %v9732_v53, %s7197_s26 }
 0x340   : > { %4233 = vrot.lane.b32.xlu1 %v9511_v25, %s7196_s25 }
 0x341   : > { %v4670_v43 = vpop.permute.xlu0 %4669  ;;  %v5254_v16 = vld [vmem:[#allocation4 + $0xf8] sm:$0xff] }
 0x342   : > { %v1557_v21 = vpop.permute.xlu1 %1556  ;;  %4754 = vst.msk [vmem:[#allocation4 + $0x110] sm:$0xff] %vm1212_vm11, %v4670_v43  ;;  %5566 = vmatprep.mubr.f32.mxu1 %v5254_v16 }
 0x343   : > { %1626 = vst.msk [vmem:[#allocation4 + $0x288] sm:$0xff] %vm1598_vm13, %v1557_v21  ;;  %4683 = vrot.lane.b32.xlu0 %v9107_v60, %s7195_s23 }
 0x344   : > { %4425 = vrot.lane.b32.xlu1 %v9533_v13, %s7197_s26 }
 0x345   : > { %v4030_v37 = vpop.permute.xlu0 %4029  ;;  %v5253_v48 = vld [vmem:[#allocation4 + $0xf0] sm:$0xff]  ;;  %v9746_v33 = vpop.f32.mrf.mxu1 }
 0x346   : > { %v1816_v49 = vpop.permute.xlu1 %1815  ;;  %v2418_v25 = vld [vmem:[#allocation4 + $0x290] sm:$0xff]  ;;  %4114 = vst.msk [vmem:[#allocation4 + $0x108] sm:$0xff] %vm1212_vm11, %v4030_v37  ;;  %5567 = vmatmul.mubr.f32.gmra.mxu1 %v5253_v48  ;;  %v9782_v37 = vld [vmem:[#allocation3 + $0x142] sm:$0xff] }
 0x347   : > { %1883 = vst.msk [vmem:[#allocation4 + $0x2a8] sm:$0xff] %vm1212_vm11, %v1816_v49  ;;  %2763 = vmatprep.mubr.f32.mxu0 %v2418_v25  ;;  %4875 = vrot.lane.b32.xlu0 %v9748_v51, %s7196_s25  ;;  %v5525_v42 = vpop.f32.mrf.mxu1 }
 0x348   : > { %4578 = vst.msk [vmem:[#allocation4 + $0x290] sm:$0xff] %vm223_vm0, %v4546_v2  ;;  %4043 = vrot.lane.b32.xlu1 %v9387_v24, %s7195_s23  ;;  %v2720_v13 = vpop.f32.mrf.mxu0 }
 0x349   : > { %v2946_v1 = vadd.f32 %v9542_v39, %v2720_v13  ;;  %v2009_v27 = vpop.permute.xlu0 %2008  ;;  %v9788_v13 = vld [vmem:[#allocation3 + $0x182] sm:$0xff] }
 0x34a   : > { %v4862_v3 = vpop.permute.xlu1 %4861  ;;  %v2417_v17 = vld [vmem:[#allocation4 + $0x288] sm:$0xff]  ;;  %2076 = vst.msk [vmem:[#allocation4 + $0x2a8] sm:$0xff] %vm1405_vm12, %v2009_v27  ;;  %v2722_v34 = vpop.f32.mrf.mxu0 }
 0x34b   : > { %4946 = vst.msk [vmem:[#allocation4 + $0x110] sm:$0xff] %vm1405_vm12, %v4862_v3  ;;  %2764 = vmatmul.mubr.f32.gmra.mxu0 %v2417_v17  ;;  %5067 = vrot.lane.b32.xlu0 %v9758_v45, %s7197_s26  ;;  %v3907_v34 = vld [vmem:[#allocation3 + $0x150] sm:$0xff] }
 0x34c   : > { %3938 = vst.msk [vmem:[#allocation4 + $0x288] sm:$0xff] %vm223_vm0, %v3906_v32  ;;  %4235 = vrot.lane.b32.xlu1 %v9569_v61, %s7196_s25  ;;  %v9774_v61 = vld [vmem:[#allocation3 + $0x140] sm:$0xff] }
 0x34d   : > { %3033 = vst.msk [vmem:[#allocation5 + $0x90] sm:$0xff] %vm3014_vm14, %v2946_v1  ;;  %v5054_v39 = vpop.permute.xlu0 %5053 }
 0x34e   : > { %v4222_v24 = vpop.permute.xlu1 %4221  ;;  %5138 = vst.msk [vmem:[#allocation4 + $0x110] sm:$0xff] %vm1598_vm13, %v5054_v39  ;;  %v9803_v39 = vld [vmem:[#allocation3 + $0x150] sm:$0xff] }
 0x34f   : > { %4306 = vst.msk [vmem:[#allocation4 + $0x108] sm:$0xff] %vm1405_vm12, %v4222_v24  ;;  %4685 = vrot.lane.b32.xlu0 %v9110_v8, %s7195_s23 }
 0x350   : > { %4427 = vrot.lane.b32.xlu1 %v9599_v62, %s7197_s26 }
 0x351   : > { %v4414_v43 = vpop.permute.xlu0 %4413 }
 0x352   : > { %v2201_v21 = vpop.permute.xlu1 %2200  ;;  %4498 = vst.msk [vmem:[#allocation4 + $0x108] sm:$0xff] %vm1598_vm13, %v4414_v43 }
 0x353   : > { %2268 = vst.msk [vmem:[#allocation4 + $0x2a8] sm:$0xff] %vm1598_vm13, %v2201_v21  ;;  %4877 = vrot.lane.b32.xlu0 %v9774_v61, %s7196_s25  ;;  %v9813_v21 = vld [vmem:[#allocation3 + $0x152] sm:$0xff] }
 0x354   : > { %4045 = vrot.lane.b32.xlu1 %v9431_v54, %s7195_s23 }
 0x355   : > { %v4672_v49 = vpop.permute.xlu0 %4671  ;;  %v5257_v62 = vld [vmem:[#allocation4 + $0x110] sm:$0xff] }
 0x356   : > { %v1559_v16 = vpop.permute.xlu1 %1558  ;;  %4755 = vst.msk [vmem:[#allocation4 + $0x128] sm:$0xff] %vm1212_vm11, %v4672_v49  ;;  %5571 = vmatprep.mubr.f32.mxu1 %v5257_v62 }
 0x357   : > { %1627 = vst.msk [vmem:[#allocation4 + $0x2a0] sm:$0xff] %vm1598_vm13, %v1559_v16  ;;  %5069 = vrot.lane.b32.xlu0 %v9782_v37, %s7197_s26 }
 0x358   : > { %4237 = vrot.lane.b32.xlu1 %v9638_v46, %s7196_s25 }
 0x359   : > { %v4032_v25 = vpop.permute.xlu0 %4031  ;;  %v5256_v2 = vld [vmem:[#allocation4 + $0x108] sm:$0xff] }
 0x35a   : > { %v1818_v54 = vpop.permute.xlu1 %1817  ;;  %v2421_v48 = vld [vmem:[#allocation4 + $0x2a8] sm:$0xff]  ;;  %4115 = vst.msk [vmem:[#allocation4 + $0x120] sm:$0xff] %vm1212_vm11, %v4032_v25  ;;  %v9792_v42 = vpop.f32.mrf.mxu1  ;;  %5572 = vmatmul.mubr.f32.gmra.mxu1 %v5256_v2 }
 0x35b   : > { %1884 = vst.msk [vmem:[#allocation4 + $0x2c0] sm:$0xff] %vm1212_vm11, %v1818_v54  ;;  %2768 = vmatprep.mubr.f32.mxu0 %v2421_v48  ;;  %4687 = vrot.lane.b32.xlu0 %v9156_v63, %s7195_s23  ;;  %v9833_v2 = vld [vmem:[#allocation3 + $0x18a] sm:$0xff] }
 0x35c   : > { %4579 = vst.msk [vmem:[#allocation4 + $0x2a8] sm:$0xff] %vm223_vm0, %v9788_v13  ;;  %4429 = vrot.lane.b32.xlu1 %v9654_v14, %s7197_s26  ;;  %v2725_v46 = vpop.f32.mrf.mxu0  ;;  %v5530_v1 = vpop.f32.mrf.mxu1 }
 0x35d   : > { %v2951_v3 = vadd.f32 %v9529_v56, %v2725_v46  ;;  %v2011_v17 = vpop.permute.xlu0 %2010  ;;  %v9839_v1 = vld [vmem:[#allocation3 + $0x15a] sm:$0xff] }
 0x35e   : > { %v4864_v27 = vpop.permute.xlu1 %4863  ;;  %v2420_v32 = vld [vmem:[#allocation4 + $0x2a0] sm:$0xff]  ;;  %2077 = vst.msk [vmem:[#allocation4 + $0x2c0] sm:$0xff] %vm1405_vm12, %v2011_v17  ;;  %v2727_v24 = vpop.f32.mrf.mxu0 }
 0x35f   : > { %4947 = vst.msk [vmem:[#allocation4 + $0x128] sm:$0xff] %vm1405_vm12, %v4864_v27  ;;  %2769 = vmatmul.mubr.f32.gmra.mxu0 %v2420_v32  ;;  %4879 = vrot.lane.b32.xlu0 %v9803_v39, %s7196_s25  ;;  %v3908_v24 = vld [vmem:[#allocation3 + $0x158] sm:$0xff] }
 0x360   : > { %3939 = vst.msk [vmem:[#allocation4 + $0x2a0] sm:$0xff] %vm223_vm0, %v3907_v34  ;;  %4047 = vrot.lane.b32.xlu1 %v9490_v35, %s7195_s23 }
 0x361   : > { %3034 = vst.msk [vmem:[#allocation5 + $0x98] sm:$0xff] %vm3014_vm14, %v2951_v3  ;;  %v5056_v14 = vpop.permute.xlu0 %5055 }
 0x362   : > { %v4224_v56 = vpop.permute.xlu1 %4223  ;;  %5139 = vst.msk [vmem:[#allocation4 + $0x128] sm:$0xff] %vm1598_vm13, %v5056_v14  ;;  %v9858_v14 = vld [vmem:[#allocation3 + $0x168] sm:$0xff] }
 0x363   : > { %4307 = vst.msk [vmem:[#allocation4 + $0x120] sm:$0xff] %vm1405_vm12, %v4224_v56  ;;  %5071 = vrot.lane.b32.xlu0 %v9813_v21, %s7197_s26 }
 0x364   : > { %4239 = vrot.lane.b32.xlu1 %v9059_v57, %s7196_s25  ;;  %v9827_v57 = vld [vmem:[#allocation3 + $0x158] sm:$0xff] }
 0x365   : > { %v4416_v16 = vpop.permute.xlu0 %4415 }
 0x366   : > { %v2203_v43 = vpop.permute.xlu1 %2202  ;;  %4499 = vst.msk [vmem:[#allocation4 + $0x120] sm:$0xff] %vm1598_vm13, %v4416_v16 }
 0x367   : > { %2269 = vst.msk [vmem:[#allocation4 + $0x2c0] sm:$0xff] %vm1598_vm13, %v2203_v43  ;;  %4689 = vrot.lane.b32.xlu0 %v9159_v31, %s7195_s23 }
 0x368   : > { %4431 = vrot.lane.b32.xlu1 %v9686_v44, %s7197_s26 }
 0x369   : > { %v4674_v49 = vpop.permute.xlu0 %4673  ;;  %v5260_v62 = vld [vmem:[#allocation4 + $0x128] sm:$0xff] }
 0x36a   : > { %v1561_v35 = vpop.permute.xlu1 %1560  ;;  %4756 = vst.msk [vmem:[#allocation4 + $0x140] sm:$0xff] %vm1212_vm11, %v4674_v49  ;;  %5576 = vmatprep.mubr.f32.mxu1 %v5260_v62 }
 0x36b   : > { %1628 = vst.msk [vmem:[#allocation4 + $0x2b8] sm:$0xff] %vm1598_vm13, %v1561_v35  ;;  %4881 = vrot.lane.b32.xlu0 %v9827_v57, %s7196_s25 }
 0x36c   : > { %4049 = vrot.lane.b32.xlu1 %v9547_v7, %s7195_s23 }
 0x36d   : > { %v4034_v54 = vpop.permute.xlu0 %4033  ;;  %v5259_v48 = vld [vmem:[#allocation4 + $0x120] sm:$0xff]  ;;  %v9837_v46 = vpop.f32.mrf.mxu1 }
 0x36e   : > { %v1820_v44 = vpop.permute.xlu1 %1819  ;;  %v2424_v25 = vld [vmem:[#allocation4 + $0x2c0] sm:$0xff]  ;;  %4116 = vst.msk [vmem:[#allocation4 + $0x138] sm:$0xff] %vm1212_vm11, %v4034_v54  ;;  %5577 = vmatmul.mubr.f32.gmra.mxu1 %v5259_v48 }
 0x36f   : > { %1885 = vst.msk [vmem:[#allocation4 + $0x2d8] sm:$0xff] %vm1212_vm11, %v1820_v44  ;;  %2773 = vmatprep.mubr.f32.mxu0 %v2424_v25  ;;  %5073 = vrot.lane.b32.xlu0 %v9839_v1, %s7197_s26  ;;  %v5535_v3 = vpop.f32.mrf.mxu1  ;;  %v9878_v25 = vld [vmem:[#allocation3 + $0x19a] sm:$0xff] }
 0x370   : > { %4580 = vst.msk [vmem:[#allocation4 + $0x2c0] sm:$0xff] %vm223_vm0, %v9833_v2  ;;  %4241 = vrot.lane.b32.xlu1 %v9061_v4, %s7196_s25  ;;  %v2730_v7 = vpop.f32.mrf.mxu0 }
 0x371   : > { %v2956_v27 = vadd.f32 %v9564_v58, %v2730_v7  ;;  %v2013_v32 = vpop.permute.xlu0 %2012  ;;  %v9884_v7 = vld [vmem:[#allocation3 + $0x170] sm:$0xff] }
 0x372   : > { %v4866_v17 = vpop.permute.xlu1 %4865  ;;  %v2423_v34 = vld [vmem:[#allocation4 + $0x2b8] sm:$0xff]  ;;  %2078 = vst.msk [vmem:[#allocation4 + $0x2d8] sm:$0xff] %vm1405_vm12, %v2013_v32  ;;  %v2732_v56 = vpop.f32.mrf.mxu0  ;;  %v3909_v32 = vld [vmem:[#allocation3 + $0x168] sm:$0xff] }
 0x373   : > { %4948 = vst.msk [vmem:[#allocation4 + $0x140] sm:$0xff] %vm1405_vm12, %v4866_v17  ;;  %2774 = vmatmul.mubr.f32.gmra.mxu0 %v2423_v34  ;;  %4691 = vrot.lane.b32.xlu0 %v9249_v22, %s7195_s23 }
 0x374   : > { %3940 = vst.msk [vmem:[#allocation4 + $0x2b8] sm:$0xff] %vm223_vm0, %v3908_v24  ;;  %4433 = vrot.lane.b32.xlu1 %v9716_v23, %s7197_s26  ;;  %v9866_v23 = vld [vmem:[#allocation3 + $0x16a] sm:$0xff]  ;;  %v9894_v24 = vld [vmem:[#allocation3 + $0x172] sm:$0xff] }
 0x375   : > { %3035 = vst.msk [vmem:[#allocation5 + $0xa0] sm:$0xff] %vm3014_vm14, %v2956_v27  ;;  %v5058_v58 = vpop.permute.xlu0 %5057 }
 0x376   : > { %v4226_v4 = vpop.permute.xlu1 %4225  ;;  %5140 = vst.msk [vmem:[#allocation4 + $0x140] sm:$0xff] %vm1598_vm13, %v5058_v58 }
 0x377   : > { %4308 = vst.msk [vmem:[#allocation4 + $0x138] sm:$0xff] %vm1405_vm12, %v4226_v4  ;;  %4883 = vrot.lane.b32.xlu0 %v9858_v14, %s7196_s25 }
 0x378   : > { %4051 = vrot.lane.b32.xlu1 %v9609_v40, %s7195_s23 }
 0x379   : > { %v4418_v16 = vpop.permute.xlu0 %4417 }
 0x37a   : > { %v2205_v43 = vpop.permute.xlu1 %2204  ;;  %4500 = vst.msk [vmem:[#allocation4 + $0x138] sm:$0xff] %vm1598_vm13, %v4418_v16 }
 0x37b   : > { %2270 = vst.msk [vmem:[#allocation4 + $0x2d8] sm:$0xff] %vm1598_vm13, %v2205_v43  ;;  %5075 = vrot.lane.b32.xlu0 %v9866_v23, %s7197_s26  ;;  %v9911_v43 = vld [vmem:[#allocation3 + $0x180] sm:$0xff] }
 0x37c   : > { %4243 = vrot.lane.b32.xlu1 %v9107_v60, %s7196_s25 }
 0x37d   : > { %v4676_v49 = vpop.permute.xlu0 %4675  ;;  %v5263_v40 = vld [vmem:[#allocation4 + $0x140] sm:$0xff] }
 0x37e   : > { %v1563_v35 = vpop.permute.xlu1 %1562  ;;  %4757 = vst.msk [vmem:[#allocation4 + $0x158] sm:$0xff] %vm1212_vm11, %v4676_v49  ;;  %5581 = vmatprep.mubr.f32.mxu1 %v5263_v40 }
 0x37f   : > { %1629 = vst.msk [vmem:[#allocation4 + $0x2d0] sm:$0xff] %vm1598_vm13, %v1563_v35  ;;  %4693 = vrot.lane.b32.xlu0 %v9251_v5, %s7195_s23 }
 0x380   : > { %4435 = vrot.lane.b32.xlu1 %v9748_v51, %s7197_s26 }
 0x381   : > { %v4036_v44 = vpop.permute.xlu0 %4035  ;;  %v5262_v54 = vld [vmem:[#allocation4 + $0x138] sm:$0xff] }
 0x382   : > { %v1822_v62 = vpop.permute.xlu1 %1821  ;;  %v2427_v60 = vld [vmem:[#allocation4 + $0x2d8] sm:$0xff]  ;;  %4117 = vst.msk [vmem:[#allocation4 + $0x150] sm:$0xff] %vm1212_vm11, %v4036_v44  ;;  %v9882_v48 = vpop.f32.mrf.mxu1  ;;  %5582 = vmatmul.mubr.f32.gmra.mxu1 %v5262_v54  ;;  %v9923_v44 = vld [vmem:[#allocation3 + $0x1a2] sm:$0xff]  ;;  %v3910_v54 = vld [vmem:[#allocation3 + $0x170] sm:$0xff] }
 0x383   : > { %1886 = vst.msk [vmem:[#allocation4 + $0x2f0] sm:$0xff] %vm1212_vm11, %v1822_v62  ;;  %2778 = vmatprep.mubr.f32.mxu0 %v2427_v60  ;;  %4885 = vrot.lane.b32.xlu0 %v9884_v7, %s7196_s25 }
 0x384   : > { %4581 = vst.msk [vmem:[#allocation4 + $0x2d8] sm:$0xff] %vm223_vm0, %v9878_v25  ;;  %4053 = vrot.lane.b32.xlu1 %v9666_v36, %s7195_s23  ;;  %v5540_v51 = vpop.f32.mrf.mxu1 }
 0x385   : > { %v2015_v27 = vpop.permute.xlu0 %2014 }
 0x386   : > { %v4868_v3 = vpop.permute.xlu1 %4867  ;;  %v2426_v17 = vld [vmem:[#allocation4 + $0x2d0] sm:$0xff]  ;;  %2079 = vst.msk [vmem:[#allocation4 + $0x2f0] sm:$0xff] %vm1405_vm12, %v2015_v27  ;;  %v9937_v27 = vld [vmem:[#allocation3 + $0x188] sm:$0xff] }
 0x387   : > { %4949 = vst.msk [vmem:[#allocation4 + $0x158] sm:$0xff] %vm1405_vm12, %v4868_v3  ;;  %v2735_v34 = vpop.f32.mrf.mxu0  ;;  %2779 = vmatmul.mubr.f32.gmra.mxu0 %v2426_v17  ;;  %5077 = vrot.lane.b32.xlu0 %v9894_v24, %s7197_s26  ;;  %v5225_v17 = vld [vmem:[#allocation4 + $0x10] sm:$0xff] }
 0x388   : > { %3941 = vst.msk [vmem:[#allocation4 + $0x2d0] sm:$0xff] %vm223_vm0, %v3909_v32  ;;  %v2961_v36 = vadd.f32 %v9555_v19, %v2735_v34  ;;  %4245 = vrot.lane.b32.xlu1 %v9110_v8, %s7196_s25 }
 0x389   : > { %v2737_v56 = vpop.f32.mrf.mxu0  ;;  %v5060_v58 = vpop.permute.xlu0 %5059 }
 0x38a   : > { %3036 = vst.msk [vmem:[#allocation5 + $0xa8] sm:$0xff] %vm3014_vm14, %v2961_v36  ;;  %v4228_v4 = vpop.permute.xlu1 %4227 }
 0x38b   : > { %4309 = vst.msk [vmem:[#allocation4 + $0x150] sm:$0xff] %vm1405_vm12, %v4228_v4  ;;  %4695 = vrot.lane.b32.xlu0 %v9348_v15, %s7195_s23  ;;  %v5228_v4 = vld [vmem:[#allocation4 + $0x28] sm:$0xff] }
 0x38c   : > { %5141 = vst.msk [vmem:[#allocation4 + $0x158] sm:$0xff] %vm1598_vm13, %v5060_v58  ;;  %4437 = vrot.lane.b32.xlu1 %v9774_v61, %s7197_s26 }
 0x38d   : > { %v4420_v8 = vpop.permute.xlu0 %4419 }
 0x38e   : > { %v2207_v19 = vpop.permute.xlu1 %2206  ;;  %4501 = vst.msk [vmem:[#allocation4 + $0x150] sm:$0xff] %vm1598_vm13, %v4420_v8  ;;  %v5234_v8 = vld [vmem:[#allocation4 + $0x58] sm:$0xff] }
 0x38f   : > { %2271 = vst.msk [vmem:[#allocation4 + $0x2f0] sm:$0xff] %vm1598_vm13, %v2207_v19  ;;  %4887 = vrot.lane.b32.xlu0 %v9911_v43, %s7196_s25 }
 0x390   : > { %4055 = vrot.lane.b32.xlu1 %v9698_v29, %s7195_s23 }
 0x391   : > { %v4678_v35 = vpop.permute.xlu0 %4677 }
 0x392   : > { %v1565_v16 = vpop.permute.xlu1 %1564  ;;  %4758 = vst.msk [vmem:[#allocation4 + $0x170] sm:$0xff] %vm1212_vm11, %v4678_v35 }
 0x393   : > { %v5266_v61 = vld [vmem:[#allocation4 + $0x158] sm:$0xff]  ;;  %1630 = vst.msk [vmem:[#allocation4 + $0x2e8] sm:$0xff] %vm1598_vm13, %v1565_v16  ;;  %5079 = vrot.lane.b32.xlu0 %v9788_v13, %s7197_s26 }
 0x394   : > { %5586 = vmatprep.mubr.f32.mxu1 %v5266_v61  ;;  %4247 = vrot.lane.b32.xlu1 %v9156_v63, %s7196_s25  ;;  %v5240_v61 = vld [vmem:[#allocation4 + $0x88] sm:$0xff] }
 0x395   : > { %v4870_v40 = vpop.permute.xlu0 %4869  ;;  %v5265_v62 = vld [vmem:[#allocation4 + $0x150] sm:$0xff] }
 0x396   : > { %v4038_v49 = vpop.permute.xlu1 %4037  ;;  %v2430_v29 = vld [vmem:[#allocation4 + $0x2f0] sm:$0xff]  ;;  %4950 = vst.msk [vmem:[#allocation4 + $0x170] sm:$0xff] %vm1405_vm12, %v4870_v40  ;;  %5587 = vmatmul.mubr.f32.gmra.mxu1 %v5265_v62  ;;  %v5246_v62 = vld [vmem:[#allocation4 + $0xb8] sm:$0xff] }
 0x397   : > { %4118 = vst.msk [vmem:[#allocation4 + $0x168] sm:$0xff] %vm1212_vm11, %v4038_v49  ;;  %2783 = vmatprep.mubr.f32.mxu0 %v2430_v29  ;;  %4697 = vrot.lane.b32.xlu0 %v9350_v11, %s7195_s23  ;;  %v9966_v49 = vld [vmem:[#allocation3 + $0x198] sm:$0xff] }
 0x398   : > { %4582 = vst.msk [vmem:[#allocation4 + $0x2f0] sm:$0xff] %vm223_vm0, %v9923_v44  ;;  %4439 = vrot.lane.b32.xlu1 %v9803_v39, %s7197_s26 }
 0x399   : > { %v5062_v13 = vpop.permute.xlu0 %5061  ;;  %v2740_v51 = vpop.f32.mrf.mxu0 }
 0x39a   : > { %v4230_v63 = vpop.permute.xlu1 %4229  ;;  %v2429_v60 = vld [vmem:[#allocation4 + $0x2e8] sm:$0xff]  ;;  %5142 = vst.msk [vmem:[#allocation4 + $0x170] sm:$0xff] %vm1598_vm13, %v5062_v13  ;;  %v2966_v39 = vadd.f32 %v9594_v50, %v2740_v51  ;;  %v5231_v50 = vld [vmem:[#allocation4 + $0x40] sm:$0xff] }
 0x39b   : > { %4310 = vst.msk [vmem:[#allocation4 + $0x168] sm:$0xff] %vm1405_vm12, %v4230_v63  ;;  %2784 = vmatmul.mubr.f32.gmra.mxu0 %v2429_v60  ;;  %v9935_v3 = vpop.f32.mrf.mxu1  ;;  %4889 = vrot.lane.b32.xlu0 %v9937_v27, %s7196_s25  ;;  %v2742_v32 = vpop.f32.mrf.mxu0 }
 0x39c   : > { %3942 = vst.msk [vmem:[#allocation4 + $0x2e8] sm:$0xff] %vm223_vm0, %v3910_v54  ;;  %4057 = vrot.lane.b32.xlu1 %v9732_v53, %s7195_s23  ;;  %6964 = vmatprep.mubr.msk.f32.mxu0 %vm223_vm0, %v5225_v17  ;;  %v5252_v54 = vld [vmem:[#allocation4 + $0xe8] sm:$0xff] }
 0x39d   : > { %v5545_v34 = vpop.f32.mrf.mxu1  ;;  %3037 = vst.msk [vmem:[#allocation5 + $0xb0] sm:$0xff] %vm3014_vm14, %v2966_v39  ;;  %v4680_v56 = vpop.permute.xlu0 %4679 }
 0x39e   : > { %v4422_v36 = vpop.permute.xlu1 %4421  ;;  %4759 = vst.msk [vmem:[#allocation4 + $0x188] sm:$0xff] %vm1212_vm11, %v4680_v56  ;;  %v5258_v34 = vld [vmem:[#allocation4 + $0x118] sm:$0xff] }
 0x39f   : > { %4502 = vst.msk [vmem:[#allocation4 + $0x168] sm:$0xff] %vm1598_vm13, %v4422_v36  ;;  %6965 = vmatmul.mubr.msk.f32.vlgmr.msra.gmra.mxu0 %vm223_vm0, %v5228_v4  ;;  %5081 = vrot.lane.b32.xlu0 %v9833_v2, %s7197_s26  ;;  %v5261_v4 = vld [vmem:[#allocation4 + $0x130] sm:$0xff] }
 0x3a0   : > { %4249 = vrot.lane.b32.xlu1 %v9159_v31, %s7196_s25  ;;  %6967 = vmatprep.mubr.msk.f32.mxu0 %vm223_vm0, %v5231_v50  ;;  %v5237_v31 = vld [vmem:[#allocation4 + $0x70] sm:$0xff] }
 0x3a1   : > { %v4872_v58 = vpop.permute.xlu0 %4871  ;;  %v5269_v19 = vld [vmem:[#allocation4 + $0x170] sm:$0xff] }
 0x3a2   : > { %v4040_v53 = vpop.permute.xlu1 %4039  ;;  %4951 = vst.msk [vmem:[#allocation4 + $0x188] sm:$0xff] %vm1405_vm12, %v4872_v58  ;;  %5591 = vmatprep.mubr.f32.mxu1 %v5269_v19  ;;  %v5264_v19 = vld [vmem:[#allocation4 + $0x148] sm:$0xff] }
 0x3a3   : > { %4119 = vst.msk [vmem:[#allocation4 + $0x180] sm:$0xff] %vm1212_vm11, %v4040_v53  ;;  %6968 = vmatmul.mubr.msk.f32.gmra.mxu0 %vm223_vm0, %v5234_v8  ;;  %4699 = vrot.lane.b32.xlu0 %v9458_v26, %s7195_s23 }
 0x3a4   : > { %4441 = vrot.lane.b32.xlu1 %v9827_v57, %s7197_s26  ;;  %6970 = vmatprep.mubr.msk.f32.mxu0 %vm223_vm0, %v5237_v31  ;;  %v5243_v57 = vld [vmem:[#allocation4 + $0xa0] sm:$0xff] }
 0x3a5   : > { %v5064_v16 = vpop.permute.xlu0 %5063 }
 0x3a6   : > { %v4232_v2 = vpop.permute.xlu1 %4231  ;;  %v5268_v35 = vld [vmem:[#allocation4 + $0x168] sm:$0xff]  ;;  %5143 = vst.msk [vmem:[#allocation4 + $0x188] sm:$0xff] %vm1598_vm13, %v5064_v16 }
 0x3a7   : > { %4311 = vst.msk [vmem:[#allocation4 + $0x180] sm:$0xff] %vm1405_vm12, %v4232_v2  ;;  %5592 = vmatmul.mubr.f32.gmra.mxu1 %v5268_v35  ;;  %6971 = vmatmul.mubr.msk.f32.gmra.mxu0 %vm223_vm0, %v5240_v61  ;;  %v5270_v2 = vld [vmem:[#allocation4 + $0x178] sm:$0xff] }
 0x3a8   : > { %4059 = vrot.lane.b32.xlu1 %v9758_v45, %s7195_s23  ;;  %4891 = vrot.lane.b32.xlu0 %v9966_v49, %s7196_s25  ;;  %v5249_v45 = vld [vmem:[#allocation4 + $0xd0] sm:$0xff] }
 0x3a9   : > { %6973 = vmatprep.mubr.msk.f32.mxu0 %vm223_vm0, %v5243_v57  ;;  %v4682_v29 = vpop.permute.xlu0 %4681  ;;  %v5276_v57 = vld [vmem:[#allocation4 + $0x1a8] sm:$0xff] }
 0x3aa   : > { %v4424_v40 = vpop.permute.xlu1 %4423  ;;  %4760 = vst.msk [vmem:[#allocation4 + $0x1a0] sm:$0xff] %vm1212_vm11, %v4682_v29 }
 0x3ab   : > { %4503 = vst.msk [vmem:[#allocation4 + $0x180] sm:$0xff] %vm1598_vm13, %v4424_v40  ;;  %6974 = vmatmul.mubr.msk.f32.gmra.mxu0 %vm223_vm0, %v5246_v62  ;;  %v5282_v62 = vld [vmem:[#allocation4 + $0x1d8] sm:$0xff] }
 0x3ac   : > { %4251 = vrot.lane.b32.xlu1 %v9249_v22, %s7196_s25  ;;  %5083 = vrot.lane.b32.xlu0 %v9878_v25, %s7197_s26  ;;  %v5255_v22 = vld [vmem:[#allocation4 + $0x100] sm:$0xff] }
 0x3ad   : > { %6976 = vmatprep.mubr.msk.f32.mxu0 %vm223_vm0, %v5249_v45  ;;  %v4874_v13 = vpop.permute.xlu0 %4873  ;;  %v5272_v60 = vld [vmem:[#allocation4 + $0x188] sm:$0xff] }
 0x3ae   : > { %v4042_v63 = vpop.permute.xlu1 %4041  ;;  %4952 = vst.msk [vmem:[#allocation4 + $0x1a0] sm:$0xff] %vm1405_vm12, %v4874_v13  ;;  %v9983_v51 = vpop.f32.mrf.mxu1  ;;  %5596 = vmatprep.mubr.f32.mxu1 %v5272_v60  ;;  %v5288_v60 = vld [vmem:[#allocation4 + $0x208] sm:$0xff] }
 0x3af   : > { %4120 = vst.msk [vmem:[#allocation4 + $0x198] sm:$0xff] %vm1212_vm11, %v4042_v63  ;;  %6977 = vmatmul.mubr.msk.f32.gmra.mxu0 %vm223_vm0, %v5252_v54 }
 0x3b0   : > { %4443 = vrot.lane.b32.xlu1 %v9858_v14, %s7197_s26  ;;  %4701 = vrot.lane.b32.xlu0 %v9460_v28, %s7195_s23  ;;  %v5550_v25 = vpop.f32.mrf.mxu1  ;;  %v9994_v14 = vld [vmem:[#allocation3 + $0x1a0] sm:$0xff] }
 0x3b1   : > { %6979 = vmatprep.mubr.msk.f32.mxu0 %vm223_vm0, %v5255_v22  ;;  %v5066_v17 = vpop.permute.xlu0 %5065  ;;  %v5291_v25 = vld [vmem:[#allocation4 + $0x220] sm:$0xff] }
 0x3b2   : > { %v4234_v39 = vpop.permute.xlu1 %4233  ;;  %v5271_v32 = vld [vmem:[#allocation4 + $0x180] sm:$0xff]  ;;  %5144 = vst.msk [vmem:[#allocation4 + $0x1a0] sm:$0xff] %vm1598_vm13, %v5066_v17 }
 0x3b3   : > { %4312 = vst.msk [vmem:[#allocation4 + $0x198] sm:$0xff] %vm1405_vm12, %v4234_v39  ;;  %v2745_v36 = vpop.f32.mrf.mxu0  ;;  %5597 = vmatmul.mubr.f32.gmra.mxu1 %v5271_v32  ;;  %6980 = vmatmul.mubr.msk.f32.gmra.mxu0 %vm223_vm0, %v5258_v34  ;;  %v4804_v32 = vld [vmem:[#allocation3 + $0x1b8] sm:$0xff] }
 0x3b4   : > { %v2971_v56 = vadd.f32 %v9577_v30, %v2745_v36  ;;  %4061 = vrot.lane.b32.xlu1 %v9782_v37, %s7195_s23  ;;  %4893 = vrot.lane.b32.xlu0 %v9994_v14, %s7196_s25  ;;  %v5267_v30 = vld [vmem:[#allocation4 + $0x160] sm:$0xff] }
 0x3b5   : > { %6982 = vmatprep.mubr.msk.f32.mxu0 %vm223_vm0, %v5261_v4  ;;  %v2747_v50 = vpop.f32.mrf.mxu0  ;;  %v4684_v58 = vpop.permute.xlu0 %4683  ;;  %v5294_v4 = vld [vmem:[#allocation4 + $0x238] sm:$0xff] }
 0x3b6   : > { %3038 = vst.msk [vmem:[#allocation5 + $0xb8] sm:$0xff] %vm3014_vm14, %v2971_v56  ;;  %v4426_v53 = vpop.permute.xlu1 %4425 }
 0x3b7   : > { %4504 = vst.msk [vmem:[#allocation4 + $0x198] sm:$0xff] %vm1598_vm13, %v4426_v53  ;;  %6983 = vmatmul.mubr.msk.f32.gmra.mxu0 %vm223_vm0, %v5264_v19  ;;  %v5300_v53 = vld [vmem:[#allocation4 + $0x268] sm:$0xff] }
 0x3b8   : > { %4761 = vst.msk [vmem:[#allocation4 + $0x1b8] sm:$0xff] %vm1212_vm11, %v4684_v58  ;;  %4253 = vrot.lane.b32.xlu1 %v9251_v5, %s7196_s25  ;;  %5085 = vrot.lane.b32.xlu0 %v9923_v44, %s7197_s26  ;;  %v5273_v5 = vld [vmem:[#allocation4 + $0x190] sm:$0xff] }
 0x3b9   : > { %6985 = vmatprep.mubr.msk.f32.mxu0 %vm223_vm0, %v5267_v30  ;;  %v4876_v8 = vpop.permute.xlu0 %4875  ;;  %v5275_v31 = vld [vmem:[#allocation4 + $0x1a0] sm:$0xff]  ;;  %v4803_v44 = vld [vmem:[#allocation3 + $0x1b0] sm:$0xff] }
 0x3ba   : > { %v4044_v37 = vpop.permute.xlu1 %4043  ;;  %4953 = vst.msk [vmem:[#allocation4 + $0x1b8] sm:$0xff] %vm1405_vm12, %v4876_v8  ;;  %5601 = vmatprep.mubr.f32.mxu1 %v5275_v31  ;;  %v5309_v8 = vld [vmem:[#allocation4 + $0x2b0] sm:$0xff]  ;;  %v4805_v31 = vld [vmem:[#allocation3 + $0x1c8] sm:$0xff] }
 0x3bb   : > { %4121 = vst.msk [vmem:[#allocation4 + $0x1b0] sm:$0xff] %vm1212_vm11, %v4044_v37  ;;  %6986 = vmatmul.mubr.msk.f32.gmra.mxu0 %vm223_vm0, %v5270_v2  ;;  %v5306_v37 = vld [vmem:[#allocation4 + $0x298] sm:$0xff] }
 0x3bc   : > { %4445 = vrot.lane.b32.xlu1 %v9884_v7, %s7197_s26  ;;  %4703 = vrot.lane.b32.xlu0 %v9585_v52, %s7195_s23  ;;  %v5279_v52 = vld [vmem:[#allocation4 + $0x1c0] sm:$0xff]  ;;  %v4995_v7 = vld [vmem:[#allocation3 + $0x1b2] sm:$0xff] }
 0x3bd   : > { %6988 = vmatprep.mubr.msk.f32.mxu0 %vm223_vm0, %v5273_v5  ;;  %v5068_v35 = vpop.permute.xlu0 %5067 }
 0x3be   : > { %v4236_v16 = vpop.permute.xlu1 %4235  ;;  %v5274_v61 = vld [vmem:[#allocation4 + $0x198] sm:$0xff]  ;;  %5145 = vst.msk [vmem:[#allocation4 + $0x1b8] sm:$0xff] %vm1598_vm13, %v5068_v35 }
 0x3bf   : > { %4313 = vst.msk [vmem:[#allocation4 + $0x1b0] sm:$0xff] %vm1405_vm12, %v4236_v16  ;;  %5602 = vmatmul.mubr.f32.gmra.mxu1 %v5274_v61  ;;  %6989 = vmatmul.mubr.msk.f32.gmra.mxu0 %vm223_vm0, %v5276_v57  ;;  %v5315_v16 = vld [vmem:[#allocation4 + $0x2e0] sm:$0xff] }
 0x3c0   : > { %4063 = vrot.lane.b32.xlu1 %v9813_v21, %s7195_s23  ;;  %4895 = vrot.lane.b32.xlu0 %v4803_v44, %s7196_s25  ;;  %v5285_v21 = vld [vmem:[#allocation4 + $0x1f0] sm:$0xff] }
 0x3c1   : > { %6991 = vmatprep.mubr.msk.f32.mxu0 %vm223_vm0, %v5279_v52  ;;  %v4686_v29 = vpop.permute.xlu0 %4685 }
 0x3c2   : > { %v4428_v40 = vpop.permute.xlu1 %4427  ;;  %4762 = vst.msk [vmem:[#allocation4 + $0x1d0] sm:$0xff] %vm1212_vm11, %v4686_v29 }
 0x3c3   : > { %4505 = vst.msk [vmem:[#allocation4 + $0x1b0] sm:$0xff] %vm1598_vm13, %v4428_v40  ;;  %6992 = vmatmul.mubr.msk.f32.gmra.mxu0 %vm223_vm0, %v5282_v62 }
 0x3c4   : > { %4255 = vrot.lane.b32.xlu1 %v9348_v15, %s7196_s25  ;;  %5087 = vrot.lane.b32.xlu0 %v4995_v7, %s7197_s26 }
 0x3c5   : > { %6994 = vmatprep.mubr.msk.f32.mxu0 %vm223_vm0, %v5285_v21  ;;  %v4878_v63 = vpop.permute.xlu0 %4877  ;;  %v5278_v13 = vld [vmem:[#allocation4 + $0x1b8] sm:$0xff]  ;;  %v2750_v54 = vpop.f32.mrf.mxu0  ;;  %v4806_v21 = vld [vmem:[#allocation3 + $0x1d0] sm:$0xff] }
 0x3c6   : > { %v4046_v45 = vpop.permute.xlu1 %4045  ;;  %4954 = vst.msk [vmem:[#allocation4 + $0x1d0] sm:$0xff] %vm1405_vm12, %v4878_v63  ;;  %5606 = vmatprep.mubr.f32.mxu1 %v5278_v13  ;;  %v2976_v15 = vadd.f32 %v9618_v6, %v2750_v54  ;;  %v4996_v6 = vld [vmem:[#allocation3 + $0x1ba] sm:$0xff] }
 0x3c7   : > { %4122 = vst.msk [vmem:[#allocation4 + $0x1c8] sm:$0xff] %vm1212_vm11, %v4046_v45  ;;  %v10035_v22 = vpop.f32.mrf.mxu1  ;;  %6995 = vmatmul.mubr.msk.f32.gmra.mxu0 %vm223_vm0, %v5288_v60  ;;  %v2752_v39 = vpop.f32.mrf.mxu0 }
 0x3c8   : > { %4447 = vrot.lane.b32.xlu1 %v9911_v43, %s7197_s26  ;;  %4705 = vrot.lane.b32.xlu0 %v9588_v9, %s7195_s23  ;;  %3039 = vst.msk [vmem:[#allocation5 + $0xc0] sm:$0xff] %vm3014_vm14, %v2976_v15  ;;  %v5297_v9 = vld [vmem:[#allocation4 + $0x250] sm:$0xff] }
 0x3c9   : > { %6997 = vmatprep.mubr.msk.f32.mxu0 %vm223_vm0, %v5291_v25  ;;  %v5555_v17 = vpop.f32.mrf.mxu1  ;;  %v5070_v36 = vpop.permute.xlu0 %5069 }
 0x3ca   : > { %v4238_v34 = vpop.permute.xlu1 %4237  ;;  %v5277_v56 = vld [vmem:[#allocation4 + $0x1b0] sm:$0xff]  ;;  %5146 = vst.msk [vmem:[#allocation4 + $0x1d0] sm:$0xff] %vm1598_vm13, %v5070_v36 }
 0x3cb   : > { %4314 = vst.msk [vmem:[#allocation4 + $0x1c8] sm:$0xff] %vm1405_vm12, %v4238_v34  ;;  %5607 = vmatmul.mubr.f32.gmra.mxu1 %v5277_v56  ;;  %6998 = vmatmul.mubr.msk.f32.gmra.mxu0 %vm223_vm0, %v5294_v4 }
 0x3cc   : > { %4065 = vrot.lane.b32.xlu1 %v9839_v1, %s7195_s23  ;;  %4897 = vrot.lane.b32.xlu0 %v4804_v32, %s7196_s25  ;;  %v5303_v1 = vld [vmem:[#allocation4 + $0x280] sm:$0xff] }
 0x3cd   : > { %7000 = vmatprep.mubr.msk.f32.mxu0 %vm223_vm0, %v5297_v9  ;;  %v4688_v50 = vpop.permute.xlu0 %4687 }
 0x3ce   : > { %v4430_v43 = vpop.permute.xlu1 %4429  ;;  %4763 = vst.msk [vmem:[#allocation4 + $0x1e8] sm:$0xff] %vm1212_vm11, %v4688_v50 }
 0x3cf   : > { %4506 = vst.msk [vmem:[#allocation4 + $0x1c8] sm:$0xff] %vm1598_vm13, %v4430_v43  ;;  %7001 = vmatmul.mubr.msk.f32.gmra.mxu0 %vm223_vm0, %v5300_v53 }
 0x3d0   : > { %4257 = vrot.lane.b32.xlu1 %v9350_v11, %s7196_s25  ;;  %5089 = vrot.lane.b32.xlu0 %v4996_v6, %s7197_s26  ;;  %v5312_v11 = vld [vmem:[#allocation4 + $0x2c8] sm:$0xff] }
 0x3d1   : > { %7003 = vmatprep.mubr.msk.f32.mxu0 %vm223_vm0, %v5303_v1  ;;  %v4880_v19 = vpop.permute.xlu0 %4879  ;;  %v5281_v30 = vld [vmem:[#allocation4 + $0x1d0] sm:$0xff] }
 0x3d2   : > { %v4048_v58 = vpop.permute.xlu1 %4047  ;;  %4955 = vst.msk [vmem:[#allocation4 + $0x1e8] sm:$0xff] %vm1405_vm12, %v4880_v19  ;;  %5611 = vmatprep.mubr.f32.mxu1 %v5281_v30 }
 0x3d3   : > { %4123 = vst.msk [vmem:[#allocation4 + $0x1e0] sm:$0xff] %vm1212_vm11, %v4048_v58  ;;  %7004 = vmatmul.mubr.msk.f32.gmra.mxu0 %vm223_vm0, %v5306_v37 }
 0x3d4   : > { %4449 = vrot.lane.b32.xlu1 %v9937_v27, %s7197_s26  ;;  %4707 = vrot.lane.b32.xlu0 %v9722_v41, %s7195_s23  ;;  %v4997_v41 = vld [vmem:[#allocation3 + $0x1ca] sm:$0xff]  ;;  %v5318_v27 = vld [vmem:[#allocation4 + $0x2f8] sm:$0xff] }
 0x3d5   : > { %7006 = vmatprep.mubr.msk.f32.mxu0 %vm223_vm0, %v5309_v8  ;;  %v5072_v5 = vpop.permute.xlu0 %5071 }
 0x3d6   : > { %v4240_v2 = vpop.permute.xlu1 %4239  ;;  %v5280_v44 = vld [vmem:[#allocation4 + $0x1c8] sm:$0xff]  ;;  %5147 = vst.msk [vmem:[#allocation4 + $0x1e8] sm:$0xff] %vm1598_vm13, %v5072_v5 }
 0x3d7   : > { %4315 = vst.msk [vmem:[#allocation4 + $0x1e0] sm:$0xff] %vm1405_vm12, %v4240_v2  ;;  %5612 = vmatmul.mubr.f32.gmra.mxu1 %v5280_v44  ;;  %7007 = vmatmul.mubr.msk.f32.gmra.mxu0 %vm223_vm0, %v5312_v11 }
 0x3d8   : > { %4067 = vrot.lane.b32.xlu1 %v9866_v23, %s7195_s23  ;;  %4899 = vrot.lane.b32.xlu0 %v4805_v31, %s7196_s25 }
 0x3d9   : > { %7009 = vmatprep.mubr.msk.f32.mxu0 %vm223_vm0, %v5315_v16  ;;  %v4690_v61 = vpop.permute.xlu0 %4689 }
 0x3da   : > { %v4432_v35 = vpop.permute.xlu1 %4431  ;;  %4764 = vst.msk [vmem:[#allocation4 + $0x200] sm:$0xff] %vm1212_vm11, %v4690_v61  ;;  %v10076_v57 = vpop.f32.mrf.mxu1 }
 0x3db   : > { %4507 = vst.msk [vmem:[#allocation4 + $0x1e0] sm:$0xff] %vm1598_vm13, %v4432_v35  ;;  %7010 = vmatmul.mubr.msk.f32.gmra.mxu0 %vm223_vm0, %v5318_v27 }
 0x3dc   : > { %4259 = vrot.lane.b32.xlu1 %v9458_v26, %s7196_s25  ;;  %5091 = vrot.lane.b32.xlu0 %v4997_v41, %s7197_s26  ;;  %v5560_v23 = vpop.f32.mrf.mxu1 }
 0x3dd   : > { %v4882_v7 = vpop.permute.xlu0 %4881  ;;  %v5284_v40 = vld [vmem:[#allocation4 + $0x1e8] sm:$0xff] }
 0x3de   : > { %v4050_v52 = vpop.permute.xlu1 %4049  ;;  %4956 = vst.msk [vmem:[#allocation4 + $0x200] sm:$0xff] %vm1405_vm12, %v4882_v7  ;;  %5616 = vmatprep.mubr.f32.mxu1 %v5284_v40 }
 0x3df   : > { %4124 = vst.msk [vmem:[#allocation4 + $0x1f8] sm:$0xff] %vm1212_vm11, %v4050_v52  ;;  %v2755_v29 = vpop.f32.mrf.mxu0 }
 0x3e0   : > { %v2981_v62 = vadd.f32 %v9605_v10, %v2755_v29  ;;  %4451 = vrot.lane.b32.xlu1 %v9966_v49, %s7197_s26  ;;  %4709 = vrot.lane.b32.xlu0 %v9726_v18, %s7195_s23  ;;  %v4998_v10 = vld [vmem:[#allocation3 + $0x1d2] sm:$0xff] }
 0x3e1   : > { %v2757_v26 = vpop.f32.mrf.mxu0  ;;  %v5074_v63 = vpop.permute.xlu0 %5073 }
 0x3e2   : > { %3040 = vst.msk [vmem:[#allocation5 + $0xc8] sm:$0xff] %vm3014_vm14, %v2981_v62  ;;  %v4242_v45 = vpop.permute.xlu1 %4241  ;;  %v5283_v13 = vld [vmem:[#allocation4 + $0x1e0] sm:$0xff] }
 0x3e3   : > { %4316 = vst.msk [vmem:[#allocation4 + $0x1f8] sm:$0xff] %vm1405_vm12, %v4242_v45  ;;  %5617 = vmatmul.mubr.f32.gmra.mxu1 %v5283_v13 }
 0x3e4   : > { %5148 = vst.msk [vmem:[#allocation4 + $0x200] sm:$0xff] %vm1598_vm13, %v5074_v63  ;;  %4069 = vrot.lane.b32.xlu1 %v9894_v24, %s7195_s23  ;;  %4901 = vrot.lane.b32.xlu0 %v4806_v21, %s7196_s25  ;;  %s6791_s23 = sshll.u32 %s7253_s22, 12  ;;  %s10468_s22 = scalar_lea.sflag [#allocation7], %s215_s30 }
 0x3e5   : > { %v4692_v18 = vpop.permute.xlu0 %4691  ;;  %s10458_s11 = scalar_lea.hbm %s10513_s5, %s6791_s23 }
 0x3e6   : > { %v4434_v49 = vpop.permute.xlu1 %4433  ;;  %4765 = vst.msk [vmem:[#allocation4 + $0x218] sm:$0xff] %vm1212_vm11, %v4692_v18 }
 0x3e7   : > { %4508 = vst.msk [vmem:[#allocation4 + $0x1f8] sm:$0xff] %vm1598_vm13, %v4434_v49 }
 0x3e8   : > { %4261 = vrot.lane.b32.xlu1 %v9460_v28, %s7196_s25  ;;  %5093 = vrot.lane.b32.xlu0 %v4998_v10, %s7197_s26  ;;  %s6576_s25 = sshll.u32 %s10361_s9, 4  ;;  %s10460_s25 = int_to_ptr.vmem [resolvable:$true] %s6576_s25 }
 0x3e9   : > { %v4884_v54 = vpop.permute.xlu0 %4883  ;;  %s7132_s12 = scalar_lea.vmem %s10460_s25, 4096  ;;  %p7139_p0 = scmp.lt.s32.totalorder %s10460_s25, %s7137_s14 }
 0x3ea   : > { %v4052_v60 = vpop.permute.xlu1 %4051  ;;  %4957 = vst.msk [vmem:[#allocation4 + $0x218] sm:$0xff] %vm1405_vm12, %v4884_v54  ;;  %p7133_p11 = scmp.ne.s32.totalorder %s10460_s25, %s7132_s12 }
 0x3eb   : > { %v5287_v15 = vld [vmem:[#allocation4 + $0x200] sm:$0xff]  ;;  %4125 = vst.msk [vmem:[#allocation4 + $0x210] sm:$0xff] %vm1212_vm11, %v4052_v60 }
 0x3ec   : > { %5621 = vmatprep.mubr.f32.mxu1 %v5287_v15  ;;  %4453 = vrot.lane.b32.xlu1 %v9994_v14, %s7197_s26  ;;  %p7134_p12 = pnand %p7133_p11, %p7270_p5 }
 0x3ed   : > { %v5076_v25 = vpop.permute.xlu0 %5075 }
 0x3ee   : > { %v4244_v24 = vpop.permute.xlu1 %4243  ;;  %v5286_v39 = vld [vmem:[#allocation4 + $0x1f8] sm:$0xff]  ;;  %5149 = vst.msk [vmem:[#allocation4 + $0x218] sm:$0xff] %vm1598_vm13, %v5076_v25  ;;  %p7135_p13 = pneg %p7134_p12 }
 0x3ef   : > { %4317 = vst.msk [vmem:[#allocation4 + $0x210] sm:$0xff] %vm1405_vm12, %v4244_v24  ;;  %5622 = vmatmul.mubr.f32.gmra.mxu1 %v5286_v39 }
 0x3f1   : > { %v4694_v17 = vpop.permute.xlu0 %4693  ;;  %v2760_v32 = vpop.f32.mrf.mxu0 }
 0x3f2   : > { %v4436_v28 = vpop.permute.xlu1 %4435  ;;  %4766 = vst.msk [vmem:[#allocation4 + $0x230] sm:$0xff] %vm1212_vm11, %v4694_v17  ;;  %v2986_v36 = vadd.f32 %v9648_v59, %v2760_v32 }
 0x3f3   : > { %4509 = vst.msk [vmem:[#allocation4 + $0x210] sm:$0xff] %vm1598_vm13, %v4436_v28  ;;  %v10108_v34 = vpop.f32.mrf.mxu1  ;;  %v2762_v14 = vpop.f32.mrf.mxu0 }
 0x3f4   : > { %3041 = vst.msk [vmem:[#allocation5 + $0xd0] sm:$0xff] %vm3014_vm14, %v2986_v36 }
 0x3f5   : > { %v5565_v56 = vpop.f32.mrf.mxu1  ;;  %v4886_v9 = vpop.permute.xlu0 %4885  ;;  %v5290_v6 = vld [vmem:[#allocation4 + $0x218] sm:$0xff] }
 0x3f6   : > { %v4054_v4 = vpop.permute.xlu1 %4053  ;;  %4958 = vst.msk [vmem:[#allocation4 + $0x230] sm:$0xff] %vm1405_vm12, %v4886_v9  ;;  %5626 = vmatprep.mubr.f32.mxu1 %v5290_v6 }
 0x3f7   : > { %4126 = vst.msk [vmem:[#allocation4 + $0x228] sm:$0xff] %vm1212_vm11, %v4054_v4 }
 0x3f9   : > { %v5078_v50 = vpop.permute.xlu0 %5077 }
 0x3fa   : > { %v4246_v43 = vpop.permute.xlu1 %4245  ;;  %v5289_v53 = vld [vmem:[#allocation4 + $0x210] sm:$0xff]  ;;  %5150 = vst.msk [vmem:[#allocation4 + $0x230] sm:$0xff] %vm1598_vm13, %v5078_v50 }
 0x3fb   : > { %4318 = vst.msk [vmem:[#allocation4 + $0x228] sm:$0xff] %vm1405_vm12, %v4246_v43  ;;  %5627 = vmatmul.mubr.f32.gmra.mxu1 %v5289_v53 }
 0x3fd   : > { %v4696_v1 = vpop.permute.xlu0 %4695 }
 0x3fe   : > { %v4438_v59 = vpop.permute.xlu1 %4437  ;;  %4767 = vst.msk [vmem:[#allocation4 + $0x248] sm:$0xff] %vm1212_vm11, %v4696_v1 }
 0x3ff   : > { %4510 = vst.msk [vmem:[#allocation4 + $0x228] sm:$0xff] %vm1598_vm13, %v4438_v59 }
 0x401   : > { %v4888_v19 = vpop.permute.xlu0 %4887  ;;  %v5293_v30 = vld [vmem:[#allocation4 + $0x230] sm:$0xff] }
 0x402   : > { %v4056_v58 = vpop.permute.xlu1 %4055  ;;  %4959 = vst.msk [vmem:[#allocation4 + $0x248] sm:$0xff] %vm1405_vm12, %v4888_v19  ;;  %5631 = vmatprep.mubr.f32.mxu1 %v5293_v30 }
 0x403   : > { %4127 = vst.msk [vmem:[#allocation4 + $0x240] sm:$0xff] %vm1212_vm11, %v4056_v58 }
 0x405   : > { %v5080_v8 = vpop.permute.xlu0 %5079 }
 0x406   : > { %v4248_v37 = vpop.permute.xlu1 %4247  ;;  %v5292_v11 = vld [vmem:[#allocation4 + $0x228] sm:$0xff]  ;;  %5151 = vst.msk [vmem:[#allocation4 + $0x248] sm:$0xff] %vm1598_vm13, %v5080_v8  ;;  %v10122_v31 = vpop.f32.mrf.mxu1 }
 0x407   : > { %4319 = vst.msk [vmem:[#allocation4 + $0x240] sm:$0xff] %vm1405_vm12, %v4248_v37  ;;  %5632 = vmatmul.mubr.f32.gmra.mxu1 %v5292_v11 }
 0x408   : > { %v5570_v2 = vpop.f32.mrf.mxu1 }
 0x409   : > { %v4698_v44 = vpop.permute.xlu0 %4697 }
 0x40a   : > { %v4440_v5 = vpop.permute.xlu1 %4439  ;;  %4768 = vst.msk [vmem:[#allocation4 + $0x260] sm:$0xff] %vm1212_vm11, %v4698_v44 }
 0x40b   : > { %4511 = vst.msk [vmem:[#allocation4 + $0x240] sm:$0xff] %vm1598_vm13, %v4440_v5  ;;  %v2765_v16 = vpop.f32.mrf.mxu0 }
 0x40c   : > { %v2991_v41 = vadd.f32 %v9630_v20, %v2765_v16 }
 0x40d   : > { %v2767_v27 = vpop.f32.mrf.mxu0  ;;  %v4890_v61 = vpop.permute.xlu0 %4889  ;;  %v5296_v23 = vld [vmem:[#allocation4 + $0x248] sm:$0xff] }
 0x40e   : > { %3042 = vst.msk [vmem:[#allocation5 + $0xd8] sm:$0xff] %vm3014_vm14, %v2991_v41  ;;  %v4058_v35 = vpop.permute.xlu1 %4057  ;;  %5636 = vmatprep.mubr.f32.mxu1 %v5296_v23 }
 0x40f   : > { %4128 = vst.msk [vmem:[#allocation4 + $0x258] sm:$0xff] %vm1212_vm11, %v4058_v35 }
 0x410   : > { %4960 = vst.msk [vmem:[#allocation4 + $0x260] sm:$0xff] %vm1405_vm12, %v4890_v61 }
 0x411   : > { %v5082_v7 = vpop.permute.xlu0 %5081 }
 0x412   : > { %v4250_v52 = vpop.permute.xlu1 %4249  ;;  %v5295_v40 = vld [vmem:[#allocation4 + $0x240] sm:$0xff]  ;;  %5152 = vst.msk [vmem:[#allocation4 + $0x260] sm:$0xff] %vm1598_vm13, %v5082_v7 }
 0x413   : > { %4320 = vst.msk [vmem:[#allocation4 + $0x258] sm:$0xff] %vm1405_vm12, %v4250_v52  ;;  %5637 = vmatmul.mubr.f32.gmra.mxu1 %v5295_v40 }
 0x415   : > { %v4700_v29 = vpop.permute.xlu0 %4699 }
 0x416   : > { %v4442_v20 = vpop.permute.xlu1 %4441  ;;  %4769 = vst.msk [vmem:[#allocation4 + $0x278] sm:$0xff] %vm1212_vm11, %v4700_v29 }
 0x417   : > { %4512 = vst.msk [vmem:[#allocation4 + $0x258] sm:$0xff] %vm1598_vm13, %v4442_v20 }
 0x419   : > { %v5299_v21 = vld [vmem:[#allocation4 + $0x260] sm:$0xff] }
 0x41a   : > { %v4060_v62 = vpop.permute.xlu1 %4059  ;;  %v4892_v26 = vpop.permute.xlu0 %4891  ;;  %5641 = vmatprep.mubr.f32.mxu1 %v5299_v21 }
 0x41b   : > { %4129 = vst.msk [vmem:[#allocation4 + $0x270] sm:$0xff] %vm1212_vm11, %v4060_v62  ;;  %v10136_v45 = vpop.f32.mrf.mxu1 }
 0x41c   : > { %4961 = vst.msk [vmem:[#allocation4 + $0x278] sm:$0xff] %vm1405_vm12, %v4892_v26 }
 0x41d   : > { %v5575_v63 = vpop.f32.mrf.mxu1 }
 0x41e   : > { %v4252_v13 = vpop.permute.xlu1 %4251  ;;  %v5084_v10 = vpop.permute.xlu0 %5083  ;;  %v5298_v49 = vld [vmem:[#allocation4 + $0x258] sm:$0xff] }
 0x41f   : > { %4321 = vst.msk [vmem:[#allocation4 + $0x270] sm:$0xff] %vm1405_vm12, %v4252_v13  ;;  %v2770_v18 = vpop.f32.mrf.mxu0  ;;  %5642 = vmatmul.mubr.f32.gmra.mxu1 %v5298_v49 }
 0x420   : > { %5153 = vst.msk [vmem:[#allocation4 + $0x278] sm:$0xff] %vm1598_vm13, %v5084_v10  ;;  %v2996_v60 = vadd.f32 %v9668_v38, %v2770_v18 }
 0x421   : > { %v2772_v54 = vpop.f32.mrf.mxu0 }
 0x422   : > { %3043 = vst.msk [vmem:[#allocation5 + $0xe0] sm:$0xff] %vm3014_vm14, %v2996_v60  ;;  %v4444_v15 = vpop.permute.xlu1 %4443  ;;  %v4702_v24 = vpop.permute.xlu0 %4701 }
 0x423   : > { %4513 = vst.msk [vmem:[#allocation4 + $0x270] sm:$0xff] %vm1598_vm13, %v4444_v15 }
 0x424   : > { %4770 = vst.msk [vmem:[#allocation4 + $0x290] sm:$0xff] %vm1212_vm11, %v4702_v24 }
 0x426   : > { %v4062_v25 = vpop.permute.xlu1 %4061  ;;  %v4894_v39 = vpop.permute.xlu0 %4893 }
 0x427   : > { %v5302_v28 = vld [vmem:[#allocation4 + $0x278] sm:$0xff]  ;;  %4130 = vst.msk [vmem:[#allocation4 + $0x288] sm:$0xff] %vm1212_vm11, %v4062_v25 }
 0x428   : > { %4962 = vst.msk [vmem:[#allocation4 + $0x290] sm:$0xff] %vm1405_vm12, %v4894_v39  ;;  %5646 = vmatprep.mubr.f32.mxu1 %v5302_v28 }
 0x42a   : > { %v4254_v17 = vpop.permute.xlu1 %4253  ;;  %v5086_v32 = vpop.permute.xlu0 %5085  ;;  %v5301_v38 = vld [vmem:[#allocation4 + $0x270] sm:$0xff] }
 0x42b   : > { %4322 = vst.msk [vmem:[#allocation4 + $0x288] sm:$0xff] %vm1405_vm12, %v4254_v17  ;;  %5647 = vmatmul.mubr.f32.gmra.mxu1 %v5301_v38 }
 0x42c   : > { %5154 = vst.msk [vmem:[#allocation4 + $0x290] sm:$0xff] %vm1598_vm13, %v5086_v32  ;;  %v6169_v32 = vld [vmem:[%s10511_s3 + $0x18] sm:$0xff] }
 0x42d   : > { %7068 = vmatprep.subr.mxu1 %v6169_v32  ;;  %7012 = vmatprep.subr.mxu0 %v6169_v32 }
 0x42e   : > { %v4446_v36 = vpop.permute.xlu1 %4445  ;;  %v4704_v14 = vpop.permute.xlu0 %4703  ;;  %7072 = vmatpush3.msra.mxu1 %v6169_v32  ;;  %7013 = vmatpush3.msra.mxu0 %v6169_v32 }
 0x42f   : > { %4514 = vst.msk [vmem:[#allocation4 + $0x288] sm:$0xff] %vm1598_vm13, %v4446_v36  ;;  %v10150_v56 = vpop.f32.mrf.mxu1  ;;  %v6168_v36 = vld [vmem:[%s10511_s3 + $0x10] sm:$0xff] }
 0x430   : > { %4771 = vst.msk [vmem:[#allocation4 + $0x2a8] sm:$0xff] %vm1212_vm11, %v4704_v14  ;;  %7069 = vmatprep.subr.mxu1 %v6168_v36  ;;  %7014 = vmatprep.subr.mxu0 %v6168_v36 }
 0x431   : > { %v5580_v4 = vpop.f32.mrf.mxu1  ;;  %7073 = vmatpush3.msra.mxu1 %v6168_v36  ;;  %7015 = vmatpush3.msra.mxu0 %v6168_v36 }
 0x432   : > { %v4064_v9 = vpop.permute.xlu1 %4063  ;;  %v4896_v6 = vpop.permute.xlu0 %4895  ;;  %v6167_v4 = vld [vmem:[%s10511_s3 + $0x8] sm:$0xff] }
 0x433   : > { %v5305_v43 = vld [vmem:[#allocation4 + $0x290] sm:$0xff]  ;;  %4131 = vst.msk [vmem:[#allocation4 + $0x2a0] sm:$0xff] %vm1212_vm11, %v4064_v9  ;;  %v2775_v50 = vpop.f32.mrf.mxu0  ;;  %7070 = vmatprep.subr.mxu1 %v6167_v4  ;;  %7016 = vmatprep.subr.mxu0 %v6167_v4 }
 0x434   : > { %4963 = vst.msk [vmem:[#allocation4 + $0x2a8] sm:$0xff] %vm1405_vm12, %v4896_v6  ;;  %5651 = vmatprep.mubr.f32.mxu1 %v5305_v43  ;;  %v3001_v53 = vadd.f32 %v9656_v55, %v2775_v50  ;;  %v6166_v43 = vld [vmem:[%s10511_s3] sm:$0xff]  ;;  %7074 = vmatpush3.msra.mxu1 %v6167_v4 }
 0x435   : > { %v2777_v59 = vpop.f32.mrf.mxu0  ;;  %7071 = vmatprep.subr.mxu1 %v6166_v43  ;;  %7017 = vmatpush3.msra.mxu0 %v6167_v4 }
 0x436   : > { %3044 = vst.msk [vmem:[#allocation5 + $0xe8] sm:$0xff] %vm3014_vm14, %v3001_v53  ;;  %v4256_v1 = vpop.permute.xlu1 %4255  ;;  %v5088_v58 = vpop.permute.xlu0 %5087  ;;  %v5304_v19 = vld [vmem:[#allocation4 + $0x288] sm:$0xff]  ;;  %7075 = vmatpush3.msra.mxu1 %v6166_v43  ;;  %7018 = vmatprep.subr.mxu0 %v6166_v43 }
 0x437   : > { %4323 = vst.msk [vmem:[#allocation4 + $0x2a0] sm:$0xff] %vm1405_vm12, %v4256_v1  ;;  %5652 = vmatmul.mubr.f32.gmra.mxu1 %v5304_v19  ;;  %7019 = vmatpush3.msra.mxu0 %v6166_v43 }
 0x438   : > { %5155 = vst.msk [vmem:[#allocation4 + $0x2a8] sm:$0xff] %vm1598_vm13, %v5088_v58 }
 0x43a   : > { %v4448_v30 = vpop.permute.xlu1 %4447  ;;  %v4706_v37 = vpop.permute.xlu0 %4705 }
 0x43b   : > { %4515 = vst.msk [vmem:[#allocation4 + $0x2a0] sm:$0xff] %vm1598_vm13, %v4448_v30 }
 0x43c   : > { %4772 = vst.msk [vmem:[#allocation4 + $0x2c0] sm:$0xff] %vm1212_vm11, %v4706_v37 }
 0x43e   : > { %v4066_v8 = vpop.permute.xlu1 %4065  ;;  %v4898_v11 = vpop.permute.xlu0 %4897 }
 0x43f   : > { %v5308_v55 = vld [vmem:[#allocation4 + $0x2a8] sm:$0xff]  ;;  %4132 = vst.msk [vmem:[#allocation4 + $0x2b8] sm:$0xff] %vm1212_vm11, %v4066_v8 }
 0x440   : > { %4964 = vst.msk [vmem:[#allocation4 + $0x2c0] sm:$0xff] %vm1405_vm12, %v4898_v11  ;;  %5656 = vmatprep.mubr.f32.mxu1 %v5308_v55 }
 0x442   : > { %v4258_v2 = vpop.permute.xlu1 %4257  ;;  %v5090_v5 = vpop.permute.xlu0 %5089  ;;  %v5307_v44 = vld [vmem:[#allocation4 + $0x2a0] sm:$0xff] }
 0x443   : > { %4324 = vst.msk [vmem:[#allocation4 + $0x2b8] sm:$0xff] %vm1405_vm12, %v4258_v2  ;;  %v10164_v16 = vpop.f32.mrf.mxu1  ;;  %5657 = vmatmul.mubr.f32.gmra.mxu1 %v5307_v44 }
 0x444   : > { %5156 = vst.msk [vmem:[#allocation4 + $0x2c0] sm:$0xff] %vm1598_vm13, %v5090_v5 }
 0x445   : > { %v5585_v41 = vpop.f32.mrf.mxu1 }
 0x446   : > { %v4450_v27 = vpop.permute.xlu1 %4449  ;;  %v4708_v35 = vpop.permute.xlu0 %4707 }
 0x447   : > { %4516 = vst.msk [vmem:[#allocation4 + $0x2b8] sm:$0xff] %vm1598_vm13, %v4450_v27  ;;  %v2780_v61 = vpop.f32.mrf.mxu0 }
 0x448   : > { %4773 = vst.msk [vmem:[#allocation4 + $0x2d8] sm:$0xff] %vm1212_vm11, %v4708_v35  ;;  %v3006_v23 = vadd.f32 %v9688_v47, %v2780_v61 }
 0x449   : > { %v2782_v52 = vpop.f32.mrf.mxu0 }
 0x44a   : > { %3045 = vst.msk [vmem:[#allocation5 + $0xf0] sm:$0xff] %vm3014_vm14, %v3006_v23  ;;  %v4068_v7 = vpop.permute.xlu1 %4067  ;;  %v4900_v40 = vpop.permute.xlu0 %4899 }
 0x44b   : > { %v5311_v20 = vld [vmem:[#allocation4 + $0x2c0] sm:$0xff]  ;;  %4133 = vst.msk [vmem:[#allocation4 + $0x2d0] sm:$0xff] %vm1212_vm11, %v4068_v7 }
 0x44c   : > { %4965 = vst.msk [vmem:[#allocation4 + $0x2d8] sm:$0xff] %vm1405_vm12, %v4900_v40  ;;  %5661 = vmatprep.mubr.f32.mxu1 %v5311_v20 }
 0x44e   : > { %v4260_v29 = vpop.permute.xlu1 %4259  ;;  %v5092_v62 = vpop.permute.xlu0 %5091  ;;  %v5310_v26 = vld [vmem:[#allocation4 + $0x2b8] sm:$0xff] }
 0x44f   : > { %4325 = vst.msk [vmem:[#allocation4 + $0x2d0] sm:$0xff] %vm1405_vm12, %v4260_v29  ;;  %5662 = vmatmul.mubr.f32.gmra.mxu1 %v5310_v26 }
 0x450   : > { %5157 = vst.msk [vmem:[#allocation4 + $0x2d8] sm:$0xff] %vm1598_vm13, %v5092_v62 }
 0x452   : > { %v4452_v47 = vpop.permute.xlu1 %4451  ;;  %v4710_v21 = vpop.permute.xlu0 %4709 }
 0x453   : > { %4517 = vst.msk [vmem:[#allocation4 + $0x2d0] sm:$0xff] %vm1598_vm13, %v4452_v47 }
 0x454   : > { %4774 = vst.msk [vmem:[#allocation4 + $0x2f0] sm:$0xff] %vm1212_vm11, %v4710_v21 }
 0x456   : > { %v4070_v63 = vpop.permute.xlu1 %4069  ;;  %v4902_v13 = vpop.permute.xlu0 %4901 }
 0x457   : > { %v5314_v10 = vld [vmem:[#allocation4 + $0x2d8] sm:$0xff]  ;;  %4134 = vst.msk [vmem:[#allocation4 + $0x2e8] sm:$0xff] %vm1212_vm11, %v4070_v63  ;;  %v10177_v49 = vpop.f32.mrf.mxu1 }
 0x458   : > { %4966 = vst.msk [vmem:[#allocation4 + $0x2f0] sm:$0xff] %vm1405_vm12, %v4902_v13  ;;  %5666 = vmatprep.mubr.f32.mxu1 %v5314_v10 }
 0x459   : > { %v5590_v18 = vpop.f32.mrf.mxu1 }
 0x45a   : > { %v4262_v60 = vpop.permute.xlu1 %4261  ;;  %v5313_v54 = vld [vmem:[#allocation4 + $0x2d0] sm:$0xff]  ;;  %v5094_v15 = vpop.permute.xlu0 %5093 }
 0x45b   : > { %4326 = vst.msk [vmem:[#allocation4 + $0x2e8] sm:$0xff] %vm1405_vm12, %v4262_v60  ;;  %v2785_v24 = vpop.f32.mrf.mxu0  ;;  %5667 = vmatmul.mubr.f32.gmra.mxu1 %v5313_v54 }
 0x45c   : > { %5158 = vst.msk [vmem:[#allocation4 + $0x2f0] sm:$0xff] %vm1598_vm13, %v5094_v15  ;;  %v3011_v25 = vadd.f32 %v9677_v12, %v2785_v24 }
 0x45d   : > { %v2787_v39 = vpop.f32.mrf.mxu0 }
 0x45e   : > { %3046 = vst.msk [vmem:[#allocation5 + $0xf8] sm:$0xff] %vm3014_vm14, %v3011_v25  ;;  %v4454_v28 = vpop.permute.xlu1 %4453 }
 0x45f   : > { %4518 = vst.msk [vmem:[#allocation4 + $0x2e8] sm:$0xff] %vm1598_vm13, %v4454_v28  ;;  %v10185_v17 = vpop.f32.mrf.mxu0 }
 0x461   : > { %v10190_v38 = vpop.f32.mrf.mxu0 }
 0x463   : > { %v5317_v12 = vld [vmem:[#allocation4 + $0x2f0] sm:$0xff]  ;;  %v6969_v14 = vpop.f32.mrf.mxu0 }
 0x464   : > { %5671 = vmatprep.mubr.f32.mxu1 %v5317_v12  ;;  %v5759_v9 = vadd.f32 %v6969_v14, %v9837_v46 }
 0x465   : > { %v5753_v6 = vpop.f32.mrf.mxu0 }
 0x466   : > { %v5754_v50 = vadd.f32 %v5753_v6, %v9792_v42  ;;  %5940 = vrot.lane.b32.xlu1 %v5759_v9, %s7198_s15  ;;  %v5316_v53 = vld [vmem:[#allocation4 + $0x2e8] sm:$0xff] }
 0x467   : > { %v5593_v59 = vpop.f32.mrf.mxu1  ;;  %5672 = vmatmul.mubr.f32.gmra.mxu1 %v5316_v53  ;;  %v6972_v1 = vpop.f32.mrf.mxu0 }
 0x468   : > { %v5769_v46 = vadd.f32 %v6972_v1, %v9935_v3  ;;  %5938 = vrot.lane.b32.xlu0 %v5754_v50, %s7198_s15 }
 0x469   : > { %v5595_v58 = vpop.f32.mrf.mxu1  ;;  %v5763_v19 = vpop.f32.mrf.mxu0 }
 0x46a   : > { %v5764_v30 = vadd.f32 %v5763_v19, %v9882_v48  ;;  %5944 = vrot.lane.b32.xlu1 %v5769_v46, %s7198_s15 }
 0x46b   : > { %v6975_v42 = vpop.f32.mrf.mxu0 }
 0x46c   : > { %v5779_v37 = vadd.f32 %v6975_v42, %v10035_v22  ;;  %5942 = vrot.lane.b32.xlu0 %v5764_v30, %s7198_s15 }
 0x46d   : > { %v5773_v8 = vpop.f32.mrf.mxu0 }
 0x46e   : > { %v5774_v3 = vadd.f32 %v5773_v8, %v9983_v51  ;;  %5948 = vrot.lane.b32.xlu1 %v5779_v37, %s7198_s15  ;;  %v10244_v8 = vld [vmem:[%s10510_s2] ss:$0 sm:$0xff] }
 0x46f   : > { %v6978_v11 = vpop.f32.mrf.mxu0 }
 0x470   : > { %v5789_v55 = vadd.f32 %v6978_v11, %v10108_v34  ;;  %5946 = vrot.lane.b32.xlu0 %v5774_v3, %s7198_s15 }
 0x471   : > { %v5783_v48 = vpop.f32.mrf.mxu0 }
 0x472   : > { %v5784_v2 = vadd.f32 %v5783_v48, %v10076_v57  ;;  %5952 = vrot.lane.b32.xlu1 %v5789_v55, %s7198_s15 }
 0x473   : > { %v5598_v5 = vpop.f32.mrf.mxu1  ;;  %v6981_v22 = vpop.f32.mrf.mxu0 }
 0x474   : > { %v5799_v44 = vadd.f32 %v6981_v22, %v10136_v45  ;;  %5950 = vrot.lane.b32.xlu0 %v5784_v2, %s7198_s15 }
 0x475   : > { %v5600_v41 = vpop.f32.mrf.mxu1  ;;  %v5793_v51 = vpop.f32.mrf.mxu0 }
 0x476   : > { %v5794_v27 = vadd.f32 %v5793_v51, %v10122_v31  ;;  %5956 = vrot.lane.b32.xlu1 %v5799_v44, %s7198_s15 }
 0x477   : > { %v6984_v34 = vpop.f32.mrf.mxu0 }
 0x478   : > { %v5809_v35 = vadd.f32 %v6984_v34, %v10164_v16  ;;  %5954 = vrot.lane.b32.xlu0 %v5794_v27, %s7198_s15 }
 0x479   : > { %v5803_v57 = vpop.f32.mrf.mxu0 }
 0x47a   : > { %v5804_v61 = vadd.f32 %v5803_v57, %v10150_v56  ;;  %5960 = vrot.lane.b32.xlu1 %v5809_v35, %s7198_s15 }
 0x47b   : > { %v6987_v23 = vpop.f32.mrf.mxu0 }
 0x47c   : > { %v5819_v45 = vadd.f32 %v6987_v23, %v5593_v59  ;;  %5958 = vrot.lane.b32.xlu0 %v5804_v61, %s7198_s15 }
 0x47d   : > { %v5813_v52 = vpop.f32.mrf.mxu0 }
 0x47e   : > { %v5814_v7 = vadd.f32 %v5813_v52, %v10177_v49  ;;  %5964 = vrot.lane.b32.xlu1 %v5819_v45, %s7198_s15 }
 0x47f   : > { %v5603_v31 = vpop.f32.mrf.mxu1  ;;  %v6990_v40 = vpop.f32.mrf.mxu0 }
 0x480   : > { %v5829_v20 = vadd.f32 %v6990_v40, %v5603_v31  ;;  %5962 = vrot.lane.b32.xlu0 %v5814_v7, %s7198_s15 }
 0x481   : > { %v5605_v16 = vpop.f32.mrf.mxu1  ;;  %v5823_v29 = vpop.f32.mrf.mxu0 }
 0x482   : > { %v5824_v62 = vadd.f32 %v5823_v29, %v5598_v5  ;;  %5968 = vrot.lane.b32.xlu1 %v5829_v20, %s7198_s15 }
 0x483   : > { %v6993_v56 = vpop.f32.mrf.mxu0 }
 0x484   : > { %5966 = vrot.lane.b32.xlu0 %v5824_v62, %s7198_s15 }
 0x485   : > { %v5833_v26 = vpop.f32.mrf.mxu0 }
 0x487   : > { %v6996_v18 = vpop.f32.mrf.mxu0 }
 0x489   : > { %v5843_v60 = vpop.f32.mrf.mxu0 }
 0x48b   : > { %v5608_v47 = vpop.f32.mrf.mxu1  ;;  %v6999_v32 = vpop.f32.mrf.mxu0 }
 0x48c   : > { %v5834_v21 = vadd.f32 %v5833_v26, %v5608_v47 }
 0x48d   : > { %v5610_v63 = vpop.f32.mrf.mxu1  ;;  %v5853_v36 = vpop.f32.mrf.mxu0 }
 0x48e   : > { %5970 = vrot.lane.b32.xlu0 %v5834_v21, %s7198_s15 }
 0x48f   : > { %v7002_v50 = vpop.f32.mrf.mxu0 }
 0x491   : > { %v5863_v53 = vpop.f32.mrf.mxu0 }
 0x493   : > { %v7005_v23 = vpop.f32.mrf.mxu0 }
 0x495   : > { %v5873_v62 = vpop.f32.mrf.mxu0 }
 0x497   : > { %v5613_v13 = vpop.f32.mrf.mxu1 }
 0x498   : > { %v5839_v10 = vadd.f32 %v6993_v56, %v5613_v13 }
 0x499   : > { %v5615_v49 = vpop.f32.mrf.mxu1 }
 0x49a   : > { %5972 = vrot.lane.b32.xlu1 %v5839_v10, %s7198_s15 }
 0x4a3   : > { %v5618_v54 = vpop.f32.mrf.mxu1 }
 0x4a4   : > { %v5844_v15 = vadd.f32 %v5843_v60, %v5618_v54 }
 0x4a5   : > { %v5620_v24 = vpop.f32.mrf.mxu1 }
 0x4a6   : > { %5974 = vrot.lane.b32.xlu0 %v5844_v15, %s7198_s15 }
 0x4af   : > { %v5623_v25 = vpop.f32.mrf.mxu1 }
 0x4b0   : > { %v5849_v39 = vadd.f32 %v6996_v18, %v5623_v25 }
 0x4b1   : > { %v5625_v28 = vpop.f32.mrf.mxu1 }
 0x4b2   : > { %5976 = vrot.lane.b32.xlu1 %v5849_v39, %s7198_s15 }
 0x4bb   : > { %v5628_v12 = vpop.f32.mrf.mxu1 }
 0x4bc   : > { %v5854_v14 = vadd.f32 %v5853_v36, %v5628_v12 }
 0x4bd   : > { %v5630_v4 = vpop.f32.mrf.mxu1 }
 0x4be   : > { %5978 = vrot.lane.b32.xlu0 %v5854_v14, %s7198_s15 }
 0x4c7   : > { %v5633_v9 = vpop.f32.mrf.mxu1 }
 0x4c8   : > { %v5859_v6 = vadd.f32 %v6999_v32, %v5633_v9 }
 0x4c9   : > { %v5635_v43 = vpop.f32.mrf.mxu1 }
 0x4ca   : > { %5980 = vrot.lane.b32.xlu1 %v5859_v6, %s7198_s15 }
 0x4d3   : > { %v5638_v59 = vpop.f32.mrf.mxu1 }
 0x4d4   : > { %v5864_v1 = vadd.f32 %v5863_v53, %v5638_v59 }
 0x4d5   : > { %v5640_v46 = vpop.f32.mrf.mxu1 }
 0x4d6   : > { %5982 = vrot.lane.b32.xlu0 %v5864_v1, %s7198_s15 }
 0x4d8   : > { %v5941_v58 = vpop.permute.xlu1 %5940 }
 0x4d9   : > { %6034 = vst.msk [vmem:[#allocation5 + $0x18] sm:$0xff] %vm6030_vm15, %v5941_v58 }
 0x4da   : > { %v5939_v19 = vpop.permute.xlu0 %5938 }
 0x4db   : > { %6033 = vst.msk [vmem:[#allocation5 + $0x10] sm:$0xff] %vm6030_vm15, %v5939_v19 }
 0x4dc   : > { %v5945_v30 = vpop.permute.xlu1 %5944 }
 0x4dd   : > { %6036 = vst.msk [vmem:[#allocation5 + $0x28] sm:$0xff] %vm6030_vm15, %v5945_v30 }
 0x4de   : > { %v5943_v42 = vpop.permute.xlu0 %5942 }
 0x4df   : > { %6035 = vst.msk [vmem:[#allocation5 + $0x20] sm:$0xff] %vm6030_vm15, %v5943_v42  ;;  %v5643_v37 = vpop.f32.mrf.mxu1 }
 0x4e0   : > { %v5869_v3 = vadd.f32 %v7002_v50, %v5643_v37  ;;  %v5949_v11 = vpop.permute.xlu1 %5948  ;;  %v6066_v55 = vld [vmem:[#allocation5 + $0x18] sm:$0xff] }
 0x4e1   : > { %6038 = vst.msk [vmem:[#allocation5 + $0x38] sm:$0xff] %vm6030_vm15, %v5949_v11  ;;  %v5645_v48 = vpop.f32.mrf.mxu1  ;;  %v6105_v22 = vadd.f32 %v10244_v8, %v6066_v55 }
 0x4e2   : > { %5984 = vrot.lane.b32.xlu1 %v5869_v3, %s7198_s15  ;;  %v5947_v2 = vpop.permute.xlu0 %5946  ;;  %v6065_v5 = vld [vmem:[#allocation5 + $0x10] sm:$0xff] }
 0x4e3   : > { %6037 = vst.msk [vmem:[#allocation5 + $0x30] sm:$0xff] %vm6030_vm15, %v5947_v2  ;;  %v6104_v44 = vadd.f32 %v10244_v8, %v6065_v5  ;;  %v6137_v35 = vmax.f32 %v6105_v22, 0.0  ;;  %v7008_v5 = vpop.f32.mrf.mxu0 }
 0x4e4   : > { %v5953_v41 = vpop.permute.xlu1 %5952  ;;  %v6068_v51 = vld [vmem:[#allocation5 + $0x28] sm:$0xff] }
 0x4e5   : > { %6040 = vst.msk [vmem:[#allocation5 + $0x48] sm:$0xff] %vm6030_vm15, %v5953_v41  ;;  %v6136_v27 = vmax.f32 %v6104_v44, 0.0  ;;  %v6107_v61 = vadd.f32 %v10244_v8, %v6068_v51 }
 0x4e6   : > { %v5951_v34 = vpop.permute.xlu0 %5950  ;;  %v6067_v57 = vld [vmem:[#allocation5 + $0x20] sm:$0xff] }
 0x4e7   : > { %6039 = vst.msk [vmem:[#allocation5 + $0x40] sm:$0xff] %vm6030_vm15, %v5951_v34  ;;  %7023 = vmatprep.mubr.msk.f32.mxu1 %vm223_vm0, %v6136_v27  ;;  %v6106_v45 = vadd.f32 %v10244_v8, %v6067_v57  ;;  %v6139_v20 = vmax.f32 %v6107_v61, 0.0  ;;  %v5883_v34 = vpop.f32.mrf.mxu0 }
 0x4e8   : > { %v5957_v52 = vpop.permute.xlu1 %5956  ;;  %7024 = vmatmul.mubr.msk.f32.vlgmr.msra.gmra.mxu1 %vm223_vm0, %v6137_v35  ;;  %v6070_v7 = vld [vmem:[#allocation5 + $0x38] sm:$0xff] }
 0x4e9   : > { %6042 = vst.msk [vmem:[#allocation5 + $0x58] sm:$0xff] %vm6030_vm15, %v5957_v52  ;;  %v6138_v31 = vmax.f32 %v6106_v45, 0.0  ;;  %v6109_v29 = vadd.f32 %v10244_v8, %v6070_v7  ;;  %v5744_v52 = vadd.f32 %v10190_v38, %v9696_v0  ;;  %v7011_v38 = vpop.f32.mrf.mxu0 }
 0x4ea   : > { %v5955_v40 = vpop.permute.xlu0 %5954  ;;  %v6069_v16 = vld [vmem:[#allocation5 + $0x30] sm:$0xff] }
 0x4eb   : > { %6041 = vst.msk [vmem:[#allocation5 + $0x50] sm:$0xff] %vm6030_vm15, %v5955_v40  ;;  %v5648_v56 = vpop.f32.mrf.mxu1  ;;  %7026 = vmatprep.mubr.msk.f32.mxu1 %vm223_vm0, %v6138_v31  ;;  %v6108_v26 = vadd.f32 %v10244_v8, %v6069_v16  ;;  %v6141_v18 = vmax.f32 %v6109_v29, 0.0 }
 0x4ec   : > { %v5874_v47 = vadd.f32 %v5873_v62, %v5648_v56  ;;  %v5961_v21 = vpop.permute.xlu1 %5960  ;;  %7027 = vmatmul.mubr.msk.f32.gmra.mxu1 %vm223_vm0, %v6139_v20  ;;  %v6072_v63 = vld [vmem:[#allocation5 + $0x48] sm:$0xff]  ;;  %v5749_v20 = vadd.f32 %v10185_v17, %v9746_v33  ;;  %v5893_v33 = vpop.f32.mrf.mxu0 }
 0x4ed   : > { %6044 = vst.msk [vmem:[#allocation5 + $0x68] sm:$0xff] %vm6030_vm15, %v5961_v21  ;;  %v5650_v13 = vpop.f32.mrf.mxu1  ;;  %v6140_v10 = vmax.f32 %v6108_v26, 0.0  ;;  %v6111_v54 = vadd.f32 %v10244_v8, %v6072_v63 }
 0x4ee   : > { %5986 = vrot.lane.b32.xlu0 %v5874_v47, %s7198_s15  ;;  %v5959_v49 = vpop.permute.xlu0 %5958  ;;  %v6071_v60 = vld [vmem:[#allocation5 + $0x40] sm:$0xff] }
 0x4ef   : > { %6043 = vst.msk [vmem:[#allocation5 + $0x60] sm:$0xff] %vm6030_vm15, %v5959_v49  ;;  %7029 = vmatprep.mubr.msk.f32.mxu1 %vm223_vm0, %v6140_v10  ;;  %v6110_v15 = vadd.f32 %v10244_v8, %v6071_v60  ;;  %v6143_v32 = vmax.f32 %v6111_v54, 0.0 }
 0x4f0   : > { %v5965_v24 = vpop.permute.xlu1 %5964  ;;  %7030 = vmatmul.mubr.msk.f32.gmra.mxu1 %vm223_vm0, %v6141_v18  ;;  %v6074_v25 = vld [vmem:[#allocation5 + $0x58] sm:$0xff] }
 0x4f1   : > { %6046 = vst.msk [vmem:[#allocation5 + $0x78] sm:$0xff] %vm6030_vm15, %v5965_v24  ;;  %v6142_v39 = vmax.f32 %v6110_v15, 0.0  ;;  %v6113_v12 = vadd.f32 %v10244_v8, %v6074_v25 }
 0x4f2   : > { %v5963_v28 = vpop.permute.xlu0 %5962  ;;  %v6073_v36 = vld [vmem:[#allocation5 + $0x50] sm:$0xff] }
 0x4f3   : > { %6045 = vst.msk [vmem:[#allocation5 + $0x70] sm:$0xff] %vm6030_vm15, %v5963_v28  ;;  %7032 = vmatprep.mubr.msk.f32.mxu1 %vm223_vm0, %v6142_v39  ;;  %v6112_v14 = vadd.f32 %v10244_v8, %v6073_v36  ;;  %v6145_v50 = vmax.f32 %v6113_v12, 0.0 }
 0x4f4   : > { %v5969_v4 = vpop.permute.xlu1 %5968  ;;  %7033 = vmatmul.mubr.msk.f32.gmra.mxu1 %vm223_vm0, %v6143_v32  ;;  %v6076_v9 = vld [vmem:[#allocation5 + $0x68] sm:$0xff] }
 0x4f5   : > { %6048 = vst.msk [vmem:[#allocation5 + $0x88] sm:$0xff] %vm6030_vm15, %v5969_v4  ;;  %v6144_v6 = vmax.f32 %v6112_v14, 0.0  ;;  %v6115_v59 = vadd.f32 %v10244_v8, %v6076_v9 }
 0x4f6   : > { %v5967_v43 = vpop.permute.xlu0 %5966  ;;  %v6075_v53 = vld [vmem:[#allocation5 + $0x60] sm:$0xff] }
 0x4f7   : > { %6047 = vst.msk [vmem:[#allocation5 + $0x80] sm:$0xff] %vm6030_vm15, %v5967_v43  ;;  %v5653_v1 = vpop.f32.mrf.mxu1  ;;  %7035 = vmatprep.mubr.msk.f32.mxu1 %vm223_vm0, %v6144_v6  ;;  %v6114_v46 = vadd.f32 %v10244_v8, %v6075_v53  ;;  %v6147_v37 = vmax.f32 %v6115_v59, 0.0 }
 0x4f8   : > { %v5879_v58 = vadd.f32 %v7005_v23, %v5653_v1  ;;  %7036 = vmatmul.mubr.msk.f32.gmra.mxu1 %vm223_vm0, %v6145_v50  ;;  %v6078_v19 = vld [vmem:[#allocation5 + $0x78] sm:$0xff] }
 0x4f9   : > { %v5655_v30 = vpop.f32.mrf.mxu1  ;;  %v6146_v42 = vmax.f32 %v6114_v46, 0.0  ;;  %v6117_v11 = vadd.f32 %v10244_v8, %v6078_v19 }
 0x4fa   : > { %5988 = vrot.lane.b32.xlu1 %v5879_v58, %s7198_s15  ;;  %v6077_v3 = vld [vmem:[#allocation5 + $0x70] sm:$0xff] }
 0x4fb   : > { %7038 = vmatprep.mubr.msk.f32.mxu1 %vm223_vm0, %v6146_v42  ;;  %v6116_v55 = vadd.f32 %v10244_v8, %v6077_v3  ;;  %v6149_v22 = vmax.f32 %v6117_v11, 0.0 }
 0x4fc   : > { %7039 = vmatmul.mubr.msk.f32.gmra.mxu1 %vm223_vm0, %v6147_v37  ;;  %v6080_v48 = vld [vmem:[#allocation5 + $0x88] sm:$0xff] }
 0x4fd   : > { %v6148_v2 = vmax.f32 %v6116_v55, 0.0  ;;  %v6119_v41 = vadd.f32 %v10244_v8, %v6080_v48 }
 0x4fe   : > { %v6079_v44 = vld [vmem:[#allocation5 + $0x80] sm:$0xff] }
 0x4ff   : > { %7041 = vmatprep.mubr.msk.f32.mxu1 %vm223_vm0, %v6148_v2  ;;  %v6118_v51 = vadd.f32 %v10244_v8, %v6079_v44  ;;  %v6151_v57 = vmax.f32 %v6119_v41, 0.0 }
 0x500   : > { %7042 = vmatmul.mubr.msk.f32.gmra.mxu1 %vm223_vm0, %v6149_v22  ;;  %v5971_v27 = vpop.permute.xlu0 %5970 }
 0x501   : > { %6049 = vst.msk [vmem:[#allocation5 + $0x90] sm:$0xff] %vm6030_vm15, %v5971_v27  ;;  %v6150_v35 = vmax.f32 %v6118_v51, 0.0 }
 0x503   : > { %v5658_v61 = vpop.f32.mrf.mxu1  ;;  %7044 = vmatprep.mubr.msk.f32.mxu1 %vm223_vm0, %v6150_v35 }
 0x504   : > { %v5884_v23 = vadd.f32 %v5883_v34, %v5658_v61  ;;  %7045 = vmatmul.mubr.msk.f32.gmra.mxu1 %vm223_vm0, %v6151_v57 }
 0x505   : > { %v5660_v45 = vpop.f32.mrf.mxu1 }
 0x506   : > { %5990 = vrot.lane.b32.xlu0 %v5884_v23, %s7198_s15 }
 0x508   : > { %v6081_v7 = vld [vmem:[#allocation5 + $0x90] sm:$0xff] }
 0x509   : > { %v6120_v31 = vadd.f32 %v10244_v8, %v6081_v7 }
 0x50a   : > { %5934 = vrot.lane.b32.xlu0 %v5744_v52, %s7198_s15 }
 0x50b   : > { %v6152_v40 = vmax.f32 %v6120_v31, 0.0 }
 0x50c   : > { %v5973_v16 = vpop.permute.xlu1 %5972 }
 0x50d   : > { %6050 = vst.msk [vmem:[#allocation5 + $0x98] sm:$0xff] %vm6030_vm15, %v5973_v16  ;;  %7047 = vmatprep.mubr.msk.f32.mxu1 %vm223_vm0, %v6152_v40 }
 0x50e   : > { %5936 = vrot.lane.b32.xlu0 %v5749_v20, %s7198_s15 }
 0x50f   : > { %v5663_v29 = vpop.f32.mrf.mxu1 }
 0x510   : > { %v5889_v62 = vadd.f32 %v7008_v5, %v5663_v29 }
 0x511   : > { %v5665_v56 = vpop.f32.mrf.mxu1 }
 0x512   : > { %5992 = vrot.lane.b32.xlu1 %v5889_v62, %s7198_s15 }
 0x514   : > { %v6082_v0 = vld [vmem:[#allocation5 + $0x98] sm:$0xff] }
 0x515   : > { %v6121_v26 = vadd.f32 %v10244_v8, %v6082_v0 }
 0x517   : > { %v6153_v47 = vmax.f32 %v6121_v26, 0.0 }
 0x518   : > { %v5975_v21 = vpop.permute.xlu0 %5974 }
 0x519   : > { %6051 = vst.msk [vmem:[#allocation5 + $0xa0] sm:$0xff] %vm6030_vm15, %v5975_v21  ;;  %7048 = vmatmul.mubr.msk.f32.gmra.mxu1 %vm223_vm0, %v6153_v47  ;;  %v10354_v47 = vld [vmem:[%s10512_s4] ss:$0 sm:$0xff] }
 0x51b   : > { %v5668_v17 = vpop.f32.mrf.mxu1 }
 0x51c   : > { %v5894_v63 = vadd.f32 %v5893_v33, %v5668_v17 }
 0x51d   : > { %v5670_v13 = vpop.f32.mrf.mxu1 }
 0x51e   : > { %5994 = vrot.lane.b32.xlu1 %v5894_v63, %s7198_s15 }
 0x520   : > { %v6083_v10 = vld [vmem:[#allocation5 + $0xa0] sm:$0xff] }
 0x521   : > { %v6122_v49 = vadd.f32 %v10244_v8, %v6083_v10 }
 0x523   : > { %v6154_v18 = vmax.f32 %v6122_v49, 0.0 }
 0x524   : > { %v5977_v60 = vpop.permute.xlu1 %5976 }
 0x525   : > { %6052 = vst.msk [vmem:[#allocation5 + $0xa8] sm:$0xff] %vm6030_vm15, %v5977_v60  ;;  %7050 = vmatprep.mubr.msk.f32.mxu1 %vm223_vm0, %v6154_v18 }
 0x527   : > { %v5673_v54 = vpop.f32.mrf.mxu1 }
 0x528   : > { %v5899_v15 = vadd.f32 %v7011_v38, %v5673_v54 }
 0x529   : > { %v5675_v24 = vpop.f32.mrf.mxu1 }
 0x52a   : > { %5996 = vrot.lane.b32.xlu1 %v5899_v15, %s7198_s15  ;;  %s7138_s15 = scalar_lea.vmem %s7137_s14, 8192 }
 0x52b   : > { %p7140_p1 = scmp.lt.s32.totalorder %s7138_s15, %s7132_s12 }
 0x52c   : > { %v6084_v25 = vld [vmem:[#allocation5 + $0xa8] sm:$0xff] }
 0x52d   : > { %v6123_v39 = vadd.f32 %v10244_v8, %v6084_v25  ;;  %p7141_p2 = por %p7140_p1, %p7139_p0 }
 0x52f   : > { %v6155_v28 = vmax.f32 %v6123_v39, 0.0  ;;  %p7142_p3 = pnand %p7141_p2, %p7135_p13 }
 0x530   : > { %v5979_v32 = vpop.permute.xlu0 %5978 }
 0x531   : > { %6053 = vst.msk [vmem:[#allocation5 + $0xb0] sm:$0xff] %vm6030_vm15, %v5979_v32  ;;  %7051 = vmatmul.mubr.msk.f32.gmra.mxu1 %vm223_vm0, %v6155_v28 }
 0x538   : > { %v6085_v36 = vld [vmem:[#allocation5 + $0xb0] sm:$0xff] }
 0x539   : > { %v6124_v12 = vadd.f32 %v10244_v8, %v6085_v36 }
 0x53b   : > { %v6156_v14 = vmax.f32 %v6124_v12, 0.0 }
 0x53c   : > { %v5981_v4 = vpop.permute.xlu1 %5980 }
 0x53d   : > { %6054 = vst.msk [vmem:[#allocation5 + $0xb8] sm:$0xff] %vm6030_vm15, %v5981_v4  ;;  %7053 = vmatprep.mubr.msk.f32.mxu1 %vm223_vm0, %v6156_v14 }
 0x544   : > { %v6086_v9 = vld [vmem:[#allocation5 + $0xb8] sm:$0xff] }
 0x545   : > { %v6125_v6 = vadd.f32 %v10244_v8, %v6086_v9 }
 0x547   : > { %v6157_v43 = vmax.f32 %v6125_v6, 0.0 }
 0x548   : > { %v5983_v50 = vpop.permute.xlu0 %5982 }
 0x549   : > { %6055 = vst.msk [vmem:[#allocation5 + $0xc0] sm:$0xff] %vm6030_vm15, %v5983_v50  ;;  %7054 = vmatmul.mubr.msk.f32.gmra.mxu1 %vm223_vm0, %v6157_v43 }
 0x550   : > { %v6087_v53 = vld [vmem:[#allocation5 + $0xc0] sm:$0xff] }
 0x551   : > { %v6126_v59 = vadd.f32 %v10244_v8, %v6087_v53 }
 0x553   : > { %v6158_v1 = vmax.f32 %v6126_v59, 0.0 }
 0x554   : > { %v5985_v46 = vpop.permute.xlu1 %5984 }
 0x555   : > { %6056 = vst.msk [vmem:[#allocation5 + $0xc8] sm:$0xff] %vm6030_vm15, %v5985_v46  ;;  %7056 = vmatprep.mubr.msk.f32.mxu1 %vm223_vm0, %v6158_v1 }
 0x55c   : > { %v6088_v58 = vld [vmem:[#allocation5 + $0xc8] sm:$0xff] }
 0x55d   : > { %v6127_v19 = vadd.f32 %v10244_v8, %v6088_v58 }
 0x55f   : > { %v6159_v30 = vmax.f32 %v6127_v19, 0.0 }
 0x560   : > { %v5987_v42 = vpop.permute.xlu0 %5986 }
 0x561   : > { %6057 = vst.msk [vmem:[#allocation5 + $0xd0] sm:$0xff] %vm6030_vm15, %v5987_v42  ;;  %7057 = vmatmul.mubr.msk.f32.gmra.mxu1 %vm223_vm0, %v6159_v30 }
 0x568   : > { %v6089_v37 = vld [vmem:[#allocation5 + $0xd0] sm:$0xff] }
 0x569   : > { %v6128_v3 = vadd.f32 %v10244_v8, %v6089_v37 }
 0x56b   : > { %v6160_v11 = vmax.f32 %v6128_v3, 0.0 }
 0x56c   : > { %v5989_v55 = vpop.permute.xlu1 %5988 }
 0x56d   : > { %6058 = vst.msk [vmem:[#allocation5 + $0xd8] sm:$0xff] %vm6030_vm15, %v5989_v55  ;;  %7059 = vmatprep.mubr.msk.f32.mxu1 %vm223_vm0, %v6160_v11 }
 0x574   : > { %v6090_v48 = vld [vmem:[#allocation5 + $0xd8] sm:$0xff] }
 0x575   : > { %v6129_v2 = vadd.f32 %v10244_v8, %v6090_v48 }
 0x577   : > { %v6161_v5 = vmax.f32 %v6129_v2, 0.0 }
 0x578   : > { %v5991_v22 = vpop.permute.xlu0 %5990 }
 0x579   : > { %6059 = vst.msk [vmem:[#allocation5 + $0xe0] sm:$0xff] %vm6030_vm15, %v5991_v22  ;;  %7060 = vmatmul.mubr.msk.f32.gmra.mxu1 %vm223_vm0, %v6161_v5 }
 0x57c   : > { %v5935_v44 = vpop.permute.xlu0 %5934 }
 0x57d   : > { %6031 = vst.msk [vmem:[#allocation5] sm:$0xff] %vm6030_vm15, %v5935_v44 }
 0x580   : > { %v5937_v41 = vpop.permute.xlu0 %5936  ;;  %v6091_v51 = vld [vmem:[#allocation5 + $0xe0] sm:$0xff] }
 0x581   : > { %6032 = vst.msk [vmem:[#allocation5 + $0x8] sm:$0xff] %vm6030_vm15, %v5937_v41  ;;  %v6130_v27 = vadd.f32 %v10244_v8, %v6091_v51 }
 0x583   : > { %v6162_v34 = vmax.f32 %v6130_v27, 0.0 }
 0x584   : > { %v5993_v35 = vpop.permute.xlu1 %5992  ;;  %v6063_v57 = vld [vmem:[#allocation5] sm:$0xff] }
 0x585   : > { %6060 = vst.msk [vmem:[#allocation5 + $0xe8] sm:$0xff] %vm6030_vm15, %v5993_v35  ;;  %7062 = vmatprep.mubr.msk.f32.mxu1 %vm223_vm0, %v6162_v34  ;;  %v6102_v61 = vadd.f32 %v10244_v8, %v6063_v57 }
 0x587   : > { %v6134_v23 = vmax.f32 %v6102_v61, 0.0 }
 0x588   : > { %v6064_v45 = vld [vmem:[#allocation5 + $0x8] sm:$0xff] }
 0x589   : > { %7020 = vmatprep.mubr.msk.f32.mxu0 %vm223_vm0, %v6134_v23  ;;  %v6103_v52 = vadd.f32 %v10244_v8, %v6064_v45 }
 0x58b   : > { %v6135_v7 = vmax.f32 %v6103_v52, 0.0 }
 0x58c   : > { %v6092_v31 = vld [vmem:[#allocation5 + $0xe8] sm:$0xff] }
 0x58d   : > { %7021 = vmatmul.mubr.msk.f32.vlgmr.msra.gmra.mxu0 %vm223_vm0, %v6135_v7  ;;  %v6131_v40 = vadd.f32 %v10244_v8, %v6092_v31 }
 0x58f   : > { %v6163_v20 = vmax.f32 %v6131_v40, 0.0 }
 0x590   : > { %v5995_v16 = vpop.permute.xlu1 %5994 }
 0x591   : > { %6061 = vst.msk [vmem:[#allocation5 + $0xf0] sm:$0xff] %vm6030_vm15, %v5995_v16  ;;  %7063 = vmatmul.mubr.msk.f32.gmra.mxu1 %vm223_vm0, %v6163_v20 }
 0x598   : > { %v6093_v29 = vld [vmem:[#allocation5 + $0xf0] sm:$0xff] }
 0x599   : > { %v6132_v62 = vadd.f32 %v10244_v8, %v6093_v29 }
 0x59b   : > { %v6164_v56 = vmax.f32 %v6132_v62, 0.0 }
 0x59c   : > { %v5997_v0 = vpop.permute.xlu1 %5996 }
 0x59d   : > { %6062 = vst.msk [vmem:[#allocation5 + $0xf8] sm:$0xff] %vm6030_vm15, %v5997_v0  ;;  %7065 = vmatprep.mubr.msk.f32.mxu1 %vm223_vm0, %v6164_v56 }
 0x5a4   : > { %v6094_v38 = vld [vmem:[#allocation5 + $0xf8] sm:$0xff] }
 0x5a5   : > { %v6133_v26 = vadd.f32 %v10244_v8, %v6094_v38 }
 0x5a7   : > { %v6165_v21 = vmax.f32 %v6133_v26, 0.0 }
 0x5a8   : > { %v7025_v33 = vpop.f32.mrf.mxu1 }
 0x5a9   : > { %v6355_v17 = vadd.f32 %v7025_v33, %v10354_v47  ;;  %7066 = vmatmul.mubr.msk.f32.gmra.mxu1 %vm223_vm0, %v6165_v21 }
 0x5aa   : > { %v6349_v63 = vpop.f32.mrf.mxu1 }
 0x5ab   : > { %v6501_v13 = vmax.f32 %v6355_v17, 0.0  ;;  %v6350_v10 = vadd.f32 %v10354_v47, %v6349_v63 }
 0x5ac   : > { %v7028_v49 = vpop.f32.mrf.mxu1 }
 0x5ad   : > { %6533 = vst.msk [vmem:[%s10361_s9 + $0x18] sm:$0xff] %vm223_vm0, %v6501_v13  ;;  %v6500_v8 = vmax.f32 %v6350_v10, 0.0  ;;  %v6365_v18 = vadd.f32 %v7028_v49, %v10354_v47 }
 0x5ae   : > { %v6359_v60 = vpop.f32.mrf.mxu1 }
 0x5af   : > { %6532 = vst.msk [vmem:[%s10361_s9 + $0x10] sm:$0xff] %vm223_vm0, %v6500_v8  ;;  %v6503_v54 = vmax.f32 %v6365_v18, 0.0  ;;  %v6360_v15 = vadd.f32 %v10354_v47, %v6359_v60 }
 0x5b0   : > { %v7031_v24 = vpop.f32.mrf.mxu1 }
 0x5b1   : > { %6535 = vst.msk [vmem:[%s10361_s9 + $0x28] sm:$0xff] %vm223_vm0, %v6503_v54  ;;  %v6502_v25 = vmax.f32 %v6360_v15, 0.0  ;;  %v6375_v39 = vadd.f32 %v7031_v24, %v10354_v47 }
 0x5b2   : > { %v6369_v28 = vpop.f32.mrf.mxu1 }
 0x5b3   : > { %6534 = vst.msk [vmem:[%s10361_s9 + $0x20] sm:$0xff] %vm223_vm0, %v6502_v25  ;;  %v6505_v32 = vmax.f32 %v6375_v39, 0.0  ;;  %v6370_v36 = vadd.f32 %v10354_v47, %v6369_v28 }
 0x5b4   : > { %v7034_v12 = vpop.f32.mrf.mxu1 }
 0x5b5   : > { %6537 = vst.msk [vmem:[%s10361_s9 + $0x38] sm:$0xff] %vm223_vm0, %v6505_v32  ;;  %v6504_v14 = vmax.f32 %v6370_v36, 0.0  ;;  %v6385_v4 = vadd.f32 %v7034_v12, %v10354_v47 }
 0x5b6   : > { %v6379_v9 = vpop.f32.mrf.mxu1 }
 0x5b7   : > { %6536 = vst.msk [vmem:[%s10361_s9 + $0x30] sm:$0xff] %vm223_vm0, %v6504_v14  ;;  %v6507_v6 = vmax.f32 %v6385_v4, 0.0  ;;  %v6380_v43 = vadd.f32 %v10354_v47, %v6379_v9 }
 0x5b8   : > { %v7037_v50 = vpop.f32.mrf.mxu1 }
 0x5b9   : > { %6539 = vst.msk [vmem:[%s10361_s9 + $0x48] sm:$0xff] %vm223_vm0, %v6507_v6  ;;  %v6506_v53 = vmax.f32 %v6380_v43, 0.0  ;;  %v6395_v59 = vadd.f32 %v7037_v50, %v10354_v47 }
 0x5ba   : > { %v6389_v1 = vpop.f32.mrf.mxu1 }
 0x5bb   : > { %6538 = vst.msk [vmem:[%s10361_s9 + $0x40] sm:$0xff] %vm223_vm0, %v6506_v53  ;;  %v6509_v46 = vmax.f32 %v6395_v59, 0.0  ;;  %v6390_v58 = vadd.f32 %v10354_v47, %v6389_v1 }
 0x5bc   : > { %v7040_v19 = vpop.f32.mrf.mxu1 }
 0x5bd   : > { %6541 = vst.msk [vmem:[%s10361_s9 + $0x58] sm:$0xff] %vm223_vm0, %v6509_v46  ;;  %v6508_v30 = vmax.f32 %v6390_v58, 0.0  ;;  %v6405_v42 = vadd.f32 %v7040_v19, %v10354_v47 }
 0x5be   : > { %v6399_v37 = vpop.f32.mrf.mxu1 }
 0x5bf   : > { %6540 = vst.msk [vmem:[%s10361_s9 + $0x50] sm:$0xff] %vm223_vm0, %v6508_v30  ;;  %v6511_v3 = vmax.f32 %v6405_v42, 0.0  ;;  %v6400_v11 = vadd.f32 %v10354_v47, %v6399_v37 }
 0x5c0   : > { %v7043_v55 = vpop.f32.mrf.mxu1 }
 0x5c1   : > { %6543 = vst.msk [vmem:[%s10361_s9 + $0x68] sm:$0xff] %vm223_vm0, %v6511_v3  ;;  %v6510_v48 = vmax.f32 %v6400_v11, 0.0  ;;  %v6415_v2 = vadd.f32 %v7043_v55, %v10354_v47 }
 0x5c2   : > { %v6409_v5 = vpop.f32.mrf.mxu1 }
 0x5c3   : > { %6542 = vst.msk [vmem:[%s10361_s9 + $0x60] sm:$0xff] %vm223_vm0, %v6510_v48  ;;  %v6513_v22 = vmax.f32 %v6415_v2, 0.0  ;;  %v6410_v44 = vadd.f32 %v10354_v47, %v6409_v5 }
 0x5c4   : > { %v7046_v41 = vpop.f32.mrf.mxu1 }
 0x5c5   : > { %6545 = vst.msk [vmem:[%s10361_s9 + $0x78] sm:$0xff] %vm223_vm0, %v6513_v22  ;;  %v6512_v51 = vmax.f32 %v6410_v44, 0.0  ;;  %v6425_v27 = vadd.f32 %v7046_v41, %v10354_v47 }
 0x5c6   : > { %v6419_v34 = vpop.f32.mrf.mxu1 }
 0x5c7   : > { %6544 = vst.msk [vmem:[%s10361_s9 + $0x70] sm:$0xff] %vm223_vm0, %v6512_v51  ;;  %v6515_v35 = vmax.f32 %v6425_v27, 0.0  ;;  %v6420_v57 = vadd.f32 %v10354_v47, %v6419_v34 }
 0x5c9   : > { %6547 = vst.msk [vmem:[%s10361_s9 + $0x88] sm:$0xff] %vm223_vm0, %v6515_v35  ;;  %v6514_v61 = vmax.f32 %v6420_v57, 0.0 }
 0x5cb   : > { %6546 = vst.msk [vmem:[%s10361_s9 + $0x80] sm:$0xff] %vm223_vm0, %v6514_v61 }
 0x5d9   : > { %v7049_v23 = vpop.f32.mrf.mxu1 }
 0x5da   : > { %v6435_v45 = vadd.f32 %v7049_v23, %v10354_v47 }
 0x5db   : > { %v6429_v52 = vpop.f32.mrf.mxu1 }
 0x5dc   : > { %v6517_v7 = vmax.f32 %v6435_v45, 0.0  ;;  %v6430_v31 = vadd.f32 %v10354_v47, %v6429_v52 }
 0x5de   : > { %6549 = vst.msk [vmem:[%s10361_s9 + $0x98] sm:$0xff] %vm223_vm0, %v6517_v7  ;;  %v6516_v40 = vmax.f32 %v6430_v31, 0.0 }
 0x5e0   : > { %6548 = vst.msk [vmem:[%s10361_s9 + $0x90] sm:$0xff] %vm223_vm0, %v6516_v40 }
 0x5f1   : > { %v7052_v20 = vpop.f32.mrf.mxu1 }
 0x5f2   : > { %v6445_v16 = vadd.f32 %v7052_v20, %v10354_v47 }
 0x5f3   : > { %v6439_v29 = vpop.f32.mrf.mxu1 }
 0x5f4   : > { %v6519_v62 = vmax.f32 %v6445_v16, 0.0  ;;  %v6440_v56 = vadd.f32 %v10354_v47, %v6439_v29 }
 0x5f6   : > { %6551 = vst.msk [vmem:[%s10361_s9 + $0xa8] sm:$0xff] %vm223_vm0, %v6519_v62  ;;  %v6518_v0 = vmax.f32 %v6440_v56, 0.0 }
 0x5f8   : > { %6550 = vst.msk [vmem:[%s10361_s9 + $0xa0] sm:$0xff] %vm223_vm0, %v6518_v0 }
 0x609   : > { %v7055_v38 = vpop.f32.mrf.mxu1 }
 0x60a   : > { %v6455_v26 = vadd.f32 %v7055_v38, %v10354_v47 }
 0x60b   : > { %v6449_v21 = vpop.f32.mrf.mxu1 }
 0x60c   : > { %v6521_v33 = vmax.f32 %v6455_v26, 0.0  ;;  %v6450_v17 = vadd.f32 %v10354_v47, %v6449_v21 }
 0x60e   : > { %6553 = vst.msk [vmem:[%s10361_s9 + $0xb8] sm:$0xff] %vm223_vm0, %v6521_v33  ;;  %v6520_v63 = vmax.f32 %v6450_v17, 0.0 }
 0x610   : > { %6552 = vst.msk [vmem:[%s10361_s9 + $0xb0] sm:$0xff] %vm223_vm0, %v6520_v63 }
 0x621   : > { %v7058_v13 = vpop.f32.mrf.mxu1 }
 0x622   : > { %v6465_v10 = vadd.f32 %v7058_v13, %v10354_v47 }
 0x623   : > { %v6459_v49 = vpop.f32.mrf.mxu1 }
 0x624   : > { %v6523_v8 = vmax.f32 %v6465_v10, 0.0  ;;  %v6460_v18 = vadd.f32 %v10354_v47, %v6459_v49 }
 0x626   : > { %6555 = vst.msk [vmem:[%s10361_s9 + $0xc8] sm:$0xff] %vm223_vm0, %v6523_v8  ;;  %v6522_v60 = vmax.f32 %v6460_v18, 0.0 }
 0x628   : > { %6554 = vst.msk [vmem:[%s10361_s9 + $0xc0] sm:$0xff] %vm223_vm0, %v6522_v60 }
 0x639   : > { %v7061_v54 = vpop.f32.mrf.mxu1 }
 0x63a   : > { %v6475_v15 = vadd.f32 %v7061_v54, %v10354_v47 }
 0x63b   : > { %v6469_v24 = vpop.f32.mrf.mxu1 }
 0x63c   : > { %v6525_v25 = vmax.f32 %v6475_v15, 0.0  ;;  %v6470_v39 = vadd.f32 %v10354_v47, %v6469_v24 }
 0x63e   : > { %6557 = vst.msk [vmem:[%s10361_s9 + $0xd8] sm:$0xff] %vm223_vm0, %v6525_v25  ;;  %v6524_v28 = vmax.f32 %v6470_v39, 0.0 }
 0x640   : > { %6556 = vst.msk [vmem:[%s10361_s9 + $0xd0] sm:$0xff] %vm223_vm0, %v6524_v28 }
 0x64d   : > { %v7022_v32 = vpop.f32.mrf.mxu0 }
 0x64e   : > { %v6345_v36 = vadd.f32 %v7022_v32, %v10354_v47 }
 0x64f   : > { %v6339_v12 = vpop.f32.mrf.mxu0 }
 0x650   : > { %v6499_v14 = vmax.f32 %v6345_v36, 0.0  ;;  %v6340_v4 = vadd.f32 %v10354_v47, %v6339_v12 }
 0x651   : > { %v7064_v9 = vpop.f32.mrf.mxu1 }
 0x652   : > { %6531 = vst.msk [vmem:[%s10361_s9 + $0x8] sm:$0xff] %vm223_vm0, %v6499_v14  ;;  %v6498_v6 = vmax.f32 %v6340_v4, 0.0  ;;  %v6485_v43 = vadd.f32 %v7064_v9, %v10354_v47 }
 0x653   : > { %v6479_v50 = vpop.f32.mrf.mxu1 }
 0x654   : > { %6530 = vst.msk [vmem:[%s10361_s9] sm:$0xff] %vm223_vm0, %v6498_v6  ;;  %v6527_v53 = vmax.f32 %v6485_v43, 0.0  ;;  %v6480_v59 = vadd.f32 %v10354_v47, %v6479_v50 }
 0x656   : > { %6559 = vst.msk [vmem:[%s10361_s9 + $0xe8] sm:$0xff] %vm223_vm0, %v6527_v53  ;;  %v6526_v1 = vmax.f32 %v6480_v59, 0.0 }
 0x658   : > { %6558 = vst.msk [vmem:[%s10361_s9 + $0xe0] sm:$0xff] %vm223_vm0, %v6526_v1 }
 0x669   : > { %v7067_v46 = vpop.f32.mrf.mxu1 }
 0x66a   : > { %v6495_v58 = vadd.f32 %v7067_v46, %v10354_v47 }
 0x66b   : > { %v6489_v19 = vpop.f32.mrf.mxu1 }
 0x66c   : > { %v6529_v30 = vmax.f32 %v6495_v58, 0.0  ;;  %v6490_v42 = vadd.f32 %v10354_v47, %v6489_v19 }
 0x66e   : > { %6561 = vst.msk [vmem:[%s10361_s9 + $0xf8] sm:$0xff] %vm223_vm0, %v6529_v30  ;;  %v6528_v37 = vmax.f32 %v6490_v42, 0.0 }
 0x670   : > { %6560 = vst.msk [vmem:[%s10361_s9 + $0xf0] sm:$0xff] %vm223_vm0, %v6528_v37 }
 0x671   : > { %7145 = shalt.err (!%p7142_p3)
}
 0x672   : > { %s7146_s16 = scalar_lea.hbm %s10458_s11, 4096  ;;  %s7150_s6 = scalar_lea.hbm %s10513_s5, 8192 }
 0x673   : > { %p7147_p4 = scmp.ne.s32.totalorder %s10458_s11, %s7146_s16  ;;  %p7151_p9 = scmp.lt.s32.totalorder %s10458_s11, %s10513_s5 }
 0x674   : > { %p7152_p10 = scmp.lt.s32.totalorder %s7150_s6, %s7146_s16 }
 0x675   : > { %p7148_p7 = pnand %p7147_p4, %p7270_p5 }
 0x676   : > { %p7153_p11 = por %p7152_p10, %p7151_p9 }
 0x677   : > { %p7149_p8 = pneg %p7148_p7 }
 0x679   : > { %p7154_p12 = pnand %p7153_p11, %p7149_p8 }
 0x67b   : > { %7157 = shalt.err (!%p7154_p12)
}
 0x67c   : > { %s7200_s9 = smov 128   ;;  %s7201_s23 = smov 8  }
 0x67d   : > { %7076 = dma.vmem_to_hbm [thread:$0]  (%p7270_p5), %s10460_s25, 4096, %s10458_s11, %s10468_s22, %s7200_s9, %s7200_s9, %s7201_s23  }
 0x67e PF: > { %p7082_p13 = scmp.ge.s32.totalorder %s7192_s21, 2  ;;  %s6591_s26 = sand.u32 1, %s7180_s18  }
 0x67f   : > { %s6592_s10 = scalar_lea.sflag [#allocation7], %s6591_s26 }
 0x680   : > { %p7079_p0 = pnand %p7082_p13, %p7274_p6 }
 0x682   : > { %p7080_p1 = pneg %p7079_p0 }
 0x684   : > { %7175 = dma.done.wait (%p7080_p1), %s6592_s10, 4096  }
 0x685   : > { %7177 = vsyncadd (%p7080_p1), %s6592_s10, 4294963200  ;;  %p15_p2 = scmp.ge.s32.totalorder %s7257_s24, 4   ;;  %s10574_s18 = smov %s7184_s19 }
 0x686   : > { %s10575_s19 = smov %s7188_s20  ;;  %s10576_s20 = smov %s7268_s27 }
 0x687   : > { %s10577_s21 = smov %s7257_s24  ;;  %17 = sbr.rel (!%p15_p2) target bundleno = 3 (0x3), region = 82 }
 0x68c   :  { %6597 = vsyncpa [#allocation7], 1 }
 0x68d   :  { %6599 = vsyncpa [#allocation7 + $0x1], 1 }

</bundles_post_ra>
